<compile_context>
chip_gen: v6e
topology: v6e:2x2x1
jax: 0.10.0
libtpu: 0.0.40
codegen_flags: <defaults>
</compile_context>

<pallas_src>
import jax
import jax.numpy as jnp
from jax.experimental import pallas as pl
from jax.experimental.pallas import tpu as pltpu


# ----------------------------------------------------------------------------
# In-kernel helper: valid 3x3 conv (stride 1) + bias + ReLU via ONE im2col
# matmul.  x_hwc is a fp32 (H, W, Cin) value; w_ref is a (9*Cin, Cout) bf16
# ref; b_ref is a (1, Cout) fp32 ref.  Returns a lane-dense (Ho*Wo, Cout)
# fp32 slab and the output spatial shape.
# ----------------------------------------------------------------------------
def _conv3x3_relu(x_hwc, w_ref, b_ref):
    H, W, Cin = x_hwc.shape
    Ho, Wo = H - 2, W - 2
    # Build the (Ho*Wo, 9*Cin) patch matrix once (taps ordered kh, kw, cin to
    # match the flattened HWIO weight), then run a single deep-K MXU matmul.
    cols = [
        x_hwc[kh:kh + Ho, kw:kw + Wo, :].reshape(Ho * Wo, Cin)
        for kh in range(3) for kw in range(3)
    ]
    patch = jnp.concatenate(cols, axis=-1).astype(jnp.bfloat16)   # (Ho*Wo, 9*Cin)
    acc = jnp.dot(patch, w_ref[...], preferred_element_type=jnp.float32)
    # Bias + ReLU fused into one fp32 elementwise expression (single pass).
    return jnp.maximum(acc + b_ref[...], 0.0), (Ho, Wo)


# ----------------------------------------------------------------------------
# Fused forward kernel: one batch element per grid step; every intermediate
# stays on-chip.
# ----------------------------------------------------------------------------
def fused_forward_kernel(x_ref,
                         w1_ref, b1_ref, w2_ref, b2_ref, w3_ref, b3_ref,
                         wfc_ref, bfc_ref, wcls_ref, bcls_ref,
                         o_ref):
    # x_ref: (1, H, W, 3) fp32   o_ref: (1, 1, num_classes) fp32
    x = x_ref[0]                                                   # (H, W, 3)

    y1, (ho1, wo1) = _conv3x3_relu(x, w1_ref, b1_ref)              # (196, 32)
    y2, (ho2, wo2) = _conv3x3_relu(y1.reshape(ho1, wo1, -1),
                                   w2_ref, b2_ref)                 # (144, 64)
    y3, _ = _conv3x3_relu(y2.reshape(ho2, wo2, -1),
                          w3_ref, b3_ref)                          # (100, 128)

    # adaptive_avg_pool2d(., 1) == mean over the Ho*Wo spatial rows.
    pooled = jnp.mean(y3, axis=0, keepdims=True)                   # (1, 128) fp32

    # fc -> classifier (no ReLU between them, matching the PyTorch forward).
    h = jnp.dot(pooled.astype(jnp.bfloat16), wfc_ref[...],
                preferred_element_type=jnp.float32) + bfc_ref[...]         # (1, 256)
    logits = jnp.dot(h.astype(jnp.bfloat16), wcls_ref[...],
                     preferred_element_type=jnp.float32) + bcls_ref[...]   # (1, 10)
    o_ref[...] = logits.reshape(1, 1, logits.shape[-1])


# ----------------------------------------------------------------------------
# Wrapper: layout plumbing (NCHW->NHWC, weight flattening, bf16 cast) + the
# single fused pallas_call.
# ----------------------------------------------------------------------------
def simple_model_forward(x_nchw, p):
    x = jnp.transpose(x_nchw, (0, 2, 3, 1)).astype(jnp.float32)    # NHWC
    N, H, W, Cin = x.shape

    # Flatten HWIO conv weights to (9*Cin, Cout) for im2col; cast matmul
    # operands to bf16 (fp32 accumulation happens inside the kernel).
    w1 = p["w_conv1"].reshape(-1, p["w_conv1"].shape[-1]).astype(jnp.bfloat16)
    w2 = p["w_conv2"].reshape(-1, p["w_conv2"].shape[-1]).astype(jnp.bfloat16)
    w3 = p["w_conv3"].reshape(-1, p["w_conv3"].shape[-1]).astype(jnp.bfloat16)
    wfc = p["w_fc"].astype(jnp.bfloat16)
    wcls = p["w_cls"].astype(jnp.bfloat16)
    b1, b2, b3 = p["b_conv1"], p["b_conv2"], p["b_conv3"]
    bfc, bcls = p["b_fc"], p["b_cls"]
    num_classes = wcls.shape[1]

    def full2d(a):
        # Whole-array block, revisited every grid step (stays VMEM-resident).
        return pl.BlockSpec(a.shape, lambda n: (0, 0))

    out = pl.pallas_call(
        fused_forward_kernel,
        out_shape=jax.ShapeDtypeStruct((N, 1, num_classes), jnp.float32),
        grid=(N,),
        in_specs=[
            pl.BlockSpec((1, H, W, Cin), lambda n: (n, 0, 0, 0)),
            full2d(w1), full2d(b1),
            full2d(w2), full2d(b2),
            full2d(w3), full2d(b3),
            full2d(wfc), full2d(bfc),
            full2d(wcls), full2d(bcls),
        ],
        out_specs=pl.BlockSpec((1, 1, num_classes), lambda n: (n, 0, 0)),
        compiler_params=pltpu.CompilerParams(
            dimension_semantics=("parallel",),          # batch across TCs (v7x)
            vmem_limit_bytes=32 * 1024 * 1024,
        ),
    )(x, w1, b1, w2, b2, w3, b3, wfc, bfc, wcls, bcls)
    return out[:, 0, :]                                            # (N, 10)


# ----------------------------------------------------------------------------
# Deterministic parameter init (PyTorch-default-style uniform(-1/sqrt(fan_in))).
# Conv weights stored HWIO, biases as (1, C) (numerically equivalent to (C,)).
# ----------------------------------------------------------------------------
def init_params(key):
    ks = jax.random.split(key, 10)

    def u(k, shape, fan_in):
        bound = fan_in ** -0.5
        return jax.random.uniform(k, shape, jnp.float32, -bound, bound)

    return {
        "w_conv1": u(ks[0], (3, 3, 3, 32), 3 * 3 * 3),
        "b_conv1": u(ks[1], (1, 32), 3 * 3 * 3),
        "w_conv2": u(ks[2], (3, 3, 32, 64), 32 * 3 * 3),
        "b_conv2": u(ks[3], (1, 64), 32 * 3 * 3),
        "w_conv3": u(ks[4], (3, 3, 64, 128), 64 * 3 * 3),
        "b_conv3": u(ks[5], (1, 128), 64 * 3 * 3),
        "w_fc":    u(ks[6], (128, 256), 128),
        "b_fc":    u(ks[7], (1, 256), 128),
        "w_cls":   u(ks[8], (256, 10), 256),
        "b_cls":   u(ks[9], (1, 10), 256),
    }


if __name__ == "__main__":
    key = jax.random.PRNGKey(0)
    k_in, k_p = jax.random.split(key)
    x = jax.random.normal(k_in, (2, 3, 16, 16), jnp.float32)  # NCHW like PyTorch
    params = init_params(k_p)

    fwd = jax.jit(simple_model_forward)
    out = jax.block_until_ready(fwd(x, params))
    assert out.shape == (2, 10) and out.dtype == jnp.float32
    print("KERNEL_OK")
</pallas_src>

<mosaic_0001>
module attributes {stable_mosaic.version = 11 : i64} {
  func.func @fused_forward_kernel(%arg0: i32, %arg1: memref<1x16x16x3xf32, #tpu.memory_space<vmem>>, %arg2: memref<27x32xbf16, #tpu.memory_space<vmem>>, %arg3: memref<1x32xf32, #tpu.memory_space<vmem>>, %arg4: memref<288x64xbf16, #tpu.memory_space<vmem>>, %arg5: memref<1x64xf32, #tpu.memory_space<vmem>>, %arg6: memref<576x128xbf16, #tpu.memory_space<vmem>>, %arg7: memref<1x128xf32, #tpu.memory_space<vmem>>, %arg8: memref<128x256xbf16, #tpu.memory_space<vmem>>, %arg9: memref<1x256xf32, #tpu.memory_space<vmem>>, %arg10: memref<256x10xbf16, #tpu.memory_space<vmem>>, %arg11: memref<1x10xf32, #tpu.memory_space<vmem>>, %arg12: memref<1x1x10xf32, #tpu.memory_space<vmem>>) attributes {dimension_semantics = [#tpu.dimension_semantics<parallel>], iteration_bounds = array<i64: 2>, scalar_prefetch = 0 : i64, scratch_operands = 0 : i64, tpu.core_type = #tpu.core_type<tc>, window_params = [{transform_indices = @transform_0, window_bounds = array<i64: 1, 16, 16, 3>}, {pipeline_mode = #tpu.pipeline_mode<synchronous>, transform_indices = @transform_1, window_bounds = array<i64: 27, 32>}, {pipeline_mode = #tpu.pipeline_mode<synchronous>, transform_indices = @transform_2, window_bounds = array<i64: 1, 32>}, {pipeline_mode = #tpu.pipeline_mode<synchronous>, transform_indices = @transform_3, window_bounds = array<i64: 288, 64>}, {pipeline_mode = #tpu.pipeline_mode<synchronous>, transform_indices = @transform_4, window_bounds = array<i64: 1, 64>}, {pipeline_mode = #tpu.pipeline_mode<synchronous>, transform_indices = @transform_5, window_bounds = array<i64: 576, 128>}, {pipeline_mode = #tpu.pipeline_mode<synchronous>, transform_indices = @transform_6, window_bounds = array<i64: 1, 128>}, {pipeline_mode = #tpu.pipeline_mode<synchronous>, transform_indices = @transform_7, window_bounds = array<i64: 128, 256>}, {pipeline_mode = #tpu.pipeline_mode<synchronous>, transform_indices = @transform_8, window_bounds = array<i64: 1, 256>}, {pipeline_mode = #tpu.pipeline_mode<synchronous>, transform_indices = @transform_9, window_bounds = array<i64: 256, 10>}, {pipeline_mode = #tpu.pipeline_mode<synchronous>, transform_indices = @transform_10, window_bounds = array<i64: 1, 10>}, {transform_indices = @transform_11, window_bounds = array<i64: 1, 1, 10>}]} {
    %c0 = arith.constant 0 : index
    %c0_0 = arith.constant 0 : index
    %c0_1 = arith.constant 0 : index
    %c0_2 = arith.constant 0 : index
    %0 = vector.load %arg1[%c0, %c0_0, %c0_1, %c0_2] : memref<1x16x16x3xf32, #tpu.memory_space<vmem>>, vector<1x16x16x3xf32>
    %1 = vector.shape_cast %0 : vector<1x16x16x3xf32> to vector<16x16x3xf32>
    %2 = vector.extract_strided_slice %1 {offsets = [0, 0, 0], sizes = [14, 14, 3], strides = [1, 1, 1]} : vector<16x16x3xf32> to vector<14x14x3xf32>
    %3 = vector.shape_cast %2 : vector<14x14x3xf32> to vector<196x3xf32>
    %4 = vector.extract_strided_slice %1 {offsets = [0, 1, 0], sizes = [14, 14, 3], strides = [1, 1, 1]} : vector<16x16x3xf32> to vector<14x14x3xf32>
    %5 = vector.shape_cast %4 : vector<14x14x3xf32> to vector<196x3xf32>
    %6 = vector.extract_strided_slice %1 {offsets = [0, 2, 0], sizes = [14, 14, 3], strides = [1, 1, 1]} : vector<16x16x3xf32> to vector<14x14x3xf32>
    %7 = vector.shape_cast %6 : vector<14x14x3xf32> to vector<196x3xf32>
    %8 = vector.extract_strided_slice %1 {offsets = [1, 0, 0], sizes = [14, 14, 3], strides = [1, 1, 1]} : vector<16x16x3xf32> to vector<14x14x3xf32>
    %9 = vector.shape_cast %8 : vector<14x14x3xf32> to vector<196x3xf32>
    %10 = vector.extract_strided_slice %1 {offsets = [1, 1, 0], sizes = [14, 14, 3], strides = [1, 1, 1]} : vector<16x16x3xf32> to vector<14x14x3xf32>
    %11 = vector.shape_cast %10 : vector<14x14x3xf32> to vector<196x3xf32>
    %12 = vector.extract_strided_slice %1 {offsets = [1, 2, 0], sizes = [14, 14, 3], strides = [1, 1, 1]} : vector<16x16x3xf32> to vector<14x14x3xf32>
    %13 = vector.shape_cast %12 : vector<14x14x3xf32> to vector<196x3xf32>
    %14 = vector.extract_strided_slice %1 {offsets = [2, 0, 0], sizes = [14, 14, 3], strides = [1, 1, 1]} : vector<16x16x3xf32> to vector<14x14x3xf32>
    %15 = vector.shape_cast %14 : vector<14x14x3xf32> to vector<196x3xf32>
    %16 = vector.extract_strided_slice %1 {offsets = [2, 1, 0], sizes = [14, 14, 3], strides = [1, 1, 1]} : vector<16x16x3xf32> to vector<14x14x3xf32>
    %17 = vector.shape_cast %16 : vector<14x14x3xf32> to vector<196x3xf32>
    %18 = vector.extract_strided_slice %1 {offsets = [2, 2, 0], sizes = [14, 14, 3], strides = [1, 1, 1]} : vector<16x16x3xf32> to vector<14x14x3xf32>
    %19 = vector.shape_cast %18 : vector<14x14x3xf32> to vector<196x3xf32>
    %20 = tpu.concatenate %3, %5, %7, %9, %11, %13, %15, %17, %19 in 1 : vector<196x3xf32>, vector<196x3xf32>, vector<196x3xf32>, vector<196x3xf32>, vector<196x3xf32>, vector<196x3xf32>, vector<196x3xf32>, vector<196x3xf32>, vector<196x3xf32> -> vector<196x27xf32>
    %21 = arith.truncf %20 : vector<196x27xf32> to vector<196x27xbf16>
    %c0_3 = arith.constant 0 : index
    %c0_4 = arith.constant 0 : index
    %22 = vector.load %arg2[%c0_3, %c0_4] : memref<27x32xbf16, #tpu.memory_space<vmem>>, vector<27x32xbf16>
    %cst = arith.constant dense<0.000000e+00> : vector<196x32xf32>
    %23 = tpu.matmul %21, %22, %cst {dimension_numbers = #tpu.dot_dimension_numbers<[1], [0], [0], [1], [0, 0, 1, 1], [], []>} : vector<196x27xbf16>, vector<27x32xbf16>, vector<196x32xf32> -> vector<196x32xf32>
    %c0_5 = arith.constant 0 : index
    %c0_6 = arith.constant 0 : index
    %24 = vector.load %arg3[%c0_5, %c0_6] : memref<1x32xf32, #tpu.memory_space<vmem>>, vector<1x32xf32>
    %25 = vector.broadcast %24 : vector<1x32xf32> to vector<196x32xf32>
    %26 = arith.addf %23, %25 : vector<196x32xf32>
    %cst_7 = arith.constant 0.000000e+00 : f32
    %27 = vector.broadcast %cst_7 : f32 to vector<196x32xf32>
    %28 = arith.maximumf %26, %27 : vector<196x32xf32>
    %29 = vector.shape_cast %28 : vector<196x32xf32> to vector<14x14x32xf32>
    %30 = vector.extract_strided_slice %29 {offsets = [0, 0, 0], sizes = [12, 12, 32], strides = [1, 1, 1]} : vector<14x14x32xf32> to vector<12x12x32xf32>
    %31 = vector.shape_cast %30 : vector<12x12x32xf32> to vector<144x32xf32>
    %32 = vector.extract_strided_slice %29 {offsets = [0, 1, 0], sizes = [12, 12, 32], strides = [1, 1, 1]} : vector<14x14x32xf32> to vector<12x12x32xf32>
    %33 = vector.shape_cast %32 : vector<12x12x32xf32> to vector<144x32xf32>
    %34 = vector.extract_strided_slice %29 {offsets = [0, 2, 0], sizes = [12, 12, 32], strides = [1, 1, 1]} : vector<14x14x32xf32> to vector<12x12x32xf32>
    %35 = vector.shape_cast %34 : vector<12x12x32xf32> to vector<144x32xf32>
    %36 = vector.extract_strided_slice %29 {offsets = [1, 0, 0], sizes = [12, 12, 32], strides = [1, 1, 1]} : vector<14x14x32xf32> to vector<12x12x32xf32>
    %37 = vector.shape_cast %36 : vector<12x12x32xf32> to vector<144x32xf32>
    %38 = vector.extract_strided_slice %29 {offsets = [1, 1, 0], sizes = [12, 12, 32], strides = [1, 1, 1]} : vector<14x14x32xf32> to vector<12x12x32xf32>
    %39 = vector.shape_cast %38 : vector<12x12x32xf32> to vector<144x32xf32>
    %40 = vector.extract_strided_slice %29 {offsets = [1, 2, 0], sizes = [12, 12, 32], strides = [1, 1, 1]} : vector<14x14x32xf32> to vector<12x12x32xf32>
    %41 = vector.shape_cast %40 : vector<12x12x32xf32> to vector<144x32xf32>
    %42 = vector.extract_strided_slice %29 {offsets = [2, 0, 0], sizes = [12, 12, 32], strides = [1, 1, 1]} : vector<14x14x32xf32> to vector<12x12x32xf32>
    %43 = vector.shape_cast %42 : vector<12x12x32xf32> to vector<144x32xf32>
    %44 = vector.extract_strided_slice %29 {offsets = [2, 1, 0], sizes = [12, 12, 32], strides = [1, 1, 1]} : vector<14x14x32xf32> to vector<12x12x32xf32>
    %45 = vector.shape_cast %44 : vector<12x12x32xf32> to vector<144x32xf32>
    %46 = vector.extract_strided_slice %29 {offsets = [2, 2, 0], sizes = [12, 12, 32], strides = [1, 1, 1]} : vector<14x14x32xf32> to vector<12x12x32xf32>
    %47 = vector.shape_cast %46 : vector<12x12x32xf32> to vector<144x32xf32>
    %48 = tpu.concatenate %31, %33, %35, %37, %39, %41, %43, %45, %47 in 1 : vector<144x32xf32>, vector<144x32xf32>, vector<144x32xf32>, vector<144x32xf32>, vector<144x32xf32>, vector<144x32xf32>, vector<144x32xf32>, vector<144x32xf32>, vector<144x32xf32> -> vector<144x288xf32>
    %49 = arith.truncf %48 : vector<144x288xf32> to vector<144x288xbf16>
    %c0_8 = arith.constant 0 : index
    %c0_9 = arith.constant 0 : index
    %50 = vector.load %arg4[%c0_8, %c0_9] : memref<288x64xbf16, #tpu.memory_space<vmem>>, vector<288x64xbf16>
    %cst_10 = arith.constant dense<0.000000e+00> : vector<144x64xf32>
    %51 = tpu.matmul %49, %50, %cst_10 {dimension_numbers = #tpu.dot_dimension_numbers<[1], [0], [0], [1], [0, 0, 1, 1], [], []>} : vector<144x288xbf16>, vector<288x64xbf16>, vector<144x64xf32> -> vector<144x64xf32>
    %c0_11 = arith.constant 0 : index
    %c0_12 = arith.constant 0 : index
    %52 = vector.load %arg5[%c0_11, %c0_12] : memref<1x64xf32, #tpu.memory_space<vmem>>, vector<1x64xf32>
    %53 = vector.broadcast %52 : vector<1x64xf32> to vector<144x64xf32>
    %54 = arith.addf %51, %53 : vector<144x64xf32>
    %cst_13 = arith.constant 0.000000e+00 : f32
    %55 = vector.broadcast %cst_13 : f32 to vector<144x64xf32>
    %56 = arith.maximumf %54, %55 : vector<144x64xf32>
    %57 = vector.shape_cast %56 : vector<144x64xf32> to vector<12x12x64xf32>
    %58 = vector.extract_strided_slice %57 {offsets = [0, 0, 0], sizes = [10, 10, 64], strides = [1, 1, 1]} : vector<12x12x64xf32> to vector<10x10x64xf32>
    %59 = vector.shape_cast %58 : vector<10x10x64xf32> to vector<100x64xf32>
    %60 = vector.extract_strided_slice %57 {offsets = [0, 1, 0], sizes = [10, 10, 64], strides = [1, 1, 1]} : vector<12x12x64xf32> to vector<10x10x64xf32>
    %61 = vector.shape_cast %60 : vector<10x10x64xf32> to vector<100x64xf32>
    %62 = vector.extract_strided_slice %57 {offsets = [0, 2, 0], sizes = [10, 10, 64], strides = [1, 1, 1]} : vector<12x12x64xf32> to vector<10x10x64xf32>
    %63 = vector.shape_cast %62 : vector<10x10x64xf32> to vector<100x64xf32>
    %64 = vector.extract_strided_slice %57 {offsets = [1, 0, 0], sizes = [10, 10, 64], strides = [1, 1, 1]} : vector<12x12x64xf32> to vector<10x10x64xf32>
    %65 = vector.shape_cast %64 : vector<10x10x64xf32> to vector<100x64xf32>
    %66 = vector.extract_strided_slice %57 {offsets = [1, 1, 0], sizes = [10, 10, 64], strides = [1, 1, 1]} : vector<12x12x64xf32> to vector<10x10x64xf32>
    %67 = vector.shape_cast %66 : vector<10x10x64xf32> to vector<100x64xf32>
    %68 = vector.extract_strided_slice %57 {offsets = [1, 2, 0], sizes = [10, 10, 64], strides = [1, 1, 1]} : vector<12x12x64xf32> to vector<10x10x64xf32>
    %69 = vector.shape_cast %68 : vector<10x10x64xf32> to vector<100x64xf32>
    %70 = vector.extract_strided_slice %57 {offsets = [2, 0, 0], sizes = [10, 10, 64], strides = [1, 1, 1]} : vector<12x12x64xf32> to vector<10x10x64xf32>
    %71 = vector.shape_cast %70 : vector<10x10x64xf32> to vector<100x64xf32>
    %72 = vector.extract_strided_slice %57 {offsets = [2, 1, 0], sizes = [10, 10, 64], strides = [1, 1, 1]} : vector<12x12x64xf32> to vector<10x10x64xf32>
    %73 = vector.shape_cast %72 : vector<10x10x64xf32> to vector<100x64xf32>
    %74 = vector.extract_strided_slice %57 {offsets = [2, 2, 0], sizes = [10, 10, 64], strides = [1, 1, 1]} : vector<12x12x64xf32> to vector<10x10x64xf32>
    %75 = vector.shape_cast %74 : vector<10x10x64xf32> to vector<100x64xf32>
    %76 = tpu.concatenate %59, %61, %63, %65, %67, %69, %71, %73, %75 in 1 : vector<100x64xf32>, vector<100x64xf32>, vector<100x64xf32>, vector<100x64xf32>, vector<100x64xf32>, vector<100x64xf32>, vector<100x64xf32>, vector<100x64xf32>, vector<100x64xf32> -> vector<100x576xf32>
    %77 = arith.truncf %76 : vector<100x576xf32> to vector<100x576xbf16>
    %c0_14 = arith.constant 0 : index
    %c0_15 = arith.constant 0 : index
    %78 = vector.load %arg6[%c0_14, %c0_15] : memref<576x128xbf16, #tpu.memory_space<vmem>>, vector<576x128xbf16>
    %cst_16 = arith.constant dense<0.000000e+00> : vector<100x128xf32>
    %79 = tpu.matmul %77, %78, %cst_16 {dimension_numbers = #tpu.dot_dimension_numbers<[1], [0], [0], [1], [0, 0, 1, 1], [], []>} : vector<100x576xbf16>, vector<576x128xbf16>, vector<100x128xf32> -> vector<100x128xf32>
    %c0_17 = arith.constant 0 : index
    %c0_18 = arith.constant 0 : index
    %80 = vector.load %arg7[%c0_17, %c0_18] : memref<1x128xf32, #tpu.memory_space<vmem>>, vector<1x128xf32>
    %81 = vector.broadcast %80 : vector<1x128xf32> to vector<100x128xf32>
    %82 = arith.addf %79, %81 : vector<100x128xf32>
    %cst_19 = arith.constant 0.000000e+00 : f32
    %83 = vector.broadcast %cst_19 : f32 to vector<100x128xf32>
    %84 = arith.maximumf %82, %83 : vector<100x128xf32>
    %cst_20 = arith.constant dense<0.000000e+00> : vector<128xf32>
    %85 = vector.multi_reduction <add>, %84, %cst_20 [0] : vector<100x128xf32> to vector<128xf32>
    %86 = vector.shape_cast %85 : vector<128xf32> to vector<1x128xf32>
    %cst_21 = arith.constant 1.000000e+02 : f32
    %87 = vector.broadcast %cst_21 : f32 to vector<1x128xf32>
    %88 = arith.divf %86, %87 : vector<1x128xf32>
    %89 = arith.truncf %88 : vector<1x128xf32> to vector<1x128xbf16>
    %c0_22 = arith.constant 0 : index
    %c0_23 = arith.constant 0 : index
    %90 = vector.load %arg8[%c0_22, %c0_23] : memref<128x256xbf16, #tpu.memory_space<vmem>>, vector<128x256xbf16>
    %cst_24 = arith.constant dense<0.000000e+00> : vector<1x256xf32>
    %91 = tpu.matmul %89, %90, %cst_24 {dimension_numbers = #tpu.dot_dimension_numbers<[1], [0], [0], [1], [0, 0, 1, 1], [], []>} : vector<1x128xbf16>, vector<128x256xbf16>, vector<1x256xf32> -> vector<1x256xf32>
    %c0_25 = arith.constant 0 : index
    %c0_26 = arith.constant 0 : index
    %92 = vector.load %arg9[%c0_25, %c0_26] : memref<1x256xf32, #tpu.memory_space<vmem>>, vector<1x256xf32>
    %93 = arith.addf %91, %92 : vector<1x256xf32>
    %94 = arith.truncf %93 : vector<1x256xf32> to vector<1x256xbf16>
    %c0_27 = arith.constant 0 : index
    %c0_28 = arith.constant 0 : index
    %95 = vector.load %arg10[%c0_27, %c0_28] : memref<256x10xbf16, #tpu.memory_space<vmem>>, vector<256x10xbf16>
    %cst_29 = arith.constant dense<0.000000e+00> : vector<1x10xf32>
    %96 = tpu.matmul %94, %95, %cst_29 {dimension_numbers = #tpu.dot_dimension_numbers<[1], [0], [0], [1], [0, 0, 1, 1], [], []>} : vector<1x256xbf16>, vector<256x10xbf16>, vector<1x10xf32> -> vector<1x10xf32>
    %c0_30 = arith.constant 0 : index
    %c0_31 = arith.constant 0 : index
    %97 = vector.load %arg11[%c0_30, %c0_31] : memref<1x10xf32, #tpu.memory_space<vmem>>, vector<1x10xf32>
    %98 = arith.addf %96, %97 : vector<1x10xf32>
    %99 = vector.shape_cast %98 : vector<1x10xf32> to vector<1x1x10xf32>
    %c0_32 = arith.constant 0 : index
    %c0_33 = arith.constant 0 : index
    %c0_34 = arith.constant 0 : index
    %100 = vector.load %arg12[%c0_32, %c0_33, %c0_34] : memref<1x1x10xf32, #tpu.memory_space<vmem>>, vector<1x1x10xf32>
    tpu.vector_store %arg12[%c0_32, %c0_33, %c0_34], %99 {strides = array<i32>} : memref<1x1x10xf32, #tpu.memory_space<vmem>>, vector<1x1x10xf32>,
    return
  }
  func.func @transform_0(%arg0: i32) -> (i32, i32, i32, i32) {
    %c0_i32 = arith.constant 0 : i32
    %c0_i32_0 = arith.constant 0 : i32
    %c0_i32_1 = arith.constant 0 : i32
    %c0_i32_2 = arith.constant 0 : i32
    return %arg0, %c0_i32, %c0_i32_0, %c0_i32_1 : i32, i32, i32, i32
  }
  func.func @transform_1(%arg0: i32) -> (i32, i32) {
    %c0_i32 = arith.constant 0 : i32
    %c0_i32_0 = arith.constant 0 : i32
    %c0_i32_1 = arith.constant 0 : i32
    return %c0_i32, %c0_i32_0 : i32, i32
  }
  func.func @transform_2(%arg0: i32) -> (i32, i32) {
    %c0_i32 = arith.constant 0 : i32
    %c0_i32_0 = arith.constant 0 : i32
    %c0_i32_1 = arith.constant 0 : i32
    return %c0_i32, %c0_i32_0 : i32, i32
  }
  func.func @transform_3(%arg0: i32) -> (i32, i32) {
    %c0_i32 = arith.constant 0 : i32
    %c0_i32_0 = arith.constant 0 : i32
    %c0_i32_1 = arith.constant 0 : i32
    return %c0_i32, %c0_i32_0 : i32, i32
  }
  func.func @transform_4(%arg0: i32) -> (i32, i32) {
    %c0_i32 = arith.constant 0 : i32
    %c0_i32_0 = arith.constant 0 : i32
    %c0_i32_1 = arith.constant 0 : i32
    return %c0_i32, %c0_i32_0 : i32, i32
  }
  func.func @transform_5(%arg0: i32) -> (i32, i32) {
    %c0_i32 = arith.constant 0 : i32
    %c0_i32_0 = arith.constant 0 : i32
    %c0_i32_1 = arith.constant 0 : i32
    return %c0_i32, %c0_i32_0 : i32, i32
  }
  func.func @transform_6(%arg0: i32) -> (i32, i32) {
    %c0_i32 = arith.constant 0 : i32
    %c0_i32_0 = arith.constant 0 : i32
    %c0_i32_1 = arith.constant 0 : i32
    return %c0_i32, %c0_i32_0 : i32, i32
  }
  func.func @transform_7(%arg0: i32) -> (i32, i32) {
    %c0_i32 = arith.constant 0 : i32
    %c0_i32_0 = arith.constant 0 : i32
    %c0_i32_1 = arith.constant 0 : i32
    return %c0_i32, %c0_i32_0 : i32, i32
  }
  func.func @transform_8(%arg0: i32) -> (i32, i32) {
    %c0_i32 = arith.constant 0 : i32
    %c0_i32_0 = arith.constant 0 : i32
    %c0_i32_1 = arith.constant 0 : i32
    return %c0_i32, %c0_i32_0 : i32, i32
  }
  func.func @transform_9(%arg0: i32) -> (i32, i32) {
    %c0_i32 = arith.constant 0 : i32
    %c0_i32_0 = arith.constant 0 : i32
    %c0_i32_1 = arith.constant 0 : i32
    return %c0_i32, %c0_i32_0 : i32, i32
  }
  func.func @transform_10(%arg0: i32) -> (i32, i32) {
    %c0_i32 = arith.constant 0 : i32
    %c0_i32_0 = arith.constant 0 : i32
    %c0_i32_1 = arith.constant 0 : i32
    return %c0_i32, %c0_i32_0 : i32, i32
  }
  func.func @transform_11(%arg0: i32) -> (i32, i32, i32) {
    %c0_i32 = arith.constant 0 : i32
    %c0_i32_0 = arith.constant 0 : i32
    %c0_i32_1 = arith.constant 0 : i32
    return %arg0, %c0_i32, %c0_i32_0 : i32, i32, i32
  }
}

</mosaic_0001>

<bundles_post_ra>
// kernel: simple_model_forward.1
= control target key start
LH: loop header
LB: loop body
LE: loop exit
PB: predicated region body
PF: predicated region fallthrough
CT: control target
= control target key end

     0   :  { %s18799_s0 = inlined_call_operand.vmem [shape: f32[2,16,16,3], index: 0, kind: input, shape index: {}]   ;;  %s18800_s1 = inlined_call_operand.vmem [shape: bf16[27,32], index: 1, kind: input, shape index: {}]   ;;  %s18801_s2 = inlined_call_operand.vmem [shape: f32[1,32], index: 2, kind: input, shape index: {}]   ;;  %s18802_s3 = inlined_call_operand.vmem [shape: bf16[288,64], index: 3, kind: input, shape index: {}]   ;;  %s18803_s4 = inlined_call_operand.vmem [shape: f32[1,64], index: 4, kind: input, shape index: {}]   ;;  %s18804_s5 = inlined_call_operand.vmem [shape: bf16[576,128], index: 5, kind: input, shape index: {}]   ;;  %s18805_s6 = inlined_call_operand.vmem [shape: f32[1,128], index: 6, kind: input, shape index: {}]   ;;  %s18806_s7 = inlined_call_operand.vmem [shape: bf16[128,256], index: 7, kind: input, shape index: {}]   ;;  %s18807_s8 = inlined_call_operand.vmem [shape: f32[1,256], index: 8, kind: input, shape index: {}]   ;;  %s18808_s9 = inlined_call_operand.vmem [shape: bf16[256,10], index: 9, kind: input, shape index: {}]   ;;  %s18809_s10 = inlined_call_operand.vmem [shape: f32[1,10], index: 10, kind: input, shape index: {}]   ;;  %s18810_s11 = inlined_call_operand.hbm [shape: f32[2,1,10], index: 11, kind: output, shape index: {}]  }
   0x1   :  { %19050 = sst [smem:[#allocation111_spill]] %s18799_s0 }
   0x2   :  { %16 = vsyncpa [#allocation3], 0 }
   0x3   :  { %18 = vsyncpa [#allocation3 + $0x1], 0  ;;  %s12130_s17 = smov 0   ;;  %s12132_s18 = smov 0  }
   0x4   :  { %s12134_s19 = smov 0   ;;  %s12136_s20 = smov 0  }
   0x5 LB: > { %s12151_s21 = sadd.s32 4294967295, %s12051_s20   ;;  %s10352_s22 = sadd.s32 4294967294, %s12051_s20   ;;  %s12051_s20 = sphi %s12136_s20, %s19628_s20   ;;  %s12047_s19 = sphi %s12134_s19, %s19627_s19   ;;  %s12043_s18 = sphi %s12132_s18, %s19626_s18   ;;  %s12039_s17 = sphi %s12130_s17, %s19625_s17  }
   0x6   : > { %s12155_s23 = sadd.s32 1, %s12051_s20   ;;  %s267_s24 = sadd.s32 1, %s12047_s19 }
   0x7   : > { %s264_s25 = ssub.s32 %s12051_s20, %s12155_s23  ;;  %p277_p0 = scmp.ne.s32.totalorder %s12047_s19, %s12043_s18 }
   0x8   : > { %p265_p1 = scmp.eq.s32.totalorder %s264_s25, 0  ;;  %p278_p2 = scmp.eq.s32.totalorder %s12151_s21, 1 }
   0x9   : > { %p283_p3 = scmp.ne.s32.totalorder %s12043_s18, %s12039_s17  ;;  %p284_p4 = scmp.eq.s32.totalorder %s10352_s22, 1 }
   0xa   : > { %s12166_s26 = scalar_select %p265_p1, %s12047_s19, %s267_s24  }
   0xb   : > { %p12168_p5 = por %p278_p2, %p277_p0  ;;  %p12172_p6 = por %p284_p4, %p283_p3 }
   0xc   : > { %p10355_p7 = scmp.ge.s32.totalorder %s12051_s20, 1  ;;  %p340_p8 = scmp.lt.s32.totalorder %s12051_s20, 3 }
   0xe   : > { %p341_p9 = pnand %p10355_p7, %p340_p8 }
  0x10   : > { %344 = sbr.rel (%p341_p9) target bundleno = 2028 (0x7ec), region = 64 }
  0x15   : > { %p379_p10 = scmp.lt.s32.totalorder %s12151_s21, 1  ;;  %v449_v0 = vlaneseq  ;;  %v12053_v1 = vmov 1983009808   ;;  %s19054_s0 = sld [smem:[#allocation111_spill]]  ;;  %vm921_vm0 = vcmask 1040384   ;;  %vm922_vm1 = vcmask 1042434  }
  0x16   : > { %v447_v2 = vunpack.c.l.s4 %v12053_v1  ;;  %vm12273_vm2 = vmor %vm921_vm0, %vm922_vm1  ;;  %vm924_vm3 = vcmask 1044484   ;;  %vm926_vm4 = vcmask 1046534   ;;  %s18845_s15 = smov 9   ;;  %s12055_s16 = smov 6   ;;  %vm4133_vm7 = vcmask 23552  }
  0x17   : > { %s380_s29 = scalar_select %p379_p10, %s12151_s21, 1  ;;  %v12180_v3 = vshrl.u32 %v449_v0, 7  ;;  %vm925_vm5 = vmor %vm12273_vm2, %vm924_vm3  ;;  %vm4159_vm8 = vcmask 48128   ;;  %vm4185_vm9 = vcmask 72704   ;;  %vm4211_vm10 = vcmask 97280  }
  0x18   : > { %v448_v4 = vunpack.c.0.s8 %v447_v2  ;;  %vm12389_vm6 = vmor %vm925_vm5, %vm926_vm4  ;;  %s12056_s22 = smov 18   ;;  %s12057_s24 = smov 15   ;;  %vm4237_vm11 = vcmask 121856   ;;  %vm4263_vm12 = vcmask 146432   ;;  %vm4289_vm13 = vcmask 171008  }
  0x19   : > { %19053 = vst [vmem:[#allocation5_spill] sm:$0xff] %v12180_v3  ;;  %s10549_s30 = sshll.u32 %s380_s29, 8  ;;  %s12058_s25 = smov 24   ;;  %vm4416_vm14 = vcmask 1044480   ;;  %vm4417_vm15 = vcmask 1045504   ;;  %vm4315_vm0 = vcmask 195584  }
  0x1a   : > { %v12188_v5 = vsub.s32 %v448_v4, %v12180_v3  ;;  %s12059_s29 = smov 3   ;;  %s12061_s12 = smov 21   ;;  %vm12064_vm1 = vmmov 0   ;;  %vm4376_vm2 = vcmask 220160   ;;  %vm6794_vm3 = vcmask 261120  }
  0x1b   : > { %s12185_s14 = scalar_lea.vmem %s19054_s0, %s10549_s30  ;;  %s12060_s30 = smov 12   ;;  %vm6813_vm4 = vcmask 523264   ;;  %vm6832_vm5 = vcmask 785408  }
  0x1c   : > { %v387_v6 = vld [vmem:[%s12185_s14 + $0x10] sm:$0xff]  ;;  %v388_v7 = vld [vmem:[%s12185_s14 + $0x18] sm:$0xff]  ;;  %v389_v8 = vld [vmem:[%s12185_s14 + $0x20] sm:$0xff] }
  0x1d   : > { %v478_v9 = vcombine.high %v387_v6, %v387_v6  ;;  %v12194_v10 = vrot.slane %v387_v6, %v12188_v5  ;;  %v495_v11 = vcombine.high %v388_v7, %v388_v7  ;;  %v12197_v12 = vrot.slane %v388_v7, %v12188_v5  ;;  %v385_v13 = vld [vmem:[%s12185_s14] sm:$0xff]  ;;  %v386_v14 = vld [vmem:[%s12185_s14 + $0x8] sm:$0xff]  ;;  %v391_v36 = vld [vmem:[%s12185_s14 + $0x30] sm:$0xff] }
  0x1e   : > { %v12202_v15 = vrot.slane %v389_v8, %v12188_v5  ;;  %v445_v16 = vcombine.high %v385_v13, %v385_v13  ;;  %v12205_v17 = vrot.slane %v385_v13, %v12188_v5  ;;  %v462_v18 = vcombine.high %v386_v14, %v386_v14  ;;  %v390_v31 = vld [vmem:[%s12185_s14 + $0x28] sm:$0xff] }
  0x1f   : > { %v12208_v19 = vrot.slane %v478_v9, %v12188_v5  ;;  %v12212_v20 = vcombine.high %v12194_v10, %v12194_v10  ;;  %v12215_v21 = vrot.slane %v495_v11, %v12188_v5  ;;  %v12219_v22 = vcombine.high %v12197_v12, %v12197_v12 }
  0x20   : > { %v12222_v23 = vrot.slane %v445_v16, %v12188_v5  ;;  %v12226_v24 = vcombine.high %v12205_v17, %v12205_v17  ;;  %v12229_v25 = vrot.slane %v386_v14, %v12188_v5  ;;  %v12232_v26 = vrot.slane %v462_v18, %v12188_v5 }
  0x21   : > { %v12236_v27 = vcombine.high %v12208_v19, %v12208_v19  ;;  %v2319_v28 = vcombine.low %v12197_v12, %v12219_v22  ;;  %v2775_v29 = vcombine.low %v12194_v10, %v12212_v20  ;;  %v2784_v30 = vcombine.low %v12215_v21, %v12202_v15 }
  0x22   : > { %19055 = vst [vmem:[#allocation6_spill] sm:$0xff] %v12232_v26  ;;  %v12247_v32 = vcombine.high %v12222_v23, %v12222_v23  ;;  %v12251_v33 = vcombine.high %v12229_v25, %v12229_v25  ;;  %v2284_v34 = vcombine.low %v12226_v24, %v12222_v23  ;;  %v10374_v35 = vcombine.high %v12232_v26, %v12194_v10 }
  0x23   : > { %v2318_v37 = vcombine.low %v12208_v19, %v12236_v27  ;;  %v12261_v38 = vrot.slane %v2319_v28, %v12188_v5  ;;  %v2782_v39 = vrot.slane %v2775_v29, %v12188_v5  ;;  %v2791_v40 = vrot.slane %v2784_v30, %v12188_v5 }
  0x24   : > { %v2285_v41 = vcombine.low %v12247_v32, %v12229_v25  ;;  %v2292_v42 = vrot.slane %v2284_v34, %v12188_v5  ;;  %v2301_v43 = vcombine.low %v12251_v33, %v12232_v26  ;;  %v2316_v44 = vrot.slane %v10374_v35, %v12188_v5 }
  0x25   : > { %v12278_v46 = vrot.slane %v2318_v37, %v12188_v5  ;;  %v2792_v47 = vcombine.low %v12261_v38, %v2791_v40  ;;  %v511_v48 = vcombine.high %v389_v8, %v389_v8  ;;  %v12283_v49 = vcombine.high %v12202_v15, %v12202_v15 }
  0x26   : > { %v2299_v50 = vrot.slane %v2285_v41, %v12188_v5  ;;  %v2309_v51 = vrot.slane %v2301_v43, %v12188_v5  ;;  %v528_v52 = vcombine.high %v390_v31, %v390_v31  ;;  %v12288_v53 = vrot.slane %v390_v31, %v12188_v5 }
  0x27   : > { %v2783_v54 = vcombine.low %v2782_v39, %v12278_v46  ;;  %v12292_v55 = vrot.slane %v511_v48, %v12188_v5  ;;  %v544_v56 = vcombine.high %v391_v36, %v391_v36  ;;  %v12295_v57 = vrot.slane %v391_v36, %v12188_v5 }
  0x28   : > { %v2300_v58 = vcombine.low %v2292_v42, %v2299_v50  ;;  %v2317_v59 = vcombine.low %v2309_v51, %v2316_v44  ;;  %v12298_v60 = vrot.slane %v528_v52, %v12188_v5  ;;  %v12302_v61 = vcombine.high %v12288_v53, %v12288_v53 }
  0x29   : > { %v10987_v62 = vpack.i.bf16 %v2792_v47, %v2783_v54  ;;  %v12306_v63 = vcombine.high %v12292_v55, %v12292_v55  ;;  %v12309_v0 = vrot.slane %v544_v56, %v12188_v5  ;;  %v12313_v1 = vcombine.high %v12295_v57, %v12295_v57  ;;  %v392_v56 = vld [vmem:[%s12185_s14 + $0x38] sm:$0xff] }
  0x2a   : > { %v10982_v2 = vpack.i.bf16 %v2317_v59, %v2300_v58  ;;  %v1404_v4 = vcombine.low %v12202_v15, %v12283_v49  ;;  %v1421_v6 = vcombine.low %v12288_v53, %v12302_v61  ;;  %v1437_v7 = vcombine.low %v12298_v60, %v12295_v57 }
  0x2b   : > { %10988 = vrot.lane.b32.xlu1 %v10987_v62, %s18845_s15  ;;  %v1420_v8 = vcombine.low %v12292_v55, %v12306_v63  ;;  %v1438_v9 = vcombine.low %v12313_v1, %v12309_v0  ;;  %v1386_v11 = vcombine.low %v12212_v20, %v12208_v19  ;;  %v1387_v13 = vcombine.low %v12236_v27, %v12197_v12 }
  0x2c   : > { %10983 = vrot.lane.b32.xlu0 %v10982_v2, %s12055_s16  ;;  %v12332_v14 = vrot.slane %v1404_v4, %v12188_v5  ;;  %v1435_v16 = vrot.slane %v1421_v6, %v12188_v5  ;;  %v12336_v18 = vrot.slane %v1437_v7, %v12188_v5  ;;  %v1403_v28 = vcombine.low %v12219_v22, %v12215_v21 }
  0x2d   : > { %v1428_v29 = vrot.slane %v1420_v8, %v12188_v5  ;;  %v12342_v30 = vrot.slane %v1438_v9, %v12188_v5  ;;  %v1394_v31 = vrot.slane %v1386_v11, %v12188_v5  ;;  %v1401_v34 = vrot.slane %v1387_v13, %v12188_v5 }
  0x2e   : > { %19058 = vst [vmem:[#allocation7_spill] sm:$0xff] %v12332_v14  ;;  %19059 = vst [vmem:[#allocation8_spill] sm:$0xff] %v12336_v18  ;;  %v3719_v35 = vcombine.low %v1435_v16, %v12336_v18  ;;  %v12348_v36 = vrot.slane %v1403_v28, %v12188_v5  ;;  %v10381_v37 = vcombine.high %v12215_v21, %v12202_v15  ;;  %v939_v11 = vrot.slane %v12229_v25, 7 }
  0x2f   : > { %19060 = vst [vmem:[#allocation9_spill] sm:$0xff] %v12342_v30  ;;  %v2336_v39 = vcombine.low %v12283_v49, %v12292_v55  ;;  %v3718_v41 = vcombine.low %v12332_v14, %v1428_v29  ;;  %v12357_v42 = vcombine.low %v1394_v31, %v1401_v34  ;;  %v2352_v43 = vcombine.low %v12306_v63, %v12288_v53 }
  0x30   : > { %19061 = vst [vmem:[#allocation10_spill] sm:$0xff] %v12348_v36  ;;  %v3508_v47 = vrot.slane %v10381_v37, %v12188_v5  ;;  %v2353_v50 = vcombine.low %v12302_v61, %v12298_v60  ;;  %v10375_v54 = vcombine.high %v12298_v60, %v12295_v57  ;;  %v2794_v45 = vcombine.low %v12295_v57, %v12313_v1 }
  0x31   : > { %19062 = vst [vmem:[#allocation11_spill] sm:$0xff] %v12357_v42  ;;  %v2350_v48 = vrot.slane %v2336_v39, %v12188_v5  ;;  %v10997_v51 = vpack.i.bf16 %v3719_v35, %v3718_v41  ;;  %v12371_v52 = vrot.slane %v2352_v43, %v12188_v5  ;;  %v12384_v62 = vcombine.high %v12215_v21, %v12215_v21 }
  0x32   : > { %v3509_v58 = vcombine.low %v12348_v36, %v3508_v47  ;;  %v12380_v59 = vrot.slane %v2353_v50, %v12188_v5  ;;  %v2334_v2 = vcombine.low %v12278_v46, %v12261_v38  ;;  %v12395_v6 = vrot.slane %v10375_v54, %v12188_v5  ;;  %v393_v38 = vld [vmem:[%s12185_s14 + $0x40] sm:$0xff] }
  0x33   : > { %10998 = vrot.lane.b32.xlu1 %v10997_v51, %s12056_s22  ;;  %v2793_v7 = vcombine.low %v2350_v48, %v12371_v52  ;;  %v2801_v8 = vrot.slane %v2794_v45, %v12188_v5  ;;  %v12401_v9 = vcombine.high %v12298_v60, %v12298_v60  ;;  %v2335_v13 = vcombine.low %v12215_v21, %v12384_v62 }
  0x34   : > { %v10992_v46 = vpack.i.bf16 %v3509_v58, %v12357_v42  ;;  %v12408_v28 = vcombine.low %v1428_v29, %v1435_v16  ;;  %v4012_v31 = vcombine.low %v12380_v59, %v12395_v6  ;;  %v12420_v41 = vcombine.high %v12309_v0, %v12309_v0 }
  0x35   : > { %v2802_v34 = vcombine.low %v12380_v59, %v2801_v8  ;;  %v3510_v37 = vcombine.low %v12298_v60, %v12401_v9  ;;  %v2343_v39 = vrot.slane %v2335_v13, %v12188_v5  ;;  %v561_v16 = vcombine.high %v392_v56, %v392_v56 }
  0x36   : > { %19065 = vst [vmem:[#allocation12_spill] sm:$0xff] %v12408_v28  ;;  %10993 = vrot.lane.b32.xlu0 %v10992_v46, %s12057_s24  ;;  %v12423_v29 = vrot.slane %v392_v56, %v12188_v5  ;;  %v11002_v43 = vpack.i.bf16 %v4012_v31, %v2793_v7  ;;  %v577_v51 = vcombine.high %v393_v38, %v393_v38  ;;  %v10359_v36 = vrot.slane %v12194_v10, 9 }
  0x37   : > { %v11012_v47 = vpack.i.bf16 %v2802_v34, %v2793_v7  ;;  %v3517_v50 = vrot.slane %v3510_v37, %v12188_v5  ;;  %v2351_v54 = vcombine.low %v2343_v39, %v2350_v48  ;;  %v12427_v45 = vrot.slane %v561_v16, %v12188_v5 }
  0x38   : > { %v12431_v58 = vcombine.high %v12423_v29, %v12423_v29  ;;  %v12434_v8 = vrot.slane %v393_v38, %v12188_v5  ;;  %11003 = vrot.lane.b32.xlu1 %v11002_v43, %s12058_s25  ;;  %v12439_v7 = vrot.slane %v577_v51, %v12188_v5  ;;  %v1454_v48 = vcombine.low %v12420_v41, %v12423_v29 }
  0x39   : > { %v3518_v56 = vcombine.low %v3517_v50, %v12342_v30  ;;  %v907_v46 = vcombine.high %v12232_v26, %v12232_v26  ;;  %v11007_v13 = vpack.i.bf16 %v2351_v54, %v2334_v2  ;;  %v10358_v34 = vrot.slane %v12205_v17, 9 }
  0x3a   : > { %11013 = vrot.lane.b32.xlu0 %v11012_v47, %s18845_s15  ;;  %v12448_v38 = vcombine.high %v12434_v8, %v12434_v8  ;;  %v1455_v31 = vcombine.low %v12431_v58, %v12427_v45  ;;  %v12456_v39 = vcombine.high %v12439_v7, %v12439_v7  ;;  %v12459_v16 = vrot.slane %v1454_v48, %v12188_v5 }
  0x3b   : > { %v11017_v37 = vpack.i.bf16 %v3518_v56, %v12408_v28  ;;  %v930_v2 = vrot.slane %v12226_v24, 7  ;;  %v933_v50 = vrot.slane %v12222_v23, 7  ;;  %v936_v51 = vrot.slane %v12247_v32, 7 }
  0x3c   : > { %v12463_v43 = vrot.slane %v1455_v31, %v12188_v5  ;;  %v1471_v47 = vcombine.low %v12434_v8, %v12448_v38  ;;  %11008 = vrot.lane.b32.xlu1 %v11007_v13, %s12055_s16  ;;  %v1472_v54 = vcombine.low %v12439_v7, %v12456_v39  ;;  %v3720_v56 = vcombine.low %v12342_v30, %v12459_v16 }
  0x3d   : > { %v931_v48 = vsel %vm12389_vm6, %v10358_v34, %v930_v2  ;;  %v932_v31 = vrot.slane %v930_v2, 2  ;;  %v935_v44 = vrot.slane %v933_v50, 2  ;;  %v938_v35 = vrot.slane %v936_v51, 2 }
  0x3e   : > { %11018 = vrot.lane.b32.xlu0 %v11017_v37, %s12057_s24  ;;  %v12478_v40 = vrot.slane %v1471_v47, %v12188_v5  ;;  %v12482_v13 = vrot.slane %v1472_v54, %v12188_v5  ;;  %v942_v28 = vrot.slane %v12251_v33, 7  ;;  %v945_v34 = vrot.slane %v12232_v26, 7 }
  0x3f   : > { %v934_v3 = vsel %vm12389_vm6, %v932_v31, %v933_v50  ;;  %v937_v2 = vsel %vm12389_vm6, %v935_v44, %v936_v51  ;;  %v940_v47 = vsel %vm12389_vm6, %v938_v35, %v939_v11  ;;  %v941_v30 = vrot.slane %v939_v11, 2 }
  0x40   : > { %19066 = vst [vmem:[#allocation13_spill] sm:$0xff] %v12478_v40  ;;  %19067 = vst [vmem:[#allocation14_spill] sm:$0xff] %v12482_v13  ;;  %v3721_v37 = vcombine.low %v12463_v43, %v12478_v40  ;;  %v944_v18 = vrot.slane %v942_v28, 2  ;;  %v947_v42 = vrot.slane %v945_v34, 2  ;;  %v948_v50 = vrot.slane %v907_v46, 7 }
  0x41   : > { %v943_v14 = vsel %vm12389_vm6, %v941_v30, %v942_v28  ;;  %v952_v26 = vrot.slane %v12212_v20, 7  ;;  %v1793_v35 = vcombine.low %v931_v48, %v934_v3  ;;  %v1794_v51 = vcombine.low %v937_v2, %v940_v47 }
  0x42   : > { %v11022_v31 = vpack.i.bf16 %v3721_v37, %v3720_v56  ;;  %v946_v44 = vsel %vm12389_vm6, %v944_v18, %v945_v34  ;;  %v949_v11 = vsel %vm12389_vm6, %v947_v42, %v948_v50  ;;  %v955_v30 = vrot.slane %v12208_v19, 7 }
  0x43   : > { %v953_v46 = vsel %vm12389_vm6, %v10359_v36, %v952_v26  ;;  %v1810_v56 = vcombine.low %v943_v14, %v946_v44  ;;  %v954_v37 = vrot.slane %v952_v26, 2  ;;  %v1801_v28 = vrot.slane %v1793_v35, %v12188_v5 }
  0x44   : > { %11023 = vrot.lane.b32.xlu1 %v11022_v31, %s12056_s22  ;;  %v1808_v20 = vrot.slane %v1794_v51, %v12188_v5  ;;  %v1811_v54 = vcombine.low %v949_v11, %v953_v46  ;;  %v958_v18 = vrot.slane %v12236_v27, 7  ;;  %v957_v48 = vrot.slane %v955_v30, 2 }
  0x45   : > { %v1818_v42 = vrot.slane %v1810_v56, %v12188_v5  ;;  %v12514_v3 = vsel %vm12389_vm6, %v954_v37, %v955_v30  ;;  %v961_v36 = vrot.slane %v12197_v12, 7  ;;  %v964_v34 = vrot.slane %v12219_v22, 7 }
  0x46   : > { %v1809_v14 = vcombine.low %v1801_v28, %v1808_v20  ;;  %v1825_v26 = vrot.slane %v1811_v54, %v12188_v5  ;;  %v960_v19 = vrot.slane %v958_v18, 2  ;;  %v959_v2 = vsel %vm12389_vm6, %v957_v48, %v958_v18 }
  0x47   : > { %v963_v47 = vrot.slane %v961_v36, 2  ;;  %v967_v27 = vrot.slane %v12215_v21, 7  ;;  %v10360_v50 = vrot.slane %v12202_v15, 9  ;;  %v966_v11 = vrot.slane %v964_v34, 2 }
  0x48   : > { %v1826_v31 = vcombine.low %v1818_v42, %v1825_v26  ;;  %v962_v44 = vsel %vm12389_vm6, %v960_v19, %v961_v36  ;;  %v974_v12 = vrot.slane %v12283_v49, 7  ;;  %v3010_v22 = vcombine.low %v953_v46, %v12514_v3 }
  0x49   : > { %v965_v54 = vsel %vm12389_vm6, %v963_v47, %v964_v34  ;;  %v969_v35 = vrot.slane %v967_v27, 2  ;;  %v3011_v51 = vcombine.low %v959_v2, %v962_v44  ;;  %v968_v21 = vsel %vm12389_vm6, %v966_v11, %v967_v27 }
  0x4a   : > { %v11027_v56 = vpack.i.bf16 %v1826_v31, %v1809_v14  ;;  %v975_v15 = vsel %vm12389_vm6, %v10360_v50, %v974_v12  ;;  %v976_v37 = vrot.slane %v974_v12, 2  ;;  %v19068_v30 = vrot.slane %v12384_v62, 7 }
  0x4b   : > { %v3018_v28 = vrot.slane %v3010_v22, %v12188_v5  ;;  %v3025_v20 = vrot.slane %v3011_v51, %v12188_v5  ;;  %v3027_v18 = vcombine.low %v965_v54, %v968_v21  ;;  %v977_v42 = vrot.slane %v12292_v55, 7 }
  0x4c   : > { %v971_v49 = vsel %vm12389_vm6, %v969_v35, %v19068_v30  ;;  %11028 = vrot.lane.b32.xlu0 %v11027_v56, %s12059_s29  ;;  %v980_v48 = vrot.slane %v12306_v63, 7  ;;  %v983_v36 = vrot.slane %v12288_v53, 7  ;;  %v986_v26 = vrot.slane %v12302_v61, 7 }
  0x4d   : > { %v3028_v46 = vcombine.low %v971_v49, %v975_v15  ;;  %v3026_v14 = vcombine.low %v3018_v28, %v3025_v20  ;;  %v3035_v62 = vrot.slane %v3027_v18, %v12188_v5  ;;  %v989_v19 = vrot.slane %v12298_v60, 7 }
  0x4e   : > { %v978_v47 = vsel %vm12389_vm6, %v976_v37, %v977_v42  ;;  %v979_v27 = vrot.slane %v977_v42, 2  ;;  %v982_v50 = vrot.slane %v980_v48, 2  ;;  %v985_v31 = vrot.slane %v983_v36, 2 }
  0x4f   : > { %v3042_v34 = vrot.slane %v3028_v46, %v12188_v5  ;;  %v988_v55 = vrot.slane %v986_v26, 2  ;;  %v991_v11 = vrot.slane %v989_v19, 2  ;;  %v10361_v63 = vrot.slane %v12295_v57, 9 }
  0x50   : > { %v981_v12 = vsel %vm12389_vm6, %v979_v27, %v980_v48  ;;  %v984_v61 = vsel %vm12389_vm6, %v982_v50, %v983_v36  ;;  %v996_v60 = vrot.slane %v12313_v1, 7  ;;  %v987_v35 = vsel %vm12389_vm6, %v985_v31, %v986_v26 }
  0x51   : > { %v3043_v53 = vcombine.low %v3035_v62, %v3042_v34  ;;  %v990_v22 = vsel %vm12389_vm6, %v988_v55, %v989_v19  ;;  %v19069_v51 = vrot.slane %v12401_v9, 7  ;;  %v1845_v56 = vcombine.low %v975_v15, %v978_v47 }
  0x52   : > { %v997_v30 = vsel %vm12389_vm6, %v10361_v63, %v996_v60  ;;  %v1861_v28 = vcombine.low %v981_v12, %v984_v61  ;;  %v1862_v20 = vcombine.low %v987_v35, %v990_v22  ;;  %v1827_v46 = vcombine.low %v12514_v3, %v959_v2 }
  0x53   : > { %v993_v57 = vsel %vm12389_vm6, %v991_v11, %v19069_v51  ;;  %v11032_v37 = vpack.i.bf16 %v3043_v53, %v3026_v14  ;;  %v1859_v1 = vrot.slane %v1845_v56, %v12188_v5  ;;  %v1828_v42 = vcombine.low %v962_v44, %v965_v54 }
  0x54   : > { %v1878_v18 = vcombine.low %v993_v57, %v997_v30  ;;  %v12569_v9 = vrot.slane %v1861_v28, %v12188_v5  ;;  %v12572_v15 = vrot.slane %v1862_v20, %v12188_v5  ;;  %v1844_v48 = vcombine.low %v968_v21, %v971_v49 }
  0x55   : > { %11033 = vrot.lane.b32.xlu1 %v11032_v37, %s12060_s30  ;;  %v998_v36 = vrot.slane %v996_v60, 2  ;;  %v1835_v62 = vrot.slane %v1827_v46, %v12188_v5  ;;  %v1842_v26 = vrot.slane %v1828_v42, %v12188_v5  ;;  %v999_v3 = vrot.slane %v12309_v0, 7 }
  0x56   : > { %v12575_v14 = vrot.slane %v1878_v18, %v12188_v5  ;;  %v3857_v2 = vcombine.low %v1859_v1, %v12569_v9  ;;  %v1852_v44 = vrot.slane %v1844_v48, %v12188_v5  ;;  %v3044_v54 = vcombine.low %v978_v47, %v981_v12 }
  0x57   : > { %v3045_v19 = vcombine.low %v984_v61, %v987_v35  ;;  %v1843_v21 = vcombine.low %v1835_v62, %v1842_v26  ;;  %v1000_v49 = vsel %vm12389_vm6, %v998_v36, %v999_v3  ;;  %v3061_v27 = vcombine.low %v990_v22, %v993_v57 }
  0x58   : > { %v3858_v34 = vcombine.low %v12572_v15, %v12575_v14  ;;  %v1860_v50 = vcombine.low %v1852_v44, %v1859_v1  ;;  %v3052_v31 = vrot.slane %v3044_v54, %v12188_v5  ;;  %v3062_v11 = vcombine.low %v997_v30, %v1000_v49 }
  0x59   : > { %v3059_v55 = vrot.slane %v3045_v19, %v12188_v5  ;;  %v3069_v53 = vrot.slane %v3061_v27, %v12188_v5  ;;  %v910_v47 = vcombine.high %v12427_v45, %v12427_v45  ;;  %v1001_v12 = vrot.slane %v999_v3, 2 }
  0x5a   : > { %v11037_v63 = vpack.i.bf16 %v3858_v34, %v3857_v2  ;;  %v11042_v61 = vpack.i.bf16 %v1860_v50, %v1843_v21  ;;  %v3076_v35 = vrot.slane %v3062_v11, %v12188_v5  ;;  %v1002_v51 = vrot.slane %v12420_v41, 7 }
  0x5b   : > { %v3060_v60 = vcombine.low %v3052_v31, %v3059_v55  ;;  %v1005_v22 = vrot.slane %v12423_v29, 7  ;;  %v1008_v57 = vrot.slane %v12431_v58, 7  ;;  %v1011_v56 = vrot.slane %v12427_v45, 7 }
  0x5c   : > { %11038 = vrot.lane.b32.xlu0 %v11037_v63, %s12061_s12  ;;  %v1014_v37 = vrot.slane %v910_v47, 7  ;;  %v3077_v30 = vcombine.low %v3069_v53, %v3076_v35  ;;  %v1003_v28 = vsel %vm12389_vm6, %v1001_v12, %v1002_v51  ;;  %v1004_v20 = vrot.slane %v1002_v51, 2 }
  0x5d   : > { %v10362_v1 = vrot.slane %v12434_v8, 9  ;;  %v1007_v18 = vrot.slane %v1005_v22, 2  ;;  %v1010_v46 = vrot.slane %v1008_v57, 2  ;;  %v1013_v42 = vrot.slane %v1011_v56, 2 }
  0x5e   : > { %v1018_v48 = vrot.slane %v12448_v38, 7  ;;  %v11047_v36 = vpack.i.bf16 %v3077_v30, %v3060_v60  ;;  %v1006_v62 = vsel %vm12389_vm6, %v1004_v20, %v1005_v22  ;;  %v1021_v26 = vrot.slane %v12439_v7, 7 }
  0x5f   : > { %v1879_v3 = vcombine.low %v1000_v49, %v1003_v28  ;;  %v1009_v2 = vsel %vm12389_vm6, %v1007_v18, %v1008_v57  ;;  %v1012_v44 = vsel %vm12389_vm6, %v1010_v46, %v1011_v56  ;;  %v1015_v54 = vsel %vm12389_vm6, %v1013_v42, %v1014_v37  ;;  %v394_v46 = vld [vmem:[%s12185_s14 + $0x48] sm:$0xff] }
  0x60   : > { %11043 = vrot.lane.b32.xlu0 %v11042_v61, %s12059_s29  ;;  %v1019_v19 = vsel %vm12389_vm6, %v10362_v1, %v1018_v48  ;;  %11048 = vrot.lane.b32.xlu1 %v11047_v36, %s12060_s30  ;;  %v1020_v34 = vrot.slane %v1018_v48, 2  ;;  %v1895_v49 = vcombine.low %v1006_v62, %v1009_v2  ;;  %v1896_v27 = vcombine.low %v1012_v44, %v1015_v54 }
  0x61   : > { %v1893_v21 = vrot.slane %v1879_v3, %v12188_v5  ;;  %v2370_v50 = vcombine.low %v12309_v0, %v12420_v41  ;;  %v2386_v31 = vcombine.low %v12423_v29, %v12431_v58  ;;  %v2387_v55 = vcombine.low %v12427_v45, %v910_v47  ;;  %v395_v3 = vld [vmem:[%s12185_s14 + $0x50] sm:$0xff] }
  0x62   : > { %v2403_v11 = vcombine.low %v12448_v38, %v12439_v7  ;;  %v1022_v63 = vsel %vm12389_vm6, %v1020_v34, %v1021_v26  ;;  %v12625_v53 = vrot.slane %v1895_v49, %v12188_v5  ;;  %v12628_v12 = vrot.slane %v1896_v27, %v12188_v5 }
  0x63   : > { %v1877_v0 = vcombine.low %v12569_v9, %v12572_v15  ;;  %v1912_v41 = vcombine.low %v1019_v19, %v1022_v63  ;;  %v2384_v29 = vrot.slane %v2370_v50, %v12188_v5  ;;  %v12634_v58 = vrot.slane %v2386_v31, %v12188_v5 }
  0x64   : > { %v12637_v7 = vrot.slane %v2387_v55, %v12188_v5  ;;  %v3859_v38 = vcombine.low %v1893_v21, %v12625_v53  ;;  %v12641_v47 = vrot.slane %v2403_v11, %v12188_v5  ;;  %v1894_v61 = vcombine.low %v12575_v14, %v1893_v21 }
  0x65   : > { %v2368_v60 = vcombine.low %v12371_v52, %v12380_v59  ;;  %v12647_v9 = vrot.slane %v1912_v41, %v12188_v5  ;;  %v2803_v15 = vcombine.low %v2384_v29, %v12634_v58  ;;  %v2385_v35 = vcombine.low %v12395_v6, %v2384_v29 }
  0x66   : > { %v2804_v51 = vcombine.low %v12427_v45, %v12434_v8  ;;  %v4013_v22 = vcombine.low %v12637_v7, %v12641_v47  ;;  %v11062_v57 = vpack.i.bf16 %v1894_v61, %v1877_v0  ;;  %v1023_v14 = vrot.slane %v1021_v26, 2 }
  0x67   : > { %v1024_v56 = vrot.slane %v12456_v39, 7  ;;  %v3860_v52 = vcombine.low %v12628_v12, %v12647_v9  ;;  %v11067_v59 = vpack.i.bf16 %v2385_v35, %v2368_v60  ;;  %v3078_v30 = vcombine.low %v1003_v28, %v1006_v62 }
  0x68   : > { %v2811_v37 = vrot.slane %v2804_v51, %v12188_v5  ;;  %v11057_v20 = vpack.i.bf16 %v4013_v22, %v2803_v15  ;;  %v3079_v1 = vcombine.low %v1009_v2, %v1012_v44  ;;  %v3095_v18 = vcombine.low %v1015_v54, %v1019_v19 }
  0x69   : > { %v12661_v6 = vsel %vm12389_vm6, %v1023_v14, %v1024_v56  ;;  %v11052_v42 = vpack.i.bf16 %v3860_v52, %v3859_v38  ;;  %v3086_v36 = vrot.slane %v3078_v30, %v12188_v5  ;;  %v12673_v34 = vcombine.low %v12459_v16, %v12463_v43 }
  0x6a   : > { %v2812_v48 = vcombine.low %v2811_v37, %v12641_v47  ;;  %v3096_v26 = vcombine.low %v1022_v63, %v12661_v6  ;;  %11058 = vrot.lane.b32.xlu1 %v11057_v20, %s12058_s25  ;;  %v3093_v28 = vrot.slane %v3079_v1, %v12188_v5  ;;  %v3103_v62 = vrot.slane %v3095_v18, %v12188_v5 }
  0x6b   : > { %19070 = vst [vmem:[#allocation15_spill] sm:$0xff] %v12673_v34  ;;  %v10382_v2 = vcombine.high %v12427_v45, %v12434_v8  ;;  %11053 = vrot.lane.b32.xlu0 %v11052_v42, %s12061_s12  ;;  %v594_v19 = vcombine.high %v394_v46, %v394_v46  ;;  %v601_v21 = vrot.slane %v394_v46, %v12188_v5  ;;  %v1026_v8 = vrot.slane %v1024_v56, 2 }
  0x6c   : > { %v11072_v44 = vpack.i.bf16 %v2812_v48, %v2803_v15  ;;  %v3110_v54 = vrot.slane %v3096_v26, %v12188_v5  ;;  %v3094_v49 = vcombine.low %v3086_v36, %v3093_v28  ;;  %v610_v50 = vcombine.high %v395_v3, %v395_v3 }
  0x6d   : > { %v3526_v27 = vrot.slane %v10382_v2, %v12188_v5  ;;  %v12682_v31 = vrot.slane %v395_v3, %v12188_v5  ;;  %v12685_v43 = vrot.slane %v594_v19, %v12188_v5  ;;  %v609_v45 = vcombine.high %v601_v21, %v601_v21 }
  0x6e   : > { %v3111_v16 = vcombine.low %v3103_v62, %v3110_v54  ;;  %11068 = vrot.lane.b32.xlu1 %v11067_v59, %s12055_s16  ;;  %v624_v11 = vrot.slane %v610_v50, %v12188_v5  ;;  %v1027_v0 = vrot.slane %v601_v21, 7  ;;  %v2404_v2 = vcombine.low %v12456_v39, %v601_v21 }
  0x6f   : > { %v3527_v55 = vcombine.low %v3526_v27, %v12482_v13  ;;  %v12692_v63 = vcombine.high %v12682_v31, %v12682_v31  ;;  %11063 = vrot.lane.b32.xlu0 %v11062_v57, %s12059_s29  ;;  %v1488_v29 = vcombine.low %v601_v21, %v609_v45  ;;  %v1489_v38 = vcombine.low %v12685_v43, %v12682_v31 }
  0x70   : > { %v11077_v41 = vpack.i.bf16 %v3111_v16, %v3094_v49  ;;  %v12699_v61 = vcombine.high %v12685_v43, %v12685_v43  ;;  %v12703_v35 = vcombine.high %v624_v11, %v624_v11  ;;  %v12707_v51 = vsel %vm12389_vm6, %v1026_v8, %v1027_v0 }
  0x71   : > { %v11082_v60 = vpack.i.bf16 %v3527_v55, %v12673_v34  ;;  %v1505_v15 = vcombine.low %v12692_v63, %v624_v11  ;;  %v12710_v22 = vrot.slane %v1488_v29, %v12188_v5  ;;  %v12713_v57 = vrot.slane %v1489_v38, %v12188_v5 }
  0x72   : > { %v1029_v14 = vrot.slane %v1027_v0, 2  ;;  %v1030_v56 = vrot.slane %v609_v45, 7  ;;  %11078 = vrot.lane.b32.xlu1 %v11077_v41, %s12060_s30  ;;  %v1033_v59 = vrot.slane %v12685_v43, 7  ;;  %v1036_v37 = vrot.slane %v12699_v61, 7 }
  0x73   : > { %19071 = vst [vmem:[#allocation16_spill] sm:$0xff] %v12710_v22  ;;  %19072 = vst [vmem:[#allocation17_spill] sm:$0xff] %v12713_v57  ;;  %v12717_v52 = vrot.slane %v1505_v15, %v12188_v5  ;;  %v10363_v30 = vrot.slane %v12682_v31, 9  ;;  %11073 = vrot.lane.b32.xlu0 %v11072_v44, %s18845_s15  ;;  %v3722_v1 = vcombine.low %v12482_v13, %v12710_v22  ;;  %v1040_v36 = vrot.slane %v12692_v63, 7 }
  0x74   : > { %v1031_v18 = vsel %vm12389_vm6, %v1029_v14, %v1030_v56  ;;  %v1032_v46 = vrot.slane %v1030_v56, 2  ;;  %v1035_v48 = vrot.slane %v1033_v59, 2  ;;  %v1043_v26 = vrot.slane %v624_v11, 7  ;;  %v396_v56 = vld [vmem:[%s12185_s14 + $0x58] sm:$0xff] }
  0x75   : > { %v3723_v42 = vcombine.low %v12713_v57, %v12717_v52  ;;  %v1046_v28 = vrot.slane %v12703_v35, 7  ;;  %v1913_v62 = vcombine.low %v12661_v6, %v12707_v51  ;;  %v1041_v19 = vsel %vm12389_vm6, %v10363_v30, %v1040_v36 }
  0x76   : > { %v1034_v3 = vsel %vm12389_vm6, %v1032_v46, %v1033_v59  ;;  %v1037_v54 = vsel %vm12389_vm6, %v1035_v48, %v1036_v37  ;;  %v1042_v49 = vrot.slane %v1040_v36, 2  ;;  %v1045_v27 = vrot.slane %v1043_v26, 2 }
  0x77   : > { %v11087_v44 = vpack.i.bf16 %v3723_v42, %v3722_v1  ;;  %11083 = vrot.lane.b32.xlu0 %v11082_v60, %s12057_s24  ;;  %v1927_v50 = vrot.slane %v1913_v62, %v12188_v5  ;;  %v1929_v16 = vcombine.low %v1031_v18, %v1034_v3  ;;  %v1930_v8 = vcombine.low %v1037_v54, %v1041_v19 }
  0x78   : > { %v1044_v39 = vsel %vm12389_vm6, %v1042_v49, %v1043_v26  ;;  %v2418_v6 = vrot.slane %v2404_v2, %v12188_v5  ;;  %v2420_v21 = vcombine.low %v609_v45, %v12685_v43  ;;  %v10376_v55 = vcombine.high %v12685_v43, %v12682_v31 }
  0x79   : > { %11088 = vrot.lane.b32.xlu1 %v11087_v44, %s12056_s22  ;;  %v1047_v0 = vsel %vm12389_vm6, %v1045_v27, %v1046_v28  ;;  %v12754_v41 = vrot.slane %v1929_v16, %v12188_v5  ;;  %v12757_v29 = vrot.slane %v1930_v8, %v12188_v5  ;;  %v2437_v38 = vcombine.low %v624_v11, %v12703_v35  ;;  %v397_v16 = vld [vmem:[%s12185_s14 + $0x60] sm:$0xff] }
  0x7a   : > { %v1946_v60 = vcombine.low %v1044_v39, %v1047_v0  ;;  %v12761_v15 = vrot.slane %v2420_v21, %v12188_v5  ;;  %v12764_v45 = vrot.slane %v10376_v55, %v12188_v5  ;;  %v1911_v14 = vcombine.low %v12625_v53, %v12628_v12 }
  0x7b   : > { %v3861_v59 = vcombine.low %v1927_v50, %v12754_v41  ;;  %v12771_v37 = vrot.slane %v2437_v38, %v12188_v5  ;;  %v1928_v30 = vcombine.low %v12647_v9, %v1927_v50  ;;  %v2402_v11 = vcombine.low %v12634_v58, %v12637_v7  ;;  %v398_v38 = vld [vmem:[%s12185_s14 + $0x68] sm:$0xff] }
  0x7c   : > { %v12777_v1 = vrot.slane %v1946_v60, %v12188_v5  ;;  %v2813_v46 = vcombine.low %v2418_v6, %v12761_v15  ;;  %v2419_v42 = vcombine.low %v12641_v47, %v2418_v6  ;;  %v2814_v53 = vcombine.low %v12682_v31, %v12692_v63 }
  0x7d   : > { %v4014_v12 = vcombine.low %v12764_v45, %v12771_v37  ;;  %v11102_v48 = vpack.i.bf16 %v1928_v30, %v1911_v14  ;;  %v627_v36 = vcombine.high %v396_v56, %v396_v56  ;;  %v12786_v9 = vrot.slane %v396_v56, %v12188_v5 }
  0x7e   : > { %v3862_v58 = vcombine.low %v12757_v29, %v12777_v1  ;;  %v11107_v7 = vpack.i.bf16 %v2419_v42, %v2402_v11  ;;  %v2821_v26 = vrot.slane %v2814_v53, %v12188_v5  ;;  %v1048_v62 = vrot.slane %v1046_v28, 2 }
  0x7f   : > { %v11097_v47 = vpack.i.bf16 %v4014_v12, %v2813_v46  ;;  %v12792_v2 = vrot.slane %v627_v36, %v12188_v5  ;;  %v1049_v31 = vrot.slane %v12786_v9, 7  ;;  %v3112_v63 = vcombine.low %v12707_v51, %v1031_v18 }
  0x80   : > { %v11092_v44 = vpack.i.bf16 %v3862_v58, %v3861_v59  ;;  %v2822_v49 = vcombine.low %v2821_v26, %v12771_v37  ;;  %v3113_v27 = vcombine.low %v1034_v3, %v1037_v54  ;;  %v3129_v50 = vcombine.low %v1041_v19, %v1044_v39 }
  0x81   : > { %11098 = vrot.lane.b32.xlu1 %v11097_v47, %s12058_s25  ;;  %v12801_v28 = vsel %vm12389_vm6, %v1048_v62, %v1049_v31  ;;  %v3120_v8 = vrot.slane %v3112_v63, %v12188_v5  ;;  %v1506_v6 = vcombine.low %v12703_v35, %v12786_v9  ;;  %v3528_v51 = vcombine.low %v12685_v43, %v12699_v61 }
  0x82   : > { %11093 = vrot.lane.b32.xlu0 %v11092_v44, %s12061_s12  ;;  %v11112_v18 = vpack.i.bf16 %v2822_v49, %v2813_v46  ;;  %v3127_v3 = vrot.slane %v3113_v27, %v12188_v5  ;;  %v3130_v54 = vcombine.low %v1047_v0, %v12801_v28  ;;  %v3137_v19 = vrot.slane %v3129_v50, %v12188_v5 }
  0x83   : > { %v1520_v39 = vrot.slane %v1506_v6, %v12188_v5  ;;  %v3535_v21 = vrot.slane %v3528_v51, %v12188_v5  ;;  %v12816_v55 = vcombine.high %v12786_v9, %v12786_v9  ;;  %v643_v35 = vcombine.high %v397_v16, %v397_v16 }
  0x84   : > { %v3128_v43 = vcombine.low %v3120_v8, %v3127_v3  ;;  %v3144_v61 = vrot.slane %v3130_v54, %v12188_v5  ;;  %v12821_v60 = vrot.slane %v397_v16, %v12188_v5  ;;  %v660_v14 = vcombine.high %v398_v38, %v398_v38 }
  0x85   : > { %11108 = vrot.lane.b32.xlu1 %v11107_v7, %s12055_s16  ;;  %v12825_v0 = vcombine.low %v12717_v52, %v1520_v39  ;;  %v3536_v56 = vcombine.low %v12710_v22, %v3535_v21  ;;  %v657_v59 = vrot.slane %v643_v35, %v12188_v5  ;;  %v1522_v30 = vcombine.low %v12816_v55, %v12792_v2 }
  0x86   : > { %11103 = vrot.lane.b32.xlu0 %v11102_v48, %s12059_s29  ;;  %v3145_v11 = vcombine.low %v3137_v19, %v3144_v61  ;;  %v658_v46 = vcombine.high %v12821_v60, %v12821_v60  ;;  %v12835_v42 = vrot.slane %v398_v38, %v12188_v5  ;;  %v12838_v53 = vrot.slane %v660_v14, %v12188_v5 }
  0x87   : > { %19073 = vst [vmem:[#allocation18_spill] sm:$0xff] %v12825_v0  ;;  %v11122_v52 = vpack.i.bf16 %v12825_v0, %v3536_v56  ;;  %v659_v12 = vcombine.high %v657_v59, %v657_v59  ;;  %v12842_v36 = vrot.slane %v1522_v30, %v12188_v5  ;;  %v912_v58 = vcombine.high %v12792_v2, %v12792_v2 }
  0x88   : > { %v11117_v48 = vpack.i.bf16 %v3145_v11, %v3128_v43  ;;  %v1523_v7 = vcombine.low %v12821_v60, %v658_v46  ;;  %v1051_v26 = vrot.slane %v1049_v31, 2  ;;  %v1052_v62 = vrot.slane %v12816_v55, 7 }
  0x89   : > { %19074 = vst [vmem:[#allocation19_spill] sm:$0xff] %v12842_v36  ;;  %v1539_v47 = vcombine.low %v657_v59, %v659_v12  ;;  %v3724_v63 = vcombine.low %v1520_v39, %v12842_v36  ;;  %v1055_v44 = vrot.slane %v12792_v2, 7  ;;  %v1058_v49 = vrot.slane %v912_v58, 7 }
  0x8a   : > { %11113 = vrot.lane.b32.xlu0 %v11112_v18, %s18845_s15  ;;  %11118 = vrot.lane.b32.xlu1 %v11117_v48, %s12060_s30  ;;  %v12853_v27 = vrot.slane %v1523_v7, %v12188_v5  ;;  %v1053_v50 = vsel %vm12389_vm6, %v1051_v26, %v1052_v62  ;;  %v1054_v16 = vrot.slane %v1052_v62, 2  ;;  %v10364_v31 = vrot.slane %v12821_v60, 9 }
  0x8b   : > { %v12859_v8 = vrot.slane %v1539_v47, %v12188_v5  ;;  %v1057_v6 = vrot.slane %v1055_v44, 2  ;;  %v1062_v51 = vrot.slane %v658_v46, 7  ;;  %v1065_v3 = vrot.slane %v657_v59, 7 }
  0x8c   : > { %19075 = vst [vmem:[#allocation20_spill] sm:$0xff] %v12853_v27  ;;  %v1056_v54 = vsel %vm12389_vm6, %v1054_v16, %v1055_v44  ;;  %v1068_v19 = vrot.slane %v659_v12, 7  ;;  %v1071_v39 = vrot.slane %v12835_v42, 7  ;;  %v1947_v56 = vcombine.low %v12801_v28, %v1053_v50 }
  0x8d   : > { %v3725_v21 = vcombine.low %v12853_v27, %v12859_v8  ;;  %v1059_v35 = vsel %vm12389_vm6, %v1057_v6, %v1058_v49  ;;  %v1063_v38 = vsel %vm12389_vm6, %v10364_v31, %v1062_v51  ;;  %v1064_v43 = vrot.slane %v1062_v51, 2 }
  0x8e   : > { %11123 = vrot.lane.b32.xlu0 %v11122_v52, %s12057_s24  ;;  %v1067_v61 = vrot.slane %v1065_v3, 2  ;;  %v1070_v14 = vrot.slane %v1068_v19, 2  ;;  %v1963_v30 = vcombine.low %v1056_v54, %v1059_v35  ;;  %v2438_v7 = vcombine.low %v12786_v9, %v12816_v55 }
  0x8f   : > { %v11127_v11 = vpack.i.bf16 %v3725_v21, %v3724_v63  ;;  %v1066_v48 = vsel %vm12389_vm6, %v1064_v43, %v1065_v3  ;;  %v2454_v26 = vcombine.low %v12792_v2, %v912_v58  ;;  %v1961_v47 = vrot.slane %v1947_v56, %v12188_v5 }
  0x90   : > { %v1069_v62 = vsel %vm12389_vm6, %v1067_v61, %v1068_v19  ;;  %v1072_v52 = vsel %vm12389_vm6, %v1070_v14, %v1071_v39  ;;  %v1964_v44 = vcombine.low %v1063_v38, %v1066_v48  ;;  %v12886_v28 = vrot.slane %v1963_v30, %v12188_v5 }
  0x91   : > { %11128 = vrot.lane.b32.xlu1 %v11127_v11, %s12056_s22  ;;  %v1980_v63 = vcombine.low %v1069_v62, %v1072_v52  ;;  %v2452_v49 = vrot.slane %v2438_v7, %v12188_v5  ;;  %v2455_v9 = vcombine.low %v658_v46, %v657_v59  ;;  %v12893_v58 = vrot.slane %v2454_v26, %v12188_v5  ;;  %v399_v7 = vld [vmem:[%s12185_s14 + $0x70] sm:$0xff] }
  0x92   : > { %v12890_v55 = vrot.slane %v1964_v44, %v12188_v5  ;;  %v2471_v16 = vcombine.low %v659_v12, %v12835_v42  ;;  %v1945_v31 = vcombine.low %v12754_v41, %v12757_v29  ;;  %v3863_v51 = vcombine.low %v1961_v47, %v12886_v28 }
  0x93   : > { %v12899_v6 = vrot.slane %v1980_v63, %v12188_v5  ;;  %v12903_v3 = vrot.slane %v2455_v9, %v12188_v5  ;;  %v1962_v59 = vcombine.low %v12777_v1, %v1961_v47  ;;  %v4015_v19 = vcombine.low %v2452_v49, %v12893_v58 }
  0x94   : > { %v12907_v46 = vrot.slane %v2471_v16, %v12188_v5  ;;  %v2436_v12 = vcombine.low %v12761_v15, %v12764_v45  ;;  %v2453_v41 = vcombine.low %v12771_v37, %v2452_v49  ;;  %v2823_v43 = vcombine.low %v12792_v2, %v12821_v60 }
  0x95   : > { %v3864_v29 = vcombine.low %v12890_v55, %v12899_v6  ;;  %v11142_v21 = vpack.i.bf16 %v1962_v59, %v1945_v31  ;;  %v12919_v1 = vcombine.high %v12835_v42, %v12835_v42  ;;  %v1073_v56 = vrot.slane %v1071_v39, 2 }
  0x96   : > { %v2832_v61 = vcombine.low %v12903_v3, %v12907_v46  ;;  %v11147_v14 = vpack.i.bf16 %v2453_v41, %v2436_v12  ;;  %v3146_v30 = vcombine.low %v1053_v50, %v1056_v54  ;;  %v2830_v45 = vrot.slane %v2823_v43, %v12188_v5 }
  0x97   : > { %v11132_v15 = vpack.i.bf16 %v3864_v29, %v3863_v51  ;;  %v1074_v37 = vrot.slane %v12919_v1, 7  ;;  %v3147_v11 = vcombine.low %v1059_v35, %v1063_v38  ;;  %v3163_v44 = vcombine.low %v1066_v48, %v1069_v62  ;;  %v400_v48 = vld [vmem:[%s12185_s14 + $0x78] sm:$0xff] }
  0x98   : > { %v11137_v26 = vpack.i.bf16 %v2832_v61, %v4015_v19  ;;  %v3154_v47 = vrot.slane %v3146_v30, %v12188_v5  ;;  %v1540_v63 = vcombine.low %v12835_v42, %v12919_v1  ;;  %v2831_v9 = vcombine.low %v2452_v49, %v2830_v45 }
  0x99   : > { %11133 = vrot.lane.b32.xlu0 %v11132_v15, %s12061_s12  ;;  %v12932_v50 = vsel %vm12389_vm6, %v1073_v56, %v1074_v37  ;;  %v3161_v54 = vrot.slane %v3147_v11, %v12188_v5  ;;  %v10383_v39 = vcombine.high %v12792_v2, %v12821_v60  ;;  %v3171_v38 = vrot.slane %v3163_v44, %v12188_v5 }
  0x9a   : > { %11138 = vrot.lane.b32.xlu1 %v11137_v26, %s12058_s25  ;;  %v3164_v35 = vcombine.low %v1072_v52, %v12932_v50  ;;  %v1554_v42 = vrot.slane %v1540_v63, %v12188_v5  ;;  %v676_v62 = vcombine.high %v399_v7, %v399_v7  ;;  %v11152_v49 = vpack.i.bf16 %v2832_v61, %v2831_v9 }
  0x9b   : > { %v3162_v16 = vcombine.low %v3154_v47, %v3161_v54  ;;  %v3544_v31 = vrot.slane %v10383_v39, %v12188_v5  ;;  %v12944_v51 = vrot.slane %v399_v7, %v12188_v5  ;;  %v693_v52 = vcombine.high %v400_v48, %v400_v48 }
  0x9c   : > { %v3178_v59 = vrot.slane %v3164_v35, %v12188_v5  ;;  %v12948_v2 = vcombine.low %v12859_v8, %v1554_v42  ;;  %v12951_v60 = vrot.slane %v676_v62, %v12188_v5  ;;  %v700_v41 = vrot.slane %v400_v48, %v12188_v5 }
  0x9d   : > { %11143 = vrot.lane.b32.xlu0 %v11142_v21, %s12059_s29  ;;  %v3545_v19 = vcombine.low %v12842_v36, %v3544_v31  ;;  %v12957_v12 = vcombine.high %v12944_v51, %v12944_v51  ;;  %v1556_v29 = vcombine.low %v12838_v53, %v12944_v51  ;;  %v12966_v61 = vrot.slane %v693_v52, %v12188_v5 }
  0x9e   : > { %19076 = vst [vmem:[#allocation21_spill] sm:$0xff] %v12948_v2  ;;  %11148 = vrot.lane.b32.xlu1 %v11147_v14, %s12055_s16  ;;  %v3179_v8 = vcombine.low %v3171_v38, %v3178_v59  ;;  %v692_v43 = vcombine.high %v12951_v60, %v12951_v60  ;;  %v12970_v21 = vcombine.high %v12838_v53, %v12838_v53  ;;  %v1076_v7 = vrot.slane %v1074_v37, 2 }
  0x9f   : > { %v11162_v56 = vpack.i.bf16 %v12948_v2, %v3545_v19  ;;  %v1557_v30 = vcombine.low %v12957_v12, %v12951_v60  ;;  %v12976_v15 = vrot.slane %v1556_v29, %v12188_v5  ;;  %v12978_v14 = vcombine.high %v700_v41, %v700_v41 }
  0xa0   : > { %v11157_v45 = vpack.i.bf16 %v3179_v8, %v3162_v16  ;;  %v1573_v11 = vcombine.low %v692_v43, %v700_v41  ;;  %v1077_v26 = vrot.slane %v12838_v53, 7  ;;  %v1080_v63 = vrot.slane %v12970_v21, 7 }
  0xa1   : > { %19077 = vst [vmem:[#allocation22_spill] sm:$0xff] %v12976_v15  ;;  %11153 = vrot.lane.b32.xlu0 %v11152_v49, %s18845_s15  ;;  %v12983_v47 = vrot.slane %v1557_v30, %v12188_v5  ;;  %v3726_v44 = vcombine.low %v1554_v42, %v12976_v15  ;;  %v10365_v9 = vrot.slane %v12944_v51, 9  ;;  %v1084_v35 = vrot.slane %v12957_v12, 7 }
  0xa2   : > { %11158 = vrot.lane.b32.xlu1 %v11157_v45, %s12060_s30  ;;  %v12990_v54 = vrot.slane %v1573_v11, %v12188_v5  ;;  %v12994_v37 = vsel %vm12389_vm6, %v1076_v7, %v1077_v26  ;;  %v1079_v39 = vrot.slane %v1077_v26, 2  ;;  %v1087_v42 = vrot.slane %v12951_v60, 7 }
  0xa3   : > { %19078 = vst [vmem:[#allocation23_spill] sm:$0xff] %v12983_v47  ;;  %v1090_v48 = vrot.slane %v692_v43, 7  ;;  %v1093_v62 = vrot.slane %v700_v41, 7  ;;  %v1085_v31 = vsel %vm12389_vm6, %v10365_v9, %v1084_v35  ;;  %v1086_v59 = vrot.slane %v1084_v35, 2 }
  0xa4   : > { %v3727_v49 = vcombine.low %v12983_v47, %v12990_v54  ;;  %v1081_v16 = vsel %vm12389_vm6, %v1079_v39, %v1080_v63  ;;  %v1089_v52 = vrot.slane %v1087_v42, 2  ;;  %v1096_v8 = vrot.slane %v12978_v14, 7 }
  0xa5   : > { %11163 = vrot.lane.b32.xlu0 %v11162_v56, %s12057_s24  ;;  %v1092_v19 = vrot.slane %v1090_v48, 2  ;;  %v1095_v29 = vrot.slane %v1093_v62, 2  ;;  %v1088_v45 = vsel %vm12389_vm6, %v1086_v59, %v1087_v42  ;;  %v1981_v11 = vcombine.low %v12932_v50, %v12994_v37 }
  0xa6   : > { %v11167_v30 = vpack.i.bf16 %v3727_v49, %v3726_v44  ;;  %v1997_v7 = vcombine.low %v1081_v16, %v1085_v31  ;;  %v1091_v26 = vsel %vm12389_vm6, %v1089_v52, %v1090_v48  ;;  %v2472_v9 = vcombine.low %v12919_v1, %v12838_v53 }
  0xa7   : > { %v1094_v63 = vsel %vm12389_vm6, %v1092_v19, %v1093_v62  ;;  %v1097_v56 = vsel %vm12389_vm6, %v1095_v29, %v1096_v8  ;;  %v1995_v44 = vrot.slane %v1981_v11, %v12188_v5  ;;  %v1998_v39 = vcombine.low %v1088_v45, %v1091_v26 }
  0xa8   : > { %11168 = vrot.lane.b32.xlu1 %v11167_v30, %s12056_s22  ;;  %v13023_v50 = vrot.slane %v1997_v7, %v12188_v5  ;;  %v2014_v35 = vcombine.low %v1094_v63, %v1097_v56  ;;  %v2486_v42 = vrot.slane %v2472_v9, %v12188_v5  ;;  %v10377_v48 = vcombine.high %v12838_v53, %v12944_v51 }
  0xa9   : > { %v2489_v62 = vcombine.low %v12951_v60, %v692_v43  ;;  %v2505_v49 = vcombine.low %v700_v41, %v12978_v14  ;;  %v13031_v1 = vrot.slane %v1998_v39, %v12188_v5  ;;  %v1979_v19 = vcombine.low %v12886_v28, %v12890_v55 }
  0xaa   : > { %v13034_v59 = vrot.slane %v2014_v35, %v12188_v5  ;;  %v3865_v52 = vcombine.low %v1995_v44, %v13023_v50  ;;  %v13040_v29 = vrot.slane %v10377_v48, %v12188_v5  ;;  %v1996_v41 = vcombine.low %v12899_v6, %v1995_v44 }
  0xab   : > { %v13043_v30 = vrot.slane %v2489_v62, %v12188_v5  ;;  %v13046_v60 = vrot.slane %v2505_v49, %v12188_v5  ;;  %v2470_v11 = vcombine.low %v12893_v58, %v12903_v3  ;;  %v2487_v28 = vcombine.low %v12907_v46, %v2486_v42 }
  0xac   : > { %v3866_v43 = vcombine.low %v13031_v1, %v13034_v59  ;;  %v2833_v55 = vcombine.low %v12944_v51, %v12957_v12  ;;  %v4016_v9 = vcombine.low %v2486_v42, %v13040_v29  ;;  %v11182_v39 = vpack.i.bf16 %v1996_v41, %v1979_v19  ;;  %v401_v51 = vld [vmem:[%s12185_s14 + $0x80] sm:$0xff] }
  0xad   : > { %v2842_v7 = vcombine.low %v13043_v30, %v13046_v60  ;;  %v1098_v35 = vrot.slane %v1096_v8, 2  ;;  %v11187_v44 = vpack.i.bf16 %v2487_v28, %v2470_v11  ;;  %v1099_v62 = vrot.slane %v12966_v61, 7 }
  0xae   : > { %v11172_v6 = vpack.i.bf16 %v3866_v43, %v3865_v52  ;;  %v2840_v48 = vrot.slane %v2833_v55, %v12188_v5  ;;  %v3180_v3 = vcombine.low %v12994_v37, %v1081_v16  ;;  %v3181_v46 = vcombine.low %v1085_v31, %v1088_v45 }
  0xaf   : > { %v11177_v58 = vpack.i.bf16 %v2842_v7, %v4016_v9  ;;  %v3197_v49 = vcombine.low %v1091_v26, %v1094_v63  ;;  %v13066_v19 = vsel %vm12389_vm6, %v1098_v35, %v1099_v62  ;;  %v1574_v8 = vcombine.low %v12978_v14, %v12966_v61  ;;  %v402_v26 = vld [vmem:[%s12185_s14 + $0x88] sm:$0xff] }
  0xb0   : > { %11173 = vrot.lane.b32.xlu0 %v11172_v6, %s12061_s12  ;;  %v2841_v12 = vcombine.low %v2486_v42, %v2840_v48  ;;  %v3546_v52 = vcombine.low %v12838_v53, %v12970_v21  ;;  %v3188_v37 = vrot.slane %v3180_v3, %v12188_v5  ;;  %v3195_v16 = vrot.slane %v3181_v46, %v12188_v5 }
  0xb1   : > { %11178 = vrot.lane.b32.xlu1 %v11177_v58, %s12058_s25  ;;  %v3198_v31 = vcombine.low %v1097_v56, %v13066_v19  ;;  %v3205_v45 = vrot.slane %v3197_v49, %v12188_v5  ;;  %v1588_v42 = vrot.slane %v1574_v8, %v12188_v5  ;;  %v709_v14 = vcombine.high %v401_v51, %v401_v51 }
  0xb2   : > { %v11192_v63 = vpack.i.bf16 %v2842_v7, %v2841_v12  ;;  %v3553_v41 = vrot.slane %v3546_v52, %v12188_v5  ;;  %v3196_v43 = vcombine.low %v3188_v37, %v3195_v16  ;;  %v13082_v21 = vrot.slane %v401_v51, %v12188_v5 }
  0xb3   : > { %v3212_v53 = vrot.slane %v3198_v31, %v12188_v5  ;;  %v726_v11 = vcombine.high %v402_v26, %v402_v26  ;;  %v13086_v56 = vcombine.low %v12990_v54, %v1588_v42  ;;  %v723_v55 = vrot.slane %v709_v14, %v12188_v5 }
  0xb4   : > { %11183 = vrot.lane.b32.xlu0 %v11182_v39, %s12059_s29  ;;  %v3554_v28 = vcombine.low %v3553_v41, %v12983_v47  ;;  %v733_v7 = vrot.slane %v402_v26, %v12188_v5  ;;  %v724_v35 = vcombine.high %v13082_v21, %v13082_v21  ;;  %v914_v39 = vcombine.high %v12966_v61, %v12966_v61 }
  0xb5   : > { %19079 = vst [vmem:[#allocation24_spill] sm:$0xff] %v13086_v56  ;;  %11188 = vrot.lane.b32.xlu1 %v11187_v44, %s12055_s16  ;;  %v3213_v9 = vcombine.low %v3205_v45, %v3212_v53  ;;  %v13095_v6 = vrot.slane %v726_v11, %v12188_v5  ;;  %v725_v48 = vcombine.high %v723_v55, %v723_v55  ;;  %v1101_v3 = vrot.slane %v1099_v62, 2 }
  0xb6   : > { %v11202_v54 = vpack.i.bf16 %v13086_v56, %v3554_v28  ;;  %v741_v58 = vcombine.high %v733_v7, %v733_v7  ;;  %v1590_v49 = vcombine.low %v13082_v21, %v724_v35  ;;  %v1102_v51 = vrot.slane %v914_v39, 7 }
  0xb7   : > { %v11197_v46 = vpack.i.bf16 %v3213_v9, %v3196_v43  ;;  %v10366_v44 = vrot.slane %v13082_v21, 9  ;;  %v1591_v12 = vcombine.low %v723_v55, %v725_v48  ;;  %v1106_v52 = vrot.slane %v724_v35, 7 }
  0xb8   : > { %11193 = vrot.lane.b32.xlu0 %v11192_v63, %s18845_s15  ;;  %v1607_v8 = vcombine.low %v733_v7, %v741_v58  ;;  %v1109_v37 = vrot.slane %v723_v55, 7  ;;  %v13105_v16 = vrot.slane %v1590_v49, %v12188_v5  ;;  %v1103_v62 = vsel %vm12389_vm6, %v1101_v3, %v1102_v51 }
  0xb9   : > { %11198 = vrot.lane.b32.xlu1 %v11197_v46, %s12060_s30  ;;  %v1112_v31 = vrot.slane %v725_v48, 7  ;;  %v1115_v45 = vrot.slane %v733_v7, 7  ;;  %v13110_v26 = vrot.slane %v1591_v12, %v12188_v5  ;;  %v1107_v63 = vsel %vm12389_vm6, %v10366_v44, %v1106_v52 }
  0xba   : > { %19080 = vst [vmem:[#allocation25_spill] sm:$0xff] %v13105_v16  ;;  %v13113_v41 = vrot.slane %v1607_v8, %v12188_v5  ;;  %v1108_v14 = vrot.slane %v1106_v52, 2  ;;  %v3728_v43 = vcombine.low %v1588_v42, %v13105_v16  ;;  %v1111_v53 = vrot.slane %v1109_v37, 2 }
  0xbb   : > { %19081 = vst [vmem:[#allocation26_spill] sm:$0xff] %v13110_v26  ;;  %v1114_v11 = vrot.slane %v1112_v31, 2  ;;  %v1117_v28 = vrot.slane %v1115_v45, 2  ;;  %v1118_v49 = vrot.slane %v741_v58, 7  ;;  %v1121_v44 = vrot.slane %v13095_v6, 7 }
  0xbc   : > { %19082 = vst [vmem:[#allocation27_spill] sm:$0xff] %v13113_v41  ;;  %11203 = vrot.lane.b32.xlu0 %v11202_v54, %s12057_s24  ;;  %v3729_v3 = vcombine.low %v13110_v26, %v13113_v41  ;;  %v1110_v46 = vsel %vm12389_vm6, %v1108_v14, %v1109_v37  ;;  %v1113_v51 = vsel %vm12389_vm6, %v1111_v53, %v1112_v31 }
  0xbd   : > { %v1116_v42 = vsel %vm12389_vm6, %v1114_v11, %v1115_v45  ;;  %v2015_v54 = vcombine.low %v13066_v19, %v1103_v62  ;;  %v1119_v8 = vsel %vm12389_vm6, %v1117_v28, %v1118_v49  ;;  %v1120_v52 = vrot.slane %v1118_v49, 2 }
  0xbe   : > { %v11207_v12 = vpack.i.bf16 %v3729_v3, %v3728_v43  ;;  %v2031_v9 = vcombine.low %v1107_v63, %v1110_v46  ;;  %v2032_v37 = vcombine.low %v1113_v51, %v1116_v42  ;;  %v2506_v14 = vcombine.low %v12966_v61, %v914_v39 }
  0xbf   : > { %v2029_v38 = vrot.slane %v2015_v54, %v12188_v5  ;;  %v2522_v18 = vcombine.low %v724_v35, %v723_v55  ;;  %v1122_v31 = vsel %vm12389_vm6, %v1120_v52, %v1121_v44  ;;  %v2523_v19 = vcombine.low %v725_v48, %v733_v7 }
  0xc0   : > { %11208 = vrot.lane.b32.xlu1 %v11207_v12, %s12056_s22  ;;  %v13139_v45 = vrot.slane %v2031_v9, %v12188_v5  ;;  %v2539_v43 = vcombine.low %v741_v58, %v13095_v6  ;;  %v13143_v53 = vrot.slane %v2032_v37, %v12188_v5  ;;  %v2048_v11 = vcombine.low %v1119_v8, %v1122_v31 }
  0xc1   : > { %v2520_v28 = vrot.slane %v2506_v14, %v12188_v5  ;;  %v13147_v39 = vrot.slane %v2522_v18, %v12188_v5  ;;  %v13151_v35 = vrot.slane %v2523_v19, %v12188_v5  ;;  %v2013_v7 = vcombine.low %v13023_v50, %v13031_v1  ;;  %v403_v19 = vld [vmem:[%s12185_s14 + $0x90] sm:$0xff] }
  0xc2   : > { %v3867_v55 = vcombine.low %v2029_v38, %v13139_v45  ;;  %v13154_v9 = vrot.slane %v2539_v43, %v12188_v5  ;;  %v13159_v48 = vrot.slane %v2048_v11, %v12188_v5  ;;  %v2030_v18 = vcombine.low %v13034_v59, %v2029_v38 }
  0xc3   : > { %v4017_v58 = vcombine.low %v2520_v28, %v13147_v39  ;;  %v2504_v3 = vcombine.low %v13040_v29, %v13043_v30  ;;  %v2521_v54 = vcombine.low %v13046_v60, %v2520_v28  ;;  %v2843_v12 = vcombine.low %v12966_v61, %v13082_v21 }
  0xc4   : > { %v2852_v49 = vcombine.low %v13151_v35, %v13154_v9  ;;  %v915_v50 = vcombine.high %v13095_v6, %v13095_v6  ;;  %v3868_v1 = vcombine.low %v13143_v53, %v13159_v48  ;;  %v11222_v52 = vpack.i.bf16 %v2030_v18, %v2013_v7  ;;  %v404_v7 = vld [vmem:[%s12185_s14 + $0x98] sm:$0xff] }
  0xc5   : > { %v1123_v37 = vrot.slane %v1121_v44, 2  ;;  %v3214_v38 = vcombine.low %v1103_v62, %v1107_v63  ;;  %v11227_v29 = vpack.i.bf16 %v2521_v54, %v2504_v3  ;;  %v2850_v30 = vrot.slane %v2843_v12, %v12188_v5 }
  0xc6   : > { %v11217_v59 = vpack.i.bf16 %v2852_v49, %v4017_v58  ;;  %v1124_v14 = vrot.slane %v915_v50, 7  ;;  %v11212_v60 = vpack.i.bf16 %v3868_v1, %v3867_v55  ;;  %v3215_v43 = vcombine.low %v1110_v46, %v1113_v51 }
  0xc7   : > { %v3222_v11 = vrot.slane %v3214_v38, %v12188_v5  ;;  %v3231_v28 = vcombine.low %v1116_v42, %v1119_v8  ;;  %v2851_v20 = vcombine.low %v2850_v30, %v13147_v39  ;;  %v10384_v62 = vcombine.high %v12966_v61, %v13082_v21 }
  0xc8   : > { %11218 = vrot.lane.b32.xlu1 %v11217_v59, %s12058_s25  ;;  %v13181_v44 = vsel %vm12389_vm6, %v1123_v37, %v1124_v14  ;;  %v3564_v63 = vcombine.low %v13095_v6, %v915_v50  ;;  %11213 = vrot.lane.b32.xlu0 %v11212_v60, %s12061_s12  ;;  %v3229_v46 = vrot.slane %v3215_v43, %v12188_v5 }
  0xc9   : > { %v3232_v51 = vcombine.low %v1122_v31, %v13181_v44  ;;  %v3239_v42 = vrot.slane %v3231_v28, %v12188_v5  ;;  %v742_v8 = vcombine.high %v403_v19, %v403_v19  ;;  %v11232_v55 = vpack.i.bf16 %v2852_v49, %v2851_v20 }
  0xca   : > { %v3562_v58 = vrot.slane %v10384_v62, %v12188_v5  ;;  %v3571_v18 = vrot.slane %v3564_v63, %v12188_v5  ;;  %v13194_v3 = vrot.slane %v403_v19, %v12188_v5  ;;  %v3230_v61 = vcombine.low %v3222_v11, %v3229_v46 }
  0xcb   : > { %v3246_v21 = vrot.slane %v3232_v51, %v12188_v5  ;;  %v13198_v54 = vrot.slane %v742_v8, %v12188_v5  ;;  %v759_v12 = vcombine.high %v404_v7, %v404_v7  ;;  %v13208_v50 = vrot.slane %v404_v7, %v12188_v5  ;;  %v13237_v51 = vpop.permute.xlu1 %10988 }
  0xcc   : > { %11228 = vrot.lane.b32.xlu1 %v11227_v29, %s12055_s16  ;;  %v3563_v31 = vcombine.low %v3562_v58, %v13110_v26  ;;  %v3572_v20 = vcombine.low %v13113_v41, %v3571_v18  ;;  %v13205_v49 = vcombine.high %v13194_v3, %v13194_v3  ;;  %11223 = vrot.lane.b32.xlu0 %v11222_v52, %s12059_s29  ;;  %v13218_v29 = vpop.permute.xlu0 %10983  ;;  %v10367_v52 = vrot.slane %v13194_v3, 9 }
  0xcd   : > { %v3247_v1 = vcombine.low %v3239_v42, %v3246_v21  ;;  %v758_v37 = vcombine.high %v13198_v54, %v13198_v54  ;;  %v13214_v38 = vrot.slane %v759_v12, %v12188_v5  ;;  %v1608_v59 = vcombine.low %v13095_v6, %v13194_v3 }
  0xce   : > { %v11242_v30 = vpack.i.bf16 %v3572_v20, %v3563_v31  ;;  %v774_v14 = vcombine.high %v13208_v50, %v13208_v50  ;;  %v1624_v19 = vcombine.low %v13205_v49, %v13198_v54  ;;  %v1128_v7 = vrot.slane %v13205_v49, 7 }
  0xcf   : > { %v11237_v60 = vpack.i.bf16 %v3247_v1, %v3230_v61  ;;  %v13226_v43 = vrot.slane %v1608_v59, %v12188_v5  ;;  %v1625_v11 = vcombine.low %v758_v37, %v13208_v50  ;;  %v916_v28 = vcombine.high %v13214_v38, %v13214_v38  ;;  %v13272_v47 = vpop.permute.xlu1 %10998 }
  0xd0   : > { %v13232_v62 = vrot.slane %v1624_v19, %v12188_v5  ;;  %v1641_v63 = vcombine.low %v774_v14, %v13214_v38  ;;  %v1131_v46 = vrot.slane %v13198_v54, 7  ;;  %11233 = vrot.lane.b32.xlu0 %v11232_v55, %s18845_s15  ;;  %v1134_v58 = vrot.slane %v758_v37, 7  ;;  %v13256_v19 = vpop.permute.xlu0 %10993 }
  0xd1   : > { %19083 = vst [vmem:[#allocation28_spill] sm:$0xff] %v13226_v43  ;;  %11238 = vrot.lane.b32.xlu1 %v11237_v60, %s12060_s30  ;;  %v13242_v42 = vrot.slane %v1625_v11, %v12188_v5  ;;  %v1137_v18 = vrot.slane %v13208_v50, 7  ;;  %v13254_v55 = vsel %vm12389_vm6, %v10367_v52, %v1128_v7  ;;  %v1130_v12 = vrot.slane %v1128_v7, 2 }
  0xd2   : > { %v13248_v61 = vrot.slane %v1641_v63, %v12188_v5  ;;  %v3730_v21 = vcombine.low %v13226_v43, %v13232_v62  ;;  %v1133_v31 = vrot.slane %v1131_v46, 2  ;;  %v1136_v20 = vrot.slane %v1134_v58, 2 }
  0xd3   : > { %v1139_v1 = vrot.slane %v1137_v18, 2  ;;  %v1140_v59 = vrot.slane %v774_v14, 7  ;;  %v1132_v11 = vsel %vm12389_vm6, %v1130_v12, %v1131_v46  ;;  %v1143_v63 = vrot.slane %v13214_v38, 7 }
  0xd4   : > { %19084 = vst [vmem:[#allocation29_spill] sm:$0xff] %v13248_v61  ;;  %v3731_v60 = vcombine.low %v13242_v42, %v13248_v61  ;;  %v1146_v8 = vrot.slane %v916_v28, 7  ;;  %11243 = vrot.lane.b32.xlu0 %v11242_v30, %s12057_s24  ;;  %v1135_v52 = vsel %vm12389_vm6, %v1133_v31, %v1134_v58  ;;  %v1138_v7 = vsel %vm12389_vm6, %v1136_v20, %v1137_v18 }
  0xd5   : > { %v1141_v26 = vsel %vm12389_vm6, %v1139_v1, %v1140_v59  ;;  %v1142_v16 = vrot.slane %v1140_v59, 2  ;;  %v1145_v41 = vrot.slane %v1143_v63, 2  ;;  %v2049_v46 = vcombine.low %v13181_v44, %v13254_v55 }
  0xd6   : > { %v11247_v43 = vpack.i.bf16 %v3731_v60, %v3730_v21  ;;  %v2065_v12 = vcombine.low %v1132_v11, %v1135_v52  ;;  %v2066_v15 = vcombine.low %v1138_v7, %v1141_v26  ;;  %v10378_v58 = vcombine.high %v13095_v6, %v13194_v3 }
  0xd7   : > { %v1144_v30 = vsel %vm12389_vm6, %v1142_v16, %v1143_v63  ;;  %v2556_v18 = vcombine.low %v13198_v54, %v758_v37  ;;  %v13282_v21 = vsel %vm12389_vm6, %v1145_v41, %v1146_v8  ;;  %v2063_v44 = vrot.slane %v2049_v46, %v12188_v5  ;;  %v13297_v41 = vpop.permute.xlu0 %11013  ;;  %v405_v63 = vld [vmem:[%s12185_s14 + $0xa0] sm:$0xff] }
  0xd8   : > { %11248 = vrot.lane.b32.xlu1 %v11247_v43, %s12056_s22  ;;  %v13286_v31 = vrot.slane %v2065_v12, %v12188_v5  ;;  %v2557_v16 = vcombine.low %v13208_v50, %v774_v14  ;;  %v13290_v20 = vrot.slane %v2066_v15, %v12188_v5  ;;  %v2082_v6 = vcombine.low %v1144_v30, %v13282_v21 }
  0xd9   : > { %v2554_v54 = vrot.slane %v10378_v58, %v12188_v5  ;;  %v13295_v37 = vrot.slane %v2556_v18, %v12188_v5  ;;  %v2573_v1 = vcombine.low %v13214_v38, %v916_v28  ;;  %v2047_v15 = vcombine.low %v13139_v45, %v13143_v53  ;;  %v13320_v53 = vpop.permute.xlu1 %11003 }
  0xda   : > { %v3869_v43 = vcombine.low %v2063_v44, %v13286_v31  ;;  %v13301_v8 = vrot.slane %v2557_v16, %v12188_v5  ;;  %v13307_v50 = vrot.slane %v2082_v6, %v12188_v5  ;;  %v2064_v59 = vcombine.low %v13159_v48, %v2063_v44  ;;  %19085 = vst [vmem:[#allocation30_spill] sm:$0xff] %v13320_v53 }
  0xdb   : > { %v4018_v14 = vcombine.low %v2554_v54, %v13295_v37  ;;  %v2538_v60 = vcombine.low %v13147_v39, %v13151_v35  ;;  %v13315_v46 = vrot.slane %v2573_v1, %v12188_v5  ;;  %v2555_v12 = vcombine.low %v13154_v9, %v2554_v54 }
  0xdc   : > { %v3870_v58 = vcombine.low %v13290_v20, %v13307_v50  ;;  %v11262_v18 = vpack.i.bf16 %v2064_v59, %v2047_v15  ;;  %v782_v9 = vrot.slane %v405_v63, %v12188_v5  ;;  %v2853_v16 = vcombine.low %v13194_v3, %v13205_v49  ;;  %v13332_v15 = vpop.permute.xlu0 %11018 }
  0xdd   : > { %v4019_v35 = vcombine.low %v13301_v8, %v13315_v46  ;;  %v11267_v44 = vpack.i.bf16 %v2555_v12, %v2538_v60  ;;  %v3248_v54 = vcombine.low %v13254_v55, %v1132_v11  ;;  %v3249_v1 = vcombine.low %v1135_v52, %v1138_v7 }
  0xde   : > { %v11252_v6 = vpack.i.bf16 %v3870_v58, %v3869_v43  ;;  %v3265_v28 = vcombine.low %v1141_v26, %v1144_v30  ;;  %v2860_v45 = vrot.slane %v2853_v16, %v12188_v5  ;;  %v2862_v48 = vcombine.low %v13214_v38, %v782_v9  ;;  %v406_v30 = vld [vmem:[%s12185_s14 + $0xa8] sm:$0xff]  ;;  %v13348_v43 = vpop.permute.xlu1 %11008 }
  0xdf   : > { %v11257_v59 = vpack.i.bf16 %v4019_v35, %v4018_v14  ;;  %v13336_v39 = vcombine.high %v782_v9, %v782_v9  ;;  %v10368_v60 = vrot.slane %v782_v9, 9  ;;  %v3256_v3 = vrot.slane %v3248_v54, %v12188_v5  ;;  %v407_v35 = vld [vmem:[%s12185_s14 + $0xb0] sm:$0xff] }
  0xe0   : > { %11253 = vrot.lane.b32.xlu0 %v11252_v6, %s12061_s12  ;;  %v3263_v49 = vrot.slane %v3249_v1, %v12188_v5  ;;  %v3273_v26 = vrot.slane %v3265_v28, %v12188_v5  ;;  %v2861_v55 = vcombine.low %v2860_v45, %v13295_v37  ;;  %v2869_v11 = vrot.slane %v2862_v48, %v12188_v5 }
  0xe1   : > { %11258 = vrot.lane.b32.xlu1 %v11257_v59, %s12058_s25  ;;  %v1150_v52 = vrot.slane %v13336_v39, 7  ;;  %v13361_v48 = vcombine.low %v13232_v62, %v13242_v42  ;;  %v10385_v6 = vcombine.high %v13214_v38, %v782_v9  ;;  %v775_v1 = vcombine.high %v405_v63, %v405_v63 }
  0xe2   : > { %v3264_v14 = vcombine.low %v3256_v3, %v3263_v49  ;;  %v2870_v16 = vcombine.low %v13301_v8, %v2869_v11  ;;  %v792_v59 = vcombine.high %v406_v30, %v406_v30  ;;  %v13368_v3 = vrot.slane %v406_v30, %v12188_v5  ;;  %v13370_v49 = vpop.permute.xlu0 %11028 }
  0xe3   : > { %v13357_v45 = vsel %vm12389_vm6, %v10368_v60, %v1150_v52  ;;  %19086 = vst [vmem:[#allocation31_spill] sm:$0xff] %v13361_v48  ;;  %v3580_v62 = vrot.slane %v10385_v6, %v12188_v5  ;;  %v808_v42 = vcombine.high %v407_v35, %v407_v35  ;;  %v13375_v38 = vrot.slane %v407_v35, %v12188_v5 }
  0xe4   : > { %11263 = vrot.lane.b32.xlu0 %v11262_v18, %s12059_s29  ;;  %v3266_v54 = vcombine.low %v13282_v21, %v13357_v45  ;;  %v11272_v60 = vpack.i.bf16 %v2870_v16, %v2861_v55  ;;  %v13379_v21 = vrot.slane %v775_v1, %v12188_v5  ;;  %v13382_v63 = vrot.slane %v792_v59, %v12188_v5  ;;  %v13397_v16 = vpop.permute.xlu1 %11023 }
  0xe5   : > { %11268 = vrot.lane.b32.xlu1 %v11267_v44, %s12055_s16  ;;  %v13386_v11 = vcombine.high %v13368_v3, %v13368_v3  ;;  %v3581_v44 = vcombine.low %v13248_v61, %v3580_v62  ;;  %v13390_v55 = vrot.slane %v808_v42, %v12188_v5  ;;  %v13394_v30 = vcombine.high %v13375_v38, %v13375_v38 }
  0xe6   : > { %v3280_v18 = vrot.slane %v3266_v54, %v12188_v5  ;;  %v1642_v35 = vcombine.low %v782_v9, %v13336_v39  ;;  %v13402_v54 = vcombine.high %v13379_v21, %v13379_v21  ;;  %v1675_v59 = vcombine.low %v13382_v63, %v13375_v38  ;;  %v13423_v28 = vpop.permute.xlu0 %11038 }
  0xe7   : > { %v1659_v1 = vcombine.low %v13368_v3, %v13386_v11  ;;  %v11282_v62 = vpack.i.bf16 %v3581_v44, %v13361_v48  ;;  %v1676_v9 = vcombine.low %v13394_v30, %v13390_v55  ;;  %v1159_v58 = vrot.slane %v13368_v3, 7 }
  0xe8   : > { %11273 = vrot.lane.b32.xlu0 %v11272_v60, %s18845_s15  ;;  %v3281_v6 = vcombine.low %v3273_v26, %v3280_v18  ;;  %v13410_v42 = vrot.slane %v1642_v35, %v12188_v5  ;;  %v1658_v18 = vcombine.low %v13379_v21, %v13402_v54  ;;  %v13421_v7 = vrot.slane %v1675_v59, %v12188_v5 }
  0xe9   : > { %v13418_v12 = vrot.slane %v1659_v1, %v12188_v5  ;;  %v13426_v44 = vrot.slane %v1676_v9, %v12188_v5  ;;  %v13442_v9 = vcombine.high %v13382_v63, %v13382_v63  ;;  %v1152_v26 = vrot.slane %v1150_v52, 2 }
  0xea   : > { %19087 = vst [vmem:[#allocation32_spill] sm:$0xff] %v13410_v42  ;;  %v11277_v60 = vpack.i.bf16 %v3281_v6, %v3264_v14  ;;  %19088 = vst [vmem:[#allocation33_spill] sm:$0xff] %v13421_v7  ;;  %v13435_v6 = vrot.slane %v1658_v18, %v12188_v5  ;;  %v13448_v14 = vpop.permute.xlu1 %11033  ;;  %v1162_v59 = vrot.slane %v13386_v11, 7  ;;  %v1165_v48 = vrot.slane %v13382_v63, 7  ;;  %v13460_v57 = vpop.permute.xlu0 %11043 }
  0xeb   : > { %19089 = vst [vmem:[#allocation34_spill] sm:$0xff] %v13426_v44  ;;  %v3733_v1 = vcombine.low %v13418_v12, %v13421_v7  ;;  %v1168_v7 = vrot.slane %v13442_v9, 7  ;;  %v1161_v27 = vrot.slane %v1159_v58, 2 }
  0xec   : > { %11278 = vrot.lane.b32.xlu1 %v11277_v60, %s12060_s30  ;;  %11283 = vrot.lane.b32.xlu0 %v11282_v62, %s12057_s24  ;;  %v1153_v60 = vrot.slane %v13379_v21, 7  ;;  %v1156_v62 = vrot.slane %v13402_v54, 7  ;;  %v3732_v18 = vcombine.low %v13410_v42, %v13435_v6  ;;  %v1164_v36 = vrot.slane %v1162_v59, 2 }
  0xed   : > { %v1167_v2 = vrot.slane %v1165_v48, 2 }
  0xee   : > { %v13457_v61 = vsel %vm12389_vm6, %v1152_v26, %v1153_v60  ;;  %v1155_v52 = vrot.slane %v1153_v60, 2  ;;  %v1158_v35 = vrot.slane %v1156_v62, 2  ;;  %v11287_v56 = vpack.i.bf16 %v3733_v1, %v3732_v18 }
  0xef   : > { %v10369_v26 = vrot.slane %v13375_v38, 9  ;;  %v1172_v60 = vrot.slane %v13394_v30, 7  ;;  %v13475_v1 = vsel %vm12389_vm6, %v1161_v27, %v1162_v59  ;;  %v13479_v18 = vsel %vm12389_vm6, %v1164_v36, %v1165_v48  ;;  %v13497_v48 = vpop.permute.xlu1 %11048 }
  0xf0   : > { %v13464_v42 = vsel %vm12389_vm6, %v1155_v52, %v1156_v62  ;;  %v13468_v22 = vsel %vm12389_vm6, %v1158_v35, %v1159_v58  ;;  %11288 = vrot.lane.b32.xlu1 %v11287_v56, %s12056_s22  ;;  %v13483_v62 = vsel %vm12389_vm6, %v1167_v2, %v1168_v7  ;;  %v2083_v58 = vcombine.low %v13357_v45, %v13457_v61 }
  0xf1   : > { %v13489_v35 = vsel %vm12389_vm6, %v10369_v26, %v1172_v60  ;;  %v2099_v56 = vcombine.low %v13464_v42, %v13468_v22  ;;  %v2100_v27 = vcombine.low %v13475_v1, %v13479_v18  ;;  %v2574_v36 = vcombine.low %v13336_v39, %v13379_v21 }
  0xf2   : > { %v2097_v2 = vrot.slane %v2083_v58, %v12188_v5  ;;  %v2116_v7 = vcombine.low %v13483_v62, %v13489_v35  ;;  %v2590_v45 = vcombine.low %v13402_v54, %v13368_v3  ;;  %v2591_v59 = vcombine.low %v13386_v11, %v13382_v63  ;;  %v13525_v54 = vpop.permute.xlu0 %11053 }
  0xf3   : > { %v13507_v52 = vrot.slane %v2099_v56, %v12188_v5  ;;  %v13510_v26 = vrot.slane %v2100_v27, %v12188_v5  ;;  %v2588_v39 = vrot.slane %v2574_v36, %v12188_v5  ;;  %v10379_v21 = vcombine.high %v13382_v63, %v13375_v38  ;;  %v13545_v40 = vpop.permute.xlu1 %11058 }
  0xf4   : > { %v13516_v58 = vrot.slane %v2116_v7, %v12188_v5  ;;  %v13519_v0 = vrot.slane %v2590_v45, %v12188_v5  ;;  %v13522_v3 = vrot.slane %v2591_v59, %v12188_v5  ;;  %v2081_v11 = vcombine.low %v13286_v31, %v13290_v20 }
  0xf5   : > { %v3871_v56 = vcombine.low %v2097_v2, %v13507_v52  ;;  %v13529_v27 = vrot.slane %v10379_v21, %v12188_v5  ;;  %v2098_v21 = vcombine.low %v13307_v50, %v2097_v2  ;;  %v2572_v36 = vcombine.low %v13295_v37, %v13301_v8 }
  0xf6   : > { %19090 = vst [vmem:[#allocation35_spill] sm:$0xff] %v13516_v58  ;;  %19091 = vst [vmem:[#allocation36_spill] sm:$0xff] %v13519_v0  ;;  %v3872_v45 = vcombine.low %v13510_v26, %v13516_v58  ;;  %v2871_v34 = vcombine.low %v2588_v39, %v13519_v0  ;;  %v2589_v7 = vcombine.low %v13315_v46, %v2588_v39  ;;  %v11026_v0 = vunpack.i.h.bf16 %v13397_v16  ;;  %v19093_v46 = vld [vmem:[#allocation6_spill] sm:$0xff]  ;;  %v13559_v39 = vpop.permute.xlu0 %11063 }
  0xf7   : > { %19092 = vst [vmem:[#allocation37_spill] sm:$0xff] %v13529_v27  ;;  %v4020_v13 = vcombine.low %v13522_v3, %v13529_v27  ;;  %v11025_v59 = vunpack.i.l.bf16 %v13397_v16  ;;  %v1352_v31 = vcombine.low %v12205_v17, %v12226_v24  ;;  %v11302_v58 = vpack.i.bf16 %v2098_v21, %v2081_v11 }
  0xf8   : > { %v11292_v53 = vpack.i.bf16 %v3872_v45, %v3871_v56  ;;  %v11307_v27 = vpack.i.bf16 %v2589_v7, %v2572_v36  ;;  %v1353_v50 = vcombine.low %v12222_v23, %v12247_v32  ;;  %v1369_v8 = vcombine.low %v12229_v25, %v12251_v33  ;;  %v13574_v36 = vpop.permute.xlu1 %11068 }
  0xf9   : > { %v11297_v20 = vpack.i.bf16 %v4020_v13, %v2871_v34  ;;  %v1360_v37 = vrot.slane %v1352_v31, %v12188_v5  ;;  %v1370_v2 = vcombine.low %v19093_v46, %v12194_v10  ;;  %v11031_v23 = vunpack.i.h.bf16 %v13370_v49 }
  0xfa   : > { %11293 = vrot.lane.b32.xlu0 %v11292_v53, %s12061_s12  ;;  %v1367_v17 = vrot.slane %v1353_v50, %v12188_v5  ;;  %v11030_v24 = vunpack.i.l.bf16 %v13370_v49  ;;  %v1377_v32 = vrot.slane %v1369_v8, %v12188_v5  ;;  %v2872_v25 = vcombine.low %v13375_v38, %v13394_v30 }
  0xfb   : > { %11298 = vrot.lane.b32.xlu1 %v11297_v20, %s12058_s25  ;;  %v1384_v13 = vrot.slane %v1370_v2, %v12188_v5  ;;  %v1174_v10 = vrot.slane %v1172_v60, 2  ;;  %v1175_v53 = vrot.slane %v13390_v55, 7  ;;  %v3282_v11 = vcombine.low %v13457_v61, %v13464_v42 }
  0xfc   : > { %v1368_v33 = vcombine.low %v1360_v37, %v1367_v17  ;;  %v3283_v56 = vcombine.low %v13468_v22, %v13475_v1  ;;  %v2879_v7 = vrot.slane %v2872_v25, %v12188_v5  ;;  %v3299_v38 = vcombine.low %v13479_v18, %v13483_v62 }
  0xfd   : > { %v1385_v49 = vcombine.low %v1377_v32, %v1384_v13  ;;  %v13586_v22 = vsel %vm12389_vm6, %v1174_v10, %v1175_v53  ;;  %v3290_v61 = vrot.slane %v3282_v11, %v12188_v5  ;;  %v19094_v1 = vunpack.i.l.bf16 %v13218_v29 }
  0xfe   : > { %11303 = vrot.lane.b32.xlu0 %v11302_v58, %s12059_s29  ;;  %v4134_v30 = vsel %vm4133_vm7, %v1368_v33, %v11030_v24  ;;  %v3297_v42 = vrot.slane %v3283_v56, %v12188_v5  ;;  %v2880_v62 = vcombine.low %v13522_v3, %v2879_v7  ;;  %v3300_v58 = vcombine.low %v13489_v35, %v13586_v22 }
  0xff   : > { %11308 = vrot.lane.b32.xlu1 %v11307_v27, %s12055_s16  ;;  %v4135_v60 = vsel %vm4133_vm7, %v1385_v49, %v11031_v23  ;;  %v4160_v18 = vsel %vm4159_vm8, %v4134_v30, %v19094_v1  ;;  %v13597_v27 = vpop.permute.xlu0 %11073  ;;  %v19095_v45 = vunpack.i.h.bf16 %v13218_v29  ;;  %v3307_v20 = vrot.slane %v3299_v38, %v12188_v5  ;;  %v13612_v23 = vpop.permute.xlu1 %11078  ;;  %v408_v30 = vld [vmem:[%s12185_s14 + $0xb8] sm:$0xff]  ;;  %v11885_v1 = vld [vmem:[%s18800_s1 + $0x8] sm:$0x3f]  }
 0x100   : > { %v3298_v31 = vcombine.low %v3290_v61, %v3297_v42  ;;  %v11312_v50 = vpack.i.bf16 %v2880_v62, %v2871_v34  ;;  %v3314_v37 = vrot.slane %v3300_v58, %v12188_v5  ;;  %v11036_v8 = vunpack.i.h.bf16 %v13448_v14 }
 0x101   : > { %v4161_v21 = vsel %vm4159_vm8, %v4135_v60, %v19095_v45  ;;  %v11035_v46 = vunpack.i.l.bf16 %v13448_v14  ;;  %v19096_v35 = vunpack.i.l.bf16 %v13237_v51  ;;  %v19097_v29 = vunpack.i.h.bf16 %v13237_v51 }
 0x102   : > { %11313 = vrot.lane.b32.xlu0 %v11312_v50, %s18845_s15  ;;  %v3315_v34 = vcombine.low %v3307_v20, %v3314_v37  ;;  %v11041_v14 = vunpack.i.h.bf16 %v13423_v28  ;;  %v19098_v13 = vunpack.i.h.bf16 %v13256_v19  ;;  %v11040_v25 = vunpack.i.l.bf16 %v13423_v28  ;;  %s19128_s15 = smov 9  }
 0x103   : > { %v4186_v2 = vsel %vm4185_vm9, %v4160_v18, %v19096_v35  ;;  %v4187_v17 = vsel %vm4185_vm9, %v4161_v21, %v19097_v29  ;;  %v19099_v33 = vunpack.i.l.bf16 %v13256_v19  ;;  %v19100_v56 = vunpack.i.h.bf16 %v13272_v47  ;;  %v13634_v61 = vpop.permute.xlu0 %11083  ;;  %v13660_v45 = vpop.permute.xlu1 %11088 }
 0x104   : > { %v4213_v24 = vsel %vm4211_vm10, %v4187_v17, %v11036_v8  ;;  %v4212_v32 = vsel %vm4211_vm10, %v4186_v2, %v11035_v46  ;;  %v11317_v10 = vpack.i.bf16 %v3315_v34, %v3298_v31  ;;  %v18848_v7 = vmov 0.0   ;;  %v19103_v34 = vld [vmem:[#allocation10_spill] sm:$0xff] }
 0x105   : > { %v4239_v51 = vsel %vm4237_vm11, %v4213_v24, %v19098_v13  ;;  %v4238_v11 = vsel %vm4237_vm11, %v4212_v32, %v19099_v33  ;;  %10795 = vmatprep.subr.bf16.mxu0 %v18848_v7  ;;  %v13631_v38 = vcombine.low %v13435_v6, %v13418_v12  ;;  %v19102_v28 = vunpack.i.l.bf16 %v13272_v47  ;;  %v409_v12 = vld [vmem:[%s12185_s14 + $0xc0] sm:$0xff]  ;;  %v19104_v24 = vld [vmem:[#allocation7_spill] sm:$0xff]  ;;  %10799 = vmatprep.mubr.msk.bf16.mxu0 %vm12064_vm1, %v18848_v7 }
 0x106   : > { %v4265_v49 = vsel %vm4263_vm12, %v4239_v51, %v19100_v56  ;;  %v3582_v60 = vcombine.low %v13382_v63, %v13442_v9  ;;  %11318 = vrot.lane.b32.xlu1 %v11317_v10, %s12060_s30  ;;  %v13654_v47 = vcombine.high %v13390_v55, %v13390_v55  ;;  %v12063_v62 = vmov 65535   ;;  %v11888_v56 = vld [vmem:[%s18800_s1] sm:$0xff]  }
 0x107   : > { %19101 = vst [vmem:[#allocation6_spill] sm:$0xff] %v13631_v38  ;;  %v4264_v19 = vsel %vm4263_vm12, %v4238_v11, %v19102_v28  ;;  %v13640_v42 = vsel %vm4289_vm13, %v4265_v49, %v11041_v14  ;;  %v4418_v63 = vsel %vm4416_vm14, 4294967295, %v12063_v62  ;;  %v825_v9 = vcombine.high %v408_v30, %v408_v30  ;;  %v13687_v13 = vpop.permute.xlu0 %11093 }
 0x108   : > { %v13650_v6 = vsel %vm4289_vm13, %v4264_v19, %v11040_v25  ;;  %v3589_v18 = vrot.slane %v3582_v60, %v12188_v5  ;;  %v13658_v58 = vrot.slane %v408_v30, %v12188_v5  ;;  %v4419_v21 = vsel %vm4417_vm15, %v4418_v63, 0  ;;  %v19107_v60 = vld [vmem:[#allocation11_spill] sm:$0xff]  ;;  %v13720_v63 = vpop.permute.xlu1 %11098 }
 0x109   : > { %v841_v31 = vcombine.high %v409_v12, %v409_v12  ;;  %v13663_v20 = vrot.slane %v409_v12, %v12188_v5  ;;  %v11046_v50 = vunpack.i.h.bf16 %v13460_v57  ;;  %v4421_v8 = vand.u32 %v11885_v1, %v4419_v21 }
 0x10a   : > { %v3590_v37 = vcombine.low %v3589_v18, %v13426_v44  ;;  %v13668_v46 = vrot.slane %v825_v9, %v12188_v5  ;;  %v13672_v35 = vcombine.high %v13658_v58, %v13658_v58  ;;  %v1692_v17 = vcombine.low %v13654_v47, %v13658_v58 }
 0x10b   : > { %v13675_v2 = vrot.slane %v841_v31, %v12188_v5  ;;  %v13679_v29 = vcombine.high %v13663_v20, %v13663_v20  ;;  %v19105_v14 = vcombine.low %v19103_v34, %v19104_v24  ;;  %10796 = vmatpush3.bf16.msra.mxu0 %v4421_v8  ;;  %v19106_v10 = vunpack.i.h.bf16 %v13348_v43 }
 0x10c   : > { %v11322_v51 = vpack.i.bf16 %v3590_v37, %v13631_v38  ;;  %v1693_v25 = vcombine.low %v13672_v35, %v13668_v46  ;;  %v11045_v11 = vunpack.i.l.bf16 %v13460_v57  ;;  %v13704_v30 = vrot.slane %v1692_v17, %v12188_v5  ;;  %10797 = vmatprep.subr.bf16.mxu0 %v18848_v7 }
 0x10d   : > { %v4137_v32 = vsel %vm4133_vm7, %v19105_v14, %v11046_v50  ;;  %v13701_v49 = vcombine.high %v13675_v2, %v13675_v2  ;;  %v1709_v28 = vcombine.low %v13663_v20, %v13679_v29  ;;  %v11051_v19 = vunpack.i.h.bf16 %v13497_v48 }
 0x10e   : > { %v4163_v33 = vsel %vm4159_vm8, %v4137_v32, %v19106_v10  ;;  %11323 = vrot.lane.b32.xlu0 %v11322_v51, %s12057_s24  ;;  %v13712_v57 = vrot.slane %v1693_v25, %v12188_v5  ;;  %v4136_v1 = vsel %vm4133_vm7, %v19107_v60, %v11045_v11  ;;  %v11050_v12 = vunpack.i.l.bf16 %v13497_v48  ;;  %v13749_v25 = vpop.permute.xlu0 %11103 }
 0x10f   : > { %v19108_v18 = vunpack.i.h.bf16 %v13297_v41  ;;  %v1710_v9 = vcombine.low %v13675_v2, %v13701_v49  ;;  %v13725_v21 = vrot.slane %v1709_v28, %v12188_v5  ;;  %v3734_v31 = vcombine.low %v13426_v44, %v13704_v30  ;;  %10798 = vmatpush3.bf16.msra.mxu0 %v11888_v56 }
 0x110   : > { %v19110_v50 = vunpack.i.l.bf16 %v13348_v43  ;;  %v19111_v48 = vunpack.i.l.bf16 %v13297_v41  ;;  %v918_v34 = vcombine.high %v13668_v46, %v13668_v46  ;;  %v1177_v24 = vrot.slane %v1175_v53, 2 }
 0x111   : > { %v4189_v62 = vsel %vm4185_vm9, %v4163_v33, %v19108_v18  ;;  %19109 = vst [vmem:[#allocation10_spill] sm:$0xff] %v13725_v21  ;;  %v13741_v14 = vrot.slane %v1710_v9, %v12188_v5  ;;  %v3735_v43 = vcombine.low %v13712_v57, %v13725_v21  ;;  %v19113_v41 = vunpack.i.h.bf16 %v13332_v15  ;;  %v13764_v9 = vpop.permute.xlu1 %11108 }
 0x112   : > { %v4162_v37 = vsel %vm4159_vm8, %v4136_v1, %v19110_v50  ;;  %v4215_v17 = vsel %vm4211_vm10, %v4189_v62, %v11051_v19  ;;  %v19114_v10 = vunpack.i.l.bf16 %v13332_v15  ;;  %v1178_v53 = vrot.slane %v13654_v47, 7 }
 0x113   : > { %v4188_v8 = vsel %vm4185_vm9, %v4162_v37, %v19111_v48  ;;  %19112 = vst [vmem:[#allocation7_spill] sm:$0xff] %v13741_v14  ;;  %v4241_v51 = vsel %vm4237_vm11, %v4215_v17, %v19113_v41  ;;  %v1181_v11 = vrot.slane %v13658_v58, 7  ;;  %v1184_v56 = vrot.slane %v13672_v35, 7 }
 0x114   : > { %v4214_v32 = vsel %vm4211_vm10, %v4188_v8, %v11050_v12  ;;  %v11327_v19 = vpack.i.bf16 %v3735_v43, %v3734_v31  ;;  %v1187_v60 = vrot.slane %v13668_v46, 7  ;;  %v1190_v1 = vrot.slane %v918_v34, 7 }
 0x115   : > { %v4240_v33 = vsel %vm4237_vm11, %v4214_v32, %v19114_v10  ;;  %v13762_v12 = vsel %vm12389_vm6, %v1177_v24, %v1178_v53  ;;  %v1180_v15 = vrot.slane %v1178_v53, 2  ;;  %v1183_v18 = vrot.slane %v1181_v11, 2 }
 0x116   : > { %v1186_v62 = vrot.slane %v1184_v56, 2  ;;  %11328 = vrot.lane.b32.xlu1 %v11327_v19, %s12056_s22  ;;  %v1189_v50 = vrot.slane %v1187_v60, 2  ;;  %v10370_v37 = vrot.slane %v13663_v20, 9  ;;  %v1194_v48 = vrot.slane %v13679_v29, 7 }
 0x117   : > { %v18847_v31 = vrot.slane %v13675_v2, 7  ;;  %v13772_v8 = vsel %vm12389_vm6, %v1180_v15, %v1181_v11  ;;  %v13776_v17 = vsel %vm12389_vm6, %v1183_v18, %v1184_v56  ;;  %v2117_v43 = vcombine.low %v13586_v22, %v13762_v12  ;;  %v13794_v11 = vpop.permute.xlu0 %11113 }
 0x118   : > { %v13780_v24 = vsel %vm12389_vm6, %v1186_v62, %v1187_v60  ;;  %v13786_v32 = vsel %vm12389_vm6, %v1189_v50, %v1190_v1  ;;  %v13790_v41 = vsel %vm12389_vm6, %v10370_v37, %v1194_v48  ;;  %v1196_v10 = vrot.slane %v1194_v48, 2 }
 0x119   : > { %v2133_v53 = vcombine.low %v13772_v8, %v13776_v17  ;;  %v2131_v56 = vrot.slane %v2117_v43, %v12188_v5  ;;  %v2134_v19 = vcombine.low %v13780_v24, %v13786_v32  ;;  %v2608_v22 = vcombine.low %v13390_v55, %v13654_v47 }
 0x11a   : > { %v2624_v60 = vcombine.low %v13658_v58, %v13672_v35  ;;  %v13807_v1 = vsel %vm12389_vm6, %v1196_v10, %v18847_v31  ;;  %v2625_v18 = vcombine.low %v13668_v46, %v918_v34  ;;  %v2641_v62 = vcombine.low %v13679_v29, %v13675_v2  ;;  %v13824_v35 = vpop.permute.xlu1 %11118 }
 0x11b   : > { %v13810_v15 = vrot.slane %v2133_v53, %v12188_v5  ;;  %v13816_v50 = vrot.slane %v2134_v19, %v12188_v5  ;;  %v2150_v55 = vcombine.low %v13790_v41, %v13807_v1  ;;  %v2622_v47 = vrot.slane %v2608_v22, %v12188_v5 }
 0x11c   : > { %v13822_v58 = vrot.slane %v2624_v60, %v12188_v5  ;;  %v13828_v34 = vrot.slane %v2625_v18, %v12188_v5  ;;  %v13831_v29 = vrot.slane %v2641_v62, %v12188_v5  ;;  %v11056_v48 = vunpack.i.h.bf16 %v13525_v54  ;;  %v13849_v18 = vpop.permute.xlu0 %11123 }
 0x11d   : > { %v3873_v37 = vcombine.low %v2131_v56, %v13810_v15  ;;  %v13835_v43 = vrot.slane %v2150_v55, %v12188_v5  ;;  %v11055_v53 = vunpack.i.l.bf16 %v13525_v54  ;;  %v4266_v19 = vsel %vm4263_vm12, %v4240_v33, %v11025_v59  ;;  %v19115_v33 = vld [vmem:[#allocation35_spill] sm:$0xff] }
 0x11e   : > { %v13838_v10 = vcombine.low %v2622_v47, %v13822_v58  ;;  %v4021_v22 = vcombine.low %v13828_v34, %v13831_v29  ;;  %v4267_v60 = vsel %vm4263_vm12, %v4241_v51, %v11026_v0  ;;  %v11061_v59 = vunpack.i.h.bf16 %v13545_v40 }
 0x11f   : > { %v3874_v62 = vcombine.low %v13816_v50, %v13835_v43  ;;  %v4292_v55 = vsel %vm4289_vm13, %v4266_v19, %v11055_v53  ;;  %v4293_v54 = vsel %vm4289_vm13, %v4267_v60, %v11056_v48  ;;  %v11060_v0 = vunpack.i.l.bf16 %v13545_v40  ;;  %v19116_v48 = vld [vmem:[#allocation30_spill] sm:$0xff]  ;;  %v13874_v40 = vpop.permute.xlu1 %11128 }
 0x120   : > { %v11337_v16 = vpack.i.bf16 %v4021_v22, %v13838_v10  ;;  %v2115_v51 = vcombine.low %v13507_v52, %v13510_v26  ;;  %v2132_v28 = vcombine.low %v19115_v33, %v2131_v56  ;;  %v13864_v53 = vsel %vm4315_vm0, %v4293_v54, %v11061_v59 }
 0x121   : > { %v11332_v31 = vpack.i.bf16 %v3874_v62, %v3873_v37  ;;  %v19117_v19 = vunpack.i.l.bf16 %v19116_v48  ;;  %v19118_v7 = vunpack.i.h.bf16 %v19116_v48  ;;  %v4318_v52 = vsel %vm4315_vm0, %v4292_v55, %v11060_v0  ;;  %v19119_v37 = vld [vmem:[#allocation36_spill] sm:$0xff]  ;;  %v13891_v0 = vpop.permute.xlu0 %11133 }
 0x122   : > { %11338 = vrot.lane.b32.xlu1 %v11337_v16, %s12058_s25  ;;  %v11342_v26 = vpack.i.bf16 %v2132_v28, %v2115_v51  ;;  %v2606_v62 = vcombine.low %v19119_v37, %v13522_v3  ;;  %v11066_v59 = vunpack.i.h.bf16 %v13559_v39  ;;  %v11070_v55 = vunpack.i.l.bf16 %v13574_v36  ;;  %v19123_v51 = vld [vmem:[#allocation9_spill] sm:$0xff]  ;;  %v19125_v48 = vld [vmem:[#allocation12_spill] sm:$0xff] }
 0x123   : > { %v4316_v60 = vsel %vm4315_vm0, %v13650_v6, %v19117_v19  ;;  %v4317_v22 = vsel %vm4315_vm0, %v13640_v42, %v19118_v7  ;;  %11333 = vrot.lane.b32.xlu0 %v11332_v31, %s12061_s12  ;;  %v19120_v6 = vld [vmem:[#allocation37_spill] sm:$0xff]  ;;  %v11065_v7 = vunpack.i.l.bf16 %v13559_v39  ;;  %v11071_v42 = vunpack.i.h.bf16 %v13574_v36 }
 0x124   : > { %v4341_v56 = vpack.c.bf16 %v4317_v22, %v4316_v60  ;;  %v2623_v54 = vcombine.low %v19120_v6, %v2622_v47  ;;  %v2882_v28 = vcombine.low %v13668_v46, %v13663_v20  ;;  %v19121_v31 = vrot.slane %v13675_v2, 7  ;;  %v19122_v47 = vld [vmem:[#allocation8_spill] sm:$0xff] }
 0x125   : > { %v19124_v33 = vcombine.low %v19122_v47, %v19123_v51  ;;  %v4138_v19 = vsel %vm4133_vm7, %v19125_v48, %v11065_v7  ;;  %v1200_v60 = vrot.slane %v13701_v49, 7  ;;  %v19126_v36 = vmov 0.0   ;;  %v13937_v47 = vpop.permute.xlu0 %11143 }
 0x126   : > { %10800 = vmatmul.mubr.msk.bf16.vlgmr.msra.gmra.mxu0 %vm4376_vm2, %v4341_v56  ;;  %v1199_v16 = vrot.slane %v19121_v31, 2  ;;  %v11347_v3 = vpack.i.bf16 %v2623_v54, %v2606_v62  ;;  %v4164_v22 = vsel %vm4159_vm8, %v4138_v19, %v11070_v55  ;;  %v2889_v56 = vrot.slane %v2882_v28, %v12188_v5 }
 0x127   : > { %v4139_v39 = vsel %vm4133_vm7, %v19124_v33, %v11066_v59  ;;  %10803 = vmatprep.mubr.msk.bf16.mxu0 %vm12064_vm1, %v19126_v36  ;;  %v3316_v37 = vcombine.low %v13762_v12, %v13772_v8  ;;  %11343 = vrot.lane.b32.xlu0 %v11342_v26, %s12059_s29  ;;  %v3317_v6 = vcombine.low %v13776_v17, %v13780_v24  ;;  %v11076_v12 = vunpack.i.h.bf16 %v13597_v27  ;;  %v13920_v8 = vpop.permute.xlu1 %11138 }
 0x128   : > { %v4165_v2 = vsel %vm4159_vm8, %v4139_v39, %v11071_v42  ;;  %11348 = vrot.lane.b32.xlu1 %v11347_v3, %s12055_s16  ;;  %v13913_v62 = vsel %vm12389_vm6, %v1199_v16, %v1200_v60  ;;  %v3333_v54 = vcombine.low %v13786_v32, %v13790_v41  ;;  %v2890_v26 = vcombine.low %v2889_v56, %v13831_v29  ;;  %v410_v41 = vld [vmem:[%s12185_s14 + $0xc8] sm:$0xff] }
 0x129   : > { %v3324_v59 = vrot.slane %v3316_v37, %v12188_v5  ;;  %v3334_v7 = vcombine.low %v13807_v1, %v13913_v62  ;;  %v11075_v42 = vunpack.i.l.bf16 %v13597_v27  ;;  %v3331_v55 = vrot.slane %v3317_v6, %v12188_v5  ;;  %v411_v1 = vld [vmem:[%s12185_s14 + $0xd0] sm:$0xff] }
 0x12a   : > { %v3341_v17 = vrot.slane %v3333_v54, %v12188_v5  ;;  %v4191_v24 = vsel %vm4185_vm9, %v4165_v2, %v11076_v12  ;;  %v11081_v32 = vunpack.i.h.bf16 %v13612_v23  ;;  %v11352_v28 = vpack.i.bf16 %v2890_v26, %v13838_v10 }
 0x12b   : > { %v3348_v31 = vrot.slane %v3334_v7, %v12188_v5  ;;  %v4190_v16 = vsel %vm4185_vm9, %v4164_v22, %v11075_v42  ;;  %v11080_v3 = vunpack.i.l.bf16 %v13612_v23  ;;  %v3332_v27 = vcombine.low %v3324_v59, %v3331_v55  ;;  %v13984_v42 = vpop.permute.xlu0 %11153 }
 0x12c   : > { %v4217_v51 = vsel %vm4211_vm10, %v4191_v24, %v11081_v32  ;;  %v13942_v33 = vcombine.low %v13704_v30, %v13712_v57  ;;  %v10386_v39 = vcombine.high %v13668_v46, %v13663_v20  ;;  %11353 = vrot.lane.b32.xlu0 %v11352_v28, %s19128_s15  ;;  %v4342_v23 = vpack.c.bf16 %v13864_v53, %v4318_v52  ;;  %v13956_v57 = vpop.permute.xlu1 %11148 }
 0x12d   : > { %v3349_v10 = vcombine.low %v3341_v17, %v3348_v31  ;;  %v4216_v48 = vsel %vm4211_vm10, %v4190_v16, %v11080_v3  ;;  %v858_v19 = vcombine.high %v410_v41, %v410_v41  ;;  %v13951_v2 = vrot.slane %v410_v41, %v12188_v5 }
 0x12e   : > { %19127 = vst [vmem:[#allocation11_spill] sm:$0xff] %v13942_v33  ;;  %v3598_v22 = vrot.slane %v10386_v39, %v12188_v5  ;;  %v874_v56 = vcombine.high %v411_v1, %v411_v1  ;;  %v13954_v30 = vrot.slane %v411_v1, %v12188_v5  ;;  %10804 = vmatmul.mubr.msk.bf16.gmra.mxu0 %vm4376_vm2, %v4342_v23  ;;  %v11086_v53 = vunpack.i.h.bf16 %v13634_v61 }
 0x12f   : > { %v11357_v20 = vpack.i.bf16 %v3349_v10, %v3332_v27  ;;  %v13960_v46 = vrot.slane %v858_v19, %v12188_v5  ;;  %v11085_v52 = vunpack.i.l.bf16 %v13634_v61  ;;  %v13967_v6 = vcombine.high %v13951_v2, %v13951_v2  ;;  %10807 = vmatprep.mubr.msk.bf16.mxu0 %vm12064_vm1, %v19126_v36 }
 0x130   : > { %v3599_v37 = vcombine.low %v3598_v22, %v13741_v14  ;;  %v13970_v54 = vrot.slane %v874_v56, %v12188_v5  ;;  %v13974_v12 = vcombine.high %v13954_v30, %v13954_v30  ;;  %v4243_v59 = vsel %vm4237_vm11, %v4217_v51, %v11086_v53  ;;  %v14014_v51 = vpop.permute.xlu1 %11158 }
 0x131   : > { %11358 = vrot.lane.b32.xlu1 %v11357_v20, %s12060_s30  ;;  %v1727_v61 = vcombine.low %v13960_v46, %v13954_v30  ;;  %v4242_v26 = vsel %vm4237_vm11, %v4216_v48, %v11085_v52  ;;  %v11091_v7 = vunpack.i.h.bf16 %v13660_v45  ;;  %v1726_v17 = vcombine.low %v13951_v2, %v13967_v6 }
 0x132   : > { %v11362_v55 = vpack.i.bf16 %v3599_v37, %v13942_v33  ;;  %v1743_v24 = vcombine.low %v13974_v12, %v13970_v54  ;;  %v11090_v32 = vunpack.i.l.bf16 %v13660_v45  ;;  %v13998_v31 = vcombine.high %v13970_v54, %v13970_v54 }
 0x133   : > { %v13993_v41 = vrot.slane %v1727_v61, %v12188_v5  ;;  %v4269_v28 = vsel %vm4263_vm12, %v4243_v59, %v11091_v7  ;;  %v14002_v16 = vcombine.high %v13960_v46, %v13960_v46  ;;  %v14006_v3 = vrot.slane %v1726_v17, %v12188_v5  ;;  %v14031_v61 = vpop.permute.xlu0 %11163 }
 0x134   : > { %11363 = vrot.lane.b32.xlu0 %v11362_v55, %s12057_s24  ;;  %v14009_v45 = vrot.slane %v1743_v24, %v12188_v5  ;;  %v4268_v1 = vsel %vm4263_vm12, %v4242_v26, %v11090_v32  ;;  %v1202_v27 = vrot.slane %v1200_v60, 2  ;;  %v1203_v39 = vrot.slane %v13951_v2, 7 }
 0x135   : > { %19129 = vst [vmem:[#allocation35_spill] sm:$0xff] %v13993_v41  ;;  %19130 = vst [vmem:[#allocation30_spill] sm:$0xff] %v14006_v3  ;;  %v1206_v10 = vrot.slane %v13967_v6, 7  ;;  %v1209_v48 = vrot.slane %v13960_v46, 7  ;;  %v1212_v23 = vrot.slane %v14002_v16, 7  ;;  %v3736_v22 = vcombine.low %v13741_v14, %v14006_v3 }
 0x136   : > { %v3737_v56 = vcombine.low %v13993_v41, %v14009_v45  ;;  %v10371_v60 = vrot.slane %v13954_v30, 9  ;;  %v14029_v20 = vsel %vm12389_vm6, %v1202_v27, %v1203_v39  ;;  %v1205_v53 = vrot.slane %v1203_v39, 2 }
 0x137   : > { %v1208_v52 = vrot.slane %v1206_v10, 2  ;;  %v1211_v37 = vrot.slane %v1209_v48, 2  ;;  %v1216_v59 = vrot.slane %v13974_v12, 7  ;;  %v1219_v7 = vrot.slane %v13970_v54, 7 }
 0x138   : > { %v11367_v26 = vpack.i.bf16 %v3737_v56, %v3736_v22  ;;  %v18850_v55 = vrot.slane %v13998_v31, 7  ;;  %v14038_v17 = vsel %vm12389_vm6, %v1205_v53, %v1206_v10  ;;  %v2151_v27 = vcombine.low %v13913_v62, %v14029_v20 }
 0x139   : > { %v14042_v24 = vsel %vm12389_vm6, %v1208_v52, %v1209_v48  ;;  %v14046_v32 = vsel %vm12389_vm6, %v1211_v37, %v1212_v23  ;;  %v14053_v39 = vsel %vm12389_vm6, %v10371_v60, %v1216_v59  ;;  %v1218_v22 = vrot.slane %v1216_v59, 2  ;;  %v14057_v48 = vpop.permute.xlu1 %11168 }
 0x13a   : > { %11368 = vrot.lane.b32.xlu1 %v11367_v26, %s12056_s22  ;;  %v1221_v10 = vrot.slane %v1219_v7, 2  ;;  %v2167_v56 = vcombine.low %v14038_v17, %v14042_v24  ;;  %v2165_v53 = vrot.slane %v2151_v27, %v12188_v5  ;;  %v2168_v23 = vcombine.low %v14046_v32, %v14053_v39  ;;  %v14090_v27 = vpop.permute.xlu0 %11173 }
 0x13b   : > { %v2642_v62 = vcombine.low %v13701_v49, %v13951_v2  ;;  %v2658_v52 = vcombine.low %v13967_v6, %v13960_v46  ;;  %v14068_v60 = vsel %vm12389_vm6, %v1218_v22, %v1219_v7  ;;  %v10380_v59 = vcombine.high %v13960_v46, %v13954_v30 }
 0x13c   : > { %v14074_v37 = vsel %vm12389_vm6, %v1221_v10, %v18850_v55  ;;  %v14077_v26 = vrot.slane %v2167_v56, %v12188_v5  ;;  %v14082_v49 = vrot.slane %v2168_v23, %v12188_v5  ;;  %v2675_v56 = vcombine.low %v13970_v54, %v13998_v31 }
 0x13d   : > { %v2184_v2 = vcombine.low %v14068_v60, %v14074_v37  ;;  %v2656_v6 = vrot.slane %v2642_v62, %v12188_v5  ;;  %v14088_v7 = vrot.slane %v2658_v52, %v12188_v5  ;;  %v14094_v10 = vrot.slane %v10380_v59, %v12188_v5  ;;  %v14112_v14 = vpop.permute.xlu1 %11178 }
 0x13e   : > { %v3875_v22 = vcombine.low %v2165_v53, %v14077_v26  ;;  %v11096_v23 = vunpack.i.h.bf16 %v13687_v13  ;;  %v11095_v52 = vunpack.i.l.bf16 %v13687_v13  ;;  %v11101_v55 = vunpack.i.h.bf16 %v13720_v63 }
 0x13f   : > { %v14100_v19 = vrot.slane %v2184_v2, %v12188_v5  ;;  %v2891_v62 = vcombine.low %v2656_v6, %v14088_v7  ;;  %v14106_v41 = vrot.slane %v2675_v56, %v12188_v5  ;;  %v11100_v33 = vunpack.i.l.bf16 %v13720_v63 }
 0x140   : > { %v4295_v59 = vsel %vm4289_vm13, %v4269_v28, %v11096_v23  ;;  %v2149_v54 = vcombine.low %v13810_v15, %v13816_v50  ;;  %v4294_v13 = vsel %vm4289_vm13, %v4268_v1, %v11095_v52  ;;  %v2166_v56 = vcombine.low %v13835_v43, %v2165_v53  ;;  %v412_v52 = vld [vmem:[%s12185_s14 + $0xd8] sm:$0xff] }
 0x141   : > { %v3876_v2 = vcombine.low %v14082_v49, %v14100_v19  ;;  %v4321_v21 = vsel %vm4315_vm0, %v4295_v59, %v11101_v55  ;;  %v4022_v28 = vcombine.low %v14094_v10, %v14106_v41  ;;  %v4320_v23 = vsel %vm4315_vm0, %v4294_v13, %v11100_v33  ;;  %v14128_v55 = vpop.permute.xlu0 %11183 }
 0x142   : > { %v2640_v63 = vcombine.low %v13822_v58, %v13828_v34  ;;  %v2657_v15 = vcombine.low %v13831_v29, %v2656_v6  ;;  %v11382_v38 = vpack.i.bf16 %v2166_v56, %v2149_v54  ;;  %v11106_v44 = vunpack.i.h.bf16 %v13749_v25  ;;  %v19131_v58 = vld [vmem:[#allocation13_spill] sm:$0xff]  ;;  %v19132_v34 = vld [vmem:[#allocation14_spill] sm:$0xff] }
 0x143   : > { %v11372_v50 = vpack.i.bf16 %v3876_v2, %v3875_v22  ;;  %v11105_v1 = vunpack.i.l.bf16 %v13749_v25  ;;  %v11377_v43 = vpack.i.bf16 %v4022_v28, %v2891_v62  ;;  %v11111_v59 = vunpack.i.h.bf16 %v13764_v9  ;;  %v19134_v22 = vld [vmem:[#allocation15_spill] sm:$0xff] }
 0x144   : > { %v11387_v53 = vpack.i.bf16 %v2657_v15, %v2640_v63  ;;  %v11110_v33 = vunpack.i.l.bf16 %v13764_v9  ;;  %v19133_v29 = vcombine.low %v19131_v58, %v19132_v34  ;;  %v2892_v25 = vcombine.low %v13954_v30, %v13974_v12 }
 0x145   : > { %11373 = vrot.lane.b32.xlu0 %v11372_v50, %s12061_s12  ;;  %v4140_v54 = vsel %vm4133_vm7, %v19134_v22, %v11105_v1  ;;  %v891_v2 = vcombine.high %v412_v52, %v412_v52  ;;  %11378 = vrot.lane.b32.xlu1 %v11377_v43, %s12058_s25  ;;  %v14145_v56 = vrot.slane %v412_v52, %v12188_v5  ;;  %v19135_v28 = vrot.slane %v13998_v31, 7 }
 0x146   : > { %v4141_v6 = vsel %vm4133_vm7, %v19133_v29, %v11106_v44  ;;  %v4166_v13 = vsel %vm4159_vm8, %v4140_v54, %v11110_v33  ;;  %v14149_v44 = vpop.permute.xlu1 %11188  ;;  %v2899_v15 = vrot.slane %v2892_v25, %v12188_v5  ;;  %v3350_v30 = vcombine.low %v14029_v20, %v14038_v17 }
 0x147   : > { %v4167_v9 = vsel %vm4159_vm8, %v4141_v6, %v11111_v59  ;;  %v1224_v63 = vrot.slane %v19135_v28, 2  ;;  %v14153_v50 = vrot.slane %v891_v2, %v12188_v5  ;;  %v3351_v12 = vcombine.low %v14042_v24, %v14046_v32  ;;  %v14168_v24 = vpop.permute.xlu0 %11193 }
 0x148   : > { %v1225_v1 = vrot.slane %v14145_v56, 7  ;;  %v3367_v52 = vcombine.low %v14053_v39, %v14068_v60  ;;  %v4343_v43 = vpack.c.bf16 %v4321_v21, %v4320_v23  ;;  %v11116_v59 = vunpack.i.h.bf16 %v13794_v11  ;;  %v413_v60 = vld [vmem:[%s12185_s14 + $0xe0] sm:$0xff] }
 0x149   : > { %11383 = vrot.lane.b32.xlu0 %v11382_v38, %s12059_s29  ;;  %v2900_v33 = vcombine.low %v2899_v15, %v14106_v41  ;;  %v3358_v58 = vrot.slane %v3350_v30, %v12188_v5  ;;  %v3365_v20 = vrot.slane %v3351_v12, %v12188_v5  ;;  %v11115_v17 = vunpack.i.l.bf16 %v13794_v11  ;;  %11388 = vrot.lane.b32.xlu1 %v11387_v53, %s12055_s16 }
 0x14a   : > { %v14175_v21 = vsel %vm12389_vm6, %v1224_v63, %v1225_v1  ;;  %v3375_v38 = vrot.slane %v3367_v52, %v12188_v5  ;;  %10808 = vmatmul.mubr.msk.bf16.gmra.mxu0 %vm4376_vm2, %v4343_v43  ;;  %v4193_v32 = vsel %vm4185_vm9, %v4167_v9, %v11116_v59  ;;  %v11121_v39 = vunpack.i.h.bf16 %v13824_v35 }
 0x14b   : > { %v11392_v11 = vpack.i.bf16 %v2900_v33, %v2891_v62  ;;  %v3366_v23 = vcombine.low %v3358_v58, %v3365_v20  ;;  %v3368_v53 = vcombine.low %v14074_v37, %v14175_v21  ;;  %v4192_v34 = vsel %vm4185_vm9, %v4166_v13, %v11115_v17  ;;  %10811 = vmatprep.mubr.msk.bf16.mxu0 %vm12064_vm1, %v19126_v36  ;;  %v14193_v62 = vpop.permute.xlu1 %11198  ;;  %v14217_v30 = vpop.permute.xlu0 %11203 }
 0x14c   : > { %v11120_v29 = vunpack.i.l.bf16 %v13824_v35  ;;  %v4219_v6 = vsel %vm4211_vm10, %v4193_v32, %v11121_v39  ;;  %v1744_v22 = vcombine.low %v13998_v31, %v14145_v56  ;;  %v3600_v54 = vcombine.low %v13960_v46, %v14002_v16 }
 0x14d   : > { %11393 = vrot.lane.b32.xlu0 %v11392_v11, %s19128_s15  ;;  %v3382_v37 = vrot.slane %v3368_v53, %v12188_v5  ;;  %v14199_v25 = vcombine.high %v14145_v56, %v14145_v56  ;;  %v1238_v2 = vcombine.high %v413_v60, %v413_v60  ;;  %v14202_v35 = vrot.slane %v413_v60, %v12188_v5  ;;  %v414_v53 = vld [vmem:[%s12185_s14 + $0xe8] sm:$0xff] }
 0x14e   : > { %v4218_v13 = vsel %vm4211_vm10, %v4192_v34, %v11120_v29  ;;  %v1758_v31 = vrot.slane %v1744_v22, %v12188_v5  ;;  %v3607_v46 = vrot.slane %v3600_v54, %v12188_v5  ;;  %v11126_v16 = vunpack.i.h.bf16 %v13849_v18 }
 0x14f   : > { %v3383_v9 = vcombine.low %v3375_v38, %v3382_v37  ;;  %v14209_v28 = vrot.slane %v1238_v2, %v12188_v5  ;;  %v14213_v63 = vcombine.high %v14202_v35, %v14202_v35  ;;  %v1760_v15 = vcombine.low %v14199_v25, %v14153_v50  ;;  %v14238_v39 = vpop.permute.xlu1 %11208 }
 0x150   : > { %v14220_v12 = vcombine.low %v14009_v45, %v1758_v31  ;;  %v3608_v52 = vcombine.low %v14006_v3, %v3607_v46  ;;  %v11125_v43 = vunpack.i.l.bf16 %v13849_v18  ;;  %v4245_v59 = vsel %vm4237_vm11, %v4219_v6, %v11126_v16 }
 0x151   : > { %v11397_v33 = vpack.i.bf16 %v3383_v9, %v3366_v23  ;;  %v14227_v58 = vcombine.high %v14209_v28, %v14209_v28  ;;  %v14230_v20 = vrot.slane %v1760_v15, %v12188_v5  ;;  %v3739_v17 = vcombine.low %v14202_v35, %v14213_v63 }
 0x152   : > { %19136 = vst [vmem:[#allocation36_spill] sm:$0xff] %v14220_v12  ;;  %v11402_v45 = vpack.i.bf16 %v14220_v12, %v3608_v52  ;;  %v4244_v38 = vsel %vm4237_vm11, %v4218_v13, %v11125_v43  ;;  %v11131_v32 = vunpack.i.h.bf16 %v13874_v40  ;;  %v11130_v18 = vunpack.i.l.bf16 %v13874_v40 }
 0x153   : > { %11398 = vrot.lane.b32.xlu1 %v11397_v33, %s12060_s30  ;;  %v3618_v60 = vcombine.low %v14209_v28, %v14227_v58  ;;  %v3738_v11 = vcombine.low %v1758_v31, %v14230_v20  ;;  %v3746_v23 = vrot.slane %v3739_v17, %v12188_v5  ;;  %v920_v34 = vcombine.high %v14153_v50, %v14153_v50  ;;  %v14258_v31 = vpop.permute.xlu0 %11213 }
 0x154   : > { %11403 = vrot.lane.b32.xlu0 %v11402_v45, %s12057_s24  ;;  %v4270_v29 = vsel %vm4263_vm12, %v4244_v38, %v11130_v18  ;;  %v4271_v40 = vsel %vm4263_vm12, %v4245_v59, %v11131_v32  ;;  %v1227_v6 = vrot.slane %v1225_v1, 2  ;;  %v1228_v22 = vrot.slane %v14199_v25, 7  ;;  %v14280_v32 = vpop.permute.xlu1 %11218 }
 0x155   : > { %v14255_v54 = vrot.slane %v3618_v60, %v12188_v5  ;;  %v1231_v37 = vrot.slane %v14153_v50, 7  ;;  %v1234_v2 = vrot.slane %v920_v34, 7  ;;  %v1255_v13 = vcombine.high %v414_v53, %v414_v53 }
 0x156   : > { %v14262_v46 = vsel %vm12389_vm6, %v1227_v6, %v1228_v22  ;;  %v1230_v16 = vrot.slane %v1228_v22, 2  ;;  %v14265_v9 = vrot.slane %v414_v53, %v12188_v5  ;;  %v10372_v1 = vrot.slane %v14202_v35, 9 }
 0x157   : > { %v3747_v15 = vcombine.low %v3746_v23, %v14255_v54  ;;  %v1233_v52 = vrot.slane %v1231_v37, 2  ;;  %v14270_v43 = vrot.slane %v1255_v13, %v12188_v5  ;;  %v1274_v59 = vrot.slane %v14213_v63, 7 }
 0x158   : > { %v14275_v33 = vsel %vm12389_vm6, %v1230_v16, %v1231_v37  ;;  %v1277_v17 = vrot.slane %v14209_v28, 7  ;;  %v1280_v45 = vrot.slane %v14227_v58, 7  ;;  %v18857_v38 = vrot.slane %v14265_v9, 7 }
 0x159   : > { %v11407_v18 = vpack.i.bf16 %v3747_v15, %v3738_v11  ;;  %v14284_v60 = vsel %vm12389_vm6, %v1233_v52, %v1234_v2  ;;  %v14288_v23 = vsel %vm12389_vm6, %v10372_v1, %v1274_v59  ;;  %v1276_v53 = vrot.slane %v1274_v59, 2  ;;  %v14304_v15 = vpop.permute.xlu0 %11223 }
 0x15a   : > { %v1279_v6 = vrot.slane %v1277_v17, 2  ;;  %v1282_v22 = vrot.slane %v1280_v45, 2  ;;  %v2185_v37 = vcombine.low %v14175_v21, %v14262_v46  ;;  %v2201_v13 = vcombine.low %v14275_v33, %v14284_v60  ;;  %19137 = vst [vmem:[#allocation37_spill] sm:$0xff] %v14304_v15 }
 0x15b   : > { %11408 = vrot.lane.b32.xlu1 %v11407_v18, %s12056_s22  ;;  %v14297_v11 = vsel %vm12389_vm6, %v1276_v53, %v1277_v17  ;;  %v2676_v2 = vcombine.low %v14145_v56, %v14199_v25  ;;  %v2692_v16 = vcombine.low %v14153_v50, %v920_v34  ;;  %v2910_v1 = vcombine.low %v14213_v63, %v14209_v28 }
 0x15c   : > { %v14308_v21 = vsel %vm12389_vm6, %v1279_v6, %v1280_v45  ;;  %v14314_v52 = vsel %vm12389_vm6, %v1282_v22, %v18857_v38  ;;  %v2199_v59 = vrot.slane %v2185_v37, %v12188_v5  ;;  %v14318_v56 = vrot.slane %v2201_v13, %v12188_v5  ;;  %v14335_v6 = vpop.permute.xlu1 %11228 }
 0x15d   : > { %v3878_v25 = vcombine.low %v14288_v23, %v14297_v11  ;;  %v3879_v28 = vcombine.low %v14308_v21, %v14314_v52  ;;  %v14325_v63 = vrot.slane %v2676_v2, %v12188_v5  ;;  %v14328_v34 = vrot.slane %v2692_v16, %v12188_v5  ;;  %19138 = vst [vmem:[#allocation8_spill] sm:$0xff] %v14335_v6  ;;  %v14350_v6 = vpop.permute.xlu0 %11233 }
 0x15e   : > { %v3877_v17 = vcombine.low %v2199_v59, %v14318_v56  ;;  %v2911_v45 = vcombine.low %v14227_v58, %v14265_v9  ;;  %v2918_v18 = vrot.slane %v2910_v1, %v12188_v5  ;;  %v11136_v53 = vunpack.i.h.bf16 %v13891_v0 }
 0x15f   : > { %v3886_v22 = vrot.slane %v3878_v25, %v12188_v5  ;;  %v3893_v37 = vrot.slane %v3879_v28, %v12188_v5  ;;  %v4023_v13 = vcombine.low %v14325_v63, %v14328_v34  ;;  %v11135_v2 = vunpack.i.l.bf16 %v13891_v0 }
 0x160   : > { %v2925_v16 = vrot.slane %v2911_v45, %v12188_v5  ;;  %v4297_v38 = vsel %vm4289_vm13, %v4271_v40, %v11136_v53  ;;  %v11141_v58 = vunpack.i.h.bf16 %v13920_v8  ;;  %v11140_v1 = vunpack.i.l.bf16 %v13920_v8 }
 0x161   : > { %v3894_v12 = vcombine.low %v3886_v22, %v3893_v37  ;;  %v4296_v3 = vsel %vm4289_vm13, %v4270_v29, %v11135_v2  ;;  %v2183_v25 = vcombine.low %v14077_v26, %v14082_v49  ;;  %v2200_v28 = vcombine.low %v14100_v19, %v2199_v59 }
 0x162   : > { %v2926_v15 = vcombine.low %v2918_v18, %v2925_v16  ;;  %v4322_v0 = vsel %vm4315_vm0, %v4296_v3, %v11140_v1  ;;  %v4323_v45 = vsel %vm4315_vm0, %v4297_v38, %v11141_v58  ;;  %v2674_v40 = vcombine.low %v14088_v7, %v14094_v10  ;;  %v14362_v3 = vpop.permute.xlu1 %11238  ;;  %v19139_v7 = vld [vmem:[#allocation18_spill] sm:$0xff] }
 0x163   : > { %v11412_v53 = vpack.i.bf16 %v3894_v12, %v3877_v17  ;;  %v11422_v8 = vpack.i.bf16 %v2200_v28, %v2183_v25  ;;  %v2691_v29 = vcombine.low %v14106_v41, %v14325_v63  ;;  %v11146_v22 = vunpack.i.h.bf16 %v13937_v47  ;;  %v19141_v17 = vld [vmem:[#allocation17_spill] sm:$0xff] }
 0x164   : > { %v11417_v26 = vpack.i.bf16 %v2926_v15, %v4023_v13  ;;  %v11145_v19 = vunpack.i.l.bf16 %v13937_v47  ;;  %v11151_v49 = vunpack.i.h.bf16 %v13956_v57  ;;  %v11150_v59 = vunpack.i.l.bf16 %v13956_v57  ;;  %v19140_v47 = vld [vmem:[#allocation16_spill] sm:$0xff] }
 0x165   : > { %11413 = vrot.lane.b32.xlu0 %v11412_v53, %s12061_s12  ;;  %v11427_v38 = vpack.i.bf16 %v2691_v29, %v2674_v40  ;;  %v4143_v10 = vsel %vm4133_vm7, %v19139_v7, %v11146_v22  ;;  %v2901_v41 = vcombine.low %v14153_v50, %v14202_v35  ;;  %v14371_v12 = vcombine.high %v14265_v9, %v14265_v9  ;;  %v14388_v40 = vpop.permute.xlu0 %11243 }
 0x166   : > { %11418 = vrot.lane.b32.xlu1 %v11417_v26, %s12058_s25  ;;  %v19142_v57 = vcombine.low %v19140_v47, %v19141_v17  ;;  %v4169_v37 = vsel %vm4159_vm8, %v4143_v10, %v11151_v49  ;;  %v19143_v13 = vrot.slane %v14265_v9, 7  ;;  %v3384_v16 = vcombine.low %v14262_v46, %v14275_v33 }
 0x167   : > { %v2908_v1 = vrot.slane %v2901_v41, %v12188_v5  ;;  %v1286_v25 = vrot.slane %v14371_v12, 7  ;;  %v3385_v28 = vcombine.low %v14284_v60, %v14288_v23  ;;  %v3401_v29 = vcombine.low %v14297_v11, %v14308_v21 }
 0x168   : > { %v4142_v18 = vsel %vm4133_vm7, %v19142_v57, %v11145_v19  ;;  %v1285_v2 = vrot.slane %v19143_v13, 2  ;;  %v3392_v53 = vrot.slane %v3384_v16, %v12188_v5  ;;  %v4344_v22 = vpack.c.bf16 %v4323_v45, %v4322_v0  ;;  %v415_v45 = vld [vmem:[%s12185_s14 + $0xf0] sm:$0xff]  ;;  %v14415_v19 = vpop.permute.xlu1 %11248 }
 0x169   : > { %v4168_v58 = vsel %vm4159_vm8, %v4142_v18, %v11150_v59  ;;  %v11156_v46 = vunpack.i.h.bf16 %v13984_v42  ;;  %11423 = vrot.lane.b32.xlu0 %v11422_v8, %s12059_s29  ;;  %v2909_v33 = vcombine.low %v14325_v63, %v2908_v1  ;;  %v3399_v23 = vrot.slane %v3385_v28, %v12188_v5  ;;  %v14413_v8 = vld [vmem:[%s12185_s14 + $0xf8] sm:$0xff]  ;;  %v14436_v57 = vpop.permute.xlu0 %11253 }
 0x16a   : > { %v14400_v60 = vsel %vm12389_vm6, %v1285_v2, %v1286_v25  ;;  %v11155_v26 = vunpack.i.l.bf16 %v13984_v42  ;;  %11428 = vrot.lane.b32.xlu1 %v11427_v38, %s12055_s16  ;;  %v3409_v21 = vrot.slane %v3401_v29, %v12188_v5  ;;  %10812 = vmatmul.mubr.msk.bf16.gmra.mxu0 %vm4376_vm2, %v4344_v22  ;;  %v11161_v0 = vunpack.i.h.bf16 %v14014_v51 }
 0x16b   : > { %v3402_v11 = vcombine.low %v14314_v52, %v14400_v60  ;;  %v4195_v63 = vsel %vm4185_vm9, %v4169_v37, %v11156_v46  ;;  %v11432_v49 = vpack.i.bf16 %v2926_v15, %v2909_v33  ;;  %v3400_v42 = vcombine.low %v3392_v53, %v3399_v23  ;;  %10815 = vmatprep.mubr.msk.bf16.mxu0 %vm12064_vm1, %v19126_v36 }
 0x16c   : > { %v4194_v59 = vsel %vm4185_vm9, %v4168_v58, %v11155_v26  ;;  %v11160_v38 = vunpack.i.l.bf16 %v14014_v51  ;;  %v4221_v7 = vsel %vm4211_vm10, %v4195_v63, %v11161_v0  ;;  %v10387_v10 = vcombine.high %v14153_v50, %v14202_v35  ;;  %v14452_v29 = vpop.permute.xlu1 %11258 }
 0x16d   : > { %v3416_v52 = vrot.slane %v3402_v11, %v12188_v5  ;;  %v3619_v41 = vcombine.low %v14265_v9, %v14371_v12  ;;  %11433 = vrot.lane.b32.xlu0 %v11432_v49, %s19128_s15  ;;  %v1296_v47 = vcombine.high %v415_v45, %v415_v45  ;;  %v14430_v51 = vrot.slane %v415_v45, %v12188_v5  ;;  %v14471_v49 = vpop.permute.xlu0 %11263 }
 0x16e   : > { %v4220_v15 = vsel %vm4211_vm10, %v4194_v59, %v11160_v38  ;;  %v14434_v17 = vrot.slane %v14413_v8, %v12188_v5  ;;  %v3616_v50 = vrot.slane %v10387_v10, %v12188_v5  ;;  %v11166_v9 = vunpack.i.h.bf16 %v14031_v61 }
 0x16f   : > { %v3417_v18 = vcombine.low %v3409_v21, %v3416_v52  ;;  %v3633_v35 = vrot.slane %v3619_v41, %v12188_v5  ;;  %v14442_v37 = vrot.slane %v1296_v47, %v12188_v5  ;;  %v1311_v13 = vcombine.high %v14430_v51, %v14430_v51 }
 0x170   : > { %v3748_v2 = vcombine.low %v14270_v43, %v14430_v51  ;;  %v11165_v16 = vunpack.i.l.bf16 %v14031_v61  ;;  %v3617_v1 = vcombine.low %v14230_v20, %v3616_v50  ;;  %v4247_v53 = vsel %vm4237_vm11, %v4221_v7, %v11166_v9  ;;  %v14491_v50 = vpop.permute.xlu1 %11268 }
 0x171   : > { %v11437_v58 = vpack.i.bf16 %v3417_v18, %v3400_v42  ;;  %v3634_v28 = vcombine.low %v14255_v54, %v3633_v35  ;;  %v14456_v22 = vcombine.high %v14442_v37, %v14442_v37  ;;  %v1332_v46 = vrot.slane %v1311_v13, 7 }
 0x172   : > { %v3755_v33 = vrot.slane %v3748_v2, %v12188_v5  ;;  %v3757_v23 = vcombine.low %v1311_v13, %v14442_v37  ;;  %v4246_v26 = vsel %vm4237_vm11, %v4220_v15, %v11165_v16  ;;  %v11171_v54 = vunpack.i.h.bf16 %v14057_v48 }
 0x173   : > { %11438 = vrot.lane.b32.xlu1 %v11437_v58, %s12060_s30  ;;  %v11442_v61 = vpack.i.bf16 %v3634_v28, %v3617_v1  ;;  %v11170_v11 = vunpack.i.l.bf16 %v14057_v48  ;;  %v3758_v63 = vcombine.low %v14456_v22, %v14434_v17  ;;  %v14469_v45 = vcombine.high %v14270_v43, %v14270_v43 }
 0x174   : > { %v3756_v21 = vcombine.low %v3633_v35, %v3755_v33  ;;  %v3765_v0 = vrot.slane %v3757_v23, %v12188_v5  ;;  %v4273_v59 = vsel %vm4263_vm12, %v4247_v53, %v11171_v54  ;;  %v1288_v48 = vrot.slane %v1286_v25, 2 }
 0x175   : > { %11443 = vrot.lane.b32.xlu0 %v11442_v61, %s12057_s24  ;;  %v4272_v42 = vsel %vm4263_vm12, %v4246_v26, %v11170_v11  ;;  %v1289_v38 = vrot.slane %v14270_v43, 7  ;;  %v3772_v52 = vrot.slane %v3758_v63, %v12188_v5  ;;  %v1292_v7 = vrot.slane %v14469_v45, 7 }
 0x176   : > { %v14483_v10 = vcombine.high %v14434_v17, %v14434_v17  ;;  %v10373_v41 = vrot.slane %v14430_v51, 9  ;;  %v1334_v18 = vrot.slane %v1332_v46, 2  ;;  %v1335_v25 = vrot.slane %v14442_v37, 7 }
 0x177   : > { %v14488_v15 = vsel %vm12389_vm6, %v1288_v48, %v1289_v38  ;;  %v1291_v47 = vrot.slane %v1289_v38, 2  ;;  %v3773_v35 = vcombine.low %v3765_v0, %v3772_v52  ;;  %v1338_v13 = vrot.slane %v14456_v22, 7 }
 0x178   : > { %v1333_v9 = vsel %vm12389_vm6, %v10373_v41, %v1332_v46  ;;  %v1341_v2 = vrot.slane %v14434_v17, 7  ;;  %v1336_v58 = vsel %vm12389_vm6, %v1334_v18, %v1335_v25  ;;  %v1337_v1 = vrot.slane %v1335_v25, 2  ;;  %v14504_v46 = vpop.permute.xlu0 %11273 }
 0x179   : > { %v1293_v16 = vsel %vm12389_vm6, %v1291_v47, %v1292_v7  ;;  %v1344_v28 = vrot.slane %v14483_v10, 7  ;;  %v11447_v53 = vpack.i.bf16 %v3773_v35, %v3756_v21  ;;  %v1340_v33 = vrot.slane %v1338_v13, 2  ;;  %v14525_v7 = vpop.permute.xlu1 %11278 }
 0x17a   : > { %v1343_v23 = vrot.slane %v1341_v2, 2  ;;  %v3895_v61 = vcombine.low %v14400_v60, %v14488_v15  ;;  %v1339_v26 = vsel %vm12389_vm6, %v1337_v1, %v1338_v13  ;;  %v3896_v54 = vcombine.low %v1293_v16, %v1333_v9 }
 0x17b   : > { %v2927_v11 = vcombine.low %v14371_v12, %v14270_v43  ;;  %v10388_v63 = vcombine.high %v14270_v43, %v14430_v51  ;;  %11448 = vrot.lane.b32.xlu1 %v11447_v53, %s12056_s22  ;;  %v1342_v21 = vsel %vm12389_vm6, %v1340_v33, %v1341_v2  ;;  %v3912_v48 = vcombine.low %v1336_v58, %v1339_v26 }
 0x17c   : > { %v1345_v60 = vsel %vm12389_vm6, %v1343_v23, %v1344_v28  ;;  %v3903_v0 = vrot.slane %v3895_v61, %v12188_v5  ;;  %v3910_v38 = vrot.slane %v3896_v54, %v12188_v5  ;;  %v4033_v47 = vcombine.low %v14442_v37, %v14456_v22  ;;  %v14540_v22 = vpop.permute.xlu0 %11283 }
 0x17d   : > { %v3913_v52 = vcombine.low %v1342_v21, %v1345_v60  ;;  %v14522_v12 = vrot.slane %v2927_v11, %v12188_v5  ;;  %v4031_v51 = vrot.slane %v10388_v63, %v12188_v5  ;;  %v3920_v41 = vrot.slane %v3912_v48, %v12188_v5  ;;  %v19144_v21 = vld [vmem:[#allocation21_spill] sm:$0xff]  ;;  %v19145_v48 = vld [vmem:[#allocation19_spill] sm:$0xff] }
 0x17e   : > { %v4034_v18 = vcombine.low %v14434_v17, %v14483_v10  ;;  %v11176_v25 = vunpack.i.h.bf16 %v14090_v27  ;;  %v3911_v35 = vcombine.low %v3903_v0, %v3910_v38  ;;  %v11175_v2 = vunpack.i.l.bf16 %v14090_v27  ;;  %v19146_v38 = vld [vmem:[#allocation20_spill] sm:$0xff] }
 0x17f   : > { %v3927_v9 = vrot.slane %v3913_v52, %v12188_v5  ;;  %v4032_v13 = vcombine.low %v14522_v12, %v4031_v51  ;;  %v4041_v58 = vrot.slane %v4033_v47, %v12188_v5  ;;  %v11181_v37 = vunpack.i.h.bf16 %v14112_v14 }
 0x180   : > { %v4048_v1 = vrot.slane %v4034_v18, %v12188_v5  ;;  %v4299_v53 = vsel %vm4289_vm13, %v4273_v59, %v11176_v25  ;;  %v4298_v33 = vsel %vm4289_vm13, %v4272_v42, %v11175_v2  ;;  %v11180_v23 = vunpack.i.l.bf16 %v14112_v14  ;;  %v14552_v42 = vpop.permute.xlu1 %11288 }
 0x181   : > { %v3928_v17 = vcombine.low %v3920_v41, %v3927_v9  ;;  %v11186_v61 = vunpack.i.h.bf16 %v14128_v55  ;;  %v4325_v27 = vsel %vm4315_vm0, %v4299_v53, %v11181_v37  ;;  %v11185_v54 = vunpack.i.l.bf16 %v14128_v55 }
 0x182   : > { %v4049_v26 = vcombine.low %v4041_v58, %v4048_v1  ;;  %v11191_v11 = vunpack.i.h.bf16 %v14149_v44  ;;  %v4324_v59 = vsel %vm4315_vm0, %v4298_v33, %v11180_v23  ;;  %v11190_v0 = vunpack.i.l.bf16 %v14149_v44 }
 0x183   : > { %v11452_v63 = vpack.i.bf16 %v3928_v17, %v3911_v35  ;;  %v4145_v60 = vsel %vm4133_vm7, %v19144_v21, %v11186_v61  ;;  %v19147_v52 = vcombine.low %v19145_v48, %v19146_v38  ;;  %v3418_v41 = vcombine.low %v14488_v15, %v1293_v16  ;;  %v14570_v16 = vpop.permute.xlu0 %11293 }
 0x184   : > { %v11457_v14 = vpack.i.bf16 %v4049_v26, %v4032_v13  ;;  %v4171_v55 = vsel %vm4159_vm8, %v4145_v60, %v11191_v11  ;;  %v4345_v18 = vpack.c.bf16 %v4325_v27, %v4324_v59  ;;  %v11196_v25 = vunpack.i.h.bf16 %v14168_v24  ;;  %v14590_v23 = vpop.permute.xlu1 %11298 }
 0x185   : > { %v4144_v51 = vsel %vm4133_vm7, %v19147_v52, %v11185_v54  ;;  %11453 = vrot.lane.b32.xlu0 %v11452_v63, %s12061_s12  ;;  %v11195_v44 = vunpack.i.l.bf16 %v14168_v24  ;;  %v3425_v35 = vrot.slane %v3418_v41, %v12188_v5  ;;  %v11201_v9 = vunpack.i.h.bf16 %v14193_v62  ;;  %v19148_v52 = vld [vmem:[#allocation37_spill] sm:$0xff] }
 0x186   : > { %v4170_v47 = vsel %vm4159_vm8, %v4144_v51, %v11190_v0  ;;  %11458 = vrot.lane.b32.xlu1 %v11457_v14, %s12058_s25  ;;  %v11200_v13 = vunpack.i.l.bf16 %v14193_v62  ;;  %v3635_v15 = vcombine.low %v14270_v43, %v14469_v45  ;;  %10816 = vmatmul.mubr.msk.bf16.gmra.mxu0 %vm4376_vm2, %v4345_v18  ;;  %v4197_v58 = vsel %vm4185_vm9, %v4171_v55, %v11196_v25 }
 0x187   : > { %v4196_v2 = vsel %vm4185_vm9, %v4170_v47, %v11195_v44  ;;  %v1313_v24 = vcombine.high %v14413_v8, %v14413_v8  ;;  %v11206_v1 = vunpack.i.h.bf16 %v14217_v30  ;;  %v4223_v62 = vsel %vm4211_vm10, %v4197_v58, %v11201_v9  ;;  %10819 = vmatprep.mubr.msk.bf16.mxu0 %vm12064_vm1, %v19126_v36  ;;  %v14605_v60 = vpop.permute.xlu0 %11303  ;;  %v19149_v47 = vld [vmem:[#allocation8_spill] sm:$0xff]  ;;  %v19152_v58 = vld [vmem:[#allocation23_spill] sm:$0xff] }
 0x188   : > { %v4222_v53 = vsel %vm4211_vm10, %v4196_v2, %v11200_v13  ;;  %v3642_v37 = vrot.slane %v3635_v15, %v12188_v5  ;;  %v11205_v43 = vunpack.i.l.bf16 %v14217_v30  ;;  %v11211_v17 = vunpack.i.h.bf16 %v14238_v39  ;;  %v14620_v25 = vpop.permute.xlu1 %11308  ;;  %v19150_v44 = vld [vmem:[#allocation24_spill] sm:$0xff]  ;;  %v19151_v2 = vld [vmem:[#allocation22_spill] sm:$0xff] }
 0x189   : > { %2257 = vrot.lane.b32.xlu0 %v14318_v56, %s12059_s29  ;;  %v1327_v45 = vrot.slane %v1313_v24, %v12188_v5  ;;  %v4249_v8 = vsel %vm4237_vm11, %v4223_v62, %v11206_v1  ;;  %v11210_v33 = vunpack.i.l.bf16 %v14238_v39  ;;  %v1346_v61 = vrot.slane %v1344_v28, 2  ;;  %s377_s29 = sand.u32 1, %s12043_s18  }
 0x18a   : > { %2748 = vrot.lane.b32.xlu1 %v14328_v34, %s12055_s16  ;;  %v4248_v30 = vsel %vm4237_vm11, %v4222_v53, %v11205_v43  ;;  %v11216_v56 = vunpack.i.h.bf16 %v14258_v31  ;;  %v11215_v26 = vunpack.i.l.bf16 %v14258_v31  ;;  %v4275_v39 = vsel %vm4263_vm12, %v4249_v8, %v11211_v17  ;;  %s10285_s16 = scalar_lea.sflag [#allocation3], %s377_s29 }
 0x18b   : > { %v3774_v27 = vcombine.low %v14483_v10, %v1327_v45  ;;  %v4274_v54 = vsel %vm4263_vm12, %v4248_v30, %v11210_v33  ;;  %v1329_v11 = vcombine.high %v1327_v45, %v1327_v45  ;;  %v1347_v63 = vrot.slane %v1327_v45, 7  ;;  %v14640_v17 = vpop.permute.xlu0 %11313 }
 0x18c   : > { %v4300_v59 = vsel %vm4289_vm13, %v4274_v54, %v11215_v26  ;;  %v4301_v34 = vsel %vm4289_vm13, %v4275_v39, %v11216_v56  ;;  %v11221_v21 = vunpack.i.h.bf16 %v14280_v32  ;;  %v11220_v0 = vunpack.i.l.bf16 %v14280_v32 }
 0x18d   : > { %2983 = vrot.lane.b32.xlu0 %v14522_v12, %s19128_s15  ;;  %v3781_v31 = vrot.slane %v3774_v27, %v12188_v5  ;;  %v1350_v10 = vrot.slane %v1329_v11, 7  ;;  %v4050_v28 = vcombine.low %v1327_v45, %v1329_v11  ;;  %v1348_v14 = vsel %vm12389_vm6, %v1346_v61, %v1347_v63 }
 0x18e   : > { %3474 = vrot.lane.b32.xlu1 %v3425_v35, %s12060_s30  ;;  %v1349_v48 = vrot.slane %v1347_v63, 2  ;;  %v4327_v38 = vsel %vm4315_vm0, %v4301_v34, %v11221_v21  ;;  %v11226_v51 = vunpack.i.h.bf16 %v19148_v52  ;;  %v4326_v12 = vsel %vm4315_vm0, %v4300_v59, %v11220_v0  ;;  %v14657_v63 = vpop.permute.xlu1 %11318 }
 0x18f   : > { %v4057_v55 = vrot.slane %v4050_v28, %v12188_v5  ;;  %v11225_v41 = vunpack.i.l.bf16 %v19148_v52  ;;  %v11231_v18 = vunpack.i.h.bf16 %v19149_v47  ;;  %v11230_v9 = vunpack.i.l.bf16 %v19149_v47  ;;  %v14672_v52 = vpop.permute.xlu0 %11323  ;;  %v19157_v47 = vld [vmem:[#allocation25_spill] sm:$0xff] }
 0x190   : > { %v1351_v32 = vsel %vm12389_vm6, %v1349_v48, %v1350_v10  ;;  %v4147_v35 = vsel %vm4133_vm7, %v19150_v44, %v11226_v51  ;;  %v4346_v13 = vpack.c.bf16 %v4327_v38, %v4326_v12  ;;  %v19153_v24 = vcombine.low %v19151_v2, %v19152_v58  ;;  %v19154_v51 = vld [vmem:[#allocation27_spill] sm:$0xff] }
 0x191   : > { %3691 = vrot.lane.b32.xlu0 %v3642_v37, %s12057_s24  ;;  %v3929_v15 = vcombine.low %v1348_v14, %v1351_v32  ;;  %v4173_v53 = vsel %vm4159_vm8, %v4147_v35, %v11231_v18  ;;  %v11236_v62 = vunpack.i.h.bf16 %v14350_v6  ;;  %v11235_v45 = vunpack.i.l.bf16 %v14350_v6  ;;  %v19158_v18 = vld [vmem:[#allocation26_spill] sm:$0xff]  ;;  %s12066_s24 = smov 32  }
 0x192   : > { %v4146_v1 = vsel %vm4133_vm7, %v19153_v24, %v11225_v41  ;;  %3830 = vrot.lane.b32.xlu1 %v3781_v31, %s12056_s22  ;;  %10820 = vmatmul.mubr.msk.bf16.gmra.mxu0 %vm4376_vm2, %v4346_v13  ;;  %v11241_v37 = vunpack.i.h.bf16 %v14362_v3  ;;  %v11240_v8 = vunpack.i.l.bf16 %v14362_v3  ;;  %v11246_v61 = vunpack.i.h.bf16 %v14388_v40  ;;  %s12065_s22 = smov 64  }
 0x193   : > { %v4172_v43 = vsel %vm4159_vm8, %v4146_v1, %v11230_v9  ;;  %v3936_v33 = vrot.slane %v3929_v15, %v12188_v5  ;;  %v4199_v30 = vsel %vm4185_vm9, %v4173_v53, %v11236_v62  ;;  %v11245_v56 = vunpack.i.l.bf16 %v14388_v40  ;;  %10823 = vmatprep.mubr.msk.bf16.mxu0 %vm12064_vm1, %v19126_v36  ;;  %v11329_v1 = vpop.permute.xlu1 %11328 }
 0x194   : > { %v4198_v26 = vsel %vm4185_vm9, %v4172_v43, %v11235_v45  ;;  %v4225_v6 = vsel %vm4211_vm10, %v4199_v30, %v11241_v37  ;;  %v11251_v27 = vunpack.i.h.bf16 %v14415_v19  ;;  %v11250_v3 = vunpack.i.l.bf16 %v14415_v19 }
 0x195   : > { %3985 = vrot.lane.b32.xlu0 %v3936_v33, %s12061_s12  ;;  %v4224_v54 = vsel %vm4211_vm10, %v4198_v26, %v11240_v8  ;;  %v4251_v39 = vsel %vm4237_vm11, %v4225_v6, %v11246_v61  ;;  %v11256_v11 = vunpack.i.h.bf16 %v14436_v57  ;;  %v11255_v40 = vunpack.i.l.bf16 %v14436_v57 }
 0x196   : > { %4106 = vrot.lane.b32.xlu1 %v4057_v55, %s12058_s25  ;;  %v4250_v59 = vsel %vm4237_vm11, %v4224_v54, %v11245_v56  ;;  %v4277_v34 = vsel %vm4263_vm12, %v4251_v39, %v11251_v27  ;;  %v11261_v19 = vunpack.i.h.bf16 %v14452_v29  ;;  %v11260_v21 = vunpack.i.l.bf16 %v14452_v29  ;;  %v19155_v55 = vld [vmem:[#allocation28_spill] sm:$0xff]  ;;  %s12067_s25 = smov 96  }
 0x197   : > { %v4276_v31 = vsel %vm4263_vm12, %v4250_v59, %v11250_v3  ;;  %v4303_v10 = vsel %vm4289_vm13, %v4277_v34, %v11256_v11  ;;  %v11266_v28 = vunpack.i.h.bf16 %v14471_v49  ;;  %v11265_v57 = vunpack.i.l.bf16 %v14471_v49  ;;  %v19161_v59 = vld [vmem:[#allocation32_spill] sm:$0xff] }
 0x198   : > { %v4302_v0 = vsel %vm4289_vm13, %v4276_v31, %v11255_v40  ;;  %v4329_v14 = vsel %vm4315_vm0, %v4303_v10, %v11261_v19  ;;  %v11271_v48 = vunpack.i.h.bf16 %v14491_v50  ;;  %v11270_v38 = vunpack.i.l.bf16 %v14491_v50  ;;  %v19160_v40 = vld [vmem:[#allocation29_spill] sm:$0xff]  ;;  %v11339_v31 = vpop.permute.xlu1 %11338 }
 0x199   : > { %v4328_v29 = vsel %vm4315_vm0, %v4302_v0, %v11260_v21  ;;  %v19156_v12 = vcombine.low %v19154_v51, %v19155_v55  ;;  %v19159_v49 = vcombine.low %v19157_v47, %v19158_v18  ;;  %v11276_v44 = vunpack.i.h.bf16 %v14504_v46  ;;  %v19163_v21 = vld [vmem:[#allocation31_spill] sm:$0xff] }
 0x19a   : > { %v4347_v9 = vpack.c.bf16 %v4329_v14, %v4328_v29  ;;  %v11275_v13 = vunpack.i.l.bf16 %v14504_v46  ;;  %v11281_v2 = vunpack.i.h.bf16 %v14525_v7  ;;  %v11280_v58 = vunpack.i.l.bf16 %v14525_v7 }
 0x19b   : > { %v4149_v41 = vsel %vm4133_vm7, %v19156_v12, %v11266_v28  ;;  %v4148_v32 = vsel %vm4133_vm7, %v19159_v49, %v11265_v57  ;;  %v11286_v24 = vunpack.i.h.bf16 %v14540_v22  ;;  %v11285_v62 = vunpack.i.l.bf16 %v14540_v22 }
 0x19c   : > { %v4174_v35 = vsel %vm4159_vm8, %v4148_v32, %v11270_v38  ;;  %v4175_v50 = vsel %vm4159_vm8, %v4149_v41, %v11271_v48  ;;  %10824 = vmatmul.mubr.msk.bf16.gmra.mxu0 %vm4376_vm2, %v4347_v9  ;;  %v11291_v43 = vunpack.i.h.bf16 %v14552_v42  ;;  %v11290_v45 = vunpack.i.l.bf16 %v14552_v42  ;;  %v11334_v42 = vpop.permute.xlu0 %11333  ;;  %v11349_v9 = vpop.permute.xlu1 %11348 }
 0x19d   : > { %v4201_v15 = vsel %vm4185_vm9, %v4175_v50, %v11276_v44  ;;  %v4200_v53 = vsel %vm4185_vm9, %v4174_v35, %v11275_v13  ;;  %v11296_v8 = vunpack.i.h.bf16 %v14570_v16  ;;  %v11295_v7 = vunpack.i.l.bf16 %v14570_v16  ;;  %10827 = vmatprep.mubr.msk.bf16.mxu0 %vm12064_vm1, %v19126_v36 }
 0x19e   : > { %v4226_v46 = vsel %vm4211_vm10, %v4200_v53, %v11280_v58  ;;  %v4227_v37 = vsel %vm4211_vm10, %v4201_v15, %v11281_v2  ;;  %v11301_v22 = vunpack.i.h.bf16 %v14590_v23  ;;  %v11300_v61 = vunpack.i.l.bf16 %v14590_v23 }
 0x19f   : > { %v4252_v33 = vsel %vm4237_vm11, %v4226_v46, %v11285_v62  ;;  %v4253_v30 = vsel %vm4237_vm11, %v4227_v37, %v11286_v24  ;;  %v11306_v6 = vunpack.i.h.bf16 %v14605_v60  ;;  %v11305_v16 = vunpack.i.l.bf16 %v14605_v60 }
 0x1a0   : > { %v4278_v56 = vsel %vm4263_vm12, %v4252_v33, %v11290_v45  ;;  %v4279_v26 = vsel %vm4263_vm12, %v4253_v30, %v11291_v43  ;;  %v11311_v54 = vunpack.i.h.bf16 %v14620_v25  ;;  %v11310_v39 = vunpack.i.l.bf16 %v14620_v25  ;;  %v11344_v41 = vpop.permute.xlu0 %11343 }
 0x1a1   : > { %v4304_v27 = vsel %vm4289_vm13, %v4278_v56, %v11295_v7  ;;  %v4305_v3 = vsel %vm4289_vm13, %v4279_v26, %v11296_v8  ;;  %v19162_v34 = vcombine.low %v19160_v40, %v19161_v59  ;;  %v4150_v60 = vsel %vm4133_vm7, %v19163_v21, %v11305_v16  ;;  %v19164_v8 = vld [vmem:[#allocation33_spill] sm:$0xff]  ;;  %v19165_v7 = vld [vmem:[#allocation34_spill] sm:$0xff] }
 0x1a2   : > { %v4330_v11 = vsel %vm4315_vm0, %v4304_v27, %v11300_v61  ;;  %v4331_v23 = vsel %vm4315_vm0, %v4305_v3, %v11301_v22  ;;  %v4176_v10 = vsel %vm4159_vm8, %v4150_v60, %v11310_v39  ;;  %v11316_v25 = vunpack.i.h.bf16 %v14640_v17  ;;  %v19167_v22 = vld [vmem:[#allocation6_spill] sm:$0xff] }
 0x1a3   : > { %v4151_v19 = vsel %vm4133_vm7, %v19162_v34, %v11306_v6  ;;  %v4348_v57 = vpack.c.bf16 %v4331_v23, %v4330_v11  ;;  %v11315_v0 = vunpack.i.l.bf16 %v14640_v17  ;;  %v11321_v14 = vunpack.i.h.bf16 %v14657_v63  ;;  %v11359_v45 = vpop.permute.xlu1 %11358 }
 0x1a4   : > { %v4177_v28 = vsel %vm4159_vm8, %v4151_v19, %v11311_v54  ;;  %v11320_v48 = vunpack.i.l.bf16 %v14657_v63  ;;  %v11326_v38 = vunpack.i.h.bf16 %v14672_v52  ;;  %v11325_v51 = vunpack.i.l.bf16 %v14672_v52 }
 0x1a5   : > { %10828 = vmatmul.mubr.msk.bf16.gmra.mxu0 %vm4376_vm2, %v4348_v57  ;;  %v4203_v29 = vsel %vm4185_vm9, %v4177_v28, %v11316_v25  ;;  %v11331_v55 = vunpack.i.h.bf16 %v11329_v1  ;;  %v11330_v12 = vunpack.i.l.bf16 %v11329_v1  ;;  %v4202_v47 = vsel %vm4185_vm9, %v4176_v10, %v11315_v0  ;;  %v11354_v1 = vpop.permute.xlu0 %11353 }
 0x1a6   : > { %v4229_v18 = vsel %vm4211_vm10, %v4203_v29, %v11321_v14  ;;  %v11336_v17 = vunpack.i.h.bf16 %v11334_v42  ;;  %v11335_v49 = vunpack.i.l.bf16 %v11334_v42  ;;  %10831 = vmatprep.mubr.msk.bf16.mxu0 %vm12064_vm1, %v19126_v36  ;;  %v4228_v63 = vsel %vm4211_vm10, %v4202_v47, %v11320_v48 }
 0x1a7   : > { %v4255_v32 = vsel %vm4237_vm11, %v4229_v18, %v11326_v38  ;;  %v11341_v44 = vunpack.i.h.bf16 %v11339_v31  ;;  %v11340_v35 = vunpack.i.l.bf16 %v11339_v31  ;;  %v4254_v52 = vsel %vm4237_vm11, %v4228_v63, %v11325_v51 }
 0x1a8   : > { %v4281_v50 = vsel %vm4263_vm12, %v4255_v32, %v11331_v55  ;;  %v4280_v13 = vsel %vm4263_vm12, %v4254_v52, %v11330_v12  ;;  %v11346_v53 = vunpack.i.h.bf16 %v11344_v41  ;;  %v11345_v62 = vunpack.i.l.bf16 %v11344_v41  ;;  %v19168_v52 = vld [vmem:[#allocation10_spill] sm:$0xff] }
 0x1a9   : > { %v4307_v15 = vsel %vm4289_vm13, %v4281_v50, %v11336_v17  ;;  %v4306_v2 = vsel %vm4289_vm13, %v4280_v13, %v11335_v49  ;;  %v11351_v46 = vunpack.i.h.bf16 %v11349_v9  ;;  %v11350_v37 = vunpack.i.l.bf16 %v11349_v9  ;;  %v11364_v26 = vpop.permute.xlu0 %11363  ;;  %v19169_v50 = vld [vmem:[#allocation7_spill] sm:$0xff] }
 0x1aa   : > { %v4333_v58 = vsel %vm4315_vm0, %v4307_v15, %v11341_v44  ;;  %v4332_v24 = vsel %vm4315_vm0, %v4306_v2, %v11340_v35  ;;  %v19166_v33 = vcombine.low %v19164_v8, %v19165_v7  ;;  %v4152_v61 = vsel %vm4133_vm7, %v19167_v22, %v11345_v62  ;;  %v19171_v15 = vld [vmem:[#allocation11_spill] sm:$0xff] }
 0x1ab   : > { %v4349_v43 = vpack.c.bf16 %v4333_v58, %v4332_v24  ;;  %v11356_v42 = vunpack.i.h.bf16 %v11354_v1  ;;  %v11355_v56 = vunpack.i.l.bf16 %v11354_v1  ;;  %v4178_v6 = vsel %vm4159_vm8, %v4152_v61, %v11350_v37 }
 0x1ac   : > { %v4153_v30 = vsel %vm4133_vm7, %v19166_v33, %v11346_v53  ;;  %v11361_v27 = vunpack.i.h.bf16 %v11359_v45  ;;  %v11360_v3 = vunpack.i.l.bf16 %v11359_v45  ;;  %v11366_v11 = vunpack.i.h.bf16 %v11364_v26  ;;  %v11369_v40 = vpop.permute.xlu1 %11368 }
 0x1ad   : > { %10832 = vmatmul.mubr.msk.bf16.gmra.mxu0 %vm4376_vm2, %v4349_v43  ;;  %v4179_v16 = vsel %vm4159_vm8, %v4153_v30, %v11351_v46  ;;  %v4204_v54 = vsel %vm4185_vm9, %v4178_v6, %v11355_v56  ;;  %v11365_v23 = vunpack.i.l.bf16 %v11364_v26  ;;  %v11371_v19 = vunpack.i.h.bf16 %v11369_v40 }
 0x1ae   : > { %10835 = vmatprep.mubr.msk.bf16.mxu0 %vm12064_vm1, %v19126_v36  ;;  %v4205_v39 = vsel %vm4185_vm9, %v4179_v16, %v11356_v42  ;;  %v4230_v59 = vsel %vm4211_vm10, %v4204_v54, %v11360_v3  ;;  %v11370_v21 = vunpack.i.l.bf16 %v11369_v40  ;;  %v19170_v9 = vcombine.low %v19168_v52, %v19169_v50 }
 0x1af   : > { %v4231_v34 = vsel %vm4211_vm10, %v4205_v39, %v11361_v27  ;;  %v4256_v60 = vsel %vm4237_vm11, %v4230_v59, %v11365_v23 }
 0x1b0   : > { %v4257_v31 = vsel %vm4237_vm11, %v4231_v34, %v11366_v11  ;;  %v4282_v0 = vsel %vm4263_vm12, %v4256_v60, %v11370_v21 }
 0x1b1   : > { %v4283_v14 = vsel %vm4263_vm12, %v4257_v31, %v11371_v19 }
 0x1b7   : > { %v11374_v10 = vpop.permute.xlu0 %11373  ;;  %v11379_v25 = vpop.permute.xlu1 %11378 }
 0x1b8   : > { %v11376_v28 = vunpack.i.h.bf16 %v11374_v10  ;;  %v11375_v57 = vunpack.i.l.bf16 %v11374_v10  ;;  %v11381_v48 = vunpack.i.h.bf16 %v11379_v25  ;;  %v11380_v38 = vunpack.i.l.bf16 %v11379_v25 }
 0x1ba   : > { %v4308_v29 = vsel %vm4289_vm13, %v4282_v0, %v11375_v57  ;;  %v4309_v51 = vsel %vm4289_vm13, %v4283_v14, %v11376_v28  ;;  %v14797_v28 = vld [vmem:[%s18801_s2] ss:$0 sm:$0xff] }
 0x1bb   : > { %v4334_v55 = vsel %vm4315_vm0, %v4308_v29, %v11380_v38  ;;  %v4335_v12 = vsel %vm4315_vm0, %v4309_v51, %v11381_v48  ;;  %v11384_v47 = vpop.permute.xlu0 %11383  ;;  %v11389_v18 = vpop.permute.xlu1 %11388  ;;  %v19172_v38 = vld [vmem:[#allocation30_spill] sm:$0xff]  ;;  %v19173_v29 = vld [vmem:[#allocation35_spill] sm:$0xff] }
 0x1bc   : > { %v4350_v41 = vpack.c.bf16 %v4335_v12, %v4334_v55  ;;  %v11386_v49 = vunpack.i.h.bf16 %v11384_v47  ;;  %v11385_v63 = vunpack.i.l.bf16 %v11384_v47  ;;  %v11391_v44 = vunpack.i.h.bf16 %v11389_v18 }
 0x1bd   : > { %v11390_v35 = vunpack.i.l.bf16 %v11389_v18  ;;  %v19174_v51 = vcombine.low %v19172_v38, %v19173_v29 }
 0x1be   : > { %10836 = vmatmul.mubr.msk.bf16.gmra.mxu0 %vm4376_vm2, %v4350_v41  ;;  %v4155_v13 = vsel %vm4133_vm7, %v19170_v9, %v11386_v49  ;;  %v4154_v2 = vsel %vm4133_vm7, %v19171_v15, %v11385_v63 }
 0x1bf   : > { %10839 = vmatprep.mubr.msk.bf16.mxu0 %vm12064_vm1, %v19126_v36  ;;  %v11394_v17 = vpop.permute.xlu0 %11393  ;;  %v4180_v53 = vsel %vm4159_vm8, %v4154_v2, %v11390_v35  ;;  %v4181_v62 = vsel %vm4159_vm8, %v4155_v13, %v11391_v44 }
 0x1c0   : > { %v11396_v58 = vunpack.i.h.bf16 %v11394_v17  ;;  %v11395_v24 = vunpack.i.l.bf16 %v11394_v17  ;;  %v19175_v17 = vld [vmem:[#allocation36_spill] sm:$0xff] }
 0x1c2   : > { %v4206_v46 = vsel %vm4185_vm9, %v4180_v53, %v11395_v24  ;;  %v4207_v37 = vsel %vm4185_vm9, %v4181_v62, %v11396_v58 }
 0x1c5   : > { %v11399_v32 = vpop.permute.xlu1 %11398 }
 0x1c6   : > { %v11404_v1 = vpop.permute.xlu0 %11403  ;;  %v11401_v43 = vunpack.i.h.bf16 %v11399_v32  ;;  %v11400_v45 = vunpack.i.l.bf16 %v11399_v32 }
 0x1c7   : > { %v11406_v8 = vunpack.i.h.bf16 %v11404_v1  ;;  %v11405_v7 = vunpack.i.l.bf16 %v11404_v1 }
 0x1c8   : > { %v4232_v30 = vsel %vm4211_vm10, %v4206_v46, %v11400_v45  ;;  %v4233_v22 = vsel %vm4211_vm10, %v4207_v37, %v11401_v43 }
 0x1c9   : > { %v4258_v56 = vsel %vm4237_vm11, %v4232_v30, %v11405_v7  ;;  %v4259_v26 = vsel %vm4237_vm11, %v4233_v22, %v11406_v8 }
 0x1cd   : > { %v11409_v33 = vpop.permute.xlu1 %11408 }
 0x1ce   : > { %v11411_v61 = vunpack.i.h.bf16 %v11409_v33  ;;  %v11410_v42 = vunpack.i.l.bf16 %v11409_v33 }
 0x1d0   : > { %v4284_v54 = vsel %vm4263_vm12, %v4258_v56, %v11410_v42  ;;  %v4285_v39 = vsel %vm4263_vm12, %v4259_v26, %v11411_v61 }
 0x1d7   : > { %v11414_v6 = vpop.permute.xlu0 %11413 }
 0x1d8   : > { %v11416_v16 = vunpack.i.h.bf16 %v11414_v6  ;;  %v11415_v27 = vunpack.i.l.bf16 %v11414_v6  ;;  %v11419_v3 = vpop.permute.xlu1 %11418 }
 0x1d9   : > { %v11421_v11 = vunpack.i.h.bf16 %v11419_v3  ;;  %v11420_v23 = vunpack.i.l.bf16 %v11419_v3 }
 0x1da   : > { %v4310_v40 = vsel %vm4289_vm13, %v4284_v54, %v11415_v27  ;;  %v4311_v59 = vsel %vm4289_vm13, %v4285_v39, %v11416_v16 }
 0x1db   : > { %v4336_v34 = vsel %vm4315_vm0, %v4310_v40, %v11420_v23  ;;  %v4337_v19 = vsel %vm4315_vm0, %v4311_v59, %v11421_v11  ;;  %v11424_v60 = vpop.permute.xlu0 %11423 }
 0x1dc   : > { %v4351_v21 = vpack.c.bf16 %v4337_v19, %v4336_v34  ;;  %v11429_v31 = vpop.permute.xlu1 %11428  ;;  %v11425_v10 = vunpack.i.l.bf16 %v11424_v60  ;;  %v11426_v57 = vunpack.i.h.bf16 %v11424_v60 }
 0x1dd   : > { %v11430_v14 = vunpack.i.l.bf16 %v11429_v31  ;;  %v11431_v12 = vunpack.i.h.bf16 %v11429_v31 }
 0x1de   : > { %10840 = vmatmul.mubr.msk.bf16.gmra.mxu0 %vm4376_vm2, %v4351_v21  ;;  %v4156_v55 = vsel %vm4133_vm7, %v19174_v51, %v11425_v10  ;;  %v4157_v49 = vsel %vm4133_vm7, %v19175_v17, %v11426_v57 }
 0x1df   : > { %10843 = vmatprep.mubr.msk.bf16.mxu0 %vm12064_vm1, %v19126_v36  ;;  %v11434_v25 = vpop.permute.xlu0 %11433  ;;  %v4182_v35 = vsel %vm4159_vm8, %v4156_v55, %v11430_v14  ;;  %v4183_v15 = vsel %vm4159_vm8, %v4157_v49, %v11431_v12 }
 0x1e0   : > { %v11435_v41 = vunpack.i.l.bf16 %v11434_v25  ;;  %v11436_v63 = vunpack.i.h.bf16 %v11434_v25 }
 0x1e2   : > { %v4208_v2 = vsel %vm4185_vm9, %v4182_v35, %v11435_v41  ;;  %v4209_v53 = vsel %vm4185_vm9, %v4183_v15, %v11436_v63 }
 0x1e5   : > { %v11439_v47 = vpop.permute.xlu1 %11438 }
 0x1e6   : > { %v4457_v0 = vpop.f32.mrf.mxu0  ;;  %v11441_v58 = vunpack.i.h.bf16 %v11439_v47  ;;  %v11440_v24 = vunpack.i.l.bf16 %v11439_v47 }
 0x1e7   : > { %v4458_v48 = vadd.f32 %v14797_v28, %v4457_v0  ;;  %v11444_v52 = vpop.permute.xlu0 %11443 }
 0x1e8   : > { %v10801_v18 = vpop.f32.mrf.mxu0  ;;  %v11446_v46 = vunpack.i.h.bf16 %v11444_v52  ;;  %v11445_v37 = vunpack.i.l.bf16 %v11444_v52  ;;  %v4234_v30 = vsel %vm4211_vm10, %v4208_v2, %v11440_v24  ;;  %v4235_v22 = vsel %vm4211_vm10, %v4209_v53, %v11441_v58 }
 0x1e9   : > { %v4559_v32 = vmax.f32 %v4458_v48, 0.0 }
 0x1ea   : > { %v4460_v44 = vpop.f32.mrf.mxu0  ;;  %v4260_v27 = vsel %vm4237_vm11, %v4234_v30, %v11445_v37  ;;  %v4261_v3 = vsel %vm4237_vm11, %v4235_v22, %v11446_v46 }
 0x1eb   : > { %v4609_v50 = vcombine.high %v4559_v32, %v4559_v32  ;;  %v4616_v9 = vrot.slane %v4559_v32, %v12188_v5  ;;  %v4461_v13 = vadd.f32 %v14797_v28, %v4460_v44 }
 0x1ec   : > { %v10802_v1 = vpop.f32.mrf.mxu0 }
 0x1ed   : > { %v14813_v62 = vrot.slane %v4609_v50, %v12188_v5  ;;  %v14815_v43 = vcombine.high %v4616_v9, %v4616_v9  ;;  %v4560_v45 = vmax.f32 %v4461_v13, 0.0  ;;  %v11449_v8 = vpop.permute.xlu1 %11448  ;;  %v10405_v59 = vrot.slane %v4616_v9, 9 }
 0x1ee   : > { %v4465_v42 = vpop.f32.mrf.mxu0  ;;  %v11451_v56 = vunpack.i.h.bf16 %v11449_v8  ;;  %v11450_v26 = vunpack.i.l.bf16 %v11449_v8 }
 0x1ef   : > { %v14819_v7 = vcombine.high %v14813_v62, %v14813_v62  ;;  %v5027_v33 = vrot.slane %v14815_v43, 7  ;;  %v5291_v61 = vcombine.low %v4616_v9, %v14815_v43  ;;  %v4626_v16 = vcombine.high %v4560_v45, %v4560_v45 }
 0x1f0   : > { %v5030_v54 = vrot.slane %v14813_v62, 7  ;;  %v10805_v11 = vpop.f32.mrf.mxu0  ;;  %v14831_v23 = vrot.slane %v4560_v45, %v12188_v5  ;;  %v4466_v40 = vadd.f32 %v14797_v28, %v4465_v42  ;;  %v5975_v19 = vcombine.low %v14815_v43, %v14813_v62 }
 0x1f1   : > { %v5029_v6 = vrot.slane %v5027_v33, 2  ;;  %v5292_v39 = vcombine.low %v14813_v62, %v14819_v7  ;;  %v4286_v60 = vsel %vm4263_vm12, %v4260_v27, %v11450_v26  ;;  %v4287_v31 = vsel %vm4263_vm12, %v4261_v3, %v11451_v56 }
 0x1f2   : > { %v4468_v21 = vpop.f32.mrf.mxu0  ;;  %v4640_v10 = vrot.slane %v4626_v16, %v12188_v5  ;;  %v14843_v57 = vcombine.high %v14831_v23, %v14831_v23  ;;  %v5028_v25 = vsel %vm12389_vm6, %v10405_v59, %v5027_v33  ;;  %v5032_v0 = vrot.slane %v5030_v54, 2 }
 0x1f3   : > { %v5031_v34 = vsel %vm12389_vm6, %v5029_v6, %v5030_v54  ;;  %v5033_v14 = vrot.slane %v14819_v7, 7  ;;  %v4561_v48 = vmax.f32 %v4466_v40, 0.0  ;;  %v14849_v51 = vrot.slane %v5291_v61, %v12188_v5 }
 0x1f4   : > { %v10806_v38 = vpop.f32.mrf.mxu0  ;;  %v5615_v55 = vcombine.low %v5028_v25, %v5031_v34  ;;  %v5308_v12 = vcombine.low %v14831_v23, %v14843_v57  ;;  %v4469_v41 = vadd.f32 %v14797_v28, %v4468_v21  ;;  %v5039_v49 = vrot.slane %v14843_v57, 7 }
 0x1f5   : > { %v4643_v63 = vcombine.high %v4561_v48, %v4561_v48  ;;  %v14855_v35 = vcombine.high %v4640_v10, %v4640_v10  ;;  %v14858_v52 = vrot.slane %v4561_v48, %v12188_v5  ;;  %v5036_v13 = vrot.slane %v14831_v23, 7 }
 0x1f6   : > { %v5976_v15 = vcombine.low %v14819_v7, %v14831_v23  ;;  %v4562_v53 = vmax.f32 %v4469_v41, 0.0  ;;  %v5041_v37 = vrot.slane %v5039_v49, 2  ;;  %v5992_v33 = vcombine.low %v14843_v57, %v4640_v10 }
 0x1f7   : > { %v11454_v29 = vpop.permute.xlu0 %11453  ;;  %v14869_v1 = vcombine.high %v14858_v52, %v14858_v52  ;;  %v14874_v8 = vrot.slane %v4643_v63, %v12188_v5  ;;  %v5983_v30 = vrot.slane %v5975_v19, %v12188_v5  ;;  %v5034_v22 = vsel %vm12389_vm6, %v5032_v0, %v5033_v14 }
 0x1f8   : > { %v11456_v47 = vunpack.i.h.bf16 %v11454_v29  ;;  %v11455_v18 = vunpack.i.l.bf16 %v11454_v29  ;;  %v11459_v17 = vpop.permute.xlu1 %11458  ;;  %v5035_v61 = vrot.slane %v5033_v14, 2  ;;  %v5042_v42 = vrot.slane %v4640_v10, 7 }
 0x1f9   : > { %v11461_v32 = vunpack.i.h.bf16 %v11459_v17  ;;  %v11460_v44 = vunpack.i.l.bf16 %v11459_v17  ;;  %v5046_v56 = vrot.slane %v14858_v52, 7  ;;  %v14885_v26 = vrot.slane %v5615_v55, %v12188_v5 }
 0x1fa   : > { %v4312_v50 = vsel %vm4289_vm13, %v4286_v60, %v11455_v18  ;;  %v4313_v9 = vsel %vm4289_vm13, %v4287_v31, %v11456_v47  ;;  %v5038_v27 = vrot.slane %v5036_v13, 2  ;;  %v10406_v3 = vrot.slane %v14855_v35, 9 }
 0x1fb   : > { %v4338_v2 = vsel %vm4315_vm0, %v4312_v50, %v11460_v44  ;;  %v4339_v58 = vsel %vm4315_vm0, %v4313_v9, %v11461_v32  ;;  %v2258_v24 = vpop.permute.xlu0 %2257  ;;  %v4660_v54 = vcombine.high %v4562_v53, %v4562_v53  ;;  %v5043_v59 = vsel %vm12389_vm6, %v5041_v37, %v5042_v42 }
 0x1fc   : > { %v4352_v43 = vpack.c.bf16 %v4339_v58, %v4338_v2  ;;  %v4158_v45 = vsel %vm4133_vm7, %v14230_v20, %v2258_v24  ;;  %v2749_v46 = vpop.permute.xlu1 %2748  ;;  %v5993_v20 = vcombine.low %v14858_v52, %v14869_v1  ;;  %v14896_v34 = vcombine.high %v14874_v8, %v14874_v8 }
 0x1fd   : > { %v4184_v6 = vsel %vm4159_vm8, %v4158_v45, %v2749_v46  ;;  %v5990_v19 = vrot.slane %v5976_v15, %v12188_v5  ;;  %v14900_v21 = vrot.slane %v4562_v53, %v12188_v5  ;;  %v14903_v60 = vrot.slane %v4660_v54, %v12188_v5 }
 0x1fe   : > { %10844 = vmatmul.mubr.msk.bf16.gmra.mxu0 %vm4376_vm2, %v4352_v43  ;;  %v6000_v31 = vrot.slane %v5992_v33, %v12188_v5  ;;  %v14907_v10 = vrot.slane %v5993_v20, %v12188_v5  ;;  %v5048_v0 = vrot.slane %v5046_v56, 2  ;;  %v5049_v14 = vrot.slane %v14869_v1, 7 }
 0x1ff   : > { %v2984_v16 = vpop.permute.xlu0 %2983  ;;  %10847 = vmatprep.mubr.msk.bf16.mxu0 %vm12064_vm1, %v19126_v36  ;;  %v5052_v48 = vrot.slane %v14874_v8, 7  ;;  %v14914_v29 = vcombine.high %v14903_v60, %v14903_v60  ;;  %v5991_v55 = vcombine.low %v5983_v30, %v5990_v19  ;;  %v5037_v47 = vsel %vm12389_vm6, %v5035_v61, %v5036_v13 }
 0x200   : > { %v4210_v11 = vsel %vm4185_vm9, %v4184_v6, %v2984_v16  ;;  %v3475_v40 = vpop.permute.xlu1 %3474  ;;  %v6008_v41 = vcombine.low %v6000_v31, %v14907_v10  ;;  %v5055_v63 = vrot.slane %v14896_v34, 7  ;;  %v5309_v32 = vcombine.low %v14855_v35, %v14858_v52 }
 0x201   : > { %v4236_v25 = vsel %vm4211_vm10, %v4210_v11, %v3475_v40  ;;  %v5325_v44 = vcombine.low %v14869_v1, %v14874_v8  ;;  %v14927_v50 = vcombine.high %v14900_v21, %v14900_v21  ;;  %v5342_v9 = vcombine.low %v14903_v60, %v14914_v29 }
 0x202   : > { %v11462_v15 = vpack.i.bf16 %v6008_v41, %v5991_v55  ;;  %v5040_v13 = vsel %vm12389_vm6, %v5038_v27, %v5039_v49  ;;  %v5047_v2 = vsel %vm12389_vm6, %v10406_v3, %v5046_v56  ;;  %v5050_v35 = vsel %vm12389_vm6, %v5048_v0, %v5049_v14 }
 0x203   : > { %v3692_v38 = vpop.permute.xlu0 %3691  ;;  %v5616_v52 = vcombine.low %v5034_v22, %v5037_v47  ;;  %v5632_v58 = vcombine.low %v5040_v13, %v5043_v59  ;;  %v5051_v53 = vrot.slane %v5049_v14, 2  ;;  %v5326_v43 = vcombine.low %v14896_v34, %v14900_v21 }
 0x204   : > { %v4262_v18 = vsel %vm4237_vm11, %v4236_v25, %v3692_v38  ;;  %v3831_v17 = vpop.permute.xlu1 %3830  ;;  %11463 = vrot.lane.b32.xlu1 %v11462_v15, %s12065_s22  ;;  %v5633_v45 = vcombine.low %v5047_v2, %v5050_v35  ;;  %v5054_v37 = vrot.slane %v5052_v48, 2  ;;  %v5058_v33 = vrot.slane %v14900_v21, 7 }
 0x205   : > { %v4288_v24 = vsel %vm4263_vm12, %v4262_v18, %v3831_v17  ;;  %v5630_v30 = vrot.slane %v5616_v52, %v12188_v5  ;;  %v5640_v61 = vrot.slane %v5632_v58, %v12188_v5  ;;  %v14950_v56 = vrot.slane %v5342_v9, %v12188_v5 }
 0x206   : > { %v14947_v42 = vrot.slane %v5633_v45, %v12188_v5  ;;  %v6009_v6 = vcombine.low %v14874_v8, %v14896_v34  ;;  %v6010_v16 = vcombine.low %v14900_v21, %v14927_v50  ;;  %v14957_v27 = vrot.slane %v5325_v44, %v12188_v5 }
 0x207   : > { %v3986_v1 = vpop.permute.xlu0 %3985  ;;  %v5631_v54 = vcombine.low %v14885_v26, %v5630_v30  ;;  %v14962_v40 = vrot.slane %v5326_v43, %v12188_v5  ;;  %v5053_v59 = vsel %vm12389_vm6, %v5051_v53, %v5052_v48  ;;  %v10407_v8 = vrot.slane %v14903_v60, 9 }
 0x208   : > { %v4314_v49 = vsel %vm4289_vm13, %v4288_v24, %v3986_v1  ;;  %v4107_v46 = vpop.permute.xlu1 %4106  ;;  %v5648_v11 = vcombine.low %v5640_v61, %v14947_v42  ;;  %v14970_v31 = vrot.slane %v5309_v32, %v12188_v5  ;;  %v5056_v26 = vsel %vm12389_vm6, %v5054_v37, %v5055_v63 }
 0x209   : > { %v4340_v22 = vsel %vm4315_vm0, %v4314_v49, %v4107_v46  ;;  %v5060_v25 = vrot.slane %v5058_v33, 2  ;;  %v5065_v0 = vrot.slane %v14914_v29, 7  ;;  %v6336_v60 = vcombine.low %v14962_v40, %v14950_v56 }
 0x20a   : > { %v4353_v20 = vpack.c.bf16 %v4340_v22, %v4340_v22  ;;  %v4473_v3 = vpop.f32.mrf.mxu0  ;;  %v11467_v48 = vpack.i.bf16 %v5648_v11, %v5631_v54  ;;  %v6335_v55 = vcombine.low %v14970_v31, %v14957_v27  ;;  %v5649_v41 = vcombine.low %v5053_v59, %v5056_v26 }
 0x20b   : > { %v4474_v19 = vadd.f32 %v14797_v28, %v4473_v3  ;;  %v14987_v47 = vrot.slane %v5292_v39, %v12188_v5  ;;  %v6017_v17 = vrot.slane %v6009_v6, %v12188_v5  ;;  %v6024_v32 = vrot.slane %v6010_v16, %v12188_v5 }
 0x20c   : > { %10848 = vmatmul.mubr.msk.bf16.gmra.mxu0 %vm4376_vm2, %v4353_v20  ;;  %v10809_v14 = vpop.f32.mrf.mxu0  ;;  %11468 = vrot.lane.b32.xlu1 %v11467_v48, %s12066_s24  ;;  %v14996_v44 = vrot.slane %v5308_v12, %v12188_v5  ;;  %v15003_v15 = vrot.slane %v5649_v41, %v12188_v5  ;;  %v5061_v13 = vrot.slane %v14927_v50, 7  ;;  %v11477_v35 = vpack.i.bf16 %v6336_v60, %v6335_v55 }
 0x20d   : > { %v4563_v38 = vmax.f32 %v4474_v19, 0.0  ;;  %v5057_v24 = vrot.slane %v5055_v63, 2  ;;  %v5066_v1 = vsel %vm12389_vm6, %v10407_v8, %v5065_v0  ;;  %v5067_v50 = vrot.slane %v5065_v0, 2 }
 0x20e   : > { %v4476_v18 = vpop.f32.mrf.mxu0  ;;  %v6491_v46 = vcombine.low %v14907_v10, %v6017_v17  ;;  %v6025_v37 = vcombine.low %v6017_v17, %v6024_v32  ;;  %v5062_v6 = vsel %vm12389_vm6, %v5060_v25, %v5061_v13  ;;  %vm10282_vm7 = vcmask 73728  }
 0x20f   : > { %v4677_v62 = vcombine.high %v4563_v38, %v4563_v38  ;;  %v4684_v7 = vrot.slane %v4563_v38, %v12188_v5  ;;  %v4477_v39 = vadd.f32 %v14797_v28, %v4476_v18  ;;  %v5059_v20 = vsel %vm12389_vm6, %v5057_v24, %v5058_v33 }
 0x210   : > { %v10810_v2 = vpop.f32.mrf.mxu0  ;;  %11478 = vrot.lane.b32.xlu1 %v11477_v35, %s12067_s25  ;;  %v5650_v25 = vcombine.low %v5059_v20, %v5062_v6 }
 0x211   : > { %v4691_v12 = vrot.slane %v4677_v62, %v12188_v5  ;;  %v4692_v52 = vcombine.high %v4684_v7, %v4684_v7  ;;  %v6026_v58 = vcombine.low %v14914_v29, %v4684_v7  ;;  %v4564_v53 = vmax.f32 %v4477_v39, 0.0 }
 0x212   : > { %v5068_v45 = vrot.slane %v4684_v7, 7 }
 0x213   : > { %v5074_v49 = vrot.slane %v4691_v12, 7  ;;  %v6027_v29 = vcombine.low %v4692_v52, %v4691_v12  ;;  %v4693_v30 = vcombine.high %v4691_v12, %v4691_v12  ;;  %v4694_v34 = vcombine.high %v4564_v53, %v4564_v53 }
 0x214   : > { %v4701_v63 = vrot.slane %v4564_v53, %v12188_v5  ;;  %v5071_v22 = vrot.slane %v4692_v52, 7  ;;  %v6034_v61 = vrot.slane %v6026_v58, %v12188_v5  ;;  %v5343_v11 = vcombine.low %v4684_v7, %v4692_v52 }
 0x215   : > { %v5076_v16 = vrot.slane %v5074_v49, 2  ;;  %v4708_v10 = vrot.slane %v4694_v34, %v12188_v5  ;;  %v5077_v54 = vrot.slane %v4693_v30, 7  ;;  %v15030_v19 = vrot.slane %v6027_v29, %v12188_v5 }
 0x216   : > { %v4709_v3 = vcombine.high %v4701_v63, %v4701_v63  ;;  %v6043_v59 = vcombine.low %v4693_v30, %v4701_v63  ;;  %v6492_v8 = vcombine.low %v6024_v32, %v6034_v61  ;;  %v5070_v26 = vrot.slane %v5068_v45, 2 }
 0x217   : > { %v15032_v0 = vcombine.high %v4708_v10, %v4708_v10  ;;  %v5079_v21 = vrot.slane %v5077_v54, 2  ;;  %v5080_v14 = vrot.slane %v4701_v63, 7  ;;  %v5073_v33 = vrot.slane %v5071_v22, 2 }
 0x218   : > { %v5360_v48 = vcombine.low %v4709_v3, %v4708_v10  ;;  %v11472_v60 = vpack.i.bf16 %v6492_v8, %v6491_v46  ;;  %v5078_v38 = vsel %vm12389_vm6, %v5076_v16, %v5077_v54  ;;  %v15040_v18 = vcombine.low %v6034_v61, %v15030_v19 }
 0x219   : > { %v5081_v55 = vsel %vm12389_vm6, %v5079_v21, %v5080_v14  ;;  %v6044_v41 = vcombine.low %v4708_v10, %v15032_v0  ;;  %v15043_v32 = vrot.slane %v6043_v59, %v12188_v5  ;;  %v15047_v62 = vrot.slane %v5343_v11, %v12188_v5 }
 0x21a   : > { %19176 = vst [vmem:[#allocation9_spill] sm:$0xff] %v15040_v18  ;;  %v5683_v17 = vcombine.low %v5078_v38, %v5081_v55  ;;  %11473 = vrot.lane.b32.xlu0 %v11472_v60, %s12066_s24  ;;  %v5359_v7 = vcombine.low %v4691_v12, %v4693_v30  ;;  %v11482_v39 = vpack.i.bf16 %v15040_v18, %v6025_v37  ;;  %v5084_v63 = vrot.slane %v4708_v10, 7  ;;  %v11897_v55 = vld [vmem:[%s18802_s3 + $0x38] sm:$0xff]  }
 0x21b   : > { %v15051_v13 = vrot.slane %v5360_v48, %v12188_v5  ;;  %v5069_v2 = vsel %vm12389_vm6, %v5067_v50, %v5068_v45  ;;  %v5072_v35 = vsel %vm12389_vm6, %v5070_v26, %v5071_v22  ;;  %v5075_v58 = vsel %vm12389_vm6, %v5073_v33, %v5074_v49 }
 0x21c   : > { %v15058_v52 = vrot.slane %v5359_v7, %v12188_v5  ;;  %v5666_v24 = vcombine.low %v5066_v1, %v5069_v2  ;;  %v15063_v12 = vrot.slane %v6044_v41, %v12188_v5  ;;  %11483 = vrot.lane.b32.xlu1 %v11482_v39, %s12065_s22  ;;  %v15067_v53 = vrot.slane %v5650_v25, %v12188_v5 }
 0x21d   : > { %v5667_v46 = vcombine.low %v5072_v35, %v5075_v58  ;;  %v15070_v50 = vrot.slane %v5683_v17, %v12188_v5  ;;  %v15074_v45 = vcombine.low %v14950_v56, %v15047_v62  ;;  %v5086_v16 = vrot.slane %v5084_v63, 2 }
 0x21e   : > { %19177 = vst [vmem:[#allocation12_spill] sm:$0xff] %v15067_v53  ;;  %v15078_v49 = vcombine.low %v15058_v52, %v15051_v13  ;;  %v15081_v1 = vrot.slane %v5666_v24, %v12188_v5  ;;  %v15085_v37 = vcombine.low %v15043_v32, %v15063_v12  ;;  %v5665_v22 = vcombine.low %v15003_v15, %v15067_v53 }
 0x21f   : > { %v15088_v29 = vrot.slane %v5667_v46, %v12188_v5  ;;  %v5087_v54 = vrot.slane %v15032_v0, 7  ;;  %v10408_v10 = vrot.slane %v4709_v3, 9  ;;  %v11896_v3 = vld [vmem:[%s18802_s3 + $0x78] sm:$0xff]  }
 0x220   : > { %19178 = vst [vmem:[#allocation13_spill] sm:$0xff] %v15078_v49  ;;  %19179 = vst [vmem:[#allocation14_spill] sm:$0xff] %v15081_v1  ;;  %v11487_v30 = vpack.i.bf16 %v15078_v49, %v15074_v45  ;;  %10565 = vmatprep.subr.bf16.mxu1 %v11896_v3 }
 0x221   : > { %19180 = vst [vmem:[#allocation15_spill] sm:$0xff] %v15085_v37  ;;  %v15100_v61 = vcombine.low %v15081_v1, %v15088_v29  ;;  %v5088_v59 = vsel %vm12389_vm6, %v5086_v16, %v5087_v54  ;;  %v5085_v26 = vsel %vm12389_vm6, %v10408_v10, %v5084_v63  ;;  %10566 = vmatpush3.bf16.msra.mxu1 %v11897_v55 }
 0x222   : > { %11488 = vrot.lane.b32.xlu0 %v11487_v30, %s12065_s22  ;;  %v5684_v33 = vcombine.low %v5085_v26, %v5088_v59  ;;  %v6493_v63 = vcombine.low %v15030_v19, %v15043_v32  ;;  %v6337_v10 = vcombine.low %v15047_v62, %v15058_v52  ;;  %v5089_v32 = vrot.slane %v5087_v54, 2 }
 0x223   : > { %v11492_v6 = vpack.i.bf16 %v15100_v61, %v5665_v22 }
 0x224   : > { %v15123_v2 = vrot.slane %v5684_v33, %v12188_v5 }
 0x225   : > { %11493 = vrot.lane.b32.xlu1 %v11492_v6, %s12066_s24 }
 0x226   : > { %v5699_v19 = vcombine.low %v15070_v50, %v15123_v2 }
 0x22a   : > { %v4481_v11 = vpop.f32.mrf.mxu0 }
 0x22b   : > { %v4482_v8 = vadd.f32 %v14797_v28, %v4481_v11  ;;  %v11898_v11 = vld [vmem:[%s18802_s3 + $0x70] sm:$0xff]  }
 0x22c   : > { %v10813_v21 = vpop.f32.mrf.mxu0  ;;  %10567 = vmatprep.subr.bf16.mxu1 %v11898_v11 }
 0x22d   : > { %v4565_v14 = vmax.f32 %v4482_v8, 0.0 }
 0x22e   : > { %v4484_v48 = vpop.f32.mrf.mxu0 }
 0x22f   : > { %v4711_v60 = vcombine.high %v4565_v14, %v4565_v14  ;;  %v4718_v25 = vrot.slane %v4565_v14, %v12188_v5  ;;  %v4485_v38 = vadd.f32 %v14797_v28, %v4484_v48 }
 0x230   : > { %v10814_v41 = vpop.f32.mrf.mxu0 }
 0x231   : > { %v4725_v17 = vrot.slane %v4711_v60, %v12188_v5  ;;  %v4726_v7 = vcombine.high %v4718_v25, %v4718_v25  ;;  %v5090_v39 = vrot.slane %v4718_v25, 7  ;;  %v5376_v35 = vcombine.low %v15032_v0, %v4718_v25  ;;  %v11899_v0 = vld [vmem:[%s18802_s3 + $0x30] sm:$0xff]  }
 0x232   : > { %v4566_v58 = vmax.f32 %v4485_v38, 0.0  ;;  %10568 = vmatpush3.bf16.msra.mxu1 %v11899_v0 }
 0x233   : > { %v4727_v24 = vcombine.high %v4725_v17, %v4725_v17  ;;  %v5093_v46 = vrot.slane %v4726_v7, 7  ;;  %v5096_v30 = vrot.slane %v4725_v17, 7  ;;  %v6060_v22 = vcombine.low %v4718_v25, %v4726_v7 }
 0x234   : > { %v4728_v6 = vcombine.high %v4566_v58, %v4566_v58  ;;  %v4735_v16 = vrot.slane %v4566_v58, %v12188_v5  ;;  %v5092_v59 = vrot.slane %v5090_v39, 2  ;;  %v5377_v26 = vcombine.low %v4726_v7, %v4725_v17 }
 0x235   : > { %v6061_v8 = vcombine.low %v4725_v17, %v4727_v24  ;;  %v5384_v62 = vrot.slane %v5376_v35, %v12188_v5  ;;  %v5095_v52 = vrot.slane %v5093_v46, 2  ;;  %v5098_v33 = vrot.slane %v5096_v30, 2 }
 0x236   : > { %v15140_v21 = vrot.slane %v4728_v6, %v12188_v5  ;;  %v15142_v14 = vcombine.high %v4735_v16, %v4735_v16  ;;  %v6068_v48 = vrot.slane %v6060_v22, %v12188_v5  ;;  %v5099_v25 = vrot.slane %v4727_v24, 7 }
 0x237   : > { %v15147_v60 = vrot.slane %v6061_v8, %v12188_v5  ;;  %v10409_v38 = vrot.slane %v4735_v16, 9  ;;  %v6338_v55 = vcombine.low %v15051_v13, %v5384_v62  ;;  %v5091_v7 = vsel %vm12389_vm6, %v5089_v32, %v5090_v39 }
 0x238   : > { %v15151_v54 = vcombine.high %v15140_v21, %v15140_v21  ;;  %v5103_v3 = vrot.slane %v15142_v14, 7  ;;  %v6494_v41 = vcombine.low %v15063_v12, %v6068_v48  ;;  %v5106_v58 = vrot.slane %v15140_v21, 7 }
 0x239   : > { %v15157_v17 = vcombine.low %v6068_v48, %v15147_v60  ;;  %v5393_v24 = vcombine.low %v4735_v16, %v15142_v14  ;;  %v5094_v22 = vsel %vm12389_vm6, %v5092_v59, %v5093_v46  ;;  %v11497_v12 = vpack.i.bf16 %v6338_v55, %v6337_v10 }
 0x23a   : > { %v5105_v35 = vrot.slane %v5103_v3, 2  ;;  %v5104_v6 = vsel %vm12389_vm6, %v10409_v38, %v5103_v3  ;;  %v5394_v13 = vcombine.low %v15140_v21, %v15151_v54  ;;  %v11502_v11 = vpack.i.bf16 %v6494_v41, %v6493_v63 }
 0x23b   : > { %19181 = vst [vmem:[#allocation18_spill] sm:$0xff] %v15157_v17  ;;  %v11512_v0 = vpack.i.bf16 %v15157_v17, %v15085_v37  ;;  %v5097_v16 = vsel %vm12389_vm6, %v5095_v52, %v5096_v30  ;;  %v5100_v46 = vsel %vm12389_vm6, %v5098_v33, %v5099_v25  ;;  %11498 = vrot.lane.b32.xlu1 %v11497_v12, %s12067_s25  ;;  %v11900_v30 = vld [vmem:[%s18802_s3 + $0x68] sm:$0xff]   ;;  %v11905_v12 = vld [vmem:[%s18802_s3 + $0x18] sm:$0xff]  }
 0x23c   : > { %v5107_v39 = vsel %vm12389_vm6, %v5105_v35, %v5106_v58  ;;  %11503 = vrot.lane.b32.xlu0 %v11502_v11, %s12066_s24  ;;  %v5700_v63 = vcombine.low %v5091_v7, %v5094_v22  ;;  %v5701_v10 = vcombine.low %v5097_v16, %v5100_v46  ;;  %v15182_v8 = vrot.slane %v5393_v24, %v12188_v5  ;;  %v11902_v24 = vld [vmem:[%s18802_s3 + $0x60] sm:$0xff]   ;;  %v11906_v16 = vld [vmem:[%s18802_s3 + $0x50] sm:$0xff]  }
 0x23d   : > { %v5717_v59 = vcombine.low %v5104_v6, %v5107_v39  ;;  %v15185_v32 = vrot.slane %v5377_v26, %v12188_v5  ;;  %v15188_v48 = vrot.slane %v5394_v13, %v12188_v5  ;;  %v11507_v52 = vpack.i.bf16 %v5699_v19, %v15100_v61  ;;  %10569 = vmatprep.subr.bf16.mxu1 %v11900_v30  ;;  %v11901_v61 = vld [vmem:[%s18802_s3 + $0x28] sm:$0xff]   ;;  %v11903_v22 = vld [vmem:[%s18802_s3 + $0x20] sm:$0xff]   ;;  %v11904_v6 = vld [vmem:[%s18802_s3 + $0x58] sm:$0xff]  }
 0x23e   : > { %v15195_v33 = vrot.slane %v5700_v63, %v12188_v5  ;;  %v15198_v25 = vrot.slane %v5701_v10, %v12188_v5  ;;  %10570 = vmatpush3.bf16.msra.mxu1 %v11901_v61  ;;  %v11907_v10 = vld [vmem:[%s18802_s3 + $0x10] sm:$0xff]  }
 0x23f   : > { %v15201_v38 = vrot.slane %v5717_v59, %v12188_v5  ;;  %v15204_v26 = vcombine.low %v5384_v62, %v15185_v32  ;;  %v15208_v3 = vcombine.low %v15182_v8, %v15188_v48  ;;  %11513 = vrot.lane.b32.xlu1 %v11512_v0, %s12065_s22  ;;  %10571 = vmatprep.subr.bf16.mxu1 %v11902_v24 }
 0x240   : > { %19182 = vst [vmem:[#allocation16_spill] sm:$0xff] %v15198_v25  ;;  %11508 = vrot.lane.b32.xlu0 %v11507_v52, %s12067_s25  ;;  %v15217_v55 = vcombine.low %v15195_v33, %v15198_v25 }
 0x241   : > { %19183 = vst [vmem:[#allocation17_spill] sm:$0xff] %v15201_v38  ;;  %19184 = vst [vmem:[#allocation21_spill] sm:$0xff] %v15204_v26  ;;  %v11522_v35 = vpack.i.bf16 %v15208_v3, %v15204_v26 }
 0x242   : > { %19185 = vst [vmem:[#allocation19_spill] sm:$0xff] %v15208_v3  ;;  %v11517_v7 = vpack.i.bf16 %v15217_v55, %v5699_v19  ;;  %10572 = vmatpush3.bf16.msra.mxu1 %v11903_v22 }
 0x243   : > { %10573 = vmatprep.subr.bf16.mxu1 %v11904_v6 }
 0x244   : > { %11518 = vrot.lane.b32.xlu1 %v11517_v7, %s12066_s24  ;;  %11523 = vrot.lane.b32.xlu0 %v11522_v35, %s12065_s22  ;;  %v5109_v7 = vrot.slane %v15151_v54, 7  ;;  %v6077_v35 = vcombine.low %v15142_v14, %v15140_v21 }
 0x246   : > { %v4489_v19 = vpop.f32.mrf.mxu0  ;;  %10574 = vmatpush3.bf16.msra.mxu1 %v11905_v12 }
 0x247   : > { %v4490_v13 = vadd.f32 %v14797_v28, %v4489_v19  ;;  %10575 = vmatprep.subr.bf16.mxu1 %v11906_v16  ;;  %v5111_v16 = vrot.slane %v5109_v7, 2 }
 0x248   : > { %v10817_v11 = vpop.f32.mrf.mxu0 }
 0x249   : > { %v4567_v39 = vmax.f32 %v4490_v13, 0.0 }
 0x24a   : > { %v4492_v0 = vpop.f32.mrf.mxu0  ;;  %10576 = vmatpush3.bf16.msra.mxu1 %v11907_v10 }
 0x24b   : > { %v4745_v46 = vcombine.high %v4567_v39, %v4567_v39  ;;  %v4752_v59 = vrot.slane %v4567_v39, %v12188_v5  ;;  %v4493_v63 = vadd.f32 %v14797_v28, %v4492_v0  ;;  %v5108_v39 = vrot.slane %v5106_v58, 2 }
 0x24c   : > { %v10818_v30 = vpop.f32.mrf.mxu0  ;;  %v6085_v0 = vrot.slane %v6077_v35, %v12188_v5  ;;  %v6339_v35 = vcombine.low %v15185_v32, %v15182_v8 }
 0x24d   : > { %v15250_v52 = vrot.slane %v4745_v46, %v12188_v5  ;;  %v15252_v61 = vcombine.high %v4752_v59, %v4752_v59  ;;  %v4568_v24 = vmax.f32 %v4493_v63, 0.0  ;;  %v6078_v6 = vcombine.low %v15151_v54, %v4752_v59  ;;  %v11908_v54 = vld [vmem:[%s18802_s3 + $0x48] sm:$0xff]  }
 0x24e   : > { %v5112_v12 = vrot.slane %v4752_v59, 7  ;;  %v11909_v46 = vld [vmem:[%s18802_s3 + $0x8] sm:$0xff]   ;;  %10577 = vmatprep.subr.bf16.mxu1 %v11908_v54  ;;  %v6495_v8 = vcombine.low %v15147_v60, %v6085_v0  ;;  %v5110_v32 = vsel %vm12389_vm6, %v5108_v39, %v5109_v7 }
 0x24f   : > { %v5410_v22 = vcombine.low %v4752_v59, %v15252_v61  ;;  %v6094_v19 = vcombine.low %v15252_v61, %v15250_v52  ;;  %v15262_v13 = vrot.slane %v4568_v24, %v12188_v5  ;;  %v4762_v59 = vcombine.high %v4568_v24, %v4568_v24  ;;  %10578 = vmatpush3.bf16.msra.mxu1 %v11909_v46 }
 0x250   : > { %v5115_v30 = vrot.slane %v15252_v61, 7  ;;  %v6092_v56 = vrot.slane %v6078_v6, %v12188_v5 }
 0x251   : > { %v15268_v14 = vcombine.high %v15262_v13, %v15262_v13  ;;  %v15279_v21 = vrot.slane %v5410_v22, %v12188_v5  ;;  %v6102_v58 = vrot.slane %v6094_v19, %v12188_v5  ;;  %v5113_v19 = vsel %vm12389_vm6, %v5111_v16, %v5112_v12 }
 0x252   : > { %v4497_v11 = vpop.f32.mrf.mxu0  ;;  %v15298_v6 = vrot.slane %v4762_v59, %v12188_v5  ;;  %v5117_v43 = vrot.slane %v5115_v30, 2  ;;  %v5718_v46 = vcombine.low %v5110_v32, %v5113_v19  ;;  %v5122_v60 = vrot.slane %v15262_v13, 7 }
 0x253   : > { %v4498_v63 = vadd.f32 %v14797_v28, %v4497_v11  ;;  %v6095_v41 = vcombine.low %v15262_v13, %v15268_v14  ;;  %v6340_v11 = vcombine.low %v15188_v48, %v15279_v21  ;;  %v6496_v34 = vcombine.low %v6092_v56, %v6102_v58 }
 0x254   : > { %v10821_v10 = vpop.f32.mrf.mxu0  ;;  %v5125_v7 = vrot.slane %v15268_v14, 7  ;;  %v15322_v19 = vrot.slane %v5718_v46, %v12188_v5  ;;  %v5114_v32 = vrot.slane %v5112_v12, 2  ;;  %v5124_v12 = vrot.slane %v5122_v60, 2 }
 0x255   : > { %v4569_v24 = vmax.f32 %v4498_v63, 0.0  ;;  %v4761_v10 = vcombine.high %v15250_v52, %v15250_v52  ;;  %v11532_v63 = vpack.i.bf16 %v6340_v11, %v6339_v35  ;;  %v15304_v62 = vrot.slane %v6095_v41, %v12188_v5  ;;  %v11910_v35 = vld [vmem:[%s18802_s3 + $0x40] sm:$0xff]  }
 0x256   : > { %v4500_v22 = vpop.f32.mrf.mxu0  ;;  %v11911_v41 = vld [vmem:[%s18802_s3] sm:$0xff]   ;;  %v11527_v11 = vpack.i.bf16 %v6496_v34, %v6495_v8  ;;  %19186 = vst [vmem:[#allocation20_spill] sm:$0xff] %v15322_v19  ;;  %10579 = vmatprep.subr.bf16.mxu1 %v11910_v35  ;;  %v15333_v34 = vcombine.high %v15298_v6, %v15298_v6  ;;  %v15349_v46 = vrot.slane %v5125_v7, 2  ;;  %v5427_v35 = vcombine.low %v15268_v14, %v15298_v6 }
 0x257   : > { %v4779_v54 = vcombine.high %v4569_v24, %v4569_v24  ;;  %v4501_v16 = vadd.f32 %v14797_v28, %v4500_v22  ;;  %v15309_v39 = vrot.slane %v4569_v24, %v12188_v5  ;;  %11533 = vrot.lane.b32.xlu1 %v11532_v63, %s12067_s25  ;;  %v15325_v24 = vcombine.low %v6102_v58, %v15304_v62 }
 0x258   : > { %v10822_v48 = vpop.f32.mrf.mxu0  ;;  %v18862_v63 = vrot.slane %v15298_v6, 7  ;;  %v10410_v9 = vrot.slane %v4761_v10, 9  ;;  %11528 = vrot.lane.b32.xlu0 %v11527_v11, %s12066_s24  ;;  %10580 = vmatpush3.bf16.msra.mxu1 %v11911_v41 }
 0x259   : > { %v15312_v59 = vrot.slane %v4779_v54, %v12188_v5  ;;  %v4570_v22 = vmax.f32 %v4501_v16, 0.0  ;;  %19187 = vst [vmem:[#allocation37_spill] sm:$0xff] %v15325_v24  ;;  %v5118_v54 = vrot.slane %v15250_v52, 7  ;;  %v15329_v48 = vcombine.low %v6085_v0, %v6092_v56  ;;  %10851 = vmatprep.subr.bf16.mxu1 %v19126_v36 }
 0x25a   : > { %v15342_v52 = vcombine.low %v15201_v38, %v15322_v19  ;;  %v5411_v0 = vcombine.low %v4761_v10, %v15262_v13  ;;  %v15364_v13 = vcombine.high %v15309_v39, %v15309_v39  ;;  %v5428_v10 = vcombine.low %v15333_v34, %v15309_v39 }
 0x25b   : > { %19188 = vst [vmem:[#allocation8_spill] sm:$0xff] %v15329_v48  ;;  %v15337_v8 = vcombine.high %v15312_v59, %v15312_v59  ;;  %v5119_v56 = vsel %vm12389_vm6, %v5117_v43, %v5118_v54  ;;  %v11542_v58 = vpack.i.bf16 %v15325_v24, %v15329_v48  ;;  %v15355_v23 = vrot.slane %v4570_v22, %v12188_v5 }
 0x25c   : > { %v4505_v20 = vpop.f32.mrf.mxu0  ;;  %v15360_v43 = vrot.slane %v18862_v63, 2  ;;  %v11537_v14 = vpack.i.bf16 %v15342_v52, %v15217_v55  ;;  %v4796_v57 = vcombine.high %v4570_v22, %v4570_v22  ;;  %v5116_v63 = vsel %vm12389_vm6, %v5114_v32, %v5115_v30 }
 0x25d   : > { %11543 = vrot.lane.b32.xlu1 %v11542_v58, %s12065_s22  ;;  %v5123_v11 = vsel %vm12389_vm6, %v10410_v9, %v5122_v60  ;;  %v5126_v55 = vsel %vm12389_vm6, %v5124_v12, %v5125_v7  ;;  %v5734_v58 = vcombine.low %v5116_v63, %v5119_v56  ;;  %v5425_v54 = vrot.slane %v5411_v0, %v12188_v5 }
 0x25e   : > { %v10825_v16 = vpop.f32.mrf.mxu0  ;;  %11538 = vrot.lane.b32.xlu0 %v11537_v14, %s12067_s25  ;;  %v6111_v22 = vcombine.low %v15298_v6, %v15333_v34  ;;  %v19189_v61 = vrot.slane %v15309_v39, 7  ;;  %v6128_v30 = vcombine.low %v15337_v8, %v15355_v23  ;;  %v5735_v32 = vcombine.low %v5123_v11, %v5126_v55 }
 0x25f   : > { %v5444_v16 = vcombine.low %v15312_v59, %v15337_v8  ;;  %v6112_v9 = vcombine.low %v15309_v39, %v15364_v13  ;;  %v5435_v60 = vrot.slane %v5427_v35, %v12188_v5  ;;  %v5442_v7 = vrot.slane %v5428_v10, %v12188_v5 }
 0x260   : > { %v4508_v41 = vpop.f32.mrf.mxu0  ;;  %v5136_v48 = vrot.slane %v19189_v61, 2  ;;  %v4506_v63 = vadd.f32 %v14797_v28, %v4505_v20  ;;  %v15398_v56 = vrot.slane %v4796_v57, %v12188_v5  ;;  %v15401_v12 = vrot.slane %v5734_v58, %v12188_v5 }
 0x261   : > { %v15404_v0 = vrot.slane %v5735_v32, %v12188_v5  ;;  %v15407_v11 = vrot.slane %v5444_v16, %v12188_v5  ;;  %v15411_v35 = vcombine.high %v15355_v23, %v15355_v23  ;;  %v15414_v28 = vcombine.low %v15279_v21, %v5425_v54 }
 0x262   : > { %v10826_v24 = vpop.f32.mrf.mxu0  ;;  %19190 = vst [vmem:[#allocation24_spill] sm:$0xff] %v15401_v12  ;;  %v15416_v20 = vcombine.low %v5435_v60, %v5442_v7  ;;  %v4571_v57 = vmax.f32 %v4506_v63, 0.0  ;;  %v6119_v16 = vrot.slane %v6111_v22, %v12188_v5  ;;  %v6136_v58 = vrot.slane %v6128_v30, %v12188_v5 }
 0x263   : > { %19191 = vst [vmem:[#allocation22_spill] sm:$0xff] %v15404_v0  ;;  %19192 = vst [vmem:[#allocation23_spill] sm:$0xff] %v15414_v28  ;;  %v15420_v14 = vcombine.low %v15401_v12, %v15404_v0  ;;  %v6342_v55 = vcombine.low %v5442_v7, %v15407_v11  ;;  %v5137_v61 = vrot.slane %v15364_v13, 7  ;;  %v10411_v32 = vrot.slane %v15312_v59, 9 }
 0x264   : > { %19193 = vst [vmem:[#allocation27_spill] sm:$0xff] %v15416_v20  ;;  %v5141_v21 = vrot.slane %v15337_v8, 7  ;;  %v11547_v63 = vpack.i.bf16 %v15416_v20, %v15414_v28  ;;  %v4813_v18 = vcombine.high %v4571_v57, %v4571_v57  ;;  %v6341_v7 = vcombine.low %v5425_v54, %v5435_v60 }
 0x265   : > { %v15395_v24 = vpop.f32.mrf.mxu0  ;;  %v11552_v17 = vpack.i.bf16 %v15420_v14, %v15342_v52  ;;  %v6126_v22 = vrot.slane %v6112_v9, %v12188_v5  ;;  %v5144_v30 = vrot.slane %v15355_v23, 7  ;;  %v5147_v13 = vrot.slane %v15411_v35, 7  ;;  %v15448_v9 = vld [vmem:[%s18801_s2] ss:$0 sm:$0xff] }
 0x266   : > { %v5150_v59 = vrot.slane %v15398_v56, 7  ;;  %11548 = vrot.lane.b32.xlu0 %v11547_v63, %s12065_s22  ;;  %v15441_v8 = vcombine.high %v15398_v56, %v15398_v56  ;;  %v11562_v52 = vpack.i.bf16 %v6342_v55, %v6341_v7  ;;  %v6497_v54 = vcombine.low %v15304_v62, %v6119_v16 }
 0x267   : > { %v10829_v10 = vpop.f32.mrf.mxu0  ;;  %11553 = vrot.lane.b32.xlu1 %v11552_v17, %s12066_s24  ;;  %v6498_v60 = vcombine.low %v6126_v22, %v6136_v58  ;;  %v4509_v20 = vadd.f32 %v15448_v9, %v4508_v41  ;;  %v5142_v63 = vsel %vm12389_vm6, %v10411_v32, %v5141_v21  ;;  %v5143_v0 = vrot.slane %v5141_v21, 2 }
 0x268   : > { %v4820_v17 = vrot.slane %v4571_v57, %v12188_v5  ;;  %v15457_v55 = vrot.slane %v4813_v18, %v12188_v5  ;;  %v19194_v7 = vrot.slane %v15298_v6, 7  ;;  %v19195_v41 = vrot.slane %v15333_v34, 7 }
 0x269   : > { %v15430_v10 = vpop.f32.mrf.mxu0  ;;  %v11557_v62 = vpack.i.bf16 %v6498_v60, %v6497_v54  ;;  %v5146_v28 = vrot.slane %v5144_v30, 2  ;;  %v5149_v57 = vrot.slane %v5147_v13, 2  ;;  %v5152_v38 = vrot.slane %v5150_v59, 2 }
 0x26a   : > { %v5129_v3 = vsel %vm12389_vm6, %v15349_v46, %v19194_v7  ;;  %v5132_v32 = vsel %vm12389_vm6, %v15360_v43, %v19195_v41  ;;  %v5445_v18 = vcombine.low %v15355_v23, %v15411_v35  ;;  %v5153_v6 = vrot.slane %v15441_v8, 7 }
 0x26b   : > { %v10830_v37 = vpop.f32.mrf.mxu0  ;;  %11563 = vrot.lane.b32.xlu1 %v11562_v52, %s12067_s25  ;;  %11558 = vrot.lane.b32.xlu0 %v11557_v62, %s12066_s24  ;;  %v4572_v46 = vmax.f32 %v4509_v20, 0.0  ;;  %v19196_v54 = vmov %v19195_v41  ;;  %v5138_v43 = vsel %vm12389_vm6, %v5136_v48, %v5137_v61  ;;  %v15480_v41 = vcombine.high %v4820_v17, %v4820_v17 }
 0x26c   : > { %v6129_v37 = vcombine.low %v15411_v35, %v15398_v56  ;;  %v5133_v60 = vrot.slane %v19196_v54, 2  ;;  %v5751_v25 = vcombine.low %v5129_v3, %v5132_v32  ;;  %v5145_v23 = vsel %vm12389_vm6, %v5143_v0, %v5144_v30 }
 0x26d   : > { %v15469_v21 = vpop.f32.mrf.mxu0  ;;  %v15489_v35 = vcombine.high %v15457_v55, %v15457_v55  ;;  %v15492_v34 = vrot.slane %v4572_v46, %v12188_v5  ;;  %v19197_v20 = vrot.slane %v15309_v39, 7  ;;  %v15498_v61 = vcombine.low %v6119_v16, %v6126_v22 }
 0x26e   : > { %v15483_v19 = vrot.slane %v6129_v37, %v12188_v5  ;;  %v5151_v0 = vsel %vm12389_vm6, %v5149_v57, %v5150_v59  ;;  %v5768_v30 = vcombine.low %v5142_v63, %v5145_v23  ;;  %v5156_v62 = vrot.slane %v4820_v17, 7 }
 0x26f   : > { %v10833_v7 = vpop.f32.mrf.mxu0  ;;  %v5135_v48 = vsel %vm12389_vm6, %v5133_v60, %v19197_v20  ;;  %19198 = vst [vmem:[#allocation28_spill] sm:$0xff] %v15498_v61  ;;  %v4830_v32 = vcombine.high %v4572_v46, %v4572_v46  ;;  %v15509_v39 = vcombine.high %v15492_v34, %v15492_v34  ;;  %v5148_v16 = vsel %vm12389_vm6, %v5146_v28, %v5147_v13 }
 0x270   : > { %v5752_v52 = vcombine.low %v5135_v48, %v5138_v43  ;;  %v15503_v37 = vcombine.low %v6136_v58, %v15483_v19  ;;  %v15514_v54 = vrot.slane %v5751_v25, %v12188_v5  ;;  %v5769_v63 = vcombine.low %v5148_v16, %v5151_v0 }
 0x271   : > { %v15500_v3 = vpop.f32.mrf.mxu0  ;;  %v15523_v57 = vsel %vm12389_vm6, %v5152_v38, %v5153_v6  ;;  %v5155_v46 = vrot.slane %v5153_v6, 2  ;;  %v5462_v60 = vcombine.low %v15480_v41, %v15457_v55  ;;  %v5478_v28 = vcombine.low %v15489_v35, %v15492_v34 }
 0x272   : > { %19199 = vst [vmem:[#allocation25_spill] sm:$0xff] %v15503_v37  ;;  %19200 = vst [vmem:[#allocation26_spill] sm:$0xff] %v15514_v54  ;;  %v15517_v58 = vrot.slane %v5752_v52, %v12188_v5  ;;  %v11572_v59 = vpack.i.bf16 %v15503_v37, %v15498_v61  ;;  %v6145_v25 = vcombine.low %v15441_v8, %v4820_v17  ;;  %v10412_v7 = vrot.slane %v15480_v41, 9 }
 0x273   : > { %v10834_v22 = vpop.f32.mrf.mxu0  ;;  %v15534_v43 = vrot.slane %v5768_v30, %v12188_v5  ;;  %v15537_v38 = vrot.slane %v5769_v63, %v12188_v5  ;;  %v15541_v6 = vsel %vm12389_vm6, %v5155_v46, %v5156_v62  ;;  %v15545_v23 = vrot.slane %v4830_v32, %v12188_v5 }
 0x274   : > { %19201 = vst [vmem:[#allocation29_spill] sm:$0xff] %v15517_v58  ;;  %v5767_v13 = vcombine.low %v15514_v54, %v15517_v58  ;;  %11573 = vrot.lane.b32.xlu1 %v11572_v59, %s12065_s22  ;;  %v6162_v17 = vcombine.low %v15492_v34, %v15509_v39  ;;  %v4514_v52 = vadd.f32 %v15448_v9, %v15395_v24  ;;  %v5160_v32 = vrot.slane %v15457_v55, 7 }
 0x275   : > { %19202 = vst [vmem:[#allocation32_spill] sm:$0xff] %v15534_v43  ;;  %19203 = vst [vmem:[#allocation31_spill] sm:$0xff] %v15537_v38  ;;  %v15552_v48 = vcombine.low %v15534_v43, %v15537_v38  ;;  %v5459_v0 = vrot.slane %v5445_v18, %v12188_v5  ;;  %v5461_v41 = vcombine.low %v15398_v56, %v15441_v8  ;;  %v5166_v63 = vrot.slane %v15492_v34, 7 }
 0x276   : > { %v11567_v20 = vpack.i.bf16 %v5767_v13, %v15420_v14  ;;  %v5476_v30 = vrot.slane %v5462_v60, %v12188_v5  ;;  %v15561_v62 = vrot.slane %v5478_v28, %v12188_v5  ;;  %v4517_v14 = vadd.f32 %v15448_v9, %v15430_v10 }
 0x277   : > { %v6153_v16 = vrot.slane %v6145_v25, %v12188_v5  ;;  %v11582_v24 = vpack.i.bf16 %v15552_v48, %v5767_v13  ;;  %v4573_v18 = vmax.f32 %v4514_v52, 0.0  ;;  %v6146_v56 = vcombine.low %v15457_v55, %v15489_v35 }
 0x278   : > { %11568 = vrot.lane.b32.xlu0 %v11567_v20, %s12067_s25  ;;  %v5469_v8 = vrot.slane %v5461_v41, %v12188_v5  ;;  %v6344_v22 = vcombine.low %v5476_v30, %v15561_v62  ;;  %v15573_v59 = vmax.f32 %v4517_v14, 0.0  ;;  %v4846_v10 = vcombine.high %v15545_v23, %v15545_v23 }
 0x279   : > { %11583 = vrot.lane.b32.xlu1 %v11582_v24, %s12066_s24  ;;  %v4847_v46 = vcombine.high %v4573_v18, %v4573_v18  ;;  %v15580_v60 = vrot.slane %v4573_v18, %v12188_v5  ;;  %v15583_v28 = vcombine.low %v15407_v11, %v5459_v0  ;;  %v6170_v13 = vrot.slane %v6162_v17, %v12188_v5 }
 0x27a   : > { %v15585_v55 = vcombine.low %v5469_v8, %v5476_v30  ;;  %v6343_v25 = vcombine.low %v5459_v0, %v5469_v8  ;;  %v5169_v20 = vrot.slane %v15509_v39, 7  ;;  %v15598_v41 = vrot.slane %v15573_v59, %v12188_v5 }
 0x27b   : > { %19204 = vst [vmem:[#allocation33_spill] sm:$0xff] %v15583_v28  ;;  %v15590_v52 = vrot.slane %v4847_v46, %v12188_v5  ;;  %v15594_v34 = vcombine.high %v15580_v60, %v15580_v60  ;;  %v5172_v11 = vrot.slane %v15545_v23, 7  ;;  %v6160_v17 = vrot.slane %v6146_v56, %v12188_v5 }
 0x27c   : > { %19205 = vst [vmem:[#allocation34_spill] sm:$0xff] %v15585_v55  ;;  %v11577_v0 = vpack.i.bf16 %v15585_v55, %v15583_v28  ;;  %v11587_v30 = vpack.i.bf16 %v6344_v22, %v6343_v25  ;;  %v5161_v24 = vsel %vm12389_vm6, %v10412_v7, %v5160_v32  ;;  %v5785_v18 = vcombine.low %v15523_v57, %v15541_v6 }
 0x27d   : > { %v5162_v8 = vrot.slane %v5160_v32, 2  ;;  %v15612_v46 = vcombine.high %v15590_v52, %v15590_v52  ;;  %v5495_v37 = vcombine.low %v15580_v60, %v15594_v34  ;;  %v6500_v56 = vcombine.low %v6160_v17, %v6170_v13 }
 0x27e   : > { %v15604_v14 = vpop.f32.mrf.mxu0  ;;  %11578 = vrot.lane.b32.xlu0 %v11577_v0, %s12065_s22  ;;  %11588 = vrot.lane.b32.xlu1 %v11587_v30, %s12067_s25  ;;  %v5163_v25 = vrot.slane %v15489_v35, 7  ;;  %v5168_v7 = vrot.slane %v5166_v63, 2  ;;  %v6163_v61 = vcombine.low %v15545_v23, %v4846_v10  ;;  %v15622_v57 = vcombine.high %v15598_v41, %v15598_v41 }
 0x27f   : > { %v5171_v6 = vrot.slane %v5169_v20, 2  ;;  %v5174_v32 = vrot.slane %v5172_v11, 2  ;;  %v5479_v55 = vcombine.low %v15509_v39, %v15545_v23  ;;  %v6499_v0 = vcombine.low %v15483_v19, %v6153_v16 }
 0x280   : > { %v10837_v22 = vpop.f32.mrf.mxu0  ;;  %v5175_v30 = vrot.slane %v4846_v10, 7  ;;  %v4864_v35 = vcombine.high %v15573_v59, %v15573_v59  ;;  %v15632_v28 = vcombine.low %v6153_v16, %v6160_v17  ;;  %v5179_v58 = vrot.slane %v15594_v34, 7 }
 0x281   : > { %v5496_v43 = vcombine.low %v15590_v52, %v15612_v46  ;;  %v15638_v54 = vrot.slane %v5495_v37, %v12188_v5  ;;  %v11592_v39 = vpack.i.bf16 %v6500_v56, %v6499_v0  ;;  %v5512_v23 = vcombine.low %v15598_v41, %v15622_v57 }
 0x282   : > { %v15627_v38 = vpop.f32.mrf.mxu0  ;;  %19206 = vst [vmem:[#allocation6_spill] sm:$0xff] %v15632_v28  ;;  %v15643_v10 = vrot.slane %v6163_v61, %v12188_v5  ;;  %v5164_v16 = vsel %vm12389_vm6, %v5162_v8, %v5163_v25  ;;  %v15648_v59 = vrot.slane %v5785_v18, %v12188_v5  ;;  %v5165_v22 = vrot.slane %v5163_v25, 2 }
 0x283   : > { %11593 = vrot.lane.b32.xlu0 %v11592_v39, %s12066_s24  ;;  %v5786_v17 = vcombine.low %v5161_v24, %v5164_v16  ;;  %v5170_v37 = vsel %vm12389_vm6, %v5168_v7, %v5169_v20  ;;  %v5173_v56 = vsel %vm12389_vm6, %v5171_v6, %v5172_v11  ;;  %v5176_v61 = vsel %vm12389_vm6, %v5174_v32, %v5175_v30 }
 0x284   : > { %v10838_v19 = vpop.f32.mrf.mxu0  ;;  %19207 = vst [vmem:[#allocation10_spill] sm:$0xff] %v15648_v59  ;;  %v15656_v0 = vcombine.low %v6170_v13, %v15643_v10  ;;  %v4522_v18 = vadd.f32 %v15448_v9, %v15469_v21  ;;  %v5493_v8 = vrot.slane %v5479_v55, %v12188_v5  ;;  %v5167_v20 = vsel %vm12389_vm6, %v5165_v22, %v5166_v63 }
 0x285   : > { %v15664_v24 = vrot.slane %v5786_v17, %v12188_v5  ;;  %v5803_v25 = vcombine.low %v5173_v56, %v5176_v61  ;;  %v5510_v11 = vrot.slane %v5496_v43, %v12188_v5  ;;  %v4878_v13 = vrot.slane %v4864_v35, %v12188_v5 }
 0x286   : > { %19208 = vst [vmem:[#allocation7_spill] sm:$0xff] %v15656_v0  ;;  %v11602_v7 = vpack.i.bf16 %v15656_v0, %v15632_v28  ;;  %v5802_v6 = vcombine.low %v5167_v20, %v5170_v37  ;;  %v4575_v32 = vmax.f32 %v4522_v18, 0.0  ;;  %v4525_v63 = vadd.f32 %v15448_v9, %v15500_v3 }
 0x287   : > { %19209 = vst [vmem:[#allocation11_spill] sm:$0xff] %v15664_v24  ;;  %v5801_v21 = vcombine.low %v15648_v59, %v15664_v24  ;;  %v15675_v55 = vrot.slane %v5803_v25, %v12188_v5  ;;  %v15678_v30 = vcombine.low %v15638_v54, %v5510_v11  ;;  %v18883_v43 = vrot.slane %v15622_v57, 7 }
 0x288   : > { %11603 = vrot.lane.b32.xlu1 %v11602_v7, %s12065_s22  ;;  %v15685_v22 = vrot.slane %v5802_v6, %v12188_v5  ;;  %v4881_v35 = vcombine.high %v4575_v32, %v4575_v32  ;;  %v15688_v39 = vrot.slane %v5512_v23, %v12188_v5  ;;  %v5181_v19 = vrot.slane %v5179_v58, 2 }
 0x289   : > { %19210 = vst [vmem:[#allocation30_spill] sm:$0xff] %v15675_v55  ;;  %19211 = vst [vmem:[#allocation35_spill] sm:$0xff] %v15678_v30  ;;  %v11597_v16 = vpack.i.bf16 %v5801_v21, %v15552_v48  ;;  %v15692_v17 = vrot.slane %v4575_v32, %v12188_v5  ;;  %v15695_v37 = vcombine.low %v15561_v62, %v5493_v8  ;;  %v5182_v3 = vrot.slane %v15590_v52, 7 }
 0x28a   : > { %19212 = vst [vmem:[#allocation36_spill] sm:$0xff] %v15685_v22  ;;  %v15700_v56 = vcombine.low %v15685_v22, %v15675_v55  ;;  %v15703_v61 = vrot.slane %v4881_v35, %v12188_v5  ;;  %v4576_v23 = vmax.f32 %v4525_v63, 0.0  ;;  %v6179_v18 = vcombine.low %v15594_v34, %v15590_v52 }
 0x28b   : > { %19213 = vst [vmem:[#allocation38_spill] sm:$0xff] %v15695_v37  ;;  %v15707_v48 = vcombine.high %v4878_v13, %v4878_v13  ;;  %v5188_v20 = vrot.slane %v15598_v41, 7  ;;  %11598 = vrot.lane.b32.xlu0 %v11597_v16, %s12067_s25  ;;  %v11612_v62 = vpack.i.bf16 %v15678_v30, %v15695_v37  ;;  %v5185_v25 = vrot.slane %v15612_v46, 7 }
 0x28c   : > { %v5193_v7 = vrot.slane %v18883_v43, 2  ;;  %v11607_v6 = vpack.i.bf16 %v15700_v56, %v5801_v21  ;;  %v6346_v32 = vcombine.low %v5510_v11, %v15688_v39  ;;  %v5183_v52 = vsel %vm12389_vm6, %v5181_v19, %v5182_v3 }
 0x28d   : > { %v5194_v34 = vrot.slane %v4878_v13, 7  ;;  %v6180_v63 = vcombine.low %v15612_v46, %v15598_v41  ;;  %v15724_v35 = vcombine.high %v15692_v17, %v15692_v17  ;;  %v6196_v16 = vcombine.low %v15622_v57, %v4878_v13 }
 0x28e   : > { %11608 = vrot.lane.b32.xlu1 %v11607_v6, %s12066_s24  ;;  %v15730_v21 = vcombine.high %v15703_v61, %v15703_v61  ;;  %v15733_v11 = vrot.slane %v4576_v23, %v12188_v5  ;;  %v6345_v19 = vcombine.low %v5493_v8, %v15638_v54  ;;  %v19214_v43 = vrot.slane %v15580_v60, 9 }
 0x28f   : > { %v5184_v46 = vrot.slane %v5182_v3, 2  ;;  %v15740_v0 = vrot.slane %v5188_v20, 2  ;;  %11613 = vrot.lane.b32.xlu0 %v11612_v62, %s12065_s22  ;;  %v4898_v13 = vcombine.high %v4576_v23, %v4576_v23  ;;  %v15745_v28 = vsel %vm12389_vm6, %v5193_v7, %v5194_v34 }
 0x290   : > { %v5180_v41 = vsel %vm12389_vm6, %v19214_v43, %v5179_v58  ;;  %v11622_v55 = vpack.i.bf16 %v6346_v32, %v6345_v19  ;;  %v18888_v54 = vrot.slane %v15692_v17, 7  ;;  %v5513_v60 = vcombine.low %v15707_v48, %v15692_v17 }
 0x291   : > { %v5819_v6 = vcombine.low %v5180_v41, %v5183_v52  ;;  %v6197_v58 = vcombine.low %v15692_v17, %v15724_v35  ;;  %v6187_v8 = vrot.slane %v6179_v18, %v12188_v5  ;;  %v5530_v43 = vcombine.low %v15730_v21, %v15733_v11 }
 0x292   : > { %11623 = vrot.lane.b32.xlu1 %v11622_v55, %s12067_s25  ;;  %v6194_v3 = vrot.slane %v6180_v63, %v12188_v5  ;;  %v6204_v23 = vrot.slane %v6196_v16, %v12188_v5  ;;  %v5187_v62 = vrot.slane %v5185_v25, 2  ;;  %v5201_v7 = vrot.slane %v15724_v35, 7 }
 0x293   : > { %v5529_v32 = vcombine.low %v15724_v35, %v15703_v61  ;;  %v15763_v52 = vrot.slane %v4898_v13, %v12188_v5  ;;  %v5186_v18 = vsel %vm12389_vm6, %v5184_v46, %v5185_v25  ;;  %v6501_v34 = vcombine.low %v15643_v10, %v6187_v8 }
 0x294   : > { %v6502_v19 = vcombine.low %v6194_v3, %v6204_v23  ;;  %v5189_v55 = vsel %vm12389_vm6, %v5187_v62, %v5188_v20  ;;  %v4530_v63 = vadd.f32 %v15448_v9, %v15604_v14  ;;  %v15773_v41 = vrot.slane %v5819_v6, %v12188_v5 }
 0x295   : > { %v5820_v16 = vcombine.low %v5186_v18, %v5189_v55  ;;  %v15775_v35 = vcombine.low %v6187_v8, %v6194_v3  ;;  %v15778_v13 = vrot.slane %v6197_v58, %v12188_v5  ;;  %v15781_v10 = vrot.slane %v5530_v43, %v12188_v5 }
 0x296   : > { %19215 = vst [vmem:[#allocation39_spill] sm:$0xff] %v15773_v41  ;;  %v11617_v30 = vpack.i.bf16 %v6502_v19, %v6501_v34  ;;  %v4577_v25 = vmax.f32 %v4530_v63, 0.0  ;;  %v4533_v20 = vadd.f32 %v15448_v9, %v15627_v38  ;;  %v15792_v6 = vrot.slane %v5513_v60, %v12188_v5 }
 0x297   : > { %19216 = vst [vmem:[#allocation40_spill] sm:$0xff] %v15775_v35  ;;  %v15786_v46 = vrot.slane %v5820_v16, %v12188_v5  ;;  %v15789_v14 = vcombine.low %v6204_v23, %v15778_v13  ;;  %v15795_v58 = vrot.slane %v5529_v32, %v12188_v5  ;;  %v5200_v8 = vrot.slane %v18888_v54, 2 }
 0x298   : > { %v15801_v43 = vcombine.high %v15763_v52, %v15763_v52  ;;  %11618 = vrot.lane.b32.xlu0 %v11617_v30, %s12066_s24  ;;  %v4915_v38 = vcombine.high %v4577_v25, %v4577_v25  ;;  %v4578_v3 = vmax.f32 %v4533_v20, 0.0  ;;  %v15809_v60 = vrot.slane %v4577_v25, %v12188_v5 }
 0x299   : > { %19217 = vst [vmem:[#allocation41_spill] sm:$0xff] %v15786_v46  ;;  %19218 = vst [vmem:[#allocation42_spill] sm:$0xff] %v15789_v14  ;;  %v15806_v23 = vcombine.low %v15773_v41, %v15786_v46  ;;  %v11632_v62 = vpack.i.bf16 %v15789_v14, %v15775_v35  ;;  %v15815_v32 = vcombine.low %v15795_v58, %v15781_v10  ;;  %v15817_v18 = vrot.slane %v5201_v7, 2  ;;  %v15882_v46 = vpop.permute.xlu1 %11463 }
 0x29a   : > { %v15823_v19 = vcombine.high %v15733_v11, %v15733_v11  ;;  %v6213_v55 = vcombine.low %v15703_v61, %v15730_v21  ;;  %v15830_v16 = vrot.slane %v4915_v38, %v12188_v5  ;;  %v15835_v25 = vcombine.low %v15688_v39, %v15792_v6 }
 0x29b   : > { %19219 = vst [vmem:[#allocation43_spill] sm:$0xff] %v15815_v32  ;;  %v11627_v63 = vpack.i.bf16 %v15806_v23, %v15700_v56  ;;  %11633 = vrot.lane.b32.xlu1 %v11632_v62, %s12065_s22  ;;  %v5217_v54 = vrot.slane %v15801_v43, 7  ;;  %v4932_v30 = vcombine.high %v4578_v3, %v4578_v3  ;;  %v15840_v14 = vrot.slane %v4578_v3, %v12188_v5 }
 0x29c   : > { %19220 = vst [vmem:[#allocation44_spill] sm:$0xff] %v15835_v25  ;;  %v15845_v56 = vcombine.high %v15809_v60, %v15809_v60  ;;  %v11637_v38 = vpack.i.bf16 %v15815_v32, %v15835_v25  ;;  %v19221_v39 = vrot.slane %v15622_v57, 7  ;;  %v5202_v34 = vsel %vm12389_vm6, %v5200_v8, %v5201_v7 }
 0x29d   : > { %11628 = vrot.lane.b32.xlu0 %v11627_v63, %s12067_s25  ;;  %v19222_v35 = vrot.slane %v15703_v61, 7  ;;  %v10415_v41 = vrot.slane %v15763_v52, 9  ;;  %v5546_v57 = vcombine.low %v15763_v52, %v15801_v43  ;;  %v19224_v7 = vrot.slane %v15707_v48, 9 }
 0x29e   : > { %v4537_v20 = vpop.f32.mrf.mxu0  ;;  %v5192_v62 = vsel %vm12389_vm6, %v15740_v0, %v19221_v39  ;;  %v19223_v39 = vrot.slane %v15692_v17, 7  ;;  %v15880_v52 = vcombine.high %v15840_v14, %v15840_v14  ;;  %v19225_v17 = vrot.slane %v15733_v11, 7 }
 0x29f   : > { %v5206_v63 = vrot.slane %v19222_v35, 2  ;;  %v5836_v37 = vcombine.low %v5192_v62, %v15745_v28  ;;  %v15876_v28 = vrot.slane %v4932_v30, %v12188_v5  ;;  %v15894_v32 = vrot.slane %v5217_v54, 2 }
 0x2a0   : > { %v10841_v3 = vpop.f32.mrf.mxu0  ;;  %v5199_v35 = vsel %vm12389_vm6, %v19224_v7, %v19223_v39  ;;  %v5212_v48 = vrot.slane %v19225_v17, 2  ;;  %v15888_v39 = vsel %vm12389_vm6, %v10415_v41, %v5217_v54  ;;  %v6214_v7 = vcombine.low %v15733_v11, %v15823_v19 }
 0x2a1   : > { %v15873_v3 = vcombine.high %v15830_v16, %v15830_v16  ;;  %v5837_v62 = vcombine.low %v5199_v35, %v5202_v34  ;;  %11638 = vrot.lane.b32.xlu0 %v11637_v38, %s12065_s22  ;;  %v6230_v34 = vcombine.low %v15801_v43, %v15809_v60  ;;  %v15899_v35 = vrot.slane %v5836_v37, %v12188_v5 }
 0x2a2   : > { %v4540_v8 = vpop.f32.mrf.mxu0  ;;  %v19228_v41 = vrot.slane %v15809_v60, 7  ;;  %v19229_v30 = vrot.slane %v15830_v16, 7  ;;  %v15913_v38 = vrot.slane %v5546_v57, %v12188_v5  ;;  %v10416_v37 = vrot.slane %v15880_v52, 9 }
 0x2a3   : > { %19226 = vst [vmem:[#allocation45_spill] sm:$0xff] %v15899_v35  ;;  %v15902_v17 = vrot.slane %v5837_v62, %v12188_v5  ;;  %v5229_v43 = vrot.slane %v15873_v3, 7  ;;  %v15930_v57 = vcombine.high %v15876_v28, %v15876_v28  ;;  %v5232_v54 = vrot.slane %v15840_v14, 7 }
 0x2a4   : > { %v10842_v0 = vpop.f32.mrf.mxu0  ;;  %v15906_v25 = vrot.slane %v19228_v41, 2  ;;  %v5228_v24 = vrot.slane %v19229_v30, 2  ;;  %v19230_v41 = vrot.slane %v15845_v56, 7  ;;  %v6231_v30 = vcombine.low %v15845_v56, %v15830_v16 }
 0x2a5   : > { %19227 = vst [vmem:[#allocation46_spill] sm:$0xff] %v15902_v17  ;;  %v5236_v0 = vrot.slane %v15876_v28, 7  ;;  %v15920_v62 = vcombine.low %v15899_v35, %v15902_v17  ;;  %v6348_v35 = vcombine.low %v15781_v10, %v15913_v38  ;;  %v6221_v12 = vrot.slane %v6213_v55, %v12188_v5 }
 0x2a6   : > { %v15924_v22 = vrot.slane %v19230_v41, 2  ;;  %v11469_v41 = vpop.permute.xlu1 %11468  ;;  %v6247_v49 = vcombine.low %v15873_v3, %v15840_v14  ;;  %v6228_v26 = vrot.slane %v6214_v7, %v12188_v5  ;;  %v6238_v36 = vrot.slane %v6230_v34, %v12188_v5 }
 0x2a7   : > { %v11642_v17 = vpack.i.bf16 %v15920_v62, %v15806_v23  ;;  %v4538_v1 = vadd.f32 %v15448_v9, %v4537_v20  ;;  %v15947_v59 = vsel %vm12389_vm6, %v5228_v24, %v5229_v43  ;;  %v5231_v23 = vrot.slane %v5229_v43, 2 }
 0x2a8   : > { %v15951_v10 = vsel %vm12389_vm6, %v10416_v37, %v5236_v0  ;;  %v6347_v14 = vcombine.low %v15792_v6, %v15795_v58  ;;  %v6503_v55 = vcombine.low %v15778_v13, %v6221_v12  ;;  %v6504_v7 = vcombine.low %v6228_v26, %v6238_v36 }
 0x2a9   : > { %11643 = vrot.lane.b32.xlu1 %v11642_v17, %s12066_s24  ;;  %v4579_v34 = vmax.f32 %v4538_v1, 0.0  ;;  %v15958_v20 = vrot.slane %v6231_v30, %v12188_v5  ;;  %v19231_v24 = vrot.slane %v15703_v61, 7  ;;  %v19232_v37 = vrot.slane %v15730_v21, 7 }
 0x2aa   : > { %v11652_v53 = vpack.i.bf16 %v6348_v35, %v6347_v14  ;;  %v15971_v58 = vrot.slane %v5236_v0, 2  ;;  %v11647_v1 = vpack.i.bf16 %v6504_v7, %v6503_v55  ;;  %v15973_v30 = vcombine.low %v6221_v12, %v6228_v26  ;;  %v15979_v61 = vpop.permute.xlu1 %11478 }
 0x2ab   : > { %v5205_v43 = vsel %vm12389_vm6, %v15817_v18, %v19231_v24  ;;  %v5208_v17 = vsel %vm12389_vm6, %v5206_v63, %v19232_v37  ;;  %v19233_v6 = vmov %v19232_v37  ;;  %v15976_v35 = vcombine.low %v6238_v36, %v15958_v20 }
 0x2ac   : > { %v5209_v13 = vrot.slane %v19233_v6, 2  ;;  %19234 = vst [vmem:[#allocation47_spill] sm:$0xff] %v15973_v30  ;;  %v19236_v18 = vrot.slane %v15733_v11, 7  ;;  %v19237_v21 = vrot.slane %v15823_v19, 7  ;;  %v5853_v14 = vcombine.low %v5205_v43, %v5208_v17  ;;  %11648 = vrot.lane.b32.xlu0 %v11647_v1, %s12066_s24 }
 0x2ad   : > { %19235 = vst [vmem:[#allocation48_spill] sm:$0xff] %v15976_v35  ;;  %11653 = vrot.lane.b32.xlu1 %v11652_v53, %s12067_s25  ;;  %v4541_v26 = vadd.f32 %v15448_v9, %v4540_v8  ;;  %v15992_v36 = vsel %vm12389_vm6, %v5231_v23, %v5232_v54  ;;  %v11471_v12 = vunpack.i.h.bf16 %v11469_v41  ;;  %v4949_v11 = vcombine.high %v4579_v34, %v4579_v34 }
 0x2ae   : > { %v5211_v63 = vsel %vm12389_vm6, %v5209_v13, %v19236_v18  ;;  %v5214_v0 = vsel %vm12389_vm6, %v5212_v48, %v19237_v21  ;;  %v15997_v55 = vrot.slane %v4579_v34, %v12188_v5  ;;  %v11662_v19 = vpack.i.bf16 %v15976_v35, %v15973_v30  ;;  %v16028_v18 = vpop.permute.xlu0 %11473  ;;  %v16034_v21 = vpop.permute.xlu1 %11483 }
 0x2af   : > { %v5854_v48 = vcombine.low %v5211_v63, %v5214_v0  ;;  %v4580_v7 = vmax.f32 %v4541_v26, 0.0  ;;  %v16004_v54 = vrot.slane %v6247_v49, %v12188_v5  ;;  %v11470_v24 = vunpack.i.l.bf16 %v11469_v41 }
 0x2b0   : > { %v16012_v37 = vrot.slane %v5853_v14, %v12188_v5  ;;  %v19240_v49 = vcombine.low %v14996_v44, %v14970_v31  ;;  %v16026_v1 = vrot.slane %v4949_v11, %v12188_v5  ;;  %v16032_v63 = vcombine.high %v15997_v55, %v15997_v55 }
 0x2b1   : > { %11663 = vrot.lane.b32.xlu1 %v11662_v19, %s12065_s22  ;;  %v16015_v17 = vrot.slane %v5854_v48, %v12188_v5  ;;  %v16039_v44 = vrot.slane %v4580_v7, %v12188_v5  ;;  %v19241_v0 = vrot.slane %v15809_v60, 7  ;;  %v19242_v26 = vcombine.low %v14849_v51, %v14987_v47 }
 0x2b2   : > { %19238 = vst [vmem:[#allocation49_spill] sm:$0xff] %v16012_v37  ;;  %v16021_v6 = vsel %vm6794_vm3, %v19240_v49, %v11471_v12  ;;  %v18907_v11 = vrot.slane %v15997_v55, 7  ;;  %v19243_v19 = vrot.slane %v15830_v16, 7  ;;  %v19244_v51 = vrot.slane %v15845_v56, 7 }
 0x2b3   : > { %19239 = vst [vmem:[#allocation50_spill] sm:$0xff] %v16015_v17  ;;  %v5869_v31 = vcombine.low %v16012_v37, %v16015_v17  ;;  %v5221_v14 = vsel %vm12389_vm6, %v15894_v32, %v19241_v0  ;;  %v16050_v12 = vsel %vm6794_vm3, %v19242_v26, %v11470_v24  ;;  %v4966_v26 = vcombine.high %v4580_v7, %v4580_v7 }
 0x2b4   : > { %v5227_v48 = vsel %vm12389_vm6, %v15924_v22, %v19243_v19  ;;  %v5870_v49 = vcombine.low %v15888_v39, %v5221_v14  ;;  %v5224_v47 = vsel %vm12389_vm6, %v15906_v25, %v19244_v51  ;;  %v16070_v22 = vcombine.high %v16039_v44, %v16039_v44 }
 0x2b5   : > { %v11657_v0 = vpack.i.bf16 %v5869_v31, %v15920_v62  ;;  %v5871_v39 = vcombine.low %v5224_v47, %v5227_v48  ;;  %v18909_v14 = vrot.slane %v16032_v63, 7  ;;  %v18908_v19 = vrot.slane %v16026_v1, 7 }
 0x2b6   : > { %v5580_v62 = vcombine.low %v15930_v57, %v15997_v55  ;;  %v16080_v25 = vcombine.high %v16026_v1, %v16026_v1  ;;  %v16084_v7 = vrot.slane %v18907_v11, 2  ;;  %v16087_v48 = vrot.slane %v5870_v49, %v12188_v5 }
 0x2b7   : > { %11658 = vrot.lane.b32.xlu0 %v11657_v0, %s12067_s25  ;;  %v16090_v51 = vrot.slane %v5871_v39, %v12188_v5  ;;  %v6264_v0 = vcombine.low %v15997_v55, %v16032_v63  ;;  %v19246_v24 = vcombine.low %v15809_v60, %v15845_v56  ;;  %v5563_v23 = vcombine.low %v15830_v16, %v15873_v3  ;;  %v16122_v56 = vpop.permute.xlu0 %11488 }
 0x2b8   : > { %19245 = vst [vmem:[#allocation51_spill] sm:$0xff] %v16087_v48  ;;  %v16103_v49 = vrot.slane %v4966_v26, %v12188_v5  ;;  %v5255_v39 = vrot.slane %v16070_v22, 7  ;;  %v19247_v41 = vcombine.low %v15880_v52, %v15876_v28  ;;  %v16116_v60 = vrot.slane %v18909_v14, 2 }
 0x2b9   : > { %v5561_v13 = vrot.slane %v19246_v24, %v12188_v5  ;;  %v16108_v34 = vcombine.low %v16087_v48, %v16090_v51  ;;  %v16120_v16 = vrot.slane %v18908_v19, 2  ;;  %v5571_v3 = vrot.slane %v5563_v23, %v12188_v5 }
 0x2ba   : > { %v5578_v32 = vrot.slane %v19247_v41, %v12188_v5  ;;  %v16126_v24 = vrot.slane %v5580_v62, %v12188_v5  ;;  %v6265_v52 = vcombine.low %v16026_v1, %v16080_v25  ;;  %v16141_v53 = vcombine.high %v16103_v49, %v16103_v49 }
 0x2bb   : > { %v11672_v41 = vpack.i.bf16 %v16108_v34, %v5869_v31  ;;  %v16134_v19 = vcombine.low %v15913_v38, %v5561_v13  ;;  %v6349_v43 = vcombine.low %v5561_v13, %v5571_v3  ;;  %v10417_v47 = vrot.slane %v16039_v44, 9 }
 0x2bc   : > { %v16136_v14 = vcombine.low %v5571_v3, %v5578_v32  ;;  %v6350_v23 = vcombine.low %v5578_v32, %v16126_v24  ;;  %v5257_v8 = vrot.slane %v5255_v39, 2  ;;  %v19250_v13 = vcombine.low %v15876_v28, %v15930_v57 }
 0x2bd   : > { %19248 = vst [vmem:[#allocation52_spill] sm:$0xff] %v16134_v19  ;;  %11673 = vrot.lane.b32.xlu1 %v11672_v41, %s12066_s24  ;;  %v6272_v3 = vrot.slane %v6264_v0, %v12188_v5  ;;  %v5258_v30 = vrot.slane %v16103_v49, 7  ;;  %v6351_v41 = vcombine.low %v16039_v44, %v16070_v22  ;;  %v16161_v28 = vrot.slane %v6265_v52, %v12188_v5 }
 0x2be   : > { %v4545_v26 = vpop.f32.mrf.mxu0  ;;  %19249 = vst [vmem:[#allocation53_spill] sm:$0xff] %v16136_v14  ;;  %v11667_v38 = vpack.i.bf16 %v16136_v14, %v16134_v19  ;;  %v11677_v35 = vpack.i.bf16 %v6350_v23, %v6349_v43  ;;  %v6262_v32 = vrot.slane %v19250_v13, %v12188_v5  ;;  %v6505_v43 = vcombine.low %v15958_v20, %v16004_v54 }
 0x2bf   : > { %v4546_v11 = vadd.f32 %v15448_v9, %v4545_v26  ;;  %v11494_v26 = vpop.permute.xlu1 %11493  ;;  %v16182_v14 = vrot.slane %v5258_v30, 2 }
 0x2c0   : > { %v10845_v62 = vpop.f32.mrf.mxu0  ;;  %11668 = vrot.lane.b32.xlu0 %v11667_v38, %s12065_s22  ;;  %v6506_v23 = vcombine.low %v6262_v32, %v6272_v3  ;;  %v11496_v19 = vunpack.i.h.bf16 %v11494_v26  ;;  %v11495_v31 = vunpack.i.l.bf16 %v11494_v26  ;;  %v11504_v38 = vpop.permute.xlu0 %11503  ;;  %v16173_v52 = vcombine.low %v16004_v54, %v6262_v32 }
 0x2c1   : > { %v4581_v17 = vmax.f32 %v4546_v11, 0.0  ;;  %11678 = vrot.lane.b32.xlu1 %v11677_v35, %s12067_s25  ;;  %v16170_v11 = vsel %vm12389_vm6, %v5257_v8, %v5258_v30  ;;  %v16190_v26 = vrot.slane %v6351_v41, %v12188_v5  ;;  %v19252_v41 = vcombine.low %v14957_v27, %v14962_v40 }
 0x2c2   : > { %v4548_v62 = vpop.f32.mrf.mxu0  ;;  %v11682_v20 = vpack.i.bf16 %v6506_v23, %v6505_v43  ;;  %19251 = vst [vmem:[#allocation54_spill] sm:$0xff] %v16173_v52  ;;  %v11505_v43 = vunpack.i.l.bf16 %v11504_v38  ;;  %v11506_v23 = vunpack.i.h.bf16 %v11504_v38  ;;  %v19253_v30 = vrot.slane %v15930_v57, 7 }
 0x2c3   : > { %v4549_v0 = vadd.f32 %v15448_v9, %v4548_v62  ;;  %v16176_v62 = vcombine.low %v6272_v3, %v16161_v28  ;;  %v16187_v8 = vrot.slane %v4581_v17, %v12188_v5  ;;  %v4983_v54 = vcombine.high %v4581_v17, %v4581_v17  ;;  %v16192_v32 = vpop.permute.xlu1 %11498 }
 0x2c4   : > { %v10846_v13 = vpop.f32.mrf.mxu0  ;;  %11683 = vrot.lane.b32.xlu0 %v11682_v20, %s12066_s24  ;;  %v16201_v3 = vsel %vm6794_vm3, %v15074_v45, %v11496_v19  ;;  %v16207_v17 = vsel %vm6794_vm3, %v19252_v41, %v11495_v31  ;;  %v5240_v45 = vsel %vm12389_vm6, %v15971_v58, %v19253_v30  ;;  %v11509_v30 = vpop.permute.xlu0 %11508  ;;  %v19256_v35 = vcombine.low %v15123_v2, %v15195_v33 }
 0x2c5   : > { %v16180_v13 = vsel %vm12389_vm6, %v10417_v47, %v5255_v39  ;;  %v11692_v47 = vpack.i.bf16 %v16176_v62, %v16173_v52  ;;  %v4582_v39 = vmax.f32 %v4549_v0, 0.0  ;;  %v16220_v27 = vcombine.high %v16187_v8, %v16187_v8 }
 0x2c6   : > { %v5888_v31 = vcombine.low %v15951_v10, %v5240_v45  ;;  %v16226_v38 = vrot.slane %v4983_v54, %v12188_v5  ;;  %v19254_v10 = vcombine.low %v15088_v29, %v15070_v50  ;;  %v16257_v40 = vsel %vm6794_vm3, %v19256_v35, %v11506_v23 }
 0x2c7   : > { %11693 = vrot.lane.b32.xlu1 %v11692_v47, %s12065_s22  ;;  %v5000_v20 = vcombine.high %v4582_v39, %v4582_v39  ;;  %v16211_v0 = vrot.slane %v4582_v39, %v12188_v5  ;;  %v18915_v47 = vrot.slane %v16187_v8, 7  ;;  %v19257_v29 = vrot.slane %v15930_v57, 7 }
 0x2c8   : > { %v16242_v54 = vsel %vm6794_vm3, %v19254_v10, %v11505_v43  ;;  %v16251_v19 = vrot.slane %v5888_v31, %v12188_v5  ;;  %v19259_v35 = vrot.slane %v16026_v1, 7  ;;  %v16282_v23 = vcombine.high %v16226_v38, %v16226_v38 }
 0x2c9   : > { %v16230_v39 = vrot.slane %v5000_v20, %v12188_v5  ;;  %v16234_v58 = vcombine.high %v16211_v0, %v16211_v0  ;;  %v19255_v20 = vcombine.low %v15947_v59, %v15992_v36  ;;  %v5241_v43 = vrot.slane %v19257_v29, 2 }
 0x2ca   : > { %v19258_v59 = vrot.slane %v16032_v63, 7  ;;  %v5249_v57 = vsel %vm12389_vm6, %v16116_v60, %v19259_v35  ;;  %v19260_v29 = vrot.slane %v15997_v55, 7  ;;  %v5270_v2 = vrot.slane %v16226_v38, 7 }
 0x2cb   : > { %v16248_v45 = vrot.slane %v19255_v20, %v12188_v5  ;;  %v16261_v50 = vcombine.high %v16230_v39, %v16230_v39  ;;  %v19261_v35 = vrot.slane %v16080_v25, 7  ;;  %v6361_v20 = vcombine.low %v16187_v8, %v16220_v27  ;;  %v16311_v25 = vpop.permute.xlu0 %11523 }
 0x2cc   : > { %v4553_v41 = vpop.f32.mrf.mxu0  ;;  %v5246_v36 = vsel %vm12389_vm6, %v16084_v7, %v19258_v59  ;;  %v16286_v7 = vrot.slane %v18915_v47, 2  ;;  %v5243_v59 = vsel %vm12389_vm6, %v5241_v43, %v19260_v29  ;;  %v19262_v55 = vcombine.low %v16032_v63, %v16026_v1 }
 0x2cd   : > { %v5903_v33 = vcombine.low %v16248_v45, %v16251_v19  ;;  %v5252_v47 = vsel %vm12389_vm6, %v16120_v16, %v19261_v35  ;;  %v5904_v10 = vcombine.low %v5243_v59, %v5246_v36  ;;  %v19264_v16 = vrot.slane %v16220_v27, 7 }
 0x2ce   : > { %v10849_v31 = vpop.f32.mrf.mxu0  ;;  %v5905_v44 = vcombine.low %v5249_v57, %v5252_v47  ;;  %v5595_v43 = vrot.slane %v19262_v55, %v12188_v5  ;;  %v6517_v59 = vcombine.low %v16220_v27, %v16226_v38  ;;  %v11511_v47 = vunpack.i.h.bf16 %v11509_v30 }
 0x2cf   : > { %v11687_v60 = vpack.i.bf16 %v5903_v33, %v16108_v34  ;;  %v19263_v34 = vcombine.low %v16103_v49, %v16141_v53  ;;  %v5269_v36 = vrot.slane %v19264_v16, 2  ;;  %v11510_v57 = vunpack.i.l.bf16 %v11509_v30  ;;  %v19269_v16 = vld [vmem:[#allocation14_spill] sm:$0xff] }
 0x2d0   : > { %v4556_v31 = vpop.f32.mrf.mxu0  ;;  %v16319_v1 = vrot.slane %v5904_v10, %v12188_v5  ;;  %v16322_v63 = vrot.slane %v5905_v44, %v12188_v5  ;;  %v16325_v35 = vcombine.low %v16126_v24, %v5595_v43  ;;  %v19265_v38 = vunpack.i.l.bf16 %v16028_v18  ;;  %v19268_v44 = vld [vmem:[#allocation12_spill] sm:$0xff] }
 0x2d1   : > { %v6368_v29 = vrot.slane %v19263_v34, %v12188_v5  ;;  %11688 = vrot.lane.b32.xlu0 %v11687_v60, %s12067_s25  ;;  %v19266_v30 = vcombine.low %v14947_v42, %v15003_v15  ;;  %v19267_v60 = vunpack.i.h.bf16 %v16028_v18  ;;  %v19270_v52 = vcombine.low %v19268_v44, %v19269_v16  ;;  %v16353_v18 = vpop.permute.xlu0 %11528 }
 0x2d2   : > { %v10850_v31 = vpop.f32.mrf.mxu0  ;;  %v16344_v48 = vcombine.low %v16319_v1, %v16322_v63  ;;  %v19272_v42 = vunpack.i.h.bf16 %v16122_v56  ;;  %v11526_v16 = vunpack.i.h.bf16 %v16311_v25 }
 0x2d3   : > { %v6587_v55 = vcombine.low %v16190_v26, %v6368_v29  ;;  %v6851_v10 = vsel %vm6794_vm3, %v19266_v30, %v19265_v38  ;;  %v6852_v24 = vsel %vm6794_vm3, %v19270_v52, %v19267_v60  ;;  %v19271_v31 = vunpack.i.l.bf16 %v16122_v56 }
 0x2d4   : > { %v6870_v15 = vsel %vm6813_vm4, %v6852_v24, %v19272_v42  ;;  %v4554_v30 = vadd.f32 %v15448_v9, %v4553_v41  ;;  %v19273_v60 = vunpack.i.l.bf16 %v15882_v46  ;;  %v11697_v44 = vpack.i.bf16 %v16344_v48, %v5903_v33  ;;  %v16372_v41 = vpop.permute.xlu1 %11513 }
 0x2d5   : > { %v11702_v34 = vpack.i.bf16 %v6587_v55, %v16325_v35  ;;  %v6869_v37 = vsel %vm6813_vm4, %v6851_v10, %v19271_v31  ;;  %v6888_v52 = vsel %vm6832_vm5, %v6870_v15, %v11511_v47  ;;  %v19274_v31 = vunpack.i.h.bf16 %v15882_v46  ;;  %v11912_v46 = vld [vmem:[%s18802_s3 + $0x88] sm:$0xff]  }
 0x2d6   : > { %v6887_v38 = vsel %vm6832_vm5, %v6869_v37, %v11510_v57  ;;  %v6814_v55 = vsel %vm6813_vm4, %v16050_v12, %v19273_v60  ;;  %v19275_v37 = vunpack.i.l.bf16 %v15979_v61  ;;  %v5277_v9 = vrot.slane %v16234_v58, 7  ;;  %11698 = vrot.lane.b32.xlu1 %v11697_v44, %s12066_s24  ;;  %v11913_v44 = vld [vmem:[%s18802_s3 + $0x80] sm:$0xff]  }
 0x2d7   : > { %11703 = vrot.lane.b32.xlu0 %v11702_v34, %s12065_s22  ;;  %v6906_v56 = vpack.c.bf16 %v6888_v52, %v6887_v38  ;;  %v6815_v10 = vsel %vm6813_vm4, %v16021_v6, %v19274_v31  ;;  %v4583_v57 = vmax.f32 %v4554_v30, 0.0  ;;  %v19276_v12 = vunpack.i.h.bf16 %v15979_v61 }
 0x2d8   : > { %v6833_v47 = vsel %vm6832_vm5, %v6814_v55, %v19275_v37  ;;  %v16378_v34 = vrot.slane %v6361_v20, %v12188_v5  ;;  %v5280_v6 = vrot.slane %v16230_v39, 7  ;;  %v19277_v61 = vcombine.low %v16070_v22, %v16103_v49 }
 0x2d9   : > { %v6834_v33 = vsel %vm6832_vm5, %v6815_v10, %v19276_v12  ;;  %7142 = vmatprep.mubr.bf16.mxu1 %v6906_v56  ;;  %v16393_v20 = vrot.slane %v4583_v57, %v12188_v5  ;;  %v6359_v15 = vcombine.low %v5595_v43, %v16190_v26  ;;  %v16398_v52 = vrot.slane %v6517_v59, %v12188_v5  ;;  %v11539_v43 = vpop.permute.xlu0 %11538  ;;  %v11519_v57 = vpop.permute.xlu1 %11518 }
 0x2da   : > { %v6905_v24 = vpack.c.bf16 %v6834_v33, %v6833_v47  ;;  %v16390_v42 = vrot.slane %v19277_v61, %v12188_v5  ;;  %v6376_v38 = vcombine.low %v6368_v29, %v16378_v34  ;;  %v16402_v30 = vsel %vm12389_vm6, %v5269_v36, %v5270_v2 }
 0x2db   : > { %v19278_v60 = vrot.slane %v16211_v0, 7  ;;  %v6588_v22 = vcombine.low %v16282_v23, %v16211_v0  ;;  %v19279_v49 = vcombine.low %v16141_v53, %v16187_v8  ;;  %v6597_v29 = vcombine.low %v16234_v58, %v16230_v39 }
 0x2dc   : > { %7143 = vmatmul.mubr.bf16.vlgmr.msra.gmra.mxu1 %v6905_v24  ;;  %v11525_v2 = vunpack.i.l.bf16 %v16311_v25  ;;  %v16421_v36 = vcombine.high %v16393_v20, %v16393_v20  ;;  %v11727_v59 = vpack.i.bf16 %v6376_v38, %v6359_v15  ;;  %v5279_v56 = vrot.slane %v5277_v9, 2 }
 0x2dd   : > { %v16406_v55 = vrot.slane %v19278_v60, 2  ;;  %v16414_v26 = vrot.slane %v19279_v49, %v12188_v5  ;;  %10852 = vmatpush3.bf16.msra.mxu1 %v11912_v46  ;;  %v5282_v31 = vrot.slane %v5280_v6, 2  ;;  %v6515_v10 = vcombine.low %v16161_v28, %v16390_v42  ;;  %v16445_v60 = vpop.permute.xlu0 %11548 }
 0x2de   : > { %v19280_v37 = vmov 0.0   ;;  %v5283_v47 = vrot.slane %v16261_v50, 7  ;;  %v6872_v12 = vsel %vm6813_vm4, %v16257_v40, %v11526_v16  ;;  %v6760_v33 = vcombine.low %v16393_v20, %v16421_v36  ;;  %11728 = vrot.lane.b32.xlu1 %v11727_v59, %s12067_s25 }
 0x2df   : > { %v6532_v25 = vcombine.low %v16414_v26, %v16398_v52  ;;  %10853 = vmatprep.subr.bf16.mxu1 %v19280_v37  ;;  %v19281_v46 = vrot.slane %v16141_v53, 7  ;;  %v6598_v28 = vcombine.low %v16261_v50, %v16393_v20  ;;  %v11541_v15 = vunpack.i.h.bf16 %v11539_v43 }
 0x2e0   : > { %v11540_v38 = vunpack.i.l.bf16 %v11539_v43  ;;  %v6871_v49 = vsel %vm6813_vm4, %v16242_v54, %v11525_v2  ;;  %v5286_v40 = vrot.slane %v16393_v20, 7  ;;  %v11521_v43 = vunpack.i.h.bf16 %v11519_v57  ;;  %v19305_v20 = vld [vmem:[#allocation32_spill] sm:$0xff] }
 0x2e1   : > { %v5263_v24 = vrot.slane %v19281_v46, 2  ;;  %v11707_v61 = vpack.i.bf16 %v6532_v25, %v6515_v10  ;;  %v19282_v16 = vmov %v19281_v46  ;;  %v19283_v46 = vrot.slane %v16187_v8, 7  ;;  %10854 = vmatpush3.bf16.msra.mxu1 %v11913_v44 }
 0x2e2   : > { %v5262_v59 = vsel %vm12389_vm6, %v16182_v14, %v19282_v16  ;;  %v6889_v54 = vsel %vm6832_vm5, %v6871_v49, %v11540_v38  ;;  %v6890_v2 = vsel %vm6832_vm5, %v6872_v12, %v11541_v15  ;;  %10891 = vmatprep.subr.bf16.mxu1 %v19280_v37  ;;  %v11520_v53 = vunpack.i.l.bf16 %v11519_v57 }
 0x2e3   : > { %v5265_v10 = vsel %vm12389_vm6, %v5263_v24, %v19283_v46  ;;  %11708 = vrot.lane.b32.xlu0 %v11707_v61, %s12066_s24  ;;  %v19284_v14 = vcombine.low %v16180_v13, %v16170_v11  ;;  %v6909_v16 = vpack.c.bf16 %v6890_v2, %v6889_v54  ;;  %v6595_v44 = vrot.slane %v6588_v22, %v12188_v5  ;;  %v16494_v54 = vpop.permute.xlu0 %11558  ;;  %s10546_s24 = sshll.u32 %s12151_s21, 4  ;;  %s12069_s21 = smov [#allocation2]  }
 0x2e4   : > { %v6456_v25 = vcombine.low %v5262_v59, %v5265_v10  ;;  %v6605_v61 = vrot.slane %v6597_v29, %v12188_v5  ;;  %v6612_v38 = vrot.slane %v6598_v28, %v12188_v5  ;;  %v19285_v12 = vunpack.i.l.bf16 %v16034_v21  ;;  %v19288_v59 = vld [vmem:[#allocation21_spill] sm:$0xff]  ;;  %s18764_s14 = scalar_lea.hbm %s18810_s11, %s10546_s24  ;;  %s11995_s12 = sshll.u32 %s12069_s21, 4  ;;  %s11996_s12 = int_to_ptr.vmem [resolvable:$false] %s11995_s12 }
 0x2e5   : > { %v16467_v8 = vrot.slane %v19284_v14, %v12188_v5  ;;  %v5288_v15 = vrot.slane %v5286_v40, 2  ;;  %v5289_v11 = vrot.slane %v16421_v36, 7  ;;  %7150 = vmatprep.mubr.bf16.mxu1 %v6909_v16  ;;  %v19286_v13 = vunpack.i.h.bf16 %v16034_v21  ;;  %v19306_v36 = vld [vmem:[#allocation29_spill] sm:$0xff]  ;;  %s11997_s0 = scalar_lea.vmem %s11996_s12, 32 }
 0x2e6   : > { %v16471_v24 = vrot.slane %v6456_v25, %v12188_v5  ;;  %v6816_v57 = vsel %vm6813_vm4, %v16207_v17, %v19285_v12  ;;  %v19287_v49 = vunpack.i.l.bf16 %v16192_v32  ;;  %v6800_v28 = vsel %vm6794_vm3, %v19288_v59, %v11521_v43 }
 0x2e7   : > { %v6817_v22 = vsel %vm6813_vm4, %v16201_v3, %v19286_v13  ;;  %v6613_v17 = vcombine.low %v6605_v61, %v6612_v38  ;;  %v19289_v10 = vunpack.i.h.bf16 %v16192_v32  ;;  %v11531_v21 = vunpack.i.h.bf16 %v16353_v18  ;;  %v19293_v13 = vld [vmem:[#allocation13_spill] sm:$0xff] }
 0x2e8   : > { %v6835_v29 = vsel %vm6832_vm5, %v6816_v57, %v19287_v49  ;;  %v6668_v46 = vcombine.low %v16467_v8, %v16471_v24  ;;  %v11530_v3 = vunpack.i.l.bf16 %v16353_v18  ;;  %v6596_v2 = vcombine.low %v16378_v34, %v6595_v44 }
 0x2e9   : > { %v6836_v25 = vsel %vm6832_vm5, %v6817_v22, %v19289_v10  ;;  %v19290_v43 = vrot.slane %v16220_v27, 7  ;;  %v19291_v32 = vrot.slane %v16211_v0, 7  ;;  %v19292_v38 = vrot.slane %v16282_v23, 9  ;;  %v19297_v10 = vld [vmem:[#allocation17_spill] sm:$0xff] }
 0x2ea   : > { %v6908_v14 = vpack.c.bf16 %v6836_v25, %v6835_v29  ;;  %v11712_v16 = vpack.i.bf16 %v6668_v46, %v16344_v48  ;;  %v5278_v18 = vsel %vm12389_vm6, %v16406_v55, %v5277_v9  ;;  %v11534_v48 = vpop.permute.xlu1 %11533  ;;  %v5281_v27 = vsel %vm12389_vm6, %v5279_v56, %v5280_v6 }
 0x2eb   : > { %v5268_v61 = vsel %vm12389_vm6, %v16286_v7, %v19290_v43  ;;  %v5275_v12 = vsel %vm12389_vm6, %v19292_v38, %v19291_v32  ;;  %v5284_v7 = vsel %vm12389_vm6, %v5282_v31, %v5283_v47  ;;  %v5285_v23 = vrot.slane %v5283_v47, 2  ;;  %v19294_v47 = vld [vmem:[#allocation24_spill] sm:$0xff] }
 0x2ec   : > { %7151 = vmatmul.mubr.bf16.gmra.mxu1 %v6908_v14  ;;  %v5290_v34 = vsel %vm12389_vm6, %v5288_v15, %v5289_v11  ;;  %11713 = vrot.lane.b32.xlu0 %v11712_v16, %s12067_s25  ;;  %v11717_v44 = vpack.i.bf16 %v6613_v17, %v6596_v2  ;;  %v6457_v57 = vcombine.low %v5268_v61, %v16402_v30  ;;  %v11551_v49 = vunpack.i.h.bf16 %v16445_v60  ;;  %v19295_v15 = vld [vmem:[#allocation20_spill] sm:$0xff]  ;;  %v11569_v30 = vpop.permute.xlu0 %11568 }
 0x2ed   : > { %v6669_v9 = vcombine.low %v5275_v12, %v5278_v18  ;;  %v6678_v55 = vcombine.low %v5281_v27, %v5284_v7  ;;  %v6799_v22 = vsel %vm6794_vm3, %v19293_v13, %v11520_v53  ;;  %v11550_v6 = vunpack.i.l.bf16 %v16445_v60  ;;  %v19296_v17 = vld [vmem:[#allocation16_spill] sm:$0xff] }
 0x2ee   : > { %v5287_v56 = vsel %vm12389_vm6, %v5285_v23, %v5286_v40  ;;  %v11536_v31 = vunpack.i.h.bf16 %v11534_v48  ;;  %v6436_v11 = vcombine.low %v19295_v15, %v19294_v47  ;;  %v11535_v46 = vunpack.i.l.bf16 %v11534_v48  ;;  %v11544_v38 = vpop.permute.xlu1 %11543 }
 0x2ef   : > { %v6676_v29 = vrot.slane %v6669_v9, %v12188_v5  ;;  %v6679_v59 = vcombine.low %v5287_v56, %v5290_v34  ;;  %v19298_v25 = vcombine.low %v19296_v17, %v19297_v10  ;;  %v11571_v2 = vunpack.i.h.bf16 %v11569_v30 }
 0x2f0   : > { %v11570_v14 = vunpack.i.l.bf16 %v11569_v30  ;;  %v6856_v60 = vsel %vm6794_vm3, %v6436_v11, %v11531_v21  ;;  %11718 = vrot.lane.b32.xlu0 %v11717_v44, %s12065_s22  ;;  %v16542_v40 = vrot.slane %v6457_v57, %v12188_v5  ;;  %v6686_v16 = vrot.slane %v6678_v55, %v12188_v5  ;;  %v11579_v13 = vpop.permute.xlu0 %11578  ;;  %v19300_v30 = vld [vmem:[#allocation23_spill] sm:$0xff] }
 0x2f1   : > { %v6855_v53 = vsel %vm6794_vm3, %v19298_v25, %v11530_v3  ;;  %v6693_v43 = vrot.slane %v6679_v59, %v12188_v5  ;;  %v11516_v61 = vunpack.i.h.bf16 %v16372_v41  ;;  %v11515_v32 = vunpack.i.l.bf16 %v16372_v41 }
 0x2f2   : > { %v6874_v3 = vsel %vm6813_vm4, %v6856_v60, %v11551_v49  ;;  %v6873_v12 = vsel %vm6813_vm4, %v6855_v53, %v11550_v6  ;;  %v6677_v21 = vcombine.low %v16542_v40, %v6676_v29  ;;  %v11554_v55 = vpop.permute.xlu1 %11553  ;;  %v6445_v6 = vcombine.low %v16090_v51, %v16248_v45  ;;  %v19302_v53 = vld [vmem:[#allocation19_spill] sm:$0xff]  ;;  %v19303_v60 = vld [vmem:[#allocation26_spill] sm:$0xff] }
 0x2f3   : > { %v6694_v18 = vcombine.low %v6686_v16, %v6693_v43  ;;  %v6891_v48 = vsel %vm6832_vm5, %v6873_v12, %v11570_v14  ;;  %v6892_v27 = vsel %vm6832_vm5, %v6874_v3, %v11571_v2  ;;  %v6818_v23 = vsel %vm6813_vm4, %v6799_v22, %v11515_v32  ;;  %v19304_v16 = vld [vmem:[#allocation22_spill] sm:$0xff] }
 0x2f4   : > { %v6912_v7 = vpack.c.bf16 %v6892_v27, %v6891_v48  ;;  %v6819_v34 = vsel %vm6813_vm4, %v6800_v28, %v11516_v61  ;;  %v6837_v41 = vsel %vm6832_vm5, %v6818_v23, %v11535_v46  ;;  %v11556_v49 = vunpack.i.h.bf16 %v11554_v55 }
 0x2f5   : > { %v11722_v44 = vpack.i.bf16 %v6694_v18, %v6677_v21  ;;  %v6838_v57 = vsel %vm6832_vm5, %v6819_v34, %v11536_v31  ;;  %v6446_v22 = vcombine.low %v16251_v19, %v16319_v1  ;;  %v6455_v28 = vcombine.low %v16322_v63, %v16467_v8  ;;  %v16566_v15 = vpop.permute.xlu0 %11593 }
 0x2f6   : > { %7158 = vmatprep.mubr.bf16.mxu1 %v6912_v7  ;;  %v6911_v9 = vpack.c.bf16 %v6838_v57, %v6837_v41  ;;  %v6472_v56 = vcombine.low %v16471_v24, %v16542_v40  ;;  %v11555_v31 = vunpack.i.l.bf16 %v11554_v55  ;;  %v11564_v47 = vpop.permute.xlu1 %11563  ;;  %v6749_v11 = vcombine.low %v16390_v42, %v16414_v26  ;;  %v19328_v24 = vld [vmem:[#allocation15_spill] sm:$0xff]  ;;  %v19329_v40 = vld [vmem:[#allocation9_spill] sm:$0xff] }
 0x2f7   : > { %11723 = vrot.lane.b32.xlu0 %v11722_v44, %s12067_s25  ;;  %v19299_v29 = vcombine.low %v16211_v0, %v16234_v58  ;;  %v6802_v46 = vsel %vm6794_vm3, %v19300_v30, %v11556_v49  ;;  %v19301_v17 = vcombine.low %v16230_v39, %v16261_v50  ;;  %v6774_v25 = vrot.slane %v6760_v33, %v12188_v5 }
 0x2f8   : > { %7159 = vmatmul.mubr.bf16.gmra.mxu1 %v6911_v9  ;;  %v11561_v42 = vunpack.i.h.bf16 %v16494_v54  ;;  %v11560_v26 = vunpack.i.l.bf16 %v16494_v54  ;;  %v16587_v0 = vpack.c.bf16 %v6749_v11, %v16176_v62  ;;  %v6801_v2 = vsel %vm6794_vm3, %v19302_v53, %v11555_v31 }
 0x2f9   : > { %v6757_v59 = vrot.slane %v19299_v29, %v12188_v5  ;;  %v6767_v10 = vrot.slane %v19301_v17, %v12188_v5  ;;  %v11566_v14 = vunpack.i.h.bf16 %v11564_v47  ;;  %v11565_v39 = vunpack.i.l.bf16 %v11564_v47  ;;  %v19307_v17 = vld [vmem:[#allocation33_spill] sm:$0xff] }
 0x2fa   : > { %v6437_v43 = vcombine.low %v19304_v16, %v19303_v60  ;;  %v6438_v33 = vcombine.low %v19306_v36, %v19305_v20  ;;  %v11581_v61 = vunpack.i.h.bf16 %v11579_v13  ;;  %v11580_v32 = vunpack.i.l.bf16 %v11579_v13  ;;  %v11574_v23 = vpop.permute.xlu1 %11573  ;;  %v19310_v60 = vld [vmem:[#allocation31_spill] sm:$0xff] }
 0x2fb   : > { %v6758_v58 = vcombine.low %v16398_v52, %v6757_v59  ;;  %v6775_v50 = vcombine.low %v6767_v10, %v6774_v25  ;;  %v11546_v54 = vunpack.i.h.bf16 %v11544_v38  ;;  %v11545_v3 = vunpack.i.l.bf16 %v11544_v38  ;;  %v19308_v25 = vld [vmem:[#allocation27_spill] sm:$0xff] }
 0x2fc   : > { %v6857_v52 = vsel %vm6794_vm3, %v6437_v43, %v11560_v26  ;;  %v6858_v12 = vsel %vm6794_vm3, %v6438_v33, %v11561_v42  ;;  %v11576_v30 = vunpack.i.h.bf16 %v11574_v23  ;;  %v11596_v26 = vunpack.i.h.bf16 %v16566_v15  ;;  %v19311_v43 = vld [vmem:[#allocation36_spill] sm:$0xff]  ;;  %v19312_v20 = vld [vmem:[#allocation11_spill] sm:$0xff] }
 0x2fd   : > { %v16596_v62 = vpack.c.bf16 %v6775_v50, %v6758_v58  ;;  %v11599_v21 = vpop.permute.xlu0 %11598  ;;  %v6820_v27 = vsel %vm6813_vm4, %v6801_v2, %v11545_v3  ;;  %v6821_v7 = vsel %vm6813_vm4, %v6802_v46, %v11546_v54  ;;  %v6876_v34 = vsel %vm6813_vm4, %v6858_v12, %v11581_v61  ;;  %v19309_v50 = vld [vmem:[#allocation10_spill] sm:$0xff] }
 0x2fe   : > { %v11601_v18 = vunpack.i.h.bf16 %v11599_v21  ;;  %v11600_v48 = vunpack.i.l.bf16 %v11599_v21  ;;  %v6875_v44 = vsel %vm6813_vm4, %v6857_v52, %v11580_v32  ;;  %v6839_v38 = vsel %vm6832_vm5, %v6820_v27, %v11565_v39  ;;  %v11584_v31 = vpop.permute.xlu1 %11583 }
 0x2ff   : > { %v6840_v41 = vsel %vm6832_vm5, %v6821_v7, %v11566_v14  ;;  %v11586_v47 = vunpack.i.h.bf16 %v11584_v31  ;;  %v11585_v11 = vunpack.i.l.bf16 %v11584_v31  ;;  %v11575_v46 = vunpack.i.l.bf16 %v11574_v23 }
 0x300   : > { %v6893_v57 = vsel %vm6832_vm5, %v6875_v44, %v11600_v48  ;;  %v6894_v9 = vsel %vm6832_vm5, %v6876_v34, %v11601_v18  ;;  %v6914_v13 = vpack.c.bf16 %v6840_v41, %v6839_v38  ;;  %v11595_v58 = vunpack.i.l.bf16 %v16566_v15 }
 0x301   : > { %v6915_v55 = vpack.c.bf16 %v6894_v9, %v6893_v57  ;;  %v11614_v49 = vpop.permute.xlu0 %11613  ;;  %v6804_v10 = vsel %vm6794_vm3, %v19307_v17, %v11586_v47  ;;  %v6803_v42 = vsel %vm6794_vm3, %v19308_v25, %v11585_v11  ;;  %v6439_v16 = vcombine.low %v19310_v60, %v19309_v50  ;;  %v19313_v47 = vld [vmem:[#allocation38_spill] sm:$0xff] }
 0x302   : > { %v11589_v29 = vpop.permute.xlu1 %11588  ;;  %v11616_v14 = vunpack.i.h.bf16 %v11614_v49  ;;  %v11615_v39 = vunpack.i.l.bf16 %v11614_v49  ;;  %v6440_v36 = vcombine.low %v19312_v20, %v19311_v43  ;;  %v6822_v61 = vsel %vm6813_vm4, %v6803_v42, %v11575_v46 }
 0x303   : > { %7166 = vmatprep.mubr.bf16.mxu1 %v6915_v55  ;;  %v11591_v53 = vunpack.i.h.bf16 %v11589_v29  ;;  %v11590_v2 = vunpack.i.l.bf16 %v11589_v29  ;;  %v6823_v32 = vsel %vm6813_vm4, %v6804_v10, %v11576_v30  ;;  %v6859_v54 = vsel %vm6794_vm3, %v6439_v16, %v11595_v58  ;;  %v19314_v29 = vld [vmem:[#allocation34_spill] sm:$0xff]  ;;  %v19315_v58 = vld [vmem:[#allocation39_spill] sm:$0xff] }
 0x304   : > { %7167 = vmatmul.mubr.bf16.gmra.mxu1 %v6914_v13  ;;  %v6860_v3 = vsel %vm6794_vm3, %v6440_v36, %v11596_v26  ;;  %v6877_v21 = vsel %vm6813_vm4, %v6859_v54, %v11615_v39  ;;  %v19318_v39 = vld [vmem:[#allocation41_spill] sm:$0xff] }
 0x305   : > { %v6878_v12 = vsel %vm6813_vm4, %v6860_v3, %v11616_v14  ;;  %v6841_v18 = vsel %vm6832_vm5, %v6822_v61, %v11590_v2  ;;  %v6842_v48 = vsel %vm6832_vm5, %v6823_v32, %v11591_v53  ;;  %v19316_v53 = vld [vmem:[#allocation30_spill] sm:$0xff]  ;;  %v19317_v14 = vld [vmem:[#allocation45_spill] sm:$0xff] }
 0x306   : > { %v6917_v34 = vpack.c.bf16 %v6842_v48, %v6841_v18  ;;  %v11604_v44 = vpop.permute.xlu1 %11603  ;;  %v6441_v2 = vcombine.low %v19316_v53, %v19315_v58  ;;  %v6442_v50 = vcombine.low %v19318_v39, %v19317_v14 }
 0x307   : > { %v11606_v49 = vunpack.i.h.bf16 %v11604_v44  ;;  %v11605_v31 = vunpack.i.l.bf16 %v11604_v44 }
 0x30a   : > { %v11619_v59 = vpop.permute.xlu0 %11618  ;;  %v11609_v38 = vpop.permute.xlu1 %11608 }
 0x30b   : > { %v11611_v57 = vunpack.i.h.bf16 %v11609_v38  ;;  %v11610_v9 = vunpack.i.l.bf16 %v11609_v38  ;;  %v11621_v46 = vunpack.i.h.bf16 %v11619_v59  ;;  %v11620_v17 = vunpack.i.l.bf16 %v11619_v59 }
 0x30d   : > { %v6806_v11 = vsel %vm6794_vm3, %v19313_v47, %v11611_v57  ;;  %v6805_v30 = vsel %vm6794_vm3, %v19314_v29, %v11610_v9  ;;  %v6861_v20 = vsel %vm6794_vm3, %v6441_v2, %v11620_v17  ;;  %v6862_v36 = vsel %vm6794_vm3, %v6442_v50, %v11621_v46  ;;  %v19319_v57 = vld [vmem:[#allocation44_spill] sm:$0xff]  ;;  %v19321_v17 = vld [vmem:[#allocation49_spill] sm:$0xff] }
 0x30e   : > { %v11624_v13 = vpop.permute.xlu1 %11623  ;;  %v6824_v16 = vsel %vm6813_vm4, %v6805_v30, %v11605_v31  ;;  %v6825_v43 = vsel %vm6813_vm4, %v6806_v11, %v11606_v49 }
 0x30f   : > { %v11629_v33 = vpop.permute.xlu0 %11628  ;;  %v11626_v10 = vunpack.i.h.bf16 %v11624_v13  ;;  %v11625_v25 = vunpack.i.l.bf16 %v11624_v13  ;;  %v19320_v13 = vld [vmem:[#allocation35_spill] sm:$0xff] }
 0x310   : > { %v11631_v15 = vunpack.i.h.bf16 %v11629_v33  ;;  %v11630_v52 = vunpack.i.l.bf16 %v11629_v33 }
 0x311   : > { %v6843_v54 = vsel %vm6832_vm5, %v6824_v16, %v11625_v25  ;;  %v6844_v3 = vsel %vm6832_vm5, %v6825_v43, %v11626_v10  ;;  %v19322_v10 = vld [vmem:[#allocation46_spill] sm:$0xff] }
 0x312   : > { %v6895_v27 = vsel %vm6832_vm5, %v6877_v21, %v11630_v52  ;;  %v6896_v7 = vsel %vm6832_vm5, %v6878_v12, %v11631_v15  ;;  %v6920_v21 = vpack.c.bf16 %v6844_v3, %v6843_v54  ;;  %v11634_v18 = vpop.permute.xlu1 %11633  ;;  %v6443_v25 = vcombine.low %v19322_v10, %v19321_v17 }
 0x313   : > { %v6918_v23 = vpack.c.bf16 %v6896_v7, %v6895_v27  ;;  %v11639_v41 = vpop.permute.xlu0 %11638  ;;  %v11636_v38 = vunpack.i.h.bf16 %v11634_v18 }
 0x314   : > { %v11641_v42 = vunpack.i.h.bf16 %v11639_v41  ;;  %v11640_v26 = vunpack.i.l.bf16 %v11639_v41  ;;  %v11635_v41 = vunpack.i.l.bf16 %v11634_v18 }
 0x315   : > { %7174 = vmatprep.mubr.bf16.mxu1 %v6918_v23 }
 0x316   : > { %7175 = vmatmul.mubr.bf16.gmra.mxu1 %v6917_v34  ;;  %v6880_v61 = vsel %vm6813_vm4, %v6862_v36, %v11641_v42  ;;  %v6879_v32 = vsel %vm6813_vm4, %v6861_v20, %v11640_v26  ;;  %v19323_v42 = vld [vmem:[#allocation51_spill] sm:$0xff]  ;;  %v19324_v26 = vld [vmem:[#allocation50_spill] sm:$0xff] }
 0x317   : > { %v6444_v58 = vcombine.low %v19324_v26, %v19323_v42 }
 0x31b   : > { %v11644_v48 = vpop.permute.xlu1 %11643 }
 0x31c   : > { %v11646_v7 = vunpack.i.h.bf16 %v11644_v48  ;;  %v11645_v23 = vunpack.i.l.bf16 %v11644_v48 }
 0x31e   : > { %v11649_v55 = vpop.permute.xlu0 %11648  ;;  %v6808_v9 = vsel %vm6794_vm3, %v19319_v57, %v11646_v7  ;;  %v6807_v49 = vsel %vm6794_vm3, %v19320_v13, %v11645_v23  ;;  %v19325_v23 = vld [vmem:[#allocation52_spill] sm:$0xff] }
 0x31f   : > { %v11654_v44 = vpop.permute.xlu1 %11653  ;;  %v11651_v31 = vunpack.i.h.bf16 %v11649_v55  ;;  %v11650_v47 = vunpack.i.l.bf16 %v11649_v55  ;;  %v6826_v2 = vsel %vm6813_vm4, %v6807_v49, %v11635_v41  ;;  %v6827_v14 = vsel %vm6813_vm4, %v6808_v9, %v11636_v38  ;;  %v19326_v38 = vld [vmem:[#allocation43_spill] sm:$0xff] }
 0x320   : > { %v11656_v11 = vunpack.i.h.bf16 %v11654_v44  ;;  %v11655_v29 = vunpack.i.l.bf16 %v11654_v44 }
 0x321   : > { %v6863_v39 = vsel %vm6794_vm3, %v6443_v25, %v11650_v47  ;;  %v6864_v50 = vsel %vm6794_vm3, %v6444_v58, %v11651_v31 }
 0x322   : > { %v6845_v36 = vsel %vm6832_vm5, %v6826_v2, %v11655_v29 }
 0x323   : > { %v11664_v55 = vpop.permute.xlu1 %11663 }
 0x324   : > { %v11665_v7 = vunpack.i.l.bf16 %v11664_v55 }
 0x329   : > { %v11659_v60 = vpop.permute.xlu0 %11658 }
 0x32a   : > { %v11661_v59 = vunpack.i.h.bf16 %v11659_v60  ;;  %v11660_v33 = vunpack.i.l.bf16 %v11659_v60 }
 0x32c   : > { %v6897_v15 = vsel %vm6832_vm5, %v6879_v32, %v11660_v33  ;;  %v6898_v52 = vsel %vm6832_vm5, %v6880_v61, %v11661_v59  ;;  %v6846_v59 = vsel %vm6832_vm5, %v6827_v14, %v11656_v11 }
 0x32d   : > { %v6921_v12 = vpack.c.bf16 %v6898_v52, %v6897_v15  ;;  %v6923_v54 = vpack.c.bf16 %v6846_v59, %v6845_v36 }
 0x32f   : > { %7182 = vmatprep.mubr.bf16.mxu1 %v6921_v12  ;;  %v11674_v3 = vpop.permute.xlu1 %11673 }
 0x330   : > { %7183 = vmatmul.mubr.bf16.gmra.mxu1 %v6920_v21  ;;  %v11676_v12 = vunpack.i.h.bf16 %v11674_v3  ;;  %v11675_v21 = vunpack.i.l.bf16 %v11674_v3 }
 0x332   : > { %v11669_v27 = vpop.permute.xlu0 %11668  ;;  %v6810_v44 = vsel %vm6794_vm3, %v19325_v23, %v11676_v12  ;;  %v6809_v41 = vsel %vm6794_vm3, %v19326_v38, %v11675_v21  ;;  %v19331_v23 = vld [vmem:[#allocation18_spill] sm:$0xff] }
 0x333   : > { %v11671_v30 = vunpack.i.h.bf16 %v11669_v27  ;;  %v11670_v46 = vunpack.i.l.bf16 %v11669_v27  ;;  %v11679_v15 = vpop.permute.xlu1 %11678  ;;  %v11666_v27 = vunpack.i.h.bf16 %v11664_v55 }
 0x334   : > { %v11681_v13 = vunpack.i.h.bf16 %v11679_v15  ;;  %v11680_v49 = vunpack.i.l.bf16 %v11679_v15 }
 0x335   : > { %v6882_v43 = vsel %vm6813_vm4, %v6864_v50, %v11671_v30  ;;  %v6881_v20 = vsel %vm6813_vm4, %v6863_v39, %v11670_v46  ;;  %v6828_v30 = vsel %vm6813_vm4, %v6809_v41, %v11665_v7  ;;  %v6829_v46 = vsel %vm6813_vm4, %v6810_v44, %v11666_v27  ;;  %v19332_v44 = vld [vmem:[#allocation8_spill] sm:$0xff]  ;;  %v19333_v41 = vld [vmem:[#allocation37_spill] sm:$0xff] }
 0x336   : > { %v11684_v34 = vpop.permute.xlu0 %11683  ;;  %v6847_v58 = vsel %vm6832_vm5, %v6828_v30, %v11680_v49  ;;  %v6910_v38 = vpack.c.bf16 %v19332_v44, %v19331_v23  ;;  %v19336_v49 = vld [vmem:[#allocation6_spill] sm:$0xff] }
 0x337   : > { %v11686_v57 = vunpack.i.h.bf16 %v11684_v34  ;;  %v11685_v9 = vunpack.i.l.bf16 %v11684_v34  ;;  %v19339_v30 = vld [vmem:[#allocation42_spill] sm:$0xff] }
 0x339   : > { %v11694_v18 = vpop.permute.xlu1 %11693  ;;  %v6865_v17 = vsel %vm6794_vm3, %v6445_v6, %v11685_v9  ;;  %v6866_v34 = vsel %vm6794_vm3, %v6446_v22, %v11686_v57  ;;  %v19334_v57 = vld [vmem:[#allocation28_spill] sm:$0xff] }
 0x33a   : > { %v11696_v39 = vunpack.i.h.bf16 %v11694_v18  ;;  %v11695_v50 = vunpack.i.l.bf16 %v11694_v18  ;;  %v6913_v9 = vpack.c.bf16 %v19334_v57, %v19333_v41 }
 0x343   : > { %v11689_v53 = vpop.permute.xlu0 %11688 }
 0x344   : > { %v11691_v60 = vunpack.i.h.bf16 %v11689_v53  ;;  %v11690_v16 = vunpack.i.l.bf16 %v11689_v53  ;;  %v6848_v53 = vsel %vm6832_vm5, %v6829_v46, %v11681_v13  ;;  %v19335_v13 = vld [vmem:[#allocation25_spill] sm:$0xff]  ;;  %v19340_v46 = vld [vmem:[#allocation47_spill] sm:$0xff] }
 0x345   : > { %v6926_v22 = vpack.c.bf16 %v6848_v53, %v6847_v58  ;;  %v19341_v58 = vld [vmem:[#allocation48_spill] sm:$0xff]  ;;  %v19342_v53 = vld [vmem:[#allocation54_spill] sm:$0xff] }
 0x346   : > { %v6899_v33 = vsel %vm6832_vm5, %v6881_v20, %v11690_v16  ;;  %v6900_v61 = vsel %vm6832_vm5, %v6882_v43, %v11691_v60  ;;  %v19327_v60 = vld [vmem:[#allocation53_spill] sm:$0xff] }
 0x347   : > { %v6924_v32 = vpack.c.bf16 %v6900_v61, %v6899_v33 }
 0x348   : > { %v11699_v11 = vpop.permute.xlu1 %11698 }
 0x349   : > { %7190 = vmatprep.mubr.bf16.mxu1 %v6924_v32  ;;  %v11704_v52 = vpop.permute.xlu0 %11703  ;;  %v11701_v2 = vunpack.i.h.bf16 %v11699_v11  ;;  %v11700_v14 = vunpack.i.l.bf16 %v11699_v11  ;;  %v19338_v11 = vld [vmem:[#allocation40_spill] sm:$0xff] }
 0x34a   : > { %7191 = vmatmul.mubr.bf16.gmra.mxu1 %v6923_v54  ;;  %v11706_v31 = vunpack.i.h.bf16 %v11704_v52  ;;  %v11705_v47 = vunpack.i.l.bf16 %v11704_v52 }
 0x34b   : > { %v6812_v55 = vsel %vm6794_vm3, %v16325_v35, %v11701_v2  ;;  %v6811_v16 = vsel %vm6794_vm3, %v19327_v60, %v11700_v14  ;;  %v6925_v2 = vpack.c.bf16 %v19342_v53, %v19341_v58 }
 0x34c   : > { %v6884_v42 = vsel %vm6813_vm4, %v6866_v34, %v11706_v31  ;;  %v6883_v26 = vsel %vm6813_vm4, %v6865_v17, %v11705_v47  ;;  %v6830_v54 = vsel %vm6813_vm4, %v6811_v16, %v11695_v50  ;;  %v6831_v3 = vsel %vm6813_vm4, %v6812_v55, %v11696_v39  ;;  %v19337_v47 = vld [vmem:[#allocation7_spill] sm:$0xff] }
 0x34d   : > { %v6916_v31 = vpack.c.bf16 %v19336_v49, %v19335_v13  ;;  %v6922_v17 = vpack.c.bf16 %v19340_v46, %v19339_v30 }
 0x350   : > { %v11729_v1 = vpop.permute.xlu1 %11728 }
 0x351   : > { %v11731_v36 = vunpack.i.h.bf16 %v11729_v1  ;;  %v11730_v59 = vunpack.i.l.bf16 %v11729_v1 }
 0x353   : > { %v6850_v27 = vsel %vm6832_vm5, %v6831_v3, %v11731_v36 }
 0x355   : > { %v11709_v48 = vpop.permute.xlu0 %11708 }
 0x356   : > { %v11711_v43 = vunpack.i.h.bf16 %v11709_v48  ;;  %v11710_v20 = vunpack.i.l.bf16 %v11709_v48  ;;  %v6849_v48 = vsel %vm6832_vm5, %v6830_v54, %v11730_v59 }
 0x358   : > { %v6867_v35 = vsel %vm6794_vm3, %v6455_v28, %v11710_v20  ;;  %v6868_v15 = vsel %vm6794_vm3, %v6472_v56, %v11711_v43  ;;  %v6929_v28 = vpack.c.bf16 %v6850_v27, %v6849_v48  ;;  %v19330_v56 = vpack.c.bf16 %v19328_v24, %v19329_v40  ;;  %v11918_v24 = vld [vmem:[%s18804_s5 + $0x78] sm:$0xff]  }
 0x359   : > { %v11919_v40 = vld [vmem:[%s18804_s5 + $0x38] sm:$0xff]   ;;  %10646 = vmatprep.subr.bf16.mxu0 %v11918_v24 }
 0x35a   : > { %10647 = vmatpush3.bf16.msra.mxu0 %v11919_v40 }
 0x35e   : > { %v11714_v29 = vpop.permute.xlu0 %11713 }
 0x35f   : > { %v11716_v10 = vunpack.i.h.bf16 %v11714_v29  ;;  %v11715_v25 = vunpack.i.l.bf16 %v11714_v29  ;;  %v6919_v29 = vpack.c.bf16 %v19338_v11, %v19337_v47  ;;  %v11921_v11 = vld [vmem:[%s18804_s5 + $0x30] sm:$0xff]  }
 0x361   : > { %v6901_v51 = vsel %vm6832_vm5, %v6883_v26, %v11715_v25  ;;  %v6902_v45 = vsel %vm6832_vm5, %v6884_v42, %v11716_v10 }
 0x362   : > { %v6927_v6 = vpack.c.bf16 %v6902_v45, %v6901_v51  ;;  %v11719_v19 = vpop.permute.xlu0 %11718 }
 0x363   : > { %v11721_v33 = vunpack.i.h.bf16 %v11719_v19  ;;  %v11720_v61 = vunpack.i.l.bf16 %v11719_v19 }
 0x364   : > { %7198 = vmatprep.mubr.bf16.mxu1 %v6927_v6 }
 0x365   : > { %7199 = vmatmul.mubr.bf16.gmra.mxu1 %v6926_v22  ;;  %v6886_v21 = vsel %vm6813_vm4, %v6868_v15, %v11721_v33  ;;  %v6885_v18 = vsel %vm6813_vm4, %v6867_v35, %v11720_v61 }
 0x369   : > { %v11724_v32 = vpop.permute.xlu0 %11723 }
 0x36a   : > { %v11726_v52 = vunpack.i.h.bf16 %v11724_v32  ;;  %v11725_v12 = vunpack.i.l.bf16 %v11724_v32  ;;  %v11915_v32 = vld [vmem:[%s18804_s5 + $0x110] sm:$0xff]  }
 0x36c   : > { %v6903_v7 = vsel %vm6832_vm5, %v6885_v18, %v11725_v12  ;;  %v6904_v63 = vsel %vm6832_vm5, %v6886_v21, %v11726_v52  ;;  %v11916_v12 = vld [vmem:[%s18804_s5 + $0x108] sm:$0xff]   ;;  %v11917_v18 = vld [vmem:[%s18804_s5 + $0x100] sm:$0xff]  }
 0x36d   : > { %v6930_v8 = vpack.c.bf16 %v6904_v63, %v6903_v7 }
 0x36f   : > { %7206 = vmatprep.mubr.bf16.mxu1 %v6930_v8 }
 0x370   : > { %7207 = vmatmul.mubr.bf16.gmra.mxu1 %v6929_v28 }
 0x371   : > { %10855 = vmatprep.mubr.msk.bf16.mxu1 %vm12064_vm1, %v19280_v37 }
 0x378   : > { %10856 = vmatmul.mubr.msk.bf16.vlgmr.msra.gmra.mxu1 %vm6794_vm3, %v19330_v56 }
 0x379   : > { %10859 = vmatprep.mubr.msk.bf16.mxu1 %vm12064_vm1, %v19280_v37 }
 0x380   : > { %10860 = vmatmul.mubr.msk.bf16.gmra.mxu1 %vm6794_vm3, %v6910_v38 }
 0x381   : > { %10863 = vmatprep.mubr.msk.bf16.mxu1 %vm12064_vm1, %v19280_v37 }
 0x388   : > { %10864 = vmatmul.mubr.msk.bf16.gmra.mxu1 %vm6794_vm3, %v6913_v9  ;;  %v11920_v9 = vld [vmem:[%s18804_s5 + $0x70] sm:$0xff]  }
 0x389   : > { %10867 = vmatprep.mubr.msk.bf16.mxu1 %vm12064_vm1, %v19280_v37  ;;  %10648 = vmatprep.subr.bf16.mxu0 %v11920_v9 }
 0x38a   : > { %10649 = vmatpush3.bf16.msra.mxu0 %v11921_v11 }
 0x390   : > { %10868 = vmatmul.mubr.msk.bf16.gmra.mxu1 %vm6794_vm3, %v6916_v31 }
 0x391   : > { %10871 = vmatprep.mubr.msk.bf16.mxu1 %vm12064_vm1, %v19280_v37 }
 0x398   : > { %10872 = vmatmul.mubr.msk.bf16.gmra.mxu1 %vm6794_vm3, %v6919_v29 }
 0x399   : > { %10875 = vmatprep.mubr.msk.bf16.mxu1 %vm12064_vm1, %v19280_v37 }
 0x39c   : > { %v10581_v34 = vpop.f32.mrf.mxu1 }
 0x39e   : > { %v10582_v10 = vpop.f32.mrf.mxu1 }
 0x39f   : > { %v16737_v25 = vadd.f32 %v10582_v10, %v10581_v34 }
 0x3a0   : > { %10876 = vmatmul.mubr.msk.bf16.gmra.mxu1 %vm6794_vm3, %v6922_v17  ;;  %v10584_v42 = vpop.f32.mrf.mxu1 }
 0x3a1   : > { %10879 = vmatprep.mubr.msk.bf16.mxu1 %vm12064_vm1, %v19280_v37 }
 0x3a2   : > { %v10585_v26 = vpop.f32.mrf.mxu1 }
 0x3a3   : > { %v16741_v14 = vadd.f32 %v10585_v26, %v10584_v42  ;;  %v10419_v42 = vld [vmem:[%s18803_s4] ss:$0 sm:$0xff] }
 0x3a4   : > { %v7145_v53 = vadd.f32 %v16737_v25, %v10419_v42 }
 0x3a8   : > { %10880 = vmatmul.mubr.msk.bf16.gmra.mxu1 %vm6794_vm3, %v6925_v2 }
 0x3a9   : > { %10883 = vmatprep.mubr.msk.bf16.mxu1 %vm12064_vm1, %v19280_v37 }
 0x3ac   : > { %v10587_v51 = vpop.f32.mrf.mxu1 }
 0x3ae   : > { %v10588_v45 = vpop.f32.mrf.mxu1 }
 0x3af   : > { %v16746_v6 = vadd.f32 %v10588_v45, %v10587_v51  ;;  %v11922_v51 = vld [vmem:[%s18804_s5 + $0x68] sm:$0xff]  }
 0x3b0   : > { %10884 = vmatmul.mubr.msk.bf16.gmra.mxu1 %vm6794_vm3, %v16587_v0  ;;  %v10590_v19 = vpop.f32.mrf.mxu1  ;;  %v11923_v45 = vld [vmem:[%s18804_s5 + $0x28] sm:$0xff]   ;;  %10650 = vmatprep.subr.bf16.mxu0 %v11922_v51 }
 0x3b1   : > { %10887 = vmatprep.mubr.msk.bf16.mxu1 %vm12064_vm1, %v19280_v37  ;;  %10651 = vmatpush3.bf16.msra.mxu0 %v11923_v45 }
 0x3b2   : > { %v10591_v1 = vpop.f32.mrf.mxu1 }
 0x3b3   : > { %v16752_v22 = vadd.f32 %v10591_v1, %v10590_v19 }
 0x3b8   : > { %10888 = vmatmul.mubr.msk.bf16.gmra.mxu1 %vm6794_vm3, %v16596_v62  ;;  %v10593_v39 = vpop.f32.mrf.mxu1  ;;  %v11914_v62 = vld [vmem:[%s18804_s5 + $0x118] sm:$0xff]  }
 0x3b9   : > { %10899 = vmatprep.mubr.msk.bf16.mxu1 %vm12064_vm1, %v19280_v37  ;;  %10892 = vmatpush3.bf16.msra.mxu1 %v11914_v62 }
 0x3ba   : > { %v10594_v50 = vpop.f32.mrf.mxu1  ;;  %10893 = vmatprep.subr.bf16.mxu1 %v19280_v37 }
 0x3bb   : > { %v16758_v55 = vadd.f32 %v10594_v50, %v10593_v39  ;;  %v7148_v50 = vadd.f32 %v16741_v14, %v10419_v42 }
 0x3bc   : > { %v10596_v60 = vpop.f32.mrf.mxu1 }
 0x3bd   : > { %10894 = vmatpush3.bf16.msra.mxu1 %v11915_v32 }
 0x3be   : > { %v10597_v16 = vpop.f32.mrf.mxu1  ;;  %10895 = vmatprep.subr.bf16.mxu1 %v19280_v37 }
 0x3bf   : > { %v16760_v0 = vadd.f32 %v10597_v16, %v10596_v60  ;;  %v7153_v60 = vadd.f32 %v16746_v6, %v10419_v42  ;;  %v7156_v16 = vadd.f32 %v16752_v22, %v10419_v42 }
 0x3c1   : > { %10896 = vmatpush3.bf16.msra.mxu1 %v11916_v12 }
 0x3c2   : > { %10897 = vmatprep.subr.bf16.mxu1 %v19280_v37 }
 0x3c4   : > { %v10599_v43 = vpop.f32.mrf.mxu1 }
 0x3c5   : > { %10898 = vmatpush3.bf16.msra.mxu1 %v11917_v18 }
 0x3c6   : > { %v10600_v20 = vpop.f32.mrf.mxu1 }
 0x3c7   : > { %v16762_v36 = vadd.f32 %v10600_v20, %v10599_v43  ;;  %v16809_v43 = vadd.f32 %v16758_v55, %v10419_v42  ;;  %v16812_v20 = vadd.f32 %v16760_v0, %v10419_v42 }
 0x3c8   : > { %v10602_v59 = vpop.f32.mrf.mxu1 }
 0x3ca   : > { %v10603_v33 = vpop.f32.mrf.mxu1 }
 0x3cb   : > { %v16764_v61 = vadd.f32 %v10603_v33, %v10602_v59  ;;  %v16815_v59 = vadd.f32 %v16762_v36, %v10419_v42 }
 0x3cd   : > { %v16818_v33 = vadd.f32 %v16764_v61, %v10419_v42 }
 0x3d6   : > { %v10605_v54 = vpop.f32.mrf.mxu1 }
 0x3d8   : > { %v10606_v3 = vpop.f32.mrf.mxu1 }
 0x3d9   : > { %v16773_v35 = vadd.f32 %v10606_v3, %v10605_v54 }
 0x3da   : > { %v10608_v15 = vpop.f32.mrf.mxu1 }
 0x3db   : > { %v16822_v22 = vadd.f32 %v16773_v35, %v10419_v42 }
 0x3dc   : > { %v10609_v52 = vpop.f32.mrf.mxu1 }
 0x3dd   : > { %v10610_v21 = vadd.f32 %v10609_v52, %v10608_v15 }
 0x3df   : > { %v16824_v54 = vadd.f32 %v10610_v21, %v10419_v42 }
 0x3f0   : > { %v10611_v48 = vpop.f32.mrf.mxu1 }
 0x3f2   : > { %v10612_v27 = vpop.f32.mrf.mxu1 }
 0x3f3   : > { %v10613_v7 = vadd.f32 %v10612_v27, %v10611_v48 }
 0x3f4   : > { %v10614_v63 = vpop.f32.mrf.mxu1 }
 0x3f5   : > { %v16826_v55 = vadd.f32 %v10613_v7, %v10419_v42 }
 0x3f6   : > { %v10615_v8 = vpop.f32.mrf.mxu1 }
 0x3f7   : > { %v10616_v28 = vadd.f32 %v10615_v8, %v10614_v63 }
 0x3f9   : > { %v16828_v0 = vadd.f32 %v10616_v28, %v10419_v42  ;;  %v11928_v28 = vld [vmem:[%s18804_s5 + $0x50] sm:$0xff]  }
 0x40a   : > { %v10617_v56 = vpop.f32.mrf.mxu1 }
 0x40c   : > { %v10618_v23 = vpop.f32.mrf.mxu1 }
 0x40d   : > { %v10619_v44 = vadd.f32 %v10618_v23, %v10617_v56 }
 0x40e   : > { %v10620_v38 = vpop.f32.mrf.mxu1 }
 0x40f   : > { %v16830_v3 = vadd.f32 %v10619_v44, %v10419_v42 }
 0x410   : > { %v10621_v41 = vpop.f32.mrf.mxu1 }
 0x411   : > { %v10622_v57 = vadd.f32 %v10621_v41, %v10620_v38 }
 0x413   : > { %v16837_v52 = vadd.f32 %v10622_v57, %v10419_v42 }
 0x425   : > { %v10623_v13 = vpop.f32.mrf.mxu1 }
 0x427   : > { %v10624_v49 = vpop.f32.mrf.mxu1 }
 0x428   : > { %v10625_v31 = vadd.f32 %v10624_v49, %v10623_v13 }
 0x429   : > { %v10626_v47 = vpop.f32.mrf.mxu1 }
 0x42a   : > { %v16839_v18 = vadd.f32 %v10625_v31, %v10419_v42 }
 0x42b   : > { %v10627_v29 = vpop.f32.mrf.mxu1 }
 0x42c   : > { %v10628_v30 = vadd.f32 %v10627_v29, %v10626_v47 }
 0x42e   : > { %v16841_v21 = vadd.f32 %v10628_v30, %v10419_v42 }
 0x430   : > { %v10629_v46 = vpop.f32.mrf.mxu1 }
 0x432   : > { %v10630_v17 = vpop.f32.mrf.mxu1 }
 0x433   : > { %v10631_v34 = vadd.f32 %v10630_v17, %v10629_v46 }
 0x434   : > { %v10632_v10 = vpop.f32.mrf.mxu1 }
 0x435   : > { %v16843_v48 = vadd.f32 %v10631_v34, %v10419_v42 }
 0x436   : > { %v10633_v26 = vpop.f32.mrf.mxu1 }
 0x437   : > { %v10634_v58 = vadd.f32 %v10633_v26, %v10632_v10 }
 0x438   : > { %v7249_v2 = vpop.f32.mrf.mxu1 }
 0x439   : > { %v7250_v19 = vadd.f32 %v7249_v2, %v7145_v53  ;;  %v16859_v57 = vadd.f32 %v10634_v58, %v10419_v42  ;;  %v11924_v58 = vld [vmem:[%s18804_s5 + $0x60] sm:$0xff]  }
 0x43a   : > { %v10857_v1 = vpop.f32.mrf.mxu1  ;;  %10652 = vmatprep.subr.bf16.mxu0 %v11924_v58 }
 0x43b   : > { %v7320_v39 = vmax.f32 %v7250_v19, 0.0 }
 0x43c   : > { %v7252_v25 = vpop.f32.mrf.mxu1 }
 0x43d   : > { %v7356_v62 = vcombine.high %v7320_v39, %v7320_v39  ;;  %v7380_v14 = vrot.slane %v7320_v39, %v12188_v5  ;;  %v7253_v6 = vadd.f32 %v7252_v25, %v7148_v50 }
 0x43e   : > { %v10858_v32 = vpop.f32.mrf.mxu1 }
 0x43f   : > { %v16832_v36 = vcombine.high %v7380_v14, %v7380_v14  ;;  %v16835_v61 = vrot.slane %v7356_v62, %v12188_v5  ;;  %v7321_v15 = vmax.f32 %v7253_v6, 0.0  ;;  %v10447_v12 = vrot.slane %v7380_v14, 9 }
 0x440   : > { %v7257_v35 = vpop.f32.mrf.mxu1 }
 0x441   : > { %19343 = vst [vmem:[#allocation12_spill] sm:$0xff] %v16832_v36  ;;  %19344 = vst [vmem:[#allocation14_spill] sm:$0xff] %v16835_v61  ;;  %v16847_v27 = vcombine.high %v16835_v61, %v16835_v61  ;;  %v7616_v7 = vrot.slane %v16832_v36, 7  ;;  %v7619_v63 = vrot.slane %v16835_v61, 7  ;;  %v7854_v8 = vcombine.low %v7380_v14, %v16832_v36  ;;  %v11926_v14 = vld [vmem:[%s18804_s5 + $0x58] sm:$0xff]  }
 0x442   : > { %v7357_v24 = vcombine.high %v7321_v15, %v7321_v15  ;;  %v16855_v40 = vrot.slane %v7321_v15, %v12188_v5  ;;  %v7258_v56 = vadd.f32 %v7257_v35, %v7153_v60  ;;  %v10861_v23 = vpop.f32.mrf.mxu1 }
 0x443   : > { %19345 = vst [vmem:[#allocation21_spill] sm:$0xff] %v16847_v27  ;;  %v7617_v44 = vsel %vm12389_vm6, %v10447_v12, %v7616_v7  ;;  %v7618_v38 = vrot.slane %v7616_v7, 2  ;;  %v7621_v41 = vrot.slane %v7619_v63, 2  ;;  %v7622_v9 = vrot.slane %v16847_v27, 7 }
 0x444   : > { %19346 = vst [vmem:[#allocation13_spill] sm:$0xff] %v16855_v40  ;;  %v16865_v49 = vrot.slane %v7357_v24, %v12188_v5  ;;  %v7604_v31 = vcombine.high %v16855_v40, %v16855_v40  ;;  %v7260_v47 = vpop.f32.mrf.mxu1  ;;  %v7625_v29 = vrot.slane %v16855_v40, 7  ;;  %v7322_v30 = vmax.f32 %v7258_v56, 0.0 }
 0x445   : > { %v7620_v11 = vsel %vm12389_vm6, %v7618_v38, %v7619_v63  ;;  %v7261_v46 = vadd.f32 %v7260_v47, %v7156_v16  ;;  %v16873_v17 = vrot.slane %v7854_v8, %v12188_v5  ;;  %v7623_v39 = vsel %vm12389_vm6, %v7621_v41, %v7622_v9  ;;  %v11925_v16 = vld [vmem:[%s18804_s5 + $0x20] sm:$0xff]  }
 0x446   : > { %19347 = vst [vmem:[#allocation24_spill] sm:$0xff] %v16865_v49  ;;  %v8079_v34 = vcombine.low %v7617_v44, %v7620_v11  ;;  %v16875_v10 = vrot.slane %v7604_v31, 7  ;;  %v16879_v42 = vcombine.high %v16865_v49, %v16865_v49  ;;  %v10862_v26 = vpop.f32.mrf.mxu1  ;;  %v10448_v53 = vrot.slane %v16865_v49, 9  ;;  %10653 = vmatpush3.bf16.msra.mxu0 %v11925_v16 }
 0x447   : > { %19348 = vst [vmem:[#allocation20_spill] sm:$0xff] %v16873_v17  ;;  %v7358_v2 = vcombine.high %v7322_v30, %v7322_v30  ;;  %v16886_v51 = vrot.slane %v7322_v30, %v12188_v5  ;;  %v7323_v45 = vmax.f32 %v7261_v46, 0.0  ;;  %v7627_v19 = vrot.slane %v7625_v29, 2  ;;  %10654 = vmatprep.subr.bf16.mxu0 %v11926_v14 }
 0x448   : > { %19349 = vst [vmem:[#allocation16_spill] sm:$0xff] %v16879_v42  ;;  %v7265_v1 = vpop.f32.mrf.mxu1  ;;  %v7624_v50 = vrot.slane %v7622_v9, 2  ;;  %v7632_v60 = vrot.slane %v16879_v42, 7  ;;  %v16902_v6 = vrot.slane %v8079_v34, %v12188_v5 }
 0x449   : > { %19350 = vst [vmem:[#allocation17_spill] sm:$0xff] %v16886_v51  ;;  %v16896_v25 = vcombine.high %v16886_v51, %v16886_v51  ;;  %v7635_v62 = vrot.slane %v16886_v51, 7  ;;  %v16905_v32 = vrot.slane %v7358_v2, %v12188_v5  ;;  %v7359_v15 = vcombine.high %v7323_v45, %v7323_v45 }
 0x44a   : > { %v16908_v12 = vrot.slane %v7323_v45, %v12188_v5  ;;  %v7266_v35 = vadd.f32 %v7265_v1, %v16809_v43  ;;  %v10865_v7 = vpop.f32.mrf.mxu1  ;;  %v7626_v56 = vsel %vm12389_vm6, %v7624_v50, %v7625_v29  ;;  %v7629_v41 = vsel %vm12389_vm6, %v7627_v19, %v16875_v10 }
 0x44b   : > { %19351 = vst [vmem:[#allocation23_spill] sm:$0xff] %v16896_v25  ;;  %19352 = vst [vmem:[#allocation19_spill] sm:$0xff] %v16905_v32  ;;  %v7637_v63 = vrot.slane %v7635_v62, 2  ;;  %v7638_v8 = vrot.slane %v16896_v25, 7  ;;  %v8348_v24 = vcombine.low %v16886_v51, %v16896_v25  ;;  %v16921_v44 = vrot.slane %v7359_v15, %v12188_v5 }
 0x44c   : > { %19353 = vst [vmem:[#allocation26_spill] sm:$0xff] %v16908_v12  ;;  %v16918_v23 = vcombine.high %v16908_v12, %v16908_v12  ;;  %v7324_v38 = vmax.f32 %v7266_v35, 0.0  ;;  %v7268_v43 = vpop.f32.mrf.mxu1  ;;  %v7634_v11 = vrot.slane %v7632_v60, 2  ;;  %v16937_v26 = vsel %vm12389_vm6, %v10448_v53, %v7632_v60 }
 0x44d   : > { %19355 = vst [vmem:[#allocation32_spill] sm:$0xff] %v16921_v44  ;;  %v16926_v9 = vrot.slane %v7638_v8, 2  ;;  %v7269_v47 = vadd.f32 %v7268_v43, %v16812_v20  ;;  %v16932_v29 = vcombine.high %v16921_v44, %v16921_v44  ;;  %v18920_v30 = vrot.slane %v16921_v44, 7  ;;  %19357 = vst [vmem:[#allocation33_spill] sm:$0xff] %v16937_v26 }
 0x44e   : > { %19354 = vst [vmem:[#allocation22_spill] sm:$0xff] %v16918_v23  ;;  %v7360_v46 = vcombine.high %v7324_v38, %v7324_v38  ;;  %v10866_v34 = vpop.f32.mrf.mxu1  ;;  %v8365_v10 = vcombine.low %v16918_v23, %v16921_v44  ;;  %v16942_v58 = vrot.slane %v7324_v38, %v12188_v5  ;;  %v16946_v2 = vsel %vm12389_vm6, %v7634_v11, %v7635_v62 }
 0x44f   : > { %19356 = vst [vmem:[#allocation29_spill] sm:$0xff] %v16932_v29  ;;  %v7325_v20 = vmax.f32 %v7269_v47, 0.0  ;;  %19359 = vst [vmem:[#allocation10_spill] sm:$0xff] %v16946_v2  ;;  %v16950_v45 = vrot.slane %v18920_v30, 2  ;;  %v16959_v50 = vsel %vm12389_vm6, %v7637_v63, %v7638_v8  ;;  %v8080_v8 = vcombine.low %v7623_v39, %v7626_v56 }
 0x450   : > { %19358 = vst [vmem:[#allocation27_spill] sm:$0xff] %v16942_v58  ;;  %v16955_v53 = vrot.slane %v7360_v46, %v12188_v5  ;;  %v7273_v1 = vpop.f32.mrf.mxu1  ;;  %19361 = vst [vmem:[#allocation36_spill] sm:$0xff] %v16959_v50  ;;  %v8381_v35 = vcombine.low %v16932_v29, %v16942_v58  ;;  %v7657_v27 = vrot.slane %v16942_v58, 7 }
 0x451   : > { %v7361_v16 = vcombine.high %v7325_v20, %v7325_v20  ;;  %v16963_v62 = vrot.slane %v7325_v20, %v12188_v5  ;;  %v7274_v15 = vadd.f32 %v7273_v1, %v16815_v59  ;;  %v8094_v20 = vrot.slane %v8080_v8, %v12188_v5 }
 0x452   : > { %19360 = vst [vmem:[#allocation31_spill] sm:$0xff] %v16955_v53  ;;  %v10460_v7 = vcombine.high %v16942_v58, %v16955_v53  ;;  %v16972_v38 = vcombine.high %v16955_v53, %v16955_v53  ;;  %v10869_v63 = vpop.f32.mrf.mxu1  ;;  %v8096_v1 = vcombine.low %v7629_v41, %v16937_v26  ;;  %v17041_v26 = vrot.slane %v8348_v24, %v12188_v5  ;;  %v11930_v24 = vld [vmem:[%s18804_s5 + $0x48] sm:$0xff]  }
 0x453   : > { %v16976_v43 = vcombine.high %v16963_v62, %v16963_v62  ;;  %v16979_v47 = vrot.slane %v7361_v16, %v12188_v5  ;;  %v18919_v59 = vrot.slane %v16963_v62, 7  ;;  %v7326_v11 = vmax.f32 %v7274_v15, 0.0 }
 0x454   : > { %v7922_v34 = vcombine.low %v16972_v38, %v16963_v62  ;;  %v7276_v39 = vpop.f32.mrf.mxu1  ;;  %v16993_v63 = vrot.slane %v10460_v7, %v12188_v5  ;;  %v11927_v7 = vld [vmem:[%s18804_s5 + $0x18] sm:$0xff]   ;;  %v8104_v31 = vrot.slane %v8096_v1, %v12188_v5  ;;  %19370 = vst [vmem:[#allocation35_spill] sm:$0xff] %v17041_v26 }
 0x455   : > { %19362 = vst [vmem:[#allocation11_spill] sm:$0xff] %v16976_v43  ;;  %19363 = vst [vmem:[#allocation38_spill] sm:$0xff] %v16979_v47  ;;  %v16989_v56 = vrot.slane %v18919_v59, 2  ;;  %v18921_v16 = vrot.slane %v16976_v43, 7  ;;  %v8398_v15 = vcombine.low %v16963_v62, %v16976_v43  ;;  %v7362_v41 = vcombine.high %v7326_v11, %v7326_v11  ;;  %10655 = vmatpush3.bf16.msra.mxu0 %v11927_v7 }
 0x456   : > { %19364 = vst [vmem:[#allocation34_spill] sm:$0xff] %v16993_v63  ;;  %v17000_v8 = vrot.slane %v7922_v34, %v12188_v5  ;;  %v17003_v13 = vrot.slane %v7326_v11, %v12188_v5  ;;  %v10870_v19 = vpop.f32.mrf.mxu1  ;;  %v8097_v59 = vcombine.low %v16946_v2, %v16959_v50  ;;  %10656 = vmatprep.subr.bf16.mxu0 %v11928_v28 }
 0x457   : > { %v17016_v34 = vrot.slane %v18921_v16, 2  ;;  %v17019_v11 = vrot.slane %v8398_v15, %v12188_v5  ;;  %v8095_v19 = vcombine.low %v16902_v6, %v8094_v20  ;;  %v17029_v30 = vrot.slane %v7362_v41, %v12188_v5 }
 0x458   : > { %19365 = vst [vmem:[#allocation39_spill] sm:$0xff] %v17000_v8  ;;  %19366 = vst [vmem:[#allocation30_spill] sm:$0xff] %v17003_v13  ;;  %v17026_v46 = vcombine.high %v17003_v13, %v17003_v13  ;;  %v7277_v16 = vadd.f32 %v7276_v39, %v16818_v33  ;;  %v7281_v60 = vpop.f32.mrf.mxu1  ;;  %v8111_v20 = vrot.slane %v8097_v59, %v12188_v5  ;;  %v11929_v33 = vld [vmem:[%s18804_s5 + $0x10] sm:$0xff]  }
 0x459   : > { %19367 = vst [vmem:[#allocation45_spill] sm:$0xff] %v17019_v11  ;;  %19369 = vst [vmem:[#allocation44_spill] sm:$0xff] %v17029_v30  ;;  %v9211_v15 = vcombine.low %v16993_v63, %v17019_v11  ;;  %v17048_v14 = vcombine.high %v17029_v30, %v17029_v30  ;;  %v18927_v1 = vrot.slane %v17029_v30, 7  ;;  %v17052_v59 = vrot.slane %v8365_v10, %v12188_v5 }
 0x45a   : > { %19368 = vst [vmem:[#allocation41_spill] sm:$0xff] %v17026_v46  ;;  %v7327_v39 = vmax.f32 %v7277_v16, 0.0  ;;  %v10873_v41 = vpop.f32.mrf.mxu1  ;;  %v8112_v7 = vcombine.low %v8104_v31, %v8111_v20  ;;  %v8555_v6 = vcombine.low %v16865_v49, %v16879_v42  ;;  %v8564_v2 = vcombine.low %v16905_v32, %v16908_v12  ;;  %10657 = vmatpush3.bf16.msra.mxu0 %v11929_v33 }
 0x45b   : > { %19371 = vst [vmem:[#allocation49_spill] sm:$0xff] %v17048_v14  ;;  %19372 = vst [vmem:[#allocation46_spill] sm:$0xff] %v17052_v59  ;;  %v17062_v50 = vrot.slane %v8381_v35, %v12188_v5  ;;  %v17066_v10 = vrot.slane %v18927_v1, 2  ;;  %v11931_v1 = vld [vmem:[%s18804_s5 + $0x8] sm:$0xff]   ;;  %v7282_v16 = vadd.f32 %v7281_v60, %v16822_v22  ;;  %10658 = vmatprep.subr.bf16.mxu0 %v11930_v24 }
 0x45c   : > { %v7363_v31 = vcombine.high %v7327_v39, %v7327_v39  ;;  %v7284_v20 = vpop.f32.mrf.mxu1  ;;  %v11737_v63 = vpack.i.bf16 %v8112_v7, %v8095_v19  ;;  %v8562_v36 = vrot.slane %v8555_v6, %v12188_v5  ;;  %v8571_v35 = vrot.slane %v8564_v2, %v12188_v5  ;;  %v11932_v2 = vld [vmem:[%s18804_s5 + $0x40] sm:$0xff]  }
 0x45d   : > { %19373 = vst [vmem:[#allocation51_spill] sm:$0xff] %v17062_v50  ;;  %v17079_v17 = vrot.slane %v7327_v39, %v12188_v5  ;;  %v7285_v41 = vadd.f32 %v7284_v20, %v16824_v54  ;;  %v9210_v39 = vcombine.low %v17052_v59, %v17062_v50  ;;  %v17096_v22 = vcombine.high %v16905_v32, %v16905_v32 }
 0x45e   : > { %v17082_v28 = vrot.slane %v7363_v31, %v12188_v5  ;;  %v10874_v19 = vpop.f32.mrf.mxu1  ;;  %11738 = vrot.lane.b32.xlu1 %v11737_v63, %s12065_s22  ;;  %v8563_v6 = vcombine.low %v8562_v36, %v17041_v26  ;;  %v8572_v33 = vcombine.low %v8571_v35, %v17052_v59  ;;  %v7328_v54 = vmax.f32 %v7282_v16, 0.0  ;;  %10659 = vmatpush3.bf16.msra.mxu0 %v11931_v1  ;;  %v11933_v16 = vld [vmem:[%s18804_s5] sm:$0xff]  }
 0x45f   : > { %19374 = vst [vmem:[#allocation50_spill] sm:$0xff] %v17079_v17  ;;  %19376 = vst [vmem:[#allocation43_spill] sm:$0xff] %v17096_v22  ;;  %v7329_v24 = vmax.f32 %v7285_v41, 0.0  ;;  %v17104_v63 = vcombine.high %v16942_v58, %v16942_v58  ;;  %v9315_v31 = vpack.c.bf16 %v9211_v15, %v9210_v39  ;;  %v7641_v20 = vrot.slane %v16905_v32, 7  ;;  %10660 = vmatprep.subr.bf16.mxu0 %v11932_v2 }
 0x460   : > { %19375 = vst [vmem:[#allocation52_spill] sm:$0xff] %v17082_v28  ;;  %v17100_v60 = vcombine.high %v17082_v28, %v17082_v28  ;;  %v7289_v36 = vpop.f32.mrf.mxu1  ;;  %v11732_v7 = vpack.i.bf16 %v8572_v33, %v8563_v6  ;;  %v7644_v35 = vrot.slane %v17096_v22, 7  ;;  %v7364_v19 = vcombine.high %v7328_v54, %v7328_v54 }
 0x461   : > { %19378 = vst [vmem:[#allocation15_spill] sm:$0xff] %v17104_v63  ;;  %v17112_v59 = vrot.slane %v7328_v54, %v12188_v5  ;;  %v7365_v41 = vcombine.high %v7329_v24, %v7329_v24  ;;  %v17115_v26 = vrot.slane %v7329_v24, %v12188_v5  ;;  %10900 = vmatmul.mubr.msk.bf16.vlgmr.msra.gmra.mxu1 %vm6813_vm4, %v9315_v31  ;;  %v7643_v6 = vrot.slane %v7641_v20, 2 }
 0x462   : > { %19377 = vst [vmem:[#allocation53_spill] sm:$0xff] %v17100_v60  ;;  %v10877_v40 = vpop.f32.mrf.mxu1  ;;  %11733 = vrot.lane.b32.xlu0 %v11732_v7, %s12065_s22  ;;  %v17123_v1 = vsel %vm12389_vm6, %v16926_v9, %v7641_v20  ;;  %v7648_v33 = vrot.slane %v16918_v23, 7  ;;  %v19381_v54 = vrot.slane %v16932_v29, 7  ;;  %10903 = vmatprep.mubr.msk.bf16.mxu1 %vm12064_vm1, %v19280_v37  ;;  %v17143_v7 = vrot.slane %v7364_v19, %v12188_v5 }
 0x463   : > { %19379 = vst [vmem:[#allocation9_spill] sm:$0xff] %v17115_v26  ;;  %19380 = vst [vmem:[#allocation18_spill] sm:$0xff] %v17123_v1  ;;  %v17128_v39 = vcombine.high %v17112_v59, %v17112_v59  ;;  %v18933_v40 = vrot.slane %v17112_v59, 7  ;;  %v17147_v31 = vcombine.high %v17115_v26, %v17115_v26  ;;  %v17150_v20 = vrot.slane %v7365_v41, %v12188_v5 }
 0x464   : > { %v17138_v24 = vsel %vm12389_vm6, %v16950_v45, %v19381_v54  ;;  %v7292_v9 = vpop.f32.mrf.mxu1  ;;  %10661 = vmatpush3.bf16.msra.mxu0 %v11933_v16  ;;  %v17162_v15 = vsel %vm12389_vm6, %v7643_v6, %v7644_v35  ;;  %v19386_v2 = vrot.slane %v16908_v12, 9  ;;  %v7650_v54 = vrot.slane %v7648_v33, 2 }
 0x465   : > { %19382 = vst [vmem:[#allocation8_spill] sm:$0xff] %v17138_v24  ;;  %19383 = vst [vmem:[#allocation37_spill] sm:$0xff] %v17147_v31  ;;  %v17155_v45 = vrot.slane %v18933_v40, 2  ;;  %v8433_v19 = vcombine.low %v17112_v59, %v17128_v39  ;;  %v17166_v41 = vcombine.high %v17150_v20, %v17150_v20  ;;  %v19388_v23 = vrot.slane %v17128_v39, 7 }
 0x466   : > { %19384 = vst [vmem:[#allocation28_spill] sm:$0xff] %v17150_v20  ;;  %19385 = vst [vmem:[#allocation25_spill] sm:$0xff] %v17162_v15  ;;  %v10878_v22 = vpop.f32.mrf.mxu1  ;;  %v17173_v40 = vsel %vm12389_vm6, %v19386_v2, %v7648_v33  ;;  %v19389_v35 = vrot.slane %v16932_v29, 7  ;;  %v11934_v2 = vld [vmem:[%s18804_s5 + $0xf8] sm:$0xff]   ;;  %v7659_v12 = vrot.slane %v7657_v27, 2  ;;  %v7664_v29 = vrot.slane %v16972_v38, 7 }
 0x467   : > { %19387 = vst [vmem:[#allocation6_spill] sm:$0xff] %v17173_v40  ;;  %v17177_v49 = vrot.slane %v19388_v23, 2  ;;  %v17190_v33 = vrot.slane %v8433_v19, %v12188_v5  ;;  %v19391_v23 = vrot.slane %v17150_v20, 7  ;;  %v7660_v19 = vrot.slane %v17104_v63, 7  ;;  %10704 = vmatprep.subr.bf16.mxu0 %v11934_v2 }
 0x468   : > { %v7656_v6 = vrot.slane %v19389_v35, 2  ;;  %v17184_v16 = vpop.f32.mrf.mxu1  ;;  %v19392_v35 = vrot.slane %v16921_v44, 7  ;;  %v8113_v22 = vcombine.low %v17123_v1, %v17162_v15  ;;  %v7290_v15 = vadd.f32 %v7289_v36, %v16826_v55 }
 0x469   : > { %19390 = vst [vmem:[#allocation7_spill] sm:$0xff] %v17190_v33  ;;  %v17194_v61 = vrot.slane %v19391_v23, 2  ;;  %v7293_v1 = vadd.f32 %v7292_v9, %v16828_v0 }
 0x46a   : > { %v17202_v8 = vsel %vm12389_vm6, %v7650_v54, %v19392_v35  ;;  %v17206_v58 = vsel %vm12389_vm6, %v7656_v6, %v7657_v27  ;;  %v10881_v23 = vpop.f32.mrf.mxu1  ;;  %v8573_v6 = vcombine.low %v16955_v53, %v16972_v38  ;;  %v17220_v27 = vsel %vm12389_vm6, %v7659_v12, %v7660_v19 }
 0x46b   : > { %19393 = vst [vmem:[#allocation40_spill] sm:$0xff] %v17202_v8  ;;  %19394 = vst [vmem:[#allocation42_spill] sm:$0xff] %v17206_v58  ;;  %v8114_v44 = vcombine.low %v17173_v40, %v17202_v8  ;;  %v8130_v54 = vcombine.low %v17138_v24, %v17206_v58  ;;  %v19396_v35 = vrot.slane %v16955_v53, 9  ;;  %v8582_v23 = vcombine.low %v16979_v47, %v17003_v13 }
 0x46c   : > { %19395 = vst [vmem:[#allocation47_spill] sm:$0xff] %v17220_v27  ;;  %v17231_v40 = vpop.f32.mrf.mxu1  ;;  %v8121_v38 = vrot.slane %v8113_v22, %v12188_v5  ;;  %v7330_v24 = vmax.f32 %v7290_v15, 0.0  ;;  %v8416_v22 = vcombine.low %v17048_v14, %v17079_v17 }
 0x46d   : > { %v17226_v2 = vsel %vm12389_vm6, %v19396_v35, %v7664_v29  ;;  %v17236_v12 = vrot.slane %v8114_v44, %v12188_v5  ;;  %v8580_v35 = vrot.slane %v8573_v6, %v12188_v5  ;;  %v8589_v8 = vrot.slane %v8582_v23, %v12188_v5 }
 0x46e   : > { %19397 = vst [vmem:[#allocation48_spill] sm:$0xff] %v17226_v2  ;;  %v8131_v19 = vcombine.low %v17220_v27, %v17226_v2  ;;  %v10882_v55 = vpop.f32.mrf.mxu1  ;;  %v17244_v36 = vrot.slane %v8130_v54, %v12188_v5  ;;  %v7607_v44 = vcombine.high %v16979_v47, %v16979_v47  ;;  %v7366_v0 = vcombine.high %v7330_v24, %v7330_v24 }
 0x46f   : > { %v8129_v6 = vcombine.low %v8121_v38, %v17236_v12  ;;  %v8581_v23 = vcombine.low %v17062_v50, %v8580_v35  ;;  %v8590_v15 = vcombine.low %v17019_v11, %v8589_v8  ;;  %v7331_v55 = vmax.f32 %v7293_v1, 0.0 }
 0x470   : > { %v17247_v58 = vrot.slane %v8131_v19, %v12188_v5  ;;  %v17256_v9 = vpop.f32.mrf.mxu1  ;;  %v17261_v19 = vrot.slane %v7330_v24, %v12188_v5  ;;  %v8399_v2 = vcombine.low %v16979_v47, %v7607_v44  ;;  %v17265_v53 = vrot.slane %v7366_v0, %v12188_v5 }
 0x471   : > { %v11742_v27 = vpack.i.bf16 %v8590_v15, %v8581_v23  ;;  %v7676_v38 = vrot.slane %v7607_v44, 7  ;;  %v19399_v8 = vcombine.low %v17026_v46, %v17029_v30  ;;  %v7367_v63 = vcombine.high %v7331_v55, %v7331_v55 }
 0x472   : > { %v8146_v54 = vcombine.low %v17244_v36, %v17247_v58  ;;  %19398 = vst [vmem:[#allocation54_spill] sm:$0xff] %v17265_v53  ;;  %v10885_v11 = vpop.f32.mrf.mxu1  ;;  %v17272_v25 = vrot.slane %v7331_v55, %v12188_v5  ;;  %v8430_v1 = vrot.slane %v8416_v22, %v12188_v5  ;;  %v17278_v24 = vcombine.high %v17265_v53, %v17265_v53 }
 0x473   : > { %v8423_v35 = vrot.slane %v19399_v8, %v12188_v5  ;;  %11743 = vrot.lane.b32.xlu0 %v11742_v27, %s12065_s22  ;;  %v17281_v44 = vrot.slane %v8399_v2, %v12188_v5  ;;  %v10461_v23 = vcombine.high %v17079_v17, %v17082_v28  ;;  %v7666_v11 = vrot.slane %v7664_v29, 2 }
 0x474   : > { %v11747_v50 = vpack.i.bf16 %v8146_v54, %v8129_v6  ;;  %v17285_v6 = vpop.f32.mrf.mxu1  ;;  %v17291_v27 = vcombine.high %v17272_v25, %v17272_v25  ;;  %v17294_v22 = vrot.slane %v7367_v63, %v12188_v5  ;;  %v18963_v2 = vrot.slane %v17272_v25, 7 }
 0x475   : > { %19400 = vst [vmem:[#allocation55_spill] sm:$0xff] %v17281_v44  ;;  %v8007_v0 = vcombine.low %v17278_v24, %v17272_v25  ;;  %v17300_v29 = vrot.slane %v10461_v23, %v12188_v5  ;;  %v9212_v54 = vcombine.low %v17281_v44, %v8423_v35  ;;  %v19406_v23 = vrot.slane %v16976_v43, 7 }
 0x476   : > { %11748 = vrot.lane.b32.xlu1 %v11747_v50, %s12065_s22  ;;  %19401 = vst [vmem:[#allocation56_spill] sm:$0xff] %v17291_v27  ;;  %19402 = vst [vmem:[#allocation57_spill] sm:$0xff] %v17294_v22  ;;  %v19404_v50 = vrot.slane %v16963_v62, 7  ;;  %v10886_v8 = vpop.f32.mrf.mxu1  ;;  %v17311_v63 = vrot.slane %v18963_v2, 2  ;;  %v8483_v32 = vcombine.low %v17272_v25, %v17291_v27  ;;  %v7680_v2 = vrot.slane %v17026_v46, 7 }
 0x477   : > { %19403 = vst [vmem:[#allocation58_spill] sm:$0xff] %v17300_v29  ;;  %v17321_v62 = vsel %vm12389_vm6, %v16989_v56, %v19406_v23  ;;  %v7673_v8 = vrot.slane %v16979_v47, 7  ;;  %v19408_v44 = vrot.slane %v17291_v27, 7  ;;  %v17335_v43 = vrot.slane %v8007_v0, %v12188_v5 }
 0x478   : > { %v17307_v55 = vsel %vm12389_vm6, %v7666_v11, %v19404_v50  ;;  %19407 = vst [vmem:[#allocation60_spill] sm:$0xff] %v17321_v62  ;;  %v9213_v50 = vcombine.low %v8430_v1, %v17300_v29  ;;  %v17328_v15 = vpop.f32.mrf.mxu1  ;;  %v17338_v56 = vrot.slane %v8483_v32, %v12188_v5  ;;  %v19411_v23 = vrot.slane %v17048_v14, 7 }
 0x479   : > { %19405 = vst [vmem:[#allocation59_spill] sm:$0xff] %v17307_v55  ;;  %v17332_v51 = vrot.slane %v19408_v44, 2  ;;  %19409 = vst [vmem:[#allocation61_spill] sm:$0xff] %v17335_v43  ;;  %v17345_v46 = vsel %vm12389_vm6, %v17016_v34, %v7673_v8  ;;  %v7675_v47 = vrot.slane %v7673_v8, 2  ;;  %v7682_v32 = vrot.slane %v7680_v2, 2 }
 0x47a   : > { %19410 = vst [vmem:[#allocation62_spill] sm:$0xff] %v17338_v56  ;;  %v7688_v11 = vrot.slane %v19411_v23, 2  ;;  %v9320_v29 = vpack.c.bf16 %v9213_v50, %v9212_v54  ;;  %19412 = vst [vmem:[#allocation63_spill] sm:$0xff] %v17345_v46  ;;  %v19413_v42 = vmov %v19411_v23  ;;  %v10889_v0 = vpop.f32.mrf.mxu1  ;;  %v7689_v43 = vrot.slane %v17079_v17, 7 }
 0x47b   : > { %v17352_v44 = vsel %vm12389_vm6, %v17066_v10, %v19413_v42  ;;  %v8147_v54 = vcombine.low %v17307_v55, %v17321_v62  ;;  %v7298_v50 = vadd.f32 %v17184_v16, %v16830_v3  ;;  %v17362_v34 = vsel %vm12389_vm6, %v7675_v47, %v7676_v38 }
 0x47c   : > { %19414 = vst [vmem:[#allocation64_spill] sm:$0xff] %v17352_v44  ;;  %10904 = vmatmul.mubr.msk.bf16.gmra.mxu1 %vm6813_vm4, %v9320_v29  ;;  %19415 = vst [vmem:[#allocation65_spill] sm:$0xff] %v17362_v34  ;;  %v19416_v8 = vrot.slane %v17003_v13, 9  ;;  %v8591_v10 = vcombine.low %v17082_v28, %v17100_v60  ;;  %v7301_v23 = vadd.f32 %v17231_v40, %v16837_v52  ;;  %v17374_v0 = vpop.f32.mrf.mxu1  ;;  %v19418_v3 = vrot.slane %v17029_v30, 7 }
 0x47d   : > { %v17384_v16 = vsel %vm12389_vm6, %v7688_v11, %v7689_v43  ;;  %v8148_v38 = vcombine.low %v17345_v46, %v17362_v34  ;;  %10907 = vmatprep.mubr.msk.bf16.mxu1 %vm12064_vm1, %v19280_v37  ;;  %v17393_v52 = vrot.slane %v8147_v54, %v12188_v5 }
 0x47e   : > { %v17368_v42 = vsel %vm12389_vm6, %v19416_v8, %v7680_v2  ;;  %v17380_v47 = vsel %vm12389_vm6, %v7682_v32, %v19418_v3  ;;  %19420 = vst [vmem:[#allocation68_spill] sm:$0xff] %v17384_v16  ;;  %v17388_v2 = vcombine.low %v8423_v35, %v8430_v1  ;;  %v8165_v29 = vcombine.low %v17352_v44, %v17384_v16  ;;  %v10890_v11 = vpop.f32.mrf.mxu1 }
 0x47f   : > { %19417 = vst [vmem:[#allocation66_spill] sm:$0xff] %v17368_v42  ;;  %19419 = vst [vmem:[#allocation67_spill] sm:$0xff] %v17380_v47  ;;  %v8164_v40 = vcombine.low %v17368_v42, %v17380_v47  ;;  %v7332_v32 = vmax.f32 %v7298_v50, 0.0  ;;  %v17400_v8 = vrot.slane %v8148_v38, %v12188_v5  ;;  %v8598_v35 = vrot.slane %v8591_v10, %v12188_v5 }
 0x480   : > { %19421 = vst [vmem:[#allocation69_spill] sm:$0xff] %v17388_v2  ;;  %v7333_v1 = vmax.f32 %v7301_v23, 0.0  ;;  %v7609_v3 = vcombine.high %v17143_v7, %v17143_v7  ;;  %v17409_v34 = vrot.slane %v8165_v29, %v12188_v5  ;;  %v19422_v23 = vcombine.low %v17147_v31, %v17150_v20 }
 0x481   : > { %v17406_v54 = vrot.slane %v8164_v40, %v12188_v5  ;;  %v7368_v47 = vcombine.high %v7332_v32, %v7332_v32  ;;  %v17412_v16 = vrot.slane %v7332_v32, %v12188_v5  ;;  %v8163_v50 = vcombine.low %v17393_v52, %v17400_v8 }
 0x482   : > { %v8599_v38 = vcombine.low %v8598_v35, %v17190_v33  ;;  %v7369_v10 = vcombine.high %v7333_v1, %v7333_v1  ;;  %v17421_v11 = vrot.slane %v19422_v23, %v12188_v5  ;;  %v17433_v44 = vrot.slane %v7333_v1, %v12188_v5 }
 0x483   : > { %v8180_v40 = vcombine.low %v17406_v54, %v17409_v34  ;;  %v17427_v29 = vcombine.high %v17412_v16, %v17412_v16  ;;  %v17430_v32 = vrot.slane %v7368_v47, %v12188_v5  ;;  %v8449_v62 = vcombine.low %v17143_v7, %v7609_v3 }
 0x484   : > { %19423 = vst [vmem:[#allocation70_spill] sm:$0xff] %v17421_v11  ;;  %19426 = vst [vmem:[#allocation73_spill] sm:$0xff] %v17433_v44  ;;  %v11752_v42 = vpack.i.bf16 %v8599_v38, %v17388_v2  ;;  %v17438_v23 = vrot.slane %v7369_v10, %v12188_v5  ;;  %v7708_v14 = vrot.slane %v7609_v3, 7  ;;  %v8466_v10 = vcombine.low %v17166_v41, %v17261_v19 }
 0x485   : > { %19424 = vst [vmem:[#allocation71_spill] sm:$0xff] %v17427_v29  ;;  %19425 = vst [vmem:[#allocation72_spill] sm:$0xff] %v17430_v32  ;;  %v11757_v46 = vpack.i.bf16 %v8180_v40, %v8163_v50  ;;  %v17443_v55 = vcombine.high %v17430_v32, %v17430_v32  ;;  %v18982_v47 = vrot.slane %v17430_v32, 7  ;;  %v17450_v38 = vrot.slane %v8449_v62, %v12188_v5 }
 0x486   : > { %19427 = vst [vmem:[#allocation74_spill] sm:$0xff] %v17438_v23  ;;  %11753 = vrot.lane.b32.xlu0 %v11752_v42, %s12065_s22  ;;  %v7306_v50 = vadd.f32 %v17256_v9, %v16839_v18  ;;  %v17466_v35 = vrot.slane %v8466_v10, %v12188_v5  ;;  %v17470_v18 = vcombine.high %v17438_v23, %v17438_v23  ;;  %v7696_v42 = vrot.slane %v17100_v60, 7 }
 0x487   : > { %19428 = vst [vmem:[#allocation75_spill] sm:$0xff] %v17443_v55  ;;  %19429 = vst [vmem:[#allocation76_spill] sm:$0xff] %v17450_v38  ;;  %11758 = vrot.lane.b32.xlu1 %v11757_v46, %s12065_s22  ;;  %v17459_v40 = vrot.slane %v18982_v47, 2  ;;  %v17474_v46 = vcombine.high %v17079_v17, %v17079_v17  ;;  %v9214_v9 = vcombine.low %v17190_v33, %v17450_v38  ;;  %v7691_v47 = vrot.slane %v7689_v43, 2 }
 0x488   : > { %19430 = vst [vmem:[#allocation77_spill] sm:$0xff] %v17466_v35  ;;  %v7334_v1 = vmax.f32 %v7306_v50, 0.0  ;;  %v7705_v62 = vrot.slane %v17143_v7, 7  ;;  %v9215_v10 = vcombine.low %v17421_v11, %v17466_v35  ;;  %v19432_v17 = vrot.slane %v17082_v28, 9 }
 0x489   : > { %19431 = vst [vmem:[#allocation78_spill] sm:$0xff] %v17474_v46  ;;  %v7692_v2 = vrot.slane %v17474_v46, 7  ;;  %v7698_v43 = vrot.slane %v7696_v42, 2  ;;  %v19434_v38 = vrot.slane %v17128_v39, 7  ;;  %v19448_v46 = vrot.slane %v17166_v41, 7 }
 0x48a   : > { %v7370_v50 = vcombine.high %v7334_v1, %v7334_v1  ;;  %v17483_v3 = vrot.slane %v7334_v1, %v12188_v5  ;;  %v17490_v30 = vsel %vm12389_vm6, %v19432_v17, %v7696_v42  ;;  %v7707_v60 = vrot.slane %v7705_v62, 2 }
 0x48b   : > { %19433 = vst [vmem:[#allocation79_spill] sm:$0xff] %v17490_v30  ;;  %v17497_v33 = vsel %vm12389_vm6, %v17155_v45, %v19434_v38  ;;  %v9325_v13 = vpack.c.bf16 %v9215_v10, %v9214_v9  ;;  %v17507_v17 = vsel %vm12389_vm6, %v17177_v49, %v7705_v62  ;;  %v19437_v38 = vrot.slane %v17112_v59, 7 }
 0x48c   : > { %19435 = vst [vmem:[#allocation80_spill] sm:$0xff] %v17497_v33  ;;  %v17501_v1 = vcombine.high %v17483_v3, %v17483_v3  ;;  %v18993_v28 = vrot.slane %v17483_v3, 7  ;;  %19436 = vst [vmem:[#allocation81_spill] sm:$0xff] %v17507_v17  ;;  %v17510_v42 = vrot.slane %v7370_v50, %v12188_v5  ;;  %v17522_v10 = vsel %vm12389_vm6, %v7707_v60, %v7708_v14 }
 0x48d   : > { %v17518_v9 = vsel %vm12389_vm6, %v7698_v43, %v19437_v38  ;;  %19439 = vst [vmem:[#allocation83_spill] sm:$0xff] %v17522_v10  ;;  %10908 = vmatmul.mubr.msk.bf16.gmra.mxu1 %vm6813_vm4, %v9325_v13  ;;  %v17533_v50 = vsel %vm12389_vm6, %v7691_v47, %v7692_v2  ;;  %v7712_v43 = vrot.slane %v17147_v31, 7  ;;  %v8198_v13 = vcombine.low %v17507_v17, %v17522_v10 }
 0x48e   : > { %19438 = vst [vmem:[#allocation82_spill] sm:$0xff] %v17518_v9  ;;  %v17527_v49 = vrot.slane %v18993_v28, 2  ;;  %v8518_v62 = vcombine.low %v17483_v3, %v17501_v1  ;;  %19440 = vst [vmem:[#allocation84_spill] sm:$0xff] %v17533_v50  ;;  %v8181_v38 = vcombine.low %v17533_v50, %v17490_v30  ;;  %v8182_v14 = vcombine.low %v17518_v9, %v17497_v33 }
 0x48f   : > { %v8600_v60 = vcombine.low %v17143_v7, %v17115_v26  ;;  %10911 = vmatprep.mubr.msk.bf16.mxu1 %vm12064_vm1, %v19280_v37  ;;  %v7714_v45 = vrot.slane %v7712_v43, 2  ;;  %v8609_v28 = vcombine.low %v17265_v53, %v17278_v24  ;;  %v19441_v33 = vrot.slane %v17115_v26, 9 }
 0x490   : > { %v17548_v47 = vrot.slane %v8518_v62, %v12188_v5  ;;  %v17559_v17 = vrot.slane %v8181_v38, %v12188_v5  ;;  %v17562_v30 = vrot.slane %v8182_v14, %v12188_v5  ;;  %v19443_v62 = vrot.slane %v17150_v20, 7 }
 0x491   : > { %v17556_v10 = vsel %vm12389_vm6, %v19441_v33, %v7712_v43  ;;  %v8607_v2 = vrot.slane %v8600_v60, %v12188_v5  ;;  %v8616_v50 = vrot.slane %v8609_v28, %v12188_v5  ;;  %v7309_v33 = vadd.f32 %v17285_v6, %v16841_v21 }
 0x492   : > { %19442 = vst [vmem:[#allocation85_spill] sm:$0xff] %v17556_v10  ;;  %v17569_v9 = vsel %vm12389_vm6, %v7714_v45, %v19443_v62  ;;  %v7314_v43 = vadd.f32 %v17328_v15, %v16843_v48  ;;  %v17579_v14 = vrot.slane %v8198_v13, %v12188_v5  ;;  %v17584_v45 = vcombine.high %v17294_v22, %v17294_v22 }
 0x493   : > { %19444 = vst [vmem:[#allocation86_spill] sm:$0xff] %v17569_v9  ;;  %v8199_v38 = vcombine.low %v17556_v10, %v17569_v9  ;;  %v8608_v60 = vcombine.low %v8607_v2, %v17421_v11  ;;  %v8617_v28 = vcombine.low %v17466_v35, %v8616_v50  ;;  %v7335_v62 = vmax.f32 %v7309_v33, 0.0 }
 0x494   : > { %v7336_v31 = vmax.f32 %v7314_v43, 0.0  ;;  %v10462_v21 = vcombine.high %v17261_v19, %v17265_v53  ;;  %v8197_v48 = vcombine.low %v17559_v17, %v17562_v30  ;;  %v8484_v15 = vcombine.low %v17294_v22, %v17584_v45 }
 0x495   : > { %v17592_v6 = vrot.slane %v8199_v38, %v12188_v5  ;;  %v19445_v13 = vcombine.low %v17427_v29, %v17430_v32  ;;  %v11762_v50 = vpack.i.bf16 %v8617_v28, %v8608_v60  ;;  %v7371_v33 = vcombine.high %v7335_v62, %v7335_v62 }
 0x496   : > { %v17601_v43 = vrot.slane %v7335_v62, %v12188_v5  ;;  %v7372_v10 = vcombine.high %v7336_v31, %v7336_v31  ;;  %v7740_v38 = vrot.slane %v17584_v45, 7  ;;  %v17607_v35 = vrot.slane %v10462_v21, %v12188_v5 }
 0x497   : > { %v8508_v2 = vrot.slane %v19445_v13, %v12188_v5  ;;  %v8214_v9 = vcombine.low %v17579_v14, %v17592_v6  ;;  %v17610_v11 = vrot.slane %v8484_v15, %v12188_v5  ;;  %11763 = vrot.lane.b32.xlu0 %v11762_v50, %s12065_s22  ;;  %v17618_v28 = vrot.slane %v7371_v33, %v12188_v5 }
 0x498   : > { %19446 = vst [vmem:[#allocation87_spill] sm:$0xff] %v17607_v35  ;;  %v17615_v60 = vcombine.high %v17601_v43, %v17601_v43  ;;  %v17621_v62 = vrot.slane %v7336_v31, %v12188_v5  ;;  %v17624_v45 = vrot.slane %v7372_v10, %v12188_v5  ;;  %v9216_v15 = vcombine.low %v17607_v35, %v17338_v56 }
 0x499   : > { %19447 = vst [vmem:[#allocation88_spill] sm:$0xff] %v17610_v11  ;;  %v11767_v21 = vpack.i.bf16 %v8214_v9, %v8197_v48  ;;  %v9217_v13 = vcombine.low %v17610_v11, %v8508_v2  ;;  %v17631_v50 = vcombine.high %v17261_v19, %v17261_v19  ;;  %v17635_v33 = vcombine.high %v17618_v28, %v17618_v28 }
 0x49a   : > { %v19011_v26 = vrot.slane %v17618_v28, 7  ;;  %v19450_v10 = vmov %v19448_v46  ;;  %v19451_v31 = vrot.slane %v17291_v27, 7 }
 0x49b   : > { %11768 = vrot.lane.b32.xlu1 %v11767_v21, %s12065_s22  ;;  %v9330_v35 = vpack.c.bf16 %v9217_v13, %v9216_v15  ;;  %v17657_v21 = vsel %vm12389_vm6, %v17194_v61, %v19448_v46  ;;  %v7720_v48 = vrot.slane %v19450_v10, 2  ;;  %v7721_v15 = vrot.slane %v17261_v19, 7 }
 0x49c   : > { %v17649_v20 = vrot.slane %v19011_v26, 2  ;;  %19449 = vst [vmem:[#allocation89_spill] sm:$0xff] %v17657_v21  ;;  %v7724_v13 = vrot.slane %v17631_v50, 7  ;;  %v7728_v26 = vrot.slane %v17278_v24, 7  ;;  %v17670_v11 = vsel %vm12389_vm6, %v17311_v63, %v19451_v31 }
 0x49d   : > { %10912 = vmatmul.mubr.msk.bf16.gmra.mxu1 %vm6813_vm4, %v9330_v35  ;;  %19452 = vst [vmem:[#allocation90_spill] sm:$0xff] %v17670_v11  ;;  %v7737_v61 = vrot.slane %v17294_v22, 7  ;;  %v8501_v46 = vcombine.low %v17443_v55, %v17433_v44  ;;  %v8618_v35 = vcombine.low %v17294_v22, %v17412_v16  ;;  %v7317_v10 = vadd.f32 %v17374_v0, %v16859_v57 }
 0x49e   : > { %10915 = vmatprep.mubr.msk.bf16.mxu1 %vm12064_vm1, %v19280_v37  ;;  %v17683_v24 = vsel %vm12389_vm6, %v7720_v48, %v7721_v15  ;;  %v7723_v63 = vrot.slane %v7721_v15, 2  ;;  %v19454_v31 = vrot.slane %v17265_v53, 9  ;;  %v7730_v27 = vrot.slane %v7728_v26, 2 }
 0x49f   : > { %19453 = vst [vmem:[#allocation91_spill] sm:$0xff] %v17683_v24  ;;  %v17694_v22 = vsel %vm12389_vm6, %v17332_v51, %v7737_v61  ;;  %v7739_v57 = vrot.slane %v7737_v61, 2  ;;  %v8215_v0 = vcombine.low %v17657_v21, %v17683_v24  ;;  %v8515_v48 = vrot.slane %v8501_v46, %v12188_v5 }
 0x4a0   : > { %v17689_v9 = vsel %vm12389_vm6, %v19454_v31, %v7728_v26  ;;  %19456 = vst [vmem:[#allocation93_spill] sm:$0xff] %v17694_v22  ;;  %v17701_v15 = vsel %vm12389_vm6, %v7723_v63, %v7724_v13  ;;  %v19458_v53 = vrot.slane %v17272_v25, 7  ;;  %v8625_v31 = vrot.slane %v8618_v35, %v12188_v5 }
 0x4a1   : > { %19455 = vst [vmem:[#allocation92_spill] sm:$0xff] %v17689_v9  ;;  %19457 = vst [vmem:[#allocation94_spill] sm:$0xff] %v17701_v15  ;;  %v7337_v51 = vmax.f32 %v7317_v10, 0.0  ;;  %v17712_v61 = vsel %vm12389_vm6, %v7739_v57, %v7740_v38  ;;  %v8216_v46 = vcombine.low %v17701_v15, %v17689_v9  ;;  %v17717_v24 = vrot.slane %v8215_v0, %v12188_v5 }
 0x4a2   : > { %v17707_v26 = vsel %vm12389_vm6, %v7730_v27, %v19458_v53  ;;  %19460 = vst [vmem:[#allocation96_spill] sm:$0xff] %v17712_v61  ;;  %v8233_v53 = vcombine.low %v17694_v22, %v17712_v61  ;;  %v17723_v27 = vcombine.low %v8508_v2, %v8515_v48  ;;  %v8626_v13 = vcombine.low %v17338_v56, %v8625_v31 }
 0x4a3   : > { %19459 = vst [vmem:[#allocation95_spill] sm:$0xff] %v17707_v26  ;;  %v8232_v25 = vcombine.low %v17707_v26, %v17670_v11  ;;  %v7373_v35 = vcombine.high %v7337_v51, %v7337_v51  ;;  %v17727_v38 = vrot.slane %v8216_v46, %v12188_v5  ;;  %v17734_v63 = vcombine.high %v17624_v45, %v17624_v45 }
 0x4a4   : > { %19461 = vst [vmem:[#allocation97_spill] sm:$0xff] %v17723_v27  ;;  %v17737_v57 = vrot.slane %v7337_v51, %v12188_v5  ;;  %v17740_v0 = vrot.slane %v8233_v53, %v12188_v5  ;;  %v11772_v2 = vpack.i.bf16 %v17723_v27, %v8626_v13  ;;  %v17748_v46 = vcombine.high %v17510_v42, %v17510_v42 }
 0x4a5   : > { %v17730_v10 = vrot.slane %v8232_v25, %v12188_v5  ;;  %v17744_v31 = vrot.slane %v7373_v35, %v12188_v5  ;;  %v19025_v51 = vrot.slane %v17734_v63, 7  ;;  %v8231_v13 = vcombine.low %v17717_v24, %v17727_v38 }
 0x4a6   : > { %v17754_v15 = vcombine.high %v17737_v57, %v17737_v57  ;;  %v19026_v53 = vrot.slane %v17737_v57, 7  ;;  %11773 = vrot.lane.b32.xlu0 %v11772_v2, %s12065_s22  ;;  %v10463_v25 = vcombine.high %v17433_v44, %v17438_v23  ;;  %v8534_v27 = vcombine.low %v17510_v42, %v17748_v46 }
 0x4a7   : > { %v8248_v35 = vcombine.low %v17730_v10, %v17740_v0  ;;  %v17769_v26 = vrot.slane %v19025_v51, 2  ;;  %v17786_v51 = vcombine.high %v17433_v44, %v17433_v44  ;;  %v19465_v11 = vrot.slane %v17443_v55, 7 }
 0x4a8   : > { %v17773_v21 = vrot.slane %v19026_v53, 2  ;;  %v17780_v9 = vrot.slane %v10463_v25, %v12188_v5  ;;  %v7744_v53 = vrot.slane %v17427_v29, 7  ;;  %v17800_v2 = vrot.slane %v8534_v27, %v12188_v5 }
 0x4a9   : > { %v11777_v61 = vpack.i.bf16 %v8248_v35, %v8231_v13  ;;  %19464 = vst [vmem:[#allocation100_spill] sm:$0xff] %v17786_v51  ;;  %v17794_v13 = vsel %vm12389_vm6, %v17459_v40, %v19465_v11  ;;  %v19467_v35 = vmov %v19465_v11  ;;  %v7753_v56 = vrot.slane %v17433_v44, 7 }
 0x4aa   : > { %19462 = vst [vmem:[#allocation98_spill] sm:$0xff] %v17773_v21  ;;  %19463 = vst [vmem:[#allocation99_spill] sm:$0xff] %v17780_v9  ;;  %v7752_v25 = vrot.slane %v19467_v35, 2  ;;  %v9218_v22 = vcombine.low %v8515_v48, %v17780_v9  ;;  %v7760_v29 = vrot.slane %v17470_v18, 7  ;;  %v19469_v21 = vrot.slane %v17412_v16, 9 }
 0x4ab   : > { %19466 = vst [vmem:[#allocation101_spill] sm:$0xff] %v17794_v13  ;;  %11778 = vrot.lane.b32.xlu1 %v11777_v61, %s12065_s22  ;;  %19468 = vst [vmem:[#allocation102_spill] sm:$0xff] %v17800_v2  ;;  %v7746_v40 = vrot.slane %v7744_v53, 2  ;;  %v7756_v35 = vrot.slane %v17786_v51, 7  ;;  %v19471_v61 = vrot.slane %v17501_v1, 7  ;;  %v9219_v48 = vcombine.low %v17548_v47, %v17800_v2 }
 0x4ac   : > { %v17809_v11 = vsel %vm12389_vm6, %v19469_v21, %v7744_v53  ;;  %v17823_v9 = vsel %vm12389_vm6, %v7752_v25, %v7753_v56  ;;  %v7755_v55 = vrot.slane %v7753_v56, 2  ;;  %v19474_v21 = vrot.slane %v17438_v23, 9 }
 0x4ad   : > { %19470 = vst [vmem:[#allocation103_spill] sm:$0xff] %v17809_v11  ;;  %v17817_v27 = vsel %vm12389_vm6, %v17527_v49, %v19471_v61  ;;  %19473 = vst [vmem:[#allocation105_spill] sm:$0xff] %v17823_v9  ;;  %v19476_v44 = vrot.slane %v17430_v32, 7  ;;  %v7762_v61 = vrot.slane %v7760_v29, 2  ;;  %v8250_v2 = vcombine.low %v17794_v13, %v17823_v9  ;;  %v19501_v13 = vld [vmem:[#allocation38_spill] sm:$0xff] }
 0x4ae   : > { %19472 = vst [vmem:[#allocation104_spill] sm:$0xff] %v17817_v27  ;;  %v17829_v53 = vsel %vm12389_vm6, %v19474_v21, %v7760_v29  ;;  %v8627_v25 = vcombine.low %v17438_v23, %v17470_v18  ;;  %v9335_v56 = vpack.c.bf16 %v9219_v48, %v9218_v22  ;;  %v17843_v51 = vsel %vm12389_vm6, %v7755_v55, %v7756_v35 }
 0x4af   : > { %19475 = vst [vmem:[#allocation106_spill] sm:$0xff] %v17829_v53  ;;  %v17835_v49 = vsel %vm12389_vm6, %v7746_v40, %v19476_v44  ;;  %19478 = vst [vmem:[#allocation108_spill] sm:$0xff] %v17843_v51  ;;  %v8636_v32 = vcombine.low %v17510_v42, %v17601_v43  ;;  %v19479_v44 = vrot.slane %v17483_v3, 7  ;;  %v17856_v40 = vrot.slane %v8250_v2, %v12188_v5 }
 0x4b0   : > { %19477 = vst [vmem:[#allocation107_spill] sm:$0xff] %v17835_v49  ;;  %v8249_v21 = vcombine.low %v17809_v11, %v17835_v49  ;;  %v8266_v22 = vcombine.low %v17843_v51, %v17829_v53  ;;  %v8634_v55 = vrot.slane %v8627_v25, %v12188_v5  ;;  %10916 = vmatmul.mubr.msk.bf16.gmra.mxu1 %vm6813_vm4, %v9335_v56 }
 0x4b1   : > { %v17853_v29 = vsel %vm12389_vm6, %v7762_v61, %v19479_v44  ;;  %v8644_v11 = vrot.slane %v8636_v32, %v12188_v5  ;;  %v19481_v2 = vcombine.low %v17615_v60, %v17618_v28  ;;  %v9119_v56 = vcombine.low %v17236_v12, %v17244_v36  ;;  %10919 = vmatprep.mubr.msk.bf16.mxu1 %vm12064_vm1, %v19280_v37 }
 0x4b2   : > { %19480 = vst [vmem:[#allocation109_spill] sm:$0xff] %v17853_v29  ;;  %v17863_v35 = vrot.slane %v8249_v21, %v12188_v5  ;;  %v8267_v48 = vcombine.low %v17853_v29, %v17817_v27  ;;  %v17873_v44 = vrot.slane %v8266_v22, %v12188_v5  ;;  %v8635_v25 = vcombine.low %v8634_v55, %v17548_v47 }
 0x4b3   : > { %v8651_v61 = vrot.slane %v19481_v2, %v12188_v5  ;;  %v9120_v21 = vcombine.low %v17247_v58, %v17393_v52  ;;  %v19482_v22 = vrot.slane %v17501_v1, 7  ;;  %v7769_v29 = vrot.slane %v17510_v42, 7 }
 0x4b4   : > { %v8265_v32 = vcombine.low %v17863_v35, %v17856_v40  ;;  %v17885_v27 = vrot.slane %v8267_v48, %v12188_v5  ;;  %v7772_v12 = vrot.slane %v17748_v46, 7  ;;  %v8653_v58 = vcombine.low %v17635_v33, %v17621_v62 }
 0x4b5   : > { %v8652_v2 = vcombine.low %v8644_v11, %v8651_v61  ;;  %v7768_v53 = vrot.slane %v19482_v22, 2  ;;  %v11797_v55 = vpack.i.bf16 %v9120_v21, %v9119_v56  ;;  %v9121_v48 = vcombine.low %v17400_v8, %v17406_v54  ;;  %v19485_v8 = vld [vmem:[#allocation16_spill] sm:$0xff]  ;;  %v19486_v54 = vld [vmem:[#allocation17_spill] sm:$0xff] }
 0x4b6   : > { %v8282_v36 = vcombine.low %v17873_v44, %v17885_v27  ;;  %v9122_v11 = vcombine.low %v17409_v34, %v17559_v17  ;;  %v19483_v22 = vrot.slane %v17744_v31, 7  ;;  %v7771_v21 = vrot.slane %v7769_v29, 2  ;;  %v19488_v17 = vld [vmem:[#allocation19_spill] sm:$0xff] }
 0x4b7   : > { %v11782_v52 = vpack.i.bf16 %v8652_v2, %v8635_v25  ;;  %v17905_v46 = vsel %vm12389_vm6, %v7768_v53, %v7769_v29  ;;  %v8660_v9 = vrot.slane %v8653_v58, %v12188_v5  ;;  %v19487_v2 = vcombine.low %v19485_v8, %v19486_v54  ;;  %v19491_v29 = vld [vmem:[#allocation32_spill] sm:$0xff]  ;;  %v19492_v58 = vld [vmem:[#allocation29_spill] sm:$0xff] }
 0x4b8   : > { %v17901_v56 = vrot.slane %v19483_v22, 2  ;;  %19484 = vst [vmem:[#allocation110_spill] sm:$0xff] %v17905_v46  ;;  %v11787_v51 = vpack.i.bf16 %v8282_v36, %v8265_v32  ;;  %v11807_v25 = vpack.i.bf16 %v9122_v11, %v9121_v48  ;;  %v19489_v22 = vld [vmem:[#allocation23_spill] sm:$0xff]  ;;  %v17919_v53 = vsel %vm12389_vm6, %v7771_v21, %v7772_v12 }
 0x4b9   : > { %11783 = vrot.lane.b32.xlu0 %v11782_v52, %s12065_s22  ;;  %v17913_v34 = vrot.slane %v19487_v2, %v12188_v5  ;;  %v7888_v49 = vcombine.low %v19489_v22, %v19488_v17  ;;  %19490 = vst [vmem:[#allocation16_spill] sm:$0xff] %v17919_v53  ;;  %v19493_v32 = vcombine.low %v19491_v29, %v19492_v58  ;;  %v19494_v52 = vld [vmem:[#allocation26_spill] sm:$0xff]  ;;  %v19499_v58 = vld [vmem:[#allocation27_spill] sm:$0xff] }
 0x4ba   : > { %v10464_v48 = vcombine.high %v19488_v17, %v19494_v52  ;;  %v9220_v11 = vcombine.low %v8651_v61, %v8660_v9  ;;  %11788 = vrot.lane.b32.xlu1 %v11787_v51, %s12065_s22  ;;  %v8283_v8 = vcombine.low %v17905_v46, %v17919_v53  ;;  %v19496_v12 = vcombine.high %v17621_v62, %v17624_v45 }
 0x4bb   : > { %v17925_v36 = vrot.slane %v19493_v32, %v12188_v5  ;;  %v17933_v54 = vrot.slane %v7888_v49, %v12188_v5  ;;  %v19497_v2 = vcombine.low %v17737_v57, %v17754_v15  ;;  %v9123_v51 = vcombine.low %v17562_v30, %v17579_v14  ;;  %v19498_v49 = vld [vmem:[#allocation15_spill] sm:$0xff] }
 0x4bc   : > { %v9229_v21 = vrot.slane %v19496_v12, %v12188_v5  ;;  %v8933_v61 = vrot.slane %v10464_v48, %v12188_v5  ;;  %v9124_v29 = vcombine.low %v17592_v6, %v17717_v24  ;;  %v8935_v32 = vcombine.low %v19499_v58, %v19498_v49  ;;  %v19500_v12 = vld [vmem:[#allocation11_spill] sm:$0xff] }
 0x4bd   : > { %19495 = vst [vmem:[#allocation17_spill] sm:$0xff] %v17933_v54  ;;  %v9236_v22 = vrot.slane %v19497_v2, %v12188_v5  ;;  %v8290_v46 = vrot.slane %v8283_v8, %v12188_v5  ;;  %v19502_v17 = vcombine.low %v19500_v12, %v19501_v13  ;;  %v19503_v2 = vld [vmem:[#allocation30_spill] sm:$0xff]  ;;  %v8925_v30 = vcombine.low %v17913_v34, %v17933_v54  ;;  %v19504_v12 = vld [vmem:[#allocation39_spill] sm:$0xff] }
 0x4be   : > { %v10465_v48 = vcombine.high %v19501_v13, %v19503_v2  ;;  %v8934_v14 = vcombine.low %v8933_v61, %v17925_v36  ;;  %v11817_v6 = vpack.i.bf16 %v9124_v29, %v9123_v51  ;;  %v8942_v24 = vrot.slane %v8935_v32, %v12188_v5  ;;  %11798 = vrot.lane.b32.xlu1 %v11797_v55, %s12065_s22  ;;  %v19505_v61 = vld [vmem:[#allocation44_spill] sm:$0xff]  ;;  %v19506_v51 = vld [vmem:[#allocation49_spill] sm:$0xff] }
 0x4bf   : > { %v9237_v53 = vcombine.low %v9229_v21, %v9236_v22  ;;  %v17955_v23 = vrot.slane %v19502_v17, %v12188_v5  ;;  %v11792_v8 = vpack.i.bf16 %v8290_v46, %v8660_v9  ;;  %v9125_v17 = vcombine.low %v17727_v38, %v17730_v10  ;;  %v19508_v38 = vld [vmem:[#allocation53_spill] sm:$0xff] }
 0x4c0   : > { %v8951_v22 = vrot.slane %v10465_v48, %v12188_v5  ;;  %v11802_v49 = vpack.i.bf16 %v8934_v14, %v8925_v30  ;;  %v8943_v13 = vcombine.low %v8942_v24, %v19504_v12  ;;  %v9126_v54 = vcombine.low %v17740_v0, %v17863_v35 }
 0x4c1   : > { %v9340_v21 = vpack.c.bf16 %v9237_v53, %v9220_v11  ;;  %v19507_v29 = vcombine.low %v19505_v61, %v19506_v51  ;;  %11793 = vrot.lane.b32.xlu0 %v11792_v8, %s12065_s22  ;;  %v19509_v10 = vcombine.low %v19508_v38, %v17112_v59  ;;  %v7973_v0 = vcombine.low %v17128_v39, %v17143_v7  ;;  %v19510_v53 = vld [vmem:[#allocation78_spill] sm:$0xff]  ;;  %v19512_v8 = vld [vmem:[#allocation28_spill] sm:$0xff] }
 0x4c2   : > { %v8952_v9 = vcombine.low %v17955_v23, %v8951_v22  ;;  %v7800_v35 = vrot.slane %v17615_v60, 7  ;;  %v19511_v11 = vld [vmem:[#allocation50_spill] sm:$0xff]  ;;  %v7837_v30 = vcombine.high %v17744_v31, %v17744_v31  ;;  %v9127_v14 = vcombine.low %v17856_v40, %v17873_v44  ;;  %11808 = vrot.lane.b32.xlu1 %v11807_v25, %s12065_s22  ;;  %v19514_v22 = vld [vmem:[#allocation9_spill] sm:$0xff] }
 0x4c3   : > { %v17974_v32 = vrot.slane %v19507_v29, %v12188_v5  ;;  %10920 = vmatmul.mubr.msk.bf16.gmra.mxu1 %vm6813_vm4, %v9340_v21  ;;  %v17983_v55 = vrot.slane %v19509_v10, %v12188_v5  ;;  %v8953_v48 = vcombine.low %v19511_v11, %v19510_v53  ;;  %v9128_v59 = vcombine.low %v17885_v27, %v8290_v46 }
 0x4c4   : > { %10923 = vmatprep.mubr.msk.bf16.mxu1 %vm12064_vm1, %v19280_v37  ;;  %v11812_v24 = vpack.i.bf16 %v8952_v9, %v8943_v13  ;;  %v17999_v39 = vrot.slane %v7973_v0, %v12188_v5  ;;  %v19513_v37 = vcombine.low %v19512_v8, %v17166_v41  ;;  %v10466_v61 = vcombine.high %v17143_v7, %v19514_v22 }
 0x4c5   : > { %v11827_v51 = vpack.i.bf16 %v9126_v54, %v9125_v17  ;;  %v8960_v40 = vrot.slane %v8953_v48, %v12188_v5  ;;  %v9238_v27 = vcombine.low %v17744_v31, %v7837_v30  ;;  %v11837_v44 = vpack.i.bf16 %v9128_v59, %v9127_v14  ;;  %11803 = vrot.lane.b32.xlu0 %v11802_v49, %s12065_s22  ;;  %v19519_v59 = vld [vmem:[#allocation61_spill] sm:$0xff] }
 0x4c6   : > { %v18005_v21 = vrot.slane %v19513_v37, %v12188_v5  ;;  %v7852_v46 = vrot.slane %v7837_v30, 7  ;;  %v8970_v25 = vrot.slane %v10466_v61, %v12188_v5  ;;  %v8972_v13 = vcombine.low %v17261_v19, %v17631_v50  ;;  %11818 = vrot.lane.b32.xlu1 %v11817_v6, %s12065_s22 }
 0x4c7   : > { %v18017_v41 = vcombine.high %v17621_v62, %v17621_v62  ;;  %v8961_v7 = vcombine.low %v17974_v32, %v8960_v40  ;;  %v18022_v54 = vcombine.low %v17983_v55, %v17999_v39  ;;  %v9245_v17 = vrot.slane %v9238_v27, %v12188_v5 }
 0x4c8   : > { %v7802_v29 = vrot.slane %v7800_v35, 2  ;;  %v8971_v49 = vcombine.low %v8970_v25, %v18005_v21  ;;  %v8979_v9 = vrot.slane %v8972_v13, %v12188_v5  ;;  %v19515_v50 = vrot.slane %v17601_v43, 9 }
 0x4c9   : > { %v19516_v10 = vrot.slane %v17635_v33, 7  ;;  %v9345_v53 = vpack.c.bf16 %v9245_v17, %v9245_v17  ;;  %v19517_v48 = vrot.slane %v17618_v28, 7  ;;  %11813 = vrot.lane.b32.xlu0 %v11812_v24, %s12065_s22  ;;  %v7812_v37 = vrot.slane %v18017_v41, 7 }
 0x4ca   : > { %v18032_v38 = vsel %vm12389_vm6, %v19515_v50, %v7800_v35  ;;  %v7809_v35 = vrot.slane %v17621_v62, 7  ;;  %v8980_v8 = vcombine.low %v8979_v9, %v19519_v59  ;;  %v19520_v61 = vrot.slane %v17734_v63, 7  ;;  %11828 = vrot.lane.b32.xlu1 %v11827_v51, %s12065_s22 }
 0x4cb   : > { %v7808_v0 = vrot.slane %v19516_v10, 2  ;;  %v18040_v30 = vsel %vm12389_vm6, %v7802_v29, %v19517_v48  ;;  %v19518_v6 = vmov %v19516_v10  ;;  %v19521_v40 = vrot.slane %v17624_v45, 9  ;;  %10924 = vmatmul.mubr.msk.bf16.gmra.mxu1 %vm6813_vm4, %v9345_v53  ;;  %v19524_v29 = vld [vmem:[#allocation98_spill] sm:$0xff] }
 0x4cc   : > { %v18047_v14 = vsel %vm12389_vm6, %v17649_v20, %v19518_v6  ;;  %v19522_v25 = vrot.slane %v17737_v57, 7  ;;  %v7811_v13 = vrot.slane %v7809_v35, 2  ;;  %v19523_v17 = vrot.slane %v17754_v15, 7 }
 0x4cd   : > { %v7841_v27 = vsel %vm12389_vm6, %v19521_v40, %v19520_v61  ;;  %v18067_v24 = vsel %vm12389_vm6, %v7808_v0, %v7809_v35  ;;  %v9129_v50 = vcombine.low %v18032_v38, %v18040_v30  ;;  %v11832_v10 = vpack.i.bf16 %v8980_v8, %v8971_v49  ;;  %v19525_v35 = vld [vmem:[#allocation56_spill] sm:$0xff]  ;;  %v19526_v61 = vld [vmem:[#allocation57_spill] sm:$0xff] }
 0x4ce   : > { %v7844_v20 = vsel %vm12389_vm6, %v17769_v26, %v19522_v25  ;;  %v7847_v9 = vsel %vm12389_vm6, %v19524_v29, %v19523_v17  ;;  %v11822_v26 = vpack.i.bf16 %v18022_v54, %v8961_v7  ;;  %v9130_v53 = vcombine.low %v18047_v14, %v18067_v24  ;;  %v19530_v17 = vld [vmem:[#allocation72_spill] sm:$0xff]  ;;  %v19531_v29 = vld [vmem:[#allocation75_spill] sm:$0xff]  ;;  %11838 = vrot.lane.b32.xlu1 %v11837_v44, %s12065_s22 }
 0x4cf   : > { %v9147_v0 = vcombine.low %v7844_v20, %v7847_v9  ;;  %v18082_v48 = vsel %vm12389_vm6, %v7811_v13, %v7812_v37  ;;  %v9137_v6 = vrot.slane %v9129_v50, %v12188_v5  ;;  %v19527_v40 = vcombine.low %v19525_v35, %v19526_v61  ;;  %v19528_v37 = vld [vmem:[#allocation100_spill] sm:$0xff]  ;;  %v19529_v20 = vld [vmem:[#allocation73_spill] sm:$0xff] }
 0x4d0   : > { %v10467_v51 = vcombine.high %v19526_v61, %v17412_v16  ;;  %11823 = vrot.lane.b32.xlu0 %v11822_v26, %s12065_s22  ;;  %v9144_v7 = vrot.slane %v9130_v53, %v12188_v5  ;;  %v9146_v49 = vcombine.low %v18082_v48, %v7841_v27  ;;  %v8990_v13 = vcombine.low %v19529_v20, %v19528_v37 }
 0x4d1   : > { %v18089_v25 = vrot.slane %v19527_v40, %v12188_v5  ;;  %v9161_v8 = vrot.slane %v9147_v0, %v12188_v5  ;;  %v19532_v9 = vcombine.low %v19530_v17, %v19531_v29  ;;  %v19533_v61 = vrot.slane %v17754_v15, 7 }
 0x4d2   : > { %v8988_v35 = vrot.slane %v10467_v51, %v12188_v5  ;;  %v7853_v27 = vsel %vm12389_vm6, %v17901_v56, %v7852_v46  ;;  %v9145_v53 = vcombine.low %v9137_v6, %v9144_v7  ;;  %v9154_v0 = vrot.slane %v9146_v49, %v12188_v5 }
 0x4d3   : > { %v18103_v50 = vrot.slane %v19532_v9, %v12188_v5  ;;  %v7848_v26 = vrot.slane %v19533_v61, 2  ;;  %v8997_v40 = vrot.slane %v8990_v13, %v12188_v5  ;;  %v9017_v37 = vcombine.low %v17621_v62, %v18017_v41  ;;  %v19538_v13 = vld [vmem:[#allocation21_spill] sm:$0xff]  ;;  %v19540_v9 = vld [vmem:[#allocation24_spill] sm:$0xff] }
 0x4d4   : > { %v8989_v17 = vcombine.low %v18089_v25, %v8988_v35  ;;  %v19534_v51 = vrot.slane %v17744_v31, 7  ;;  %v19535_v56 = vcombine.low %v17470_v18, %v17483_v3  ;;  %v8058_v46 = vcombine.low %v17501_v1, %v17510_v42  ;;  %11833 = vrot.lane.b32.xlu0 %v11832_v10, %s12065_s22  ;;  %v19537_v1 = vld [vmem:[#allocation14_spill] sm:$0xff]  ;;  %v19541_v35 = vld [vmem:[#allocation13_spill] sm:$0xff] }
 0x4d5   : > { %v9162_v6 = vcombine.low %v9154_v0, %v9161_v8  ;;  %v8998_v41 = vcombine.low %v18103_v50, %v8997_v40  ;;  %v10468_v49 = vcombine.high %v17510_v42, %v17601_v43  ;;  %v19536_v3 = vcombine.low %v17618_v28, %v17635_v33 }
 0x4d6   : > { %v7850_v29 = vsel %vm12389_vm6, %v7848_v26, %v19534_v51  ;;  %v18125_v44 = vrot.slane %v19535_v56, %v12188_v5  ;;  %v18134_v4 = vrot.slane %v8058_v46, %v12188_v5  ;;  %v19539_v10 = vcombine.low %v19537_v1, %v19538_v13  ;;  %v19542_v51 = vld [vmem:[#allocation20_spill] sm:$0xff] }
 0x4d7   : > { %v9163_v7 = vcombine.low %v7850_v29, %v7853_v27  ;;  %v18140_v18 = vrot.slane %v19536_v3, %v12188_v5  ;;  %v7871_v61 = vcombine.low %v19541_v35, %v19540_v9  ;;  %v11847_v26 = vpack.i.bf16 %v9162_v6, %v9145_v53  ;;  %v11739_v29 = vpop.permute.xlu1 %11738 }
 0x4d8   : > { %v7869_v8 = vrot.slane %v19539_v10, %v12188_v5  ;;  %v11842_v27 = vpack.i.bf16 %v8998_v41, %v8989_v17  ;;  %v9008_v0 = vrot.slane %v10468_v49, %v12188_v5  ;;  %v9024_v40 = vrot.slane %v9017_v37, %v12188_v5  ;;  %v19543_v10 = vld [vmem:[#allocation12_spill] sm:$0xff] }
 0x4d9   : > { %v9170_v42 = vrot.slane %v9163_v7, %v12188_v5  ;;  %v7879_v33 = vrot.slane %v7871_v61, %v12188_v5  ;;  %v8331_v56 = vcombine.low %v19538_v13, %v19541_v35  ;;  %11848 = vrot.lane.b32.xlu1 %v11847_v26, %s12065_s22  ;;  %v18159_v53 = vcombine.low %v18125_v44, %v18134_v4 }
 0x4da   : > { %v7870_v28 = vcombine.low %v19542_v51, %v7869_v8  ;;  %11843 = vrot.lane.b32.xlu0 %v11842_v27, %s12065_s22  ;;  %v9016_v17 = vcombine.low %v9008_v0, %v18140_v18  ;;  %v11741_v46 = vunpack.i.h.bf16 %v11739_v29  ;;  %v11740_v37 = vunpack.i.l.bf16 %v11739_v29  ;;  %v11734_v27 = vpop.permute.xlu0 %11733 }
 0x4db   : > { %v7887_v6 = vcombine.low %v7879_v33, %v17913_v34  ;;  %v8345_v41 = vrot.slane %v8331_v56, %v12188_v5  ;;  %v10459_v7 = vcombine.high %v19541_v35, %v19540_v9  ;;  %v11857_v49 = vpack.i.bf16 %v9024_v40, %v9170_v42  ;;  %v19545_v40 = vld [vmem:[#allocation35_spill] sm:$0xff] }
 0x4dc   : > { %v11852_v3 = vpack.i.bf16 %v9016_v17, %v18159_v53  ;;  %v9259_v13 = vsel %vm6813_vm4, %v7870_v28, %v11740_v37  ;;  %v19544_v8 = vcombine.low %v19543_v10, %v19537_v1  ;;  %v11736_v35 = vunpack.i.h.bf16 %v11734_v27  ;;  %v11935_v56 = vld [vmem:[%s18804_s5 + $0xb8] sm:$0xff]   ;;  %v19546_v17 = vld [vmem:[#allocation41_spill] sm:$0xff]  ;;  %v19547_v37 = vld [vmem:[#allocation22_spill] sm:$0xff] }
 0x4dd   : > { %v9260_v26 = vsel %vm6813_vm4, %v7887_v6, %v11741_v46  ;;  %v8355_v34 = vrot.slane %v10459_v7, %v12188_v5  ;;  %11858 = vrot.lane.b32.xlu1 %v11857_v49, %s12065_s22  ;;  %v11735_v42 = vunpack.i.l.bf16 %v11734_v27  ;;  %v7938_v1 = vcombine.low %v19504_v12, %v17955_v23  ;;  %v19548_v7 = vld [vmem:[#allocation31_spill] sm:$0xff] }
 0x4de   : > { %v8338_v61 = vrot.slane %v19544_v8, %v12188_v5  ;;  %11853 = vrot.lane.b32.xlu0 %v11852_v3, %s12065_s22  ;;  %v9311_v9 = vpack.c.bf16 %v9260_v26, %v9259_v13  ;;  %v7939_v46 = vcombine.low %v19503_v2, %v19546_v17  ;;  %v7889_v6 = vcombine.low %v19494_v52, %v19547_v37  ;;  %v19549_v13 = vld [vmem:[#allocation99_spill] sm:$0xff]  ;;  %v19550_v8 = vld [vmem:[#allocation74_spill] sm:$0xff]  ;;  %v11941_v17 = vld [vmem:[%s18804_s5 + $0xa0] sm:$0xff]   ;;  %s378_s22 = scalar_lea.vmem [#allocation2], %s377_s29 }
 0x4df   : > { %v8363_v51 = vcombine.low %v8355_v34, %v19545_v40  ;;  %v7906_v49 = vcombine.low %v19499_v58, %v19548_v7  ;;  %v8023_v3 = vcombine.low %v19519_v59, %v18089_v25  ;;  %v8533_v10 = vcombine.low %v19549_v13, %v17548_v47  ;;  %v11937_v52 = vld [vmem:[%s18804_s5 + $0xb0] sm:$0xff]   ;;  %v11938_v26 = vld [vmem:[%s18804_s5 + $0xe8] sm:$0xff]   ;;  %v19582_v13 = vld [vmem:[#allocation8_spill] sm:$0xff]  ;;  %s10297_s25 = sshll.u32 %s378_s22, 4  ;;  %s10298_s25 = int_to_ptr.vmem [resolvable:$true] %s10297_s25 }
 0x4e0   : > { %v8346_v0 = vcombine.low %v8338_v61, %v8345_v41  ;;  %v11936_v41 = vld [vmem:[%s18804_s5 + $0xf0] sm:$0xff]   ;;  %v8041_v2 = vcombine.low %v19529_v20, %v19550_v8  ;;  %v18203_v61 = vrot.slane %v7939_v46, %v12188_v5  ;;  %v18206_v58 = vrot.slane %v7889_v6, %v12188_v5  ;;  %v11939_v40 = vld [vmem:[%s18804_s5 + $0xa8] sm:$0xff]   ;;  %s11991_s30 = scalar_lea.vmem %s10298_s25, 16  ;;  %p11998_p0 = scmp.lt.s32.totalorder %s10298_s25, %s11996_s12 }
 0x4e1   : > { %v9273_v33 = vsel %vm6813_vm4, %v8363_v51, %v11736_v35  ;;  %v18215_v20 = vrot.slane %v7906_v49, %v12188_v5  ;;  %v19551_v34 = vld [vmem:[#allocation43_spill] sm:$0xff]  ;;  %v19554_v49 = vld [vmem:[#allocation34_spill] sm:$0xff]  ;;  %vm9950_vm6 = vcmask 1043456   ;;  %p11992_p11 = scmp.ne.s32.totalorder %s10298_s25, %s11991_s30  ;;  %p11999_p1 = scmp.lt.s32.totalorder %s11997_s0, %s11991_s30 }
 0x4e2   : > { %v9272_v28 = vsel %vm6813_vm4, %v8346_v0, %v11735_v42  ;;  %v18212_v27 = vrot.slane %v8041_v2, %v12188_v5  ;;  %v9064_v0 = vcombine.low %v18206_v58, %v17925_v36  ;;  %v19555_v8 = vld [vmem:[#allocation51_spill] sm:$0xff] }
 0x4e3   : > { %v9312_v29 = vpack.c.bf16 %v9273_v33, %v9272_v28  ;;  %v9065_v51 = vcombine.low %v18215_v20, %v19504_v12  ;;  %v9066_v28 = vcombine.low %v17955_v23, %v18203_v61  ;;  %v11940_v33 = vld [vmem:[%s18804_s5 + $0xe0] sm:$0xff]   ;;  %v8397_v2 = vcombine.low %v19555_v8, %v19554_v49  ;;  %p11993_p12 = pnand %p11992_p11, %p12168_p5  ;;  %p12000_p2 = por %p11999_p1, %p11998_p0 }
 0x4e4   : > { %v8057_v42 = vcombine.low %v18212_v27, %v18125_v44 }
 0x4e5   : > { %9694 = vmatprep.mubr.bf16.mxu0 %v9312_v29  ;;  %p11994_p13 = pneg %p11993_p12 }
 0x4e6   : > { %9695 = vmatmul.mubr.bf16.vlgmr.msra.gmra.mxu0 %v9311_v9  ;;  %v19552_v9 = vld [vmem:[#allocation19_spill] sm:$0xff] }
 0x4e7   : > { %10705 = vmatpush3.bf16.msra.mxu0 %v11935_v56  ;;  %v8364_v35 = vcombine.low %v19552_v9, %v19551_v34  ;;  %v11744_v56 = vpop.permute.xlu0 %11743  ;;  %v19556_v9 = vld [vmem:[#allocation17_spill] sm:$0xff]  ;;  %p12001_p3 = pnand %p12000_p2, %p11994_p13 }
 0x4e8   : > { %10706 = vmatprep.subr.bf16.mxu0 %v11936_v41  ;;  %v11749_v46 = vpop.permute.xlu1 %11748  ;;  %v11746_v37 = vunpack.i.h.bf16 %v11744_v56  ;;  %v11745_v6 = vunpack.i.l.bf16 %v11744_v56  ;;  %v19553_v41 = vld [vmem:[#allocation46_spill] sm:$0xff] }
 0x4e9   : > { %v8372_v29 = vrot.slane %v8364_v35, %v12188_v5  ;;  %v11750_v34 = vunpack.i.l.bf16 %v11749_v46  ;;  %v7904_v35 = vcombine.low %v19556_v9, %v18206_v58  ;;  %v11944_v9 = vld [vmem:[%s18804_s5 + $0xd0] sm:$0xff]  }
 0x4ea   : > { %v19588_v58 = vld [vmem:[#allocation102_spill] sm:$0xff] }
 0x4eb   : > { %10707 = vmatpush3.bf16.msra.mxu0 %v11937_v52  ;;  %v8380_v7 = vcombine.low %v8372_v29, %v19553_v41  ;;  %v11942_v52 = vld [vmem:[%s18804_s5 + $0xd8] sm:$0xff]   ;;  %v9275_v29 = vsel %vm6813_vm4, %v8397_v2, %v11746_v37  ;;  %v9261_v49 = vsel %vm6813_vm4, %v7904_v35, %v11750_v34  ;;  %v19560_v34 = vld [vmem:[#allocation105_spill] sm:$0xff] }
 0x4ec   : > { %10708 = vmatprep.subr.bf16.mxu0 %v11938_v26  ;;  %v11751_v26 = vunpack.i.h.bf16 %v11749_v46  ;;  %v11943_v46 = vld [vmem:[%s18804_s5 + $0x98] sm:$0xff]   ;;  %v11946_v35 = vld [vmem:[%s18804_s5 + $0xc8] sm:$0xff]  }
 0x4ed   : > { %v9274_v56 = vsel %vm6813_vm4, %v8380_v7, %v11745_v6  ;;  %v19557_v6 = vld [vmem:[#allocation101_spill] sm:$0xff]  ;;  %v19558_v7 = vld [vmem:[#allocation107_spill] sm:$0xff] }
 0x4ee   : > { %v9317_v41 = vpack.c.bf16 %v9275_v29, %v9274_v56  ;;  %v8853_v2 = vcombine.low %v19558_v7, %v19557_v6  ;;  %v19561_v29 = vcombine.low %v17621_v62, %v17624_v45  ;;  %v8888_v62 = vcombine.low %v18040_v30, %v18047_v14  ;;  %v11948_v45 = vld [vmem:[%s18804_s5 + $0xc0] sm:$0xff]  }
 0x4ef   : > { %10709 = vmatpush3.bf16.msra.mxu0 %v11939_v40  ;;  %v7921_v40 = vcombine.low %v17925_v36, %v18215_v20  ;;  %v11949_v30 = vld [vmem:[%s18804_s5 + $0x80] sm:$0xff]  }
 0x4f0   : > { %10710 = vmatprep.subr.bf16.mxu0 %v11940_v33  ;;  %9702 = vmatprep.mubr.bf16.mxu0 %v9317_v41  ;;  %v18279_v41 = vrot.slane %v19561_v29, %v12188_v5  ;;  %v18305_v7 = vrot.slane %v8888_v62, %v12188_v5  ;;  %v19566_v62 = vld [vmem:[#allocation69_spill] sm:$0xff]  ;;  %v19568_v14 = vld [vmem:[#allocation52_spill] sm:$0xff] }
 0x4f1   : > { %v9262_v33 = vsel %vm6813_vm4, %v7921_v40, %v11751_v26  ;;  %v19559_v26 = vld [vmem:[#allocation108_spill] sm:$0xff]  ;;  %v18270_v40 = vrot.slane %v8853_v2, %v12188_v5 }
 0x4f2   : > { %v9316_v8 = vpack.c.bf16 %v9262_v33, %v9261_v49  ;;  %v19562_v49 = vcombine.low %v17734_v63, %v17737_v57 }
 0x4f3   : > { %10711 = vmatpush3.bf16.msra.mxu0 %v11941_v17  ;;  %v11945_v17 = vld [vmem:[%s18804_s5 + $0x90] sm:$0xff]  }
 0x4f4   : > { %10712 = vmatprep.subr.bf16.mxu0 %v11942_v52  ;;  %9703 = vmatmul.mubr.bf16.gmra.mxu0 %v9316_v8  ;;  %v8854_v52 = vcombine.low %v19560_v34, %v19559_v26  ;;  %v18285_v33 = vrot.slane %v19562_v49, %v12188_v5 }
 0x4f6   : > { %v18273_v56 = vrot.slane %v8854_v52, %v12188_v5  ;;  %v9097_v63 = vcombine.low %v18279_v41, %v18285_v33  ;;  %v19564_v52 = vld [vmem:[#allocation55_spill] sm:$0xff]  ;;  %v19619_v33 = vld [vmem:[#allocation94_spill] sm:$0xff] }
 0x4f7   : > { %10713 = vmatpush3.bf16.msra.mxu0 %v11943_v46  ;;  %v11947_v46 = vld [vmem:[%s18804_s5 + $0x88] sm:$0xff]  }
 0x4f8   : > { %10714 = vmatprep.subr.bf16.mxu0 %v11944_v9  ;;  %v8869_v8 = vcombine.low %v18270_v40, %v18273_v56  ;;  %v19563_v9 = vld [vmem:[#allocation16_spill] sm:$0xff]  ;;  %v11754_v2 = vpop.permute.xlu0 %11753  ;;  %v19615_v40 = vld [vmem:[#allocation95_spill] sm:$0xff] }
 0x4f9   : > { %v8887_v6 = vcombine.low %v19563_v9, %v18032_v38  ;;  %v11756_v26 = vunpack.i.h.bf16 %v11754_v2  ;;  %v11755_v34 = vunpack.i.l.bf16 %v11754_v2  ;;  %v19616_v56 = vld [vmem:[#allocation92_spill] sm:$0xff] }
 0x4fb   : > { %10715 = vmatpush3.bf16.msra.mxu0 %v11945_v17  ;;  %v18302_v57 = vrot.slane %v8887_v6, %v12188_v5  ;;  %v11759_v17 = vpop.permute.xlu1 %11758  ;;  %v9277_v38 = vsel %vm6813_vm4, %v19566_v62, %v11756_v26  ;;  %v19569_v26 = vld [vmem:[#allocation7_spill] sm:$0xff] }
 0x4fc   : > { %10716 = vmatprep.subr.bf16.mxu0 %v11946_v35  ;;  %v19565_v35 = vld [vmem:[#allocation45_spill] sm:$0xff]  ;;  %v11761_v49 = vunpack.i.h.bf16 %v11759_v17  ;;  %v11760_v9 = vunpack.i.l.bf16 %v11759_v17 }
 0x4fd   : > { %v8414_v29 = vcombine.low %v19565_v35, %v19564_v52  ;;  %v19567_v17 = vld [vmem:[#allocation37_spill] sm:$0xff] }
 0x4fe   : > { %v7974_v35 = vcombine.low %v19514_v22, %v19567_v17 }
 0x4ff   : > { %10717 = vmatpush3.bf16.msra.mxu0 %v11947_v46  ;;  %v7955_v46 = vcombine.low %v18203_v61, %v17974_v32  ;;  %v9276_v6 = vsel %vm6813_vm4, %v8414_v29, %v11755_v34  ;;  %v7956_v34 = vcombine.low %v19511_v11, %v19568_v14 }
 0x500   : > { %10718 = vmatprep.subr.bf16.mxu0 %v11948_v45  ;;  %v9322_v37 = vpack.c.bf16 %v9277_v38, %v9276_v6  ;;  %v9263_v45 = vsel %vm6813_vm4, %v7938_v1, %v11760_v9  ;;  %v18333_v6 = vrot.slane %v7974_v35, %v12188_v5  ;;  %v19571_v9 = vld [vmem:[#allocation70_spill] sm:$0xff] }
 0x501   : > { %v9264_v2 = vsel %vm6813_vm4, %v7955_v46, %v11761_v49  ;;  %v19572_v49 = vld [vmem:[#allocation76_spill] sm:$0xff] }
 0x502   : > { %v9321_v52 = vpack.c.bf16 %v9264_v2, %v9263_v45  ;;  %9710 = vmatprep.mubr.bf16.mxu0 %v9322_v37  ;;  %v8465_v46 = vcombine.low %v19572_v49, %v19571_v9  ;;  %v18338_v37 = vrot.slane %v7956_v34, %v12188_v5  ;;  %v7989_v35 = vcombine.low %v17999_v39, %v18333_v6  ;;  %v19575_v9 = vld [vmem:[#allocation77_spill] sm:$0xff] }
 0x503   : > { %10719 = vmatpush3.bf16.msra.mxu0 %v11949_v30  ;;  %v19570_v30 = vld [vmem:[#allocation58_spill] sm:$0xff] }
 0x504   : > { %9711 = vmatmul.mubr.bf16.gmra.mxu0 %v9321_v52  ;;  %v8448_v38 = vcombine.low %v19570_v30, %v19569_v26  ;;  %v7972_v14 = vcombine.low %v18338_v37, %v17983_v55  ;;  %v19573_v30 = vld [vmem:[#allocation54_spill] sm:$0xff] }
 0x509   : > { %v11764_v29 = vpop.permute.xlu0 %11763 }
 0x50a   : > { %v11766_v62 = vunpack.i.h.bf16 %v11764_v29  ;;  %v11765_v1 = vunpack.i.l.bf16 %v11764_v29 }
 0x50c   : > { %v9278_v22 = vsel %vm6813_vm4, %v8448_v38, %v11765_v1  ;;  %v9279_v11 = vsel %vm6813_vm4, %v8465_v46, %v11766_v62  ;;  %v7991_v38 = vcombine.low %v17261_v19, %v19573_v30  ;;  %v19574_v1 = vld [vmem:[#allocation87_spill] sm:$0xff] }
 0x50d   : > { %v11769_v45 = vpop.permute.xlu1 %11768  ;;  %v9327_v17 = vpack.c.bf16 %v9279_v11, %v9278_v22  ;;  %v8482_v55 = vcombine.low %v19575_v9, %v19574_v1  ;;  %v19577_v22 = vld [vmem:[#allocation62_spill] sm:$0xff] }
 0x50e   : > { %v11771_v2 = vunpack.i.h.bf16 %v11769_v45  ;;  %v11770_v52 = vunpack.i.l.bf16 %v11769_v45  ;;  %v19576_v45 = vld [vmem:[#allocation88_spill] sm:$0xff]  ;;  %v18355_v39 = vrot.slane %v7991_v38, %v12188_v5 }
 0x50f   : > { %9718 = vmatprep.mubr.bf16.mxu0 %v9327_v17  ;;  %v8499_v11 = vcombine.low %v19577_v22, %v19576_v45 }
 0x510   : > { %v9265_v29 = vsel %vm6813_vm4, %v7972_v14, %v11770_v52  ;;  %v9266_v34 = vsel %vm6813_vm4, %v7989_v35, %v11771_v2 }
 0x511   : > { %v9326_v26 = vpack.c.bf16 %v9266_v34, %v9265_v29  ;;  %v8006_v29 = vcombine.low %v18005_v21, %v18355_v39 }
 0x513   : > { %9719 = vmatmul.mubr.bf16.gmra.mxu0 %v9326_v26 }
 0x518   : > { %v11774_v62 = vpop.permute.xlu0 %11773 }
 0x519   : > { %v11776_v49 = vunpack.i.h.bf16 %v11774_v62  ;;  %v11775_v46 = vunpack.i.l.bf16 %v11774_v62  ;;  %v19578_v62 = vld [vmem:[#allocation71_spill] sm:$0xff] }
 0x51a   : > { %v8024_v1 = vcombine.low %v17412_v16, %v19578_v62 }
 0x51b   : > { %v9280_v14 = vsel %vm6813_vm4, %v8482_v55, %v11775_v46  ;;  %v9281_v2 = vsel %vm6813_vm4, %v8499_v11, %v11776_v49 }
 0x51c   : > { %v9332_v17 = vpack.c.bf16 %v9281_v2, %v9280_v14  ;;  %v18373_v46 = vrot.slane %v8024_v1, %v12188_v5 }
 0x51d   : > { %v11779_v52 = vpop.permute.xlu1 %11778 }
 0x51e   : > { %v11781_v35 = vunpack.i.h.bf16 %v11779_v52  ;;  %v11780_v19 = vunpack.i.l.bf16 %v11779_v52  ;;  %9726 = vmatprep.mubr.bf16.mxu0 %v9332_v17  ;;  %v19579_v17 = vld [vmem:[#allocation97_spill] sm:$0xff] }
 0x520   : > { %v9267_v34 = vsel %vm6813_vm4, %v8006_v29, %v11780_v19  ;;  %v9268_v26 = vsel %vm6813_vm4, %v8023_v3, %v11781_v35  ;;  %v8040_v3 = vcombine.low %v18373_v46, %v18103_v50 }
 0x521   : > { %v9331_v30 = vpack.c.bf16 %v9268_v26, %v9267_v34  ;;  %v18366_v38 = vpop.f32.mrf.mxu1 }
 0x523   : > { %9727 = vmatmul.mubr.bf16.gmra.mxu0 %v9331_v30  ;;  %v10901_v9 = vpop.f32.mrf.mxu1 }
 0x525   : > { %v18370_v55 = vpop.f32.mrf.mxu1 }
 0x527   : > { %v10902_v11 = vpop.f32.mrf.mxu1 }
 0x52b   : > { %v11784_v49 = vpop.permute.xlu0 %11783 }
 0x52c   : > { %v11786_v45 = vunpack.i.h.bf16 %v11784_v49  ;;  %v11785_v22 = vunpack.i.l.bf16 %v11784_v49  ;;  %v11789_v14 = vpop.permute.xlu1 %11788  ;;  %v19580_v49 = vld [vmem:[#allocation18_spill] sm:$0xff] }
 0x52d   : > { %v11791_v2 = vunpack.i.h.bf16 %v11789_v14  ;;  %v11790_v52 = vunpack.i.l.bf16 %v11789_v14 }
 0x52e   : > { %v9282_v35 = vsel %vm6813_vm4, %v19579_v17, %v11785_v22  ;;  %v9283_v16 = vsel %vm6813_vm4, %v8533_v10, %v11786_v45  ;;  %v19581_v22 = vld [vmem:[#allocation36_spill] sm:$0xff] }
 0x52f   : > { %v9337_v19 = vpack.c.bf16 %v9283_v16, %v9282_v35  ;;  %v9269_v29 = vsel %vm6813_vm4, %v8040_v3, %v11790_v52  ;;  %v9270_v34 = vsel %vm6813_vm4, %v8057_v42, %v11791_v2  ;;  %v8701_v47 = vcombine.low %v19581_v22, %v19580_v49  ;;  %v19583_v10 = vld [vmem:[#allocation40_spill] sm:$0xff]  ;;  %v19584_v2 = vld [vmem:[#allocation10_spill] sm:$0xff]  ;;  %v19585_v52 = vld [vmem:[#allocation33_spill] sm:$0xff] }
 0x530   : > { %v11799_v26 = vpop.permute.xlu1 %11798  ;;  %v9336_v30 = vpack.c.bf16 %v9270_v34, %v9269_v29  ;;  %v8718_v45 = vcombine.low %v19583_v10, %v19582_v13  ;;  %v8700_v17 = vcombine.low %v19585_v52, %v19584_v2  ;;  %v19586_v35 = vld [vmem:[#allocation6_spill] sm:$0xff]  ;;  %v19587_v16 = vld [vmem:[#allocation25_spill] sm:$0xff]  ;;  %v9067_v34 = vcombine.low %v17974_v32, %v18338_v37  ;;  %v19589_v22 = vld [vmem:[#allocation47_spill] sm:$0xff] }
 0x531   : > { %9734 = vmatprep.mubr.bf16.mxu0 %v9337_v19  ;;  %v11801_v62 = vunpack.i.h.bf16 %v11799_v26  ;;  %v11800_v1 = vunpack.i.l.bf16 %v11799_v26  ;;  %v8717_v19 = vcombine.low %v19587_v16, %v19586_v35  ;;  %v19591_v10 = vld [vmem:[#allocation59_spill] sm:$0xff]  ;;  %v19595_v2 = vld [vmem:[#allocation66_spill] sm:$0xff]  ;;  %v19596_v52 = vld [vmem:[#allocation65_spill] sm:$0xff] }
 0x532   : > { %9735 = vmatmul.mubr.bf16.gmra.mxu0 %v9336_v30  ;;  %v8715_v30 = vrot.slane %v8701_v47, %v12188_v5  ;;  %v8752_v35 = vcombine.low %v19596_v52, %v19595_v2 }
 0x533   : > { %v11794_v9 = vpop.permute.xlu0 %11793  ;;  %v9298_v44 = vsel %vm6813_vm4, %v9064_v0, %v11800_v1  ;;  %v9299_v42 = vsel %vm6813_vm4, %v9065_v51, %v11801_v62  ;;  %v8732_v62 = vrot.slane %v8718_v45, %v12188_v5  ;;  %v8708_v45 = vrot.slane %v8700_v17, %v12188_v5  ;;  %v19600_v17 = vld [vmem:[#allocation68_spill] sm:$0xff] }
 0x534   : > { %v11796_v11 = vunpack.i.h.bf16 %v11794_v9  ;;  %v11795_v14 = vunpack.i.l.bf16 %v11794_v9  ;;  %v11809_v3 = vpop.permute.xlu1 %11808  ;;  %v9314_v29 = vpack.c.bf16 %v9299_v42, %v9298_v44  ;;  %v19593_v44 = vld [vmem:[#allocation63_spill] sm:$0xff]  ;;  %v19594_v42 = vld [vmem:[#allocation60_spill] sm:$0xff] }
 0x535   : > { %v11811_v26 = vunpack.i.h.bf16 %v11809_v3  ;;  %v11810_v36 = vunpack.i.l.bf16 %v11809_v3  ;;  %v8751_v3 = vcombine.low %v19594_v42, %v19593_v44  ;;  %v8716_v16 = vcombine.low %v8708_v45, %v8715_v30 }
 0x536   : > { %v9284_v0 = vsel %vm6813_vm4, %v19588_v58, %v11795_v14  ;;  %v9271_v12 = vsel %vm6813_vm4, %v18134_v4, %v11796_v11  ;;  %v19590_v4 = vld [vmem:[#allocation42_spill] sm:$0xff]  ;;  %v19592_v11 = vld [vmem:[#allocation48_spill] sm:$0xff]  ;;  %v8725_v14 = vrot.slane %v8717_v19, %v12188_v5 }
 0x537   : > { %v11804_v20 = vpop.permute.xlu0 %11803  ;;  %v9342_v51 = vpack.c.bf16 %v9284_v0, %v9284_v0  ;;  %v9300_v1 = vsel %vm6813_vm4, %v9066_v28, %v11810_v36  ;;  %v9301_v32 = vsel %vm6813_vm4, %v9067_v34, %v11811_v26  ;;  %v9341_v9 = vpack.c.bf16 %v9271_v12, %v9271_v12  ;;  %v19597_v26 = vld [vmem:[#allocation64_spill] sm:$0xff]  ;;  %v19598_v36 = vld [vmem:[#allocation67_spill] sm:$0xff] }
 0x538   : > { %v18417_v37 = vpop.permute.xlu1 %11818  ;;  %v9319_v49 = vpack.c.bf16 %v9301_v32, %v9300_v1  ;;  %v8734_v13 = vcombine.low %v19590_v4, %v19589_v22  ;;  %v8735_v47 = vcombine.low %v19592_v11, %v19591_v10  ;;  %v11806_v23 = vunpack.i.h.bf16 %v11804_v20  ;;  %v19599_v0 = vld [vmem:[#allocation84_spill] sm:$0xff]  ;;  %v19601_v10 = vld [vmem:[#allocation82_spill] sm:$0xff]  ;;  %v19602_v11 = vld [vmem:[#allocation79_spill] sm:$0xff] }
 0x539   : > { %9742 = vmatprep.mubr.bf16.mxu0 %v9342_v51  ;;  %v11805_v61 = vunpack.i.l.bf16 %v11804_v20  ;;  %v8733_v34 = vcombine.low %v8725_v14, %v8732_v62  ;;  %v8768_v58 = vcombine.low %v19598_v36, %v19597_v26  ;;  %v8769_v12 = vcombine.low %v19600_v17, %v19599_v0  ;;  %v19605_v14 = vld [vmem:[#allocation81_spill] sm:$0xff] }
 0x53a   : > { %9743 = vmatmul.mubr.bf16.gmra.mxu0 %v9341_v9  ;;  %v8742_v20 = vrot.slane %v8734_v13, %v12188_v5  ;;  %v8749_v51 = vrot.slane %v8735_v47, %v12188_v5  ;;  %v9069_v1 = vcombine.low %v18355_v39, %v19519_v59  ;;  %v9070_v32 = vcombine.low %v18089_v25, %v18373_v46  ;;  %v19603_v59 = vld [vmem:[#allocation103_spill] sm:$0xff]  ;;  %v19604_v39 = vld [vmem:[#allocation96_spill] sm:$0xff] }
 0x53b   : > { %v11814_v28 = vpop.permute.xlu0 %11813  ;;  %9782 = vmatprep.mubr.bf16.mxu0 %v9314_v29  ;;  %v9286_v30 = vsel %vm6813_vm4, %v8733_v34, %v11806_v23  ;;  %v9285_v29 = vsel %vm6813_vm4, %v8716_v16, %v11805_v61  ;;  %v8759_v4 = vrot.slane %v8751_v3, %v12188_v5  ;;  %v8766_v13 = vrot.slane %v8752_v35, %v12188_v5  ;;  %v19606_v23 = vld [vmem:[#allocation80_spill] sm:$0xff]  ;;  %v19607_v16 = vld [vmem:[#allocation93_spill] sm:$0xff]  ;;  %v19608_v34 = vld [vmem:[#allocation90_spill] sm:$0xff] }
 0x53c   : > { %v11829_v19 = vpop.permute.xlu1 %11828  ;;  %v8785_v47 = vcombine.low %v19602_v11, %v19601_v10  ;;  %v18447_v45 = vpop.f32.mrf.mxu1  ;;  %v8837_v25 = vcombine.low %v19604_v39, %v19603_v59  ;;  %v18452_v46 = vrot.slane %v8769_v12, %v12188_v5  ;;  %v8786_v61 = vcombine.low %v19606_v23, %v19605_v14  ;;  %v19611_v11 = vld [vmem:[#allocation110_spill] sm:$0xff] }
 0x53d   : > { %v11831_v62 = vunpack.i.h.bf16 %v11829_v19  ;;  %v11830_v9 = vunpack.i.l.bf16 %v11829_v19  ;;  %v9313_v3 = vpack.c.bf16 %v9286_v30, %v9285_v29  ;;  %v8836_v26 = vcombine.low %v19608_v34, %v19607_v16 }
 0x53e   : > { %v10905_v35 = vpop.f32.mrf.mxu1  ;;  %v9072_v36 = vcombine.low %v17601_v43, %v17615_v60  ;;  %v11821_v0 = vunpack.i.h.bf16 %v18417_v37  ;;  %v11820_v17 = vunpack.i.l.bf16 %v18417_v37  ;;  %v11816_v12 = vunpack.i.h.bf16 %v11814_v28  ;;  %v19612_v43 = vld [vmem:[#allocation104_spill] sm:$0xff] }
 0x53f   : > { %v18457_v44 = vsel %vm6813_vm4, %v9069_v1, %v11830_v9  ;;  %v18460_v42 = vsel %vm6813_vm4, %v9070_v32, %v11831_v62  ;;  %v11815_v19 = vunpack.i.l.bf16 %v11814_v28  ;;  %v8776_v32 = vrot.slane %v8768_v58, %v12188_v5  ;;  %v19609_v62 = vld [vmem:[#allocation109_spill] sm:$0xff]  ;;  %v19610_v9 = vld [vmem:[#allocation106_spill] sm:$0xff] }
 0x540   : > { %v18462_v2 = vpop.permute.xlu1 %11838  ;;  %v9329_v52 = vpack.c.bf16 %v18460_v42, %v18457_v44  ;;  %v18475_v30 = vpop.f32.mrf.mxu1  ;;  %v8851_v29 = vrot.slane %v8837_v25, %v12188_v5  ;;  %v8870_v10 = vcombine.low %v19610_v9, %v19609_v62  ;;  %v8871_v60 = vcombine.low %v19612_v43, %v19611_v11  ;;  %v19614_v9 = vld [vmem:[#allocation86_spill] sm:$0xff] }
 0x541   : > { %v8750_v59 = vcombine.low %v8742_v20, %v8749_v51  ;;  %v8767_v37 = vcombine.low %v8759_v4, %v8766_v13  ;;  %v9068_v28 = vcombine.low %v18333_v6, %v18005_v21  ;;  %v8793_v39 = vrot.slane %v8785_v47, %v12188_v5 }
 0x542   : > { %v18441_v22 = vpop.permute.xlu0 %11823  ;;  %9783 = vmatmul.mubr.bf16.vlgmr.msra.gmra.mxu0 %v9313_v3  ;;  %v8784_v58 = vcombine.low %v8776_v32, %v18452_v46  ;;  %v8800_v14 = vrot.slane %v8786_v61, %v12188_v5  ;;  %v10906_v23 = vpop.f32.mrf.mxu1  ;;  %v8844_v25 = vrot.slane %v8836_v26, %v12188_v5  ;;  %v9079_v3 = vrot.slane %v9072_v36, %v12188_v5 }
 0x543   : > { %9790 = vmatprep.mubr.bf16.mxu0 %v9319_v49  ;;  %v9287_v35 = vsel %vm6813_vm4, %v8750_v59, %v11815_v19  ;;  %v9288_v49 = vsel %vm6813_vm4, %v8767_v37, %v11816_v12  ;;  %v9302_v20 = vsel %vm6813_vm4, %v18022_v54, %v11820_v17  ;;  %v9303_v21 = vsel %vm6813_vm4, %v9068_v28, %v11821_v0  ;;  %v19617_v28 = vld [vmem:[#allocation85_spill] sm:$0xff]  ;;  %v19618_v23 = vld [vmem:[#allocation83_spill] sm:$0xff] }
 0x544   : > { %v8852_v4 = vcombine.low %v8844_v25, %v8851_v29  ;;  %v9080_v13 = vcombine.low %v9079_v3, %v18140_v18  ;;  %v8878_v47 = vrot.slane %v8870_v10, %v12188_v5  ;;  %v8885_v46 = vrot.slane %v8871_v60, %v12188_v5 }
 0x545   : > { %v11826_v36 = vunpack.i.h.bf16 %v18441_v22  ;;  %v11825_v12 = vunpack.i.l.bf16 %v18441_v22  ;;  %v9318_v54 = vpack.c.bf16 %v9288_v49, %v9287_v35  ;;  %v9324_v17 = vpack.c.bf16 %v9303_v21, %v9302_v20  ;;  %v19613_v22 = vld [vmem:[#allocation89_spill] sm:$0xff] }
 0x546   : > { %v18472_v1 = vpop.permute.xlu0 %11833  ;;  %v8801_v62 = vcombine.low %v8793_v39, %v8800_v14  ;;  %v8803_v10 = vcombine.low %v19614_v9, %v19613_v22  ;;  %v8886_v37 = vcombine.low %v8878_v47, %v8885_v46  ;;  %v8802_v41 = vcombine.low %v19618_v23, %v19617_v28  ;;  %v11950_v23 = vld [vmem:[%s18806_s7 + $0x70] ss:$8 sps:$4 sm:$0xff]  }
 0x547   : > { %v9289_v39 = vsel %vm6813_vm4, %v8784_v58, %v11825_v12  ;;  %v19621_v35 = vcombine.low %v18302_v57, %v18305_v7  ;;  %v11835_v58 = vunpack.i.l.bf16 %v18472_v1  ;;  %v11841_v57 = vunpack.i.h.bf16 %v18462_v2 }
 0x548   : > { %v9290_v14 = vsel %vm6813_vm4, %v8801_v62, %v11826_v36  ;;  %v8817_v21 = vrot.slane %v8803_v10, %v12188_v5  ;;  %v8810_v47 = vrot.slane %v8802_v41, %v12188_v5  ;;  %v11840_v7 = vunpack.i.l.bf16 %v18462_v2  ;;  %v11952_v41 = vld [vmem:[%s18806_s7 + $0x74] ss:$8 sps:$4 sm:$0xff]  }
 0x549   : > { %v9307_v2 = vsel %vm6813_vm4, %v18159_v53, %v11841_v57  ;;  %v19623_v9 = vcombine.low %v18067_v24, %v18082_v48  ;;  %10070 = vmatprep.subr.bf16.mxu0 %v11952_v41  ;;  %v11985_v41 = vld [vmem:[%s18808_s9 + $0x10] sm:$0xff]  }
 0x54a   : > { %9791 = vmatmul.mubr.bf16.gmra.mxu0 %v9318_v54  ;;  %v19622_v54 = vcombine.low %v18103_v50, %v18212_v27 }
 0x54b   : > { %v11849_v6 = vpop.permute.xlu1 %11848  ;;  %9798 = vmatprep.mubr.bf16.mxu0 %v9324_v17  ;;  %10071 = vmatpush1.bf16.msra.mxu0 %v11950_v23  ;;  %v11984_v23 = vld [vmem:[%s18808_s9 + $0x50] sm:$0xff]  }
 0x54c   : > { %v11844_v51 = vpop.permute.xlu0 %11843  ;;  %v11851_v61 = vunpack.i.h.bf16 %v11849_v6  ;;  %v11850_v16 = vunpack.i.l.bf16 %v11849_v6  ;;  %v9306_v17 = vsel %vm6813_vm4, %v19622_v54, %v11840_v7  ;;  %v11962_v7 = vld [vmem:[%s18806_s7 + $0x30] ss:$8 sps:$4 sm:$0xff]  }
 0x54d   : > { %v11846_v34 = vunpack.i.h.bf16 %v11844_v51  ;;  %v11845_v26 = vunpack.i.l.bf16 %v11844_v51  ;;  %v18526_v51 = vpop.f32.mrf.mxu1  ;;  %v9334_v44 = vpack.c.bf16 %v9307_v2, %v9306_v17  ;;  %v11965_v2 = vld [vmem:[%s18806_s7 + $0x20] ss:$8 sps:$4 sm:$0xff]  }
 0x54e   : > { %v9308_v19 = vsel %vm6813_vm4, %v9080_v13, %v11850_v16  ;;  %v9309_v32 = vsel %vm6813_vm4, %v9097_v63, %v11851_v61  ;;  %v19620_v63 = vld [vmem:[#allocation91_spill] sm:$0xff]  ;;  %v11836_v13 = vunpack.i.h.bf16 %v18472_v1  ;;  %v8818_v16 = vcombine.low %v8810_v47, %v8817_v21 }
 0x54f   : > { %v9293_v0 = vsel %vm6813_vm4, %v8852_v4, %v11845_v26  ;;  %v9294_v18 = vsel %vm6813_vm4, %v8869_v8, %v11846_v34  ;;  %v9339_v43 = vpack.c.bf16 %v9309_v32, %v9308_v19  ;;  %v8820_v8 = vcombine.low %v19616_v56, %v19615_v40  ;;  %v10909_v61 = vpop.f32.mrf.mxu1  ;;  %v11958_v21 = vld [vmem:[%s18806_s7 + $0x54] ss:$8 sps:$4 sm:$0xff]  }
 0x550   : > { %v11854_v29 = vpop.permute.xlu0 %11853  ;;  %v9333_v11 = vpack.c.bf16 %v9294_v18, %v9293_v0  ;;  %v8819_v25 = vcombine.low %v19620_v63, %v19619_v33  ;;  %v9323_v4 = vpack.c.bf16 %v9290_v14, %v9289_v39  ;;  %v9291_v1 = vsel %vm6813_vm4, %v8818_v16, %v11835_v58  ;;  %v11961_v61 = vld [vmem:[%s18806_s7 + $0x44] ss:$8 sps:$4 sm:$0xff]   ;;  %v11964_v16 = vld [vmem:[%s18806_s7 + $0x34] ss:$8 sps:$4 sm:$0xff]  }
 0x551   : > { %v11856_v60 = vunpack.i.h.bf16 %v11854_v29  ;;  %v11855_v59 = vunpack.i.l.bf16 %v11854_v29  ;;  %v8834_v6 = vrot.slane %v8820_v8, %v12188_v5  ;;  %v18537_v26 = vpop.f32.mrf.mxu1  ;;  %v9098_v18 = vcombine.low %v17754_v15, %v17744_v31 }
 0x552   : > { %v8827_v46 = vrot.slane %v8819_v25, %v12188_v5  ;;  %9799 = vmatmul.mubr.bf16.gmra.mxu0 %v9323_v4  ;;  %v8911_v15 = vrot.slane %v19623_v9, %v12188_v5  ;;  %v11978_v9 = vld [vmem:[%s18808_s9 + $0x68] sm:$0xff]  }
 0x553   : > { %v9295_v3 = vsel %vm6813_vm4, %v8886_v37, %v11855_v59  ;;  %v9296_v49 = vsel %vm6813_vm4, %v19621_v35, %v11856_v60  ;;  %9806 = vmatprep.mubr.bf16.mxu0 %v9329_v52  ;;  %v10910_v12 = vpop.f32.mrf.mxu1  ;;  %v11859_v52 = vpop.permute.xlu1 %11858  ;;  %v9105_v50 = vrot.slane %v9098_v18, %v12188_v5  ;;  %v11955_v35 = vld [vmem:[%s18806_s7 + $0x64] ss:$8 sps:$4 sm:$0xff]   ;;  %v12068_v18 = vmov 0  }
 0x554   : > { %v9338_v20 = vpack.c.bf16 %v9296_v49, %v9295_v3  ;;  %v8835_v34 = vcombine.low %v8827_v46, %v8834_v6  ;;  %v11860_v32 = vunpack.i.l.bf16 %v11859_v52  ;;  %v11861_v62 = vunpack.i.h.bf16 %v11859_v52  ;;  %v11953_v3 = vld [vmem:[%s18806_s7 + $0x60] ss:$8 sps:$4 sm:$0xff]   ;;  %10072 = vmatprep.subr.bf16.mxu0 %v11955_v35  ;;  %v11968_v52 = vld [vmem:[%s18806_s7 + $0x10] ss:$8 sps:$4 sm:$0xff]  }
 0x555   : > { %10073 = vmatpush1.bf16.msra.mxu0 %v11953_v3  ;;  %v11959_v46 = vld [vmem:[%s18806_s7 + $0x40] ss:$8 sps:$4 sm:$0xff]  }
 0x556   : > { %v9292_v36 = vsel %vm6813_vm4, %v8835_v34, %v11836_v13  ;;  %v9310_v53 = vsel %vm6813_vm4, %v9105_v50, %v11860_v32  ;;  %v9297_v31 = vsel %vm6813_vm4, %v8911_v15, %v11861_v62  ;;  %10074 = vmatprep.subr.bf16.mxu0 %v11958_v21  ;;  %v11971_v32 = vld [vmem:[%s18806_s7] ss:$8 sps:$4 sm:$0xff]   ;;  %v11974_v50 = vld [vmem:[%s18808_s9 + $0x78] sm:$0xff]   ;;  %v11977_v62 = vld [vmem:[%s18808_s9 + $0x30] sm:$0xff]  }
 0x557   : > { %v9328_v0 = vpack.c.bf16 %v9292_v36, %v9291_v1  ;;  %v9344_v22 = vpack.c.bf16 %v9310_v53, %v9310_v53  ;;  %v9343_v10 = vpack.c.bf16 %v9297_v31, %v9297_v31  ;;  %v11976_v53 = vld [vmem:[%s18808_s9 + $0x70] sm:$0xff]   ;;  %10773 = vmatprep.subr.bf16.mxu1 %v11974_v50 }
 0x55a   : > { %9807 = vmatmul.mubr.bf16.gmra.mxu0 %v9328_v0  ;;  %v11967_v0 = vld [vmem:[%s18806_s7 + $0x24] ss:$8 sps:$4 sm:$0xff]  }
 0x55b   : > { %9814 = vmatprep.mubr.bf16.mxu0 %v9334_v44  ;;  %v11970_v44 = vld [vmem:[%s18806_s7 + $0x14] ss:$8 sps:$4 sm:$0xff]  }
 0x55d   : > { %v18547_v42 = vpop.f32.mrf.mxu1 }
 0x55f   : > { %v10913_v19 = vpop.f32.mrf.mxu1 }
 0x560   : > { %v11973_v19 = vld [vmem:[%s18806_s7 + $0x4] ss:$8 sps:$4 sm:$0xff]  }
 0x561   : > { %v18551_v29 = vpop.f32.mrf.mxu1 }
 0x562   : > { %9815 = vmatmul.mubr.bf16.gmra.mxu0 %v9333_v11 }
 0x563   : > { %9822 = vmatprep.mubr.bf16.mxu0 %v9339_v43  ;;  %v10914_v27 = vpop.f32.mrf.mxu1 }
 0x564   : > { %v11975_v27 = vld [vmem:[%s18808_s9 + $0x38] sm:$0xff]  }
 0x565   : > { %10774 = vmatpush3.bf16.msra.mxu1 %v11975_v27 }
 0x566   : > { %10775 = vmatprep.subr.bf16.mxu1 %v11976_v53 }
 0x569   : > { %10776 = vmatpush3.bf16.msra.mxu1 %v11977_v62 }
 0x56a   : > { %9823 = vmatmul.mubr.bf16.gmra.mxu0 %v9338_v20  ;;  %v11956_v20 = vld [vmem:[%s18806_s7 + $0x50] ss:$8 sps:$4 sm:$0xff]   ;;  %10777 = vmatprep.subr.bf16.mxu1 %v11978_v9 }
 0x56b   : > { %9830 = vmatprep.mubr.bf16.mxu0 %v9344_v22  ;;  %10075 = vmatpush1.bf16.msra.mxu0 %v11956_v20 }
 0x56c   : > { %10076 = vmatprep.subr.bf16.mxu0 %v11961_v61 }
 0x56f   : > { %10077 = vmatpush1.bf16.msra.mxu0 %v11959_v46 }
 0x570   : > { %v18560_v11 = vpop.f32.mrf.mxu1  ;;  %10078 = vmatprep.subr.bf16.mxu0 %v11964_v16 }
 0x572   : > { %9831 = vmatmul.mubr.bf16.gmra.mxu0 %v9343_v10  ;;  %v10917_v43 = vpop.f32.mrf.mxu1  ;;  %v11979_v10 = vld [vmem:[%s18808_s9 + $0x28] sm:$0xff]  }
 0x573   : > { %10079 = vmatpush1.bf16.msra.mxu0 %v11962_v7  ;;  %10102 = vmatprep.mubr.bf16.mxu0 %v12068_v18  ;;  %v18699_v7 = vld [vmem:[%s18805_s6] ss:$0 sm:$0xff] }
 0x574   : > { %v18562_v60 = vpop.f32.mrf.mxu1  ;;  %10080 = vmatprep.subr.bf16.mxu0 %v11967_v0  ;;  %10778 = vmatpush3.bf16.msra.mxu1 %v11979_v10 }
 0x576   : > { %v10918_v59 = vpop.f32.mrf.mxu1 }
 0x577   : > { %10081 = vmatpush1.bf16.msra.mxu0 %v11965_v2  ;;  %v11980_v59 = vld [vmem:[%s18808_s9 + $0x60] sm:$0xff]  }
 0x578   : > { %10082 = vmatprep.subr.bf16.mxu0 %v11970_v44  ;;  %10779 = vmatprep.subr.bf16.mxu1 %v11980_v59 }
 0x57b   : > { %10083 = vmatpush1.bf16.msra.mxu0 %v11968_v52 }
 0x57c   : > { %10084 = vmatprep.subr.bf16.mxu0 %v11973_v19 }
 0x57f   : > { %10085 = vmatpush1.bf16.msra.mxu0 %v11971_v32 }
 0x583   : > { %v18564_v40 = vpop.f32.mrf.mxu1 }
 0x585   : > { %v10921_v56 = vpop.f32.mrf.mxu1 }
 0x587   : > { %v18566_v8 = vpop.f32.mrf.mxu1 }
 0x589   : > { %v10922_v37 = vpop.f32.mrf.mxu1 }
 0x58b   : > { %v18568_v28 = vpop.f32.mrf.mxu1 }
 0x58d   : > { %v10925_v24 = vpop.f32.mrf.mxu1 }
 0x58e   : > { %v11981_v24 = vld [vmem:[%s18808_s9 + $0x20] sm:$0xff]  }
 0x58f   : > { %v9923_v5 = vpop.f32.mrf.mxu1  ;;  %10780 = vmatpush3.bf16.msra.mxu1 %v11981_v24 }
 0x590   : > { %v11982_v5 = vld [vmem:[%s18808_s9 + $0x58] sm:$0xff]  }
 0x591   : > { %v10926_v48 = vpop.f32.mrf.mxu1  ;;  %10781 = vmatprep.subr.bf16.mxu1 %v11982_v5 }
 0x592   : > { %v11983_v48 = vld [vmem:[%s18808_s9 + $0x18] sm:$0xff]  }
 0x593   : > { %10782 = vmatpush3.bf16.msra.mxu1 %v11983_v48 }
 0x594   : > { %10783 = vmatprep.subr.bf16.mxu1 %v11984_v23 }
 0x597   : > { %10784 = vmatpush3.bf16.msra.mxu1 %v11985_v41 }
 0x5a6   : > { %v10662_v33 = vpop.f32.mrf.mxu0 }
 0x5a8   : > { %v10663_v63 = vpop.f32.mrf.mxu0 }
 0x5a9   : > { %v18576_v25 = vadd.f32 %v10663_v63, %v10662_v33  ;;  %v11986_v63 = vld [vmem:[%s18808_s9 + $0x48] sm:$0xff]  }
 0x5aa   : > { %v10665_v39 = vpop.f32.mrf.mxu0  ;;  %10785 = vmatprep.subr.bf16.mxu1 %v11986_v63 }
 0x5ac   : > { %v10666_v14 = vpop.f32.mrf.mxu0 }
 0x5ad   : > { %v18584_v49 = vadd.f32 %v10666_v14, %v10665_v39  ;;  %v11987_v39 = vld [vmem:[%s18808_s9 + $0x8] sm:$0xff]  }
 0x5ae   : > { %10786 = vmatpush3.bf16.msra.mxu1 %v11987_v39 }
 0x5af   : > { %v9700_v44 = vadd.f32 %v18584_v49, %v18699_v7 }
 0x5b4   : > { %v10668_v6 = vpop.f32.mrf.mxu0 }
 0x5b6   : > { %v10669_v4 = vpop.f32.mrf.mxu0 }
 0x5b7   : > { %v18592_v13 = vadd.f32 %v10669_v4, %v10668_v6 }
 0x5b8   : > { %v10671_v58 = vpop.f32.mrf.mxu0 }
 0x5b9   : > { %v9705_v27 = vadd.f32 %v18592_v13, %v18699_v7 }
 0x5ba   : > { %v10672_v47 = vpop.f32.mrf.mxu0 }
 0x5bb   : > { %v18600_v57 = vadd.f32 %v10672_v47, %v10671_v58 }
 0x5bd   : > { %v9708_v49 = vadd.f32 %v18600_v57, %v18699_v7 }
 0x5c4   : > { %v10674_v34 = vpop.f32.mrf.mxu0 }
 0x5c6   : > { %v10675_v1 = vpop.f32.mrf.mxu0 }
 0x5c7   : > { %v18608_v36 = vadd.f32 %v10675_v1, %v10674_v34  ;;  %v9697_v1 = vadd.f32 %v18576_v25, %v18699_v7 }
 0x5c8   : > { %v10677_v12 = vpop.f32.mrf.mxu0 }
 0x5ca   : > { %v10678_v54 = vpop.f32.mrf.mxu0 }
 0x5cb   : > { %v18610_v17 = vadd.f32 %v10678_v54, %v10677_v12 }
 0x5cd   : > { %v9716_v57 = vadd.f32 %v18610_v17, %v18699_v7 }
 0x5d3   : > { %v10680_v22 = vpop.f32.mrf.mxu0 }
 0x5d5   : > { %v10681_v15 = vpop.f32.mrf.mxu0 }
 0x5d6   : > { %v18645_v31 = vadd.f32 %v10681_v15, %v10680_v22 }
 0x5d7   : > { %v10683_v43 = vpop.f32.mrf.mxu0 }
 0x5d9   : > { %v10684_v56 = vpop.f32.mrf.mxu0 }
 0x5da   : > { %v18653_v37 = vadd.f32 %v10684_v56, %v10683_v43 }
 0x5dc   : > { %v9724_v17 = vadd.f32 %v18653_v37, %v18699_v7 }
 0x5e3   : > { %v18670_v33 = vpop.f32.mrf.mxu0 }
 0x5e5   : > { %v18678_v14 = vpop.f32.mrf.mxu0 }
 0x5e7   : > { %v18680_v3 = vpop.f32.mrf.mxu0 }
 0x5e9   : > { %v18682_v35 = vpop.f32.mrf.mxu0 }
 0x5ea   : > { %v10691_v37 = vadd.f32 %v18682_v35, %v18680_v3 }
 0x5f2   : > { %v18684_v20 = vpop.f32.mrf.mxu0 }
 0x5f4   : > { %v18686_v21 = vpop.f32.mrf.mxu0 }
 0x5f6   : > { %v18688_v6 = vpop.f32.mrf.mxu0 }
 0x5f8   : > { %v18690_v4 = vpop.f32.mrf.mxu0 }
 0x5f9   : > { %v10697_v3 = vadd.f32 %v18690_v4, %v18688_v6 }
 0x5fa   : > { %v18692_v58 = vpop.f32.mrf.mxu0 }
 0x5fc   : > { %v18694_v47 = vpop.f32.mrf.mxu0 }
 0x5fe   : > { %v10701_v46 = vpop.f32.mrf.mxu0 }
 0x600   : > { %v10702_v61 = vpop.f32.mrf.mxu0 }
 0x602   : > { %v10720_v16 = vpop.f32.mrf.mxu0 }
 0x604   : > { %v10721_v34 = vpop.f32.mrf.mxu0 }
 0x605   : > { %v10722_v12 = vadd.f32 %v10721_v34, %v10720_v16 }
 0x606   : > { %v10723_v54 = vpop.f32.mrf.mxu0 }
 0x607   : > { %v9785_v2 = vadd.f32 %v10722_v12, %v9697_v1 }
 0x608   : > { %v10724_v0 = vpop.f32.mrf.mxu0 }
 0x609   : > { %v10725_v52 = vadd.f32 %v10724_v0, %v10723_v54  ;;  %v9873_v19 = vadd.f32 %v18366_v38, %v9785_v2 }
 0x60a   : > { %v10726_v18 = vpop.f32.mrf.mxu0 }
 0x60b   : > { %v9788_v32 = vadd.f32 %v10725_v52, %v9700_v44  ;;  %v9926_v22 = vmax.f32 %v9873_v19, 0.0 }
 0x60c   : > { %v10727_v50 = vpop.f32.mrf.mxu0 }
 0x60d   : > { %v9876_v53 = vadd.f32 %v18370_v55, %v9788_v32  ;;  %v10728_v62 = vadd.f32 %v10727_v50, %v10726_v18  ;;  %v9713_v55 = vadd.f32 %v18608_v36, %v18699_v7  ;;  %v9721_v36 = vadd.f32 %v18645_v31, %v18699_v7 }
 0x60e   : > { %v10729_v25 = vpop.f32.mrf.mxu0 }
 0x60f   : > { %v9927_v9 = vmax.f32 %v9876_v53, 0.0  ;;  %v9793_v15 = vadd.f32 %v10728_v62, %v9705_v27 }
 0x610   : > { %v10730_v10 = vpop.f32.mrf.mxu0 }
 0x611   : > { %v9939_v43 = vadd.f32 %v9927_v9, %v9926_v22  ;;  %v9881_v59 = vadd.f32 %v18447_v45, %v9793_v15  ;;  %v10731_v38 = vadd.f32 %v10730_v10, %v10729_v25 }
 0x612   : > { %v10732_v56 = vpop.f32.mrf.mxu0 }
 0x613   : > { %v9928_v24 = vmax.f32 %v9881_v59, 0.0  ;;  %v9796_v5 = vadd.f32 %v10731_v38, %v9708_v49 }
 0x614   : > { %v10733_v48 = vpop.f32.mrf.mxu0 }
 0x615   : > { %v9940_v13 = vadd.f32 %v9939_v43, %v9928_v24  ;;  %v9884_v23 = vadd.f32 %v18475_v30, %v9796_v5  ;;  %v10734_v41 = vadd.f32 %v10733_v48, %v10732_v56  ;;  %v9732_v24 = vadd.f32 %v10691_v37, %v18699_v7 }
 0x616   : > { %v10735_v63 = vpop.f32.mrf.mxu0 }
 0x617   : > { %v9929_v39 = vmax.f32 %v9884_v23, 0.0  ;;  %v9801_v46 = vadd.f32 %v10734_v41, %v9713_v55 }
 0x618   : > { %v10736_v61 = vpop.f32.mrf.mxu0 }
 0x619   : > { %v9941_v45 = vadd.f32 %v9940_v13, %v9929_v39  ;;  %v9889_v16 = vadd.f32 %v18526_v51, %v9801_v46  ;;  %v10737_v34 = vadd.f32 %v10736_v61, %v10735_v63  ;;  %v10688_v51 = vadd.f32 %v18678_v14, %v18670_v33 }
 0x61a   : > { %v10738_v1 = vpop.f32.mrf.mxu0  ;;  %v10700_v39 = vadd.f32 %v18694_v47, %v18692_v58 }
 0x61b   : > { %v9930_v12 = vmax.f32 %v9889_v16, 0.0  ;;  %v9804_v54 = vadd.f32 %v10737_v34, %v9716_v57 }
 0x61c   : > { %v10739_v2 = vpop.f32.mrf.mxu0  ;;  %v9745_v6 = vadd.f32 %v10700_v39, %v18699_v7 }
 0x61d   : > { %v9942_v30 = vadd.f32 %v9941_v45, %v9930_v12  ;;  %v9892_v0 = vadd.f32 %v18537_v26, %v9804_v54  ;;  %v10740_v44 = vadd.f32 %v10739_v2, %v10738_v1  ;;  %v9729_v26 = vadd.f32 %v10688_v51, %v18699_v7 }
 0x61e   : > { %v10741_v52 = vpop.f32.mrf.mxu0 }
 0x61f   : > { %v9931_v18 = vmax.f32 %v9892_v0, 0.0  ;;  %v9809_v19 = vadd.f32 %v10740_v44, %v9721_v36 }
 0x620   : > { %v10742_v32 = vpop.f32.mrf.mxu0 }
 0x621   : > { %v9943_v50 = vadd.f32 %v9942_v30, %v9931_v18  ;;  %v9897_v27 = vadd.f32 %v18547_v42, %v9809_v19  ;;  %v10743_v53 = vadd.f32 %v10742_v32, %v10741_v52  ;;  %v10694_v42 = vadd.f32 %v18686_v21, %v18684_v20 }
 0x622   : > { %v10744_v62 = vpop.f32.mrf.mxu0 }
 0x623   : > { %v9932_v31 = vmax.f32 %v9897_v27, 0.0  ;;  %v9812_v25 = vadd.f32 %v10743_v53, %v9724_v17  ;;  %v9737_v13 = vadd.f32 %v10694_v42, %v18699_v7  ;;  %v11988_v27 = vld [vmem:[%s18808_s9 + $0x40] sm:$0xff]  }
 0x624   : > { %v10745_v22 = vpop.f32.mrf.mxu0  ;;  %10787 = vmatprep.subr.bf16.mxu1 %v11988_v27  ;;  %v19624_v53 = vld [vmem:[#allocation5_spill] sm:$0xff] }
 0x625   : > { %v9944_v9 = vadd.f32 %v9943_v50, %v9932_v31  ;;  %v9900_v15 = vadd.f32 %v18551_v29, %v9812_v25  ;;  %v10746_v10 = vadd.f32 %v10745_v22, %v10744_v62  ;;  %v10062_v62 = vsub.s32 0, %v19624_v53  ;;  %v9978_v31 = vld [vmem:[%s18807_s8] sm:$0x3] }
 0x626   : > { %v10747_v49 = vpop.f32.mrf.mxu0  ;;  %v10066_v25 = vsub.s32 1, %v19624_v53 }
 0x627   : > { %v9933_v43 = vmax.f32 %v9900_v15, 0.0  ;;  %v9817_v33 = vadd.f32 %v10746_v10, %v9729_v26  ;;  %v10063_v22 = vrot.slane %v9978_v31, %v10062_v62 }
 0x628   : > { %v10748_v14 = vpop.f32.mrf.mxu0  ;;  %v10067_v26 = vrot.slane %v9978_v31, %v10066_v25 }
 0x629   : > { %v9945_v59 = vadd.f32 %v9944_v9, %v9933_v43  ;;  %v9905_v38 = vadd.f32 %v18560_v11, %v9817_v33  ;;  %v10749_v56 = vadd.f32 %v10748_v14, %v10747_v49  ;;  %v9740_v11 = vadd.f32 %v10697_v3, %v18699_v7 }
 0x62a   : > { %v10750_v5 = vpop.f32.mrf.mxu0 }
 0x62b   : > { %v9934_v48 = vmax.f32 %v9905_v38, 0.0  ;;  %v9820_v29 = vadd.f32 %v10749_v56, %v9732_v24 }
 0x62c   : > { %v10751_v55 = vpop.f32.mrf.mxu0 }
 0x62d   : > { %v9946_v35 = vadd.f32 %v9945_v59, %v9934_v48  ;;  %v10752_v23 = vadd.f32 %v10751_v55, %v10750_v5  ;;  %v9908_v20 = vadd.f32 %v18562_v60, %v9820_v29  ;;  %v10145_v59 = vld [vmem:[%s18809_s10] sm:$0x1] }
 0x62e   : > { %v10753_v41 = vpop.f32.mrf.mxu0 }
 0x62f   : > { %v9825_v63 = vadd.f32 %v10752_v23, %v9737_v13  ;;  %v9935_v16 = vmax.f32 %v9908_v20, 0.0 }
 0x630   : > { %v10754_v21 = vpop.f32.mrf.mxu0 }
 0x631   : > { %v10755_v46 = vadd.f32 %v10754_v21, %v10753_v41  ;;  %v9913_v61 = vadd.f32 %v18564_v40, %v9825_v63  ;;  %v9947_v2 = vadd.f32 %v9946_v35, %v9935_v16 }
 0x632   : > { %v10756_v57 = vpop.f32.mrf.mxu0 }
 0x633   : > { %v9828_v45 = vadd.f32 %v10755_v46, %v9740_v11  ;;  %v9936_v12 = vmax.f32 %v9913_v61, 0.0 }
 0x634   : > { %v10757_v34 = vpop.f32.mrf.mxu0 }
 0x635   : > { %v9916_v4 = vadd.f32 %v18566_v8, %v9828_v45  ;;  %v10758_v1 = vadd.f32 %v10757_v34, %v10756_v57  ;;  %v9948_v47 = vadd.f32 %v9947_v2, %v9936_v12 }
 0x636   : > { %v10759_v60 = vpop.f32.mrf.mxu0 }
 0x637   : > { %v9833_v54 = vadd.f32 %v10758_v1, %v9745_v6  ;;  %v9937_v36 = vmax.f32 %v9916_v4, 0.0 }
 0x638   : > { %v10760_v30 = vpop.f32.mrf.mxu0 }
 0x639   : > { %v9921_v58 = vadd.f32 %v18568_v28, %v9833_v54  ;;  %v9949_v0 = vadd.f32 %v9948_v47, %v9937_v36  ;;  %v11989_v28 = vld [vmem:[%s18808_s9] sm:$0xff]  }
 0x63a   : > { %10788 = vmatpush3.bf16.msra.mxu1 %v11989_v28 }
 0x63b   : > { %v9938_v40 = vmax.f32 %v9921_v58, 0.0 }
 0x63d   : > { %v9951_v44 = vsel %vm9950_vm6, %v9938_v40, 0.0 }
 0x63e   : > { %v9952_v52 = vadd.f32 %v9951_v44, %v9949_v0 }
 0x640   : > { %v9953_v18 = vrot.slane %v9952_v52, 4 }
 0x642   : > { %v9954_v19 = vadd.f32 %v9953_v18, %v9952_v52 }
 0x644   : > { %v9955_v7 = vrot.slane %v9954_v19, 2 }
 0x646   : > { %v9956_v17 = vadd.f32 %v9955_v7, %v9954_v19 }
 0x648   : > { %v9957_v8 = vrot.slane %v9956_v17, 1 }
 0x64a   : > { %v9958_v32 = vadd.f32 %v9957_v8, %v9956_v17 }
 0x64c   : > { %v9960_v51 = vmul.f32 0.01, %v9958_v32 }
 0x64e   : > { %v9961_v50 = vpack.c.bf16 %v9960_v51, %v9960_v51 }
 0x650   : > { %10103 = vmatmul.mubr.bf16.vlgmr.msra.gmra.mxu0 %v9961_v50 }
 0x710   : > { %v10104_v9 = vpop.f32.mrf.mxu0 }
 0x711   : > { %v10105_v15 = vadd.f32 %v10104_v9, %v10063_v22 }
 0x712   : > { %v10106_v10 = vpop.f32.mrf.mxu0 }
 0x713   : > { %v10107_v37 = vadd.f32 %v10106_v10, %v10067_v26  ;;  %v10111_v33 = vpack.c.bf16 %v10105_v15, %v10105_v15 }
 0x714   : > { %v10108_v49 = vpop.f32.mrf.mxu0 }
 0x715   : > { %v10112_v43 = vpack.c.bf16 %v10107_v37, %v10107_v37 }
 0x716   : > { %v10109_v14 = vpop.f32.mrf.mxu0 }
 0x717   : > { %10274 = vmatprep.mubr.bf16.mxu1 %v10112_v43 }
 0x718   : > { %10275 = vmatmul.mubr.bf16.vlgmr.msra.gmra.mxu1 %v10111_v33 }
 0x7d8   : > { %v10789_v42 = vpop.f32.mrf.mxu1 }
 0x7da   : > { %v10790_v38 = vpop.f32.mrf.mxu1 }
 0x7db   : > { %v10791_v56 = vadd.f32 %v10790_v38, %v10789_v42 }
 0x7dc   : > { %v10792_v24 = vpop.f32.mrf.mxu1 }
 0x7dd   : > { %v10277_v5 = vadd.f32 %v10791_v56, %v10145_v59 }
 0x7de   : > { %v10793_v48 = vpop.f32.mrf.mxu1 }
 0x7df   : > { %10283 = vst.msk [vmem:[%s378_s22] sm:$0x1] %vm10282_vm7, %v10277_v5 }
 0x7e0   : > { %12004 = shalt.err (!%p12001_p3)
}
 0x7e1   : > { %s12005_s24 = scalar_lea.hbm %s18764_s14, 16  ;;  %s12009_s13 = scalar_lea.hbm %s18810_s11, 32 }
 0x7e2   : > { %p12006_p4 = scmp.ne.s32.totalorder %s18764_s14, %s12005_s24  ;;  %p12010_p9 = scmp.lt.s32.totalorder %s18764_s14, %s18810_s11 }
 0x7e3   : > { %p12011_p10 = scmp.lt.s32.totalorder %s12009_s13, %s12005_s24 }
 0x7e4   : > { %p12007_p7 = pnand %p12006_p4, %p12168_p5 }
 0x7e5   : > { %p12012_p11 = por %p12011_p10, %p12010_p9 }
 0x7e6   : > { %p12008_p8 = pneg %p12007_p7 }
 0x7e8   : > { %p12013_p12 = pnand %p12012_p11, %p12008_p8 }
 0x7ea   : > { %12016 = shalt.err (!%p12013_p12)
}
 0x7eb   : > { %10927 = dma.vmem_to_hbm [thread:$0]  (%p12168_p5), %s10298_s25, 16, %s18764_s14, %s10285_s16  }
 0x7ec PF: > { %p10933_p13 = scmp.ge.s32.totalorder %s12051_s20, 2  ;;  %s10309_s0 = sand.u32 1, %s12039_s17  }
 0x7ed   : > { %s10310_s30 = scalar_lea.sflag [#allocation3], %s10309_s0 }
 0x7ee   : > { %p10930_p0 = pnand %p10933_p13, %p12172_p6 }
 0x7f0   : > { %p10931_p1 = pneg %p10930_p0 }
 0x7f2   : > { %12034 = dma.done.wait (%p10931_p1), %s10310_s30, 16  }
 0x7f3   : > { %12036 = vsyncadd (%p10931_p1), %s10310_s30, 4294967280  ;;  %p21_p2 = scmp.ge.s32.totalorder %s12155_s23, 4   ;;  %s19625_s17 = smov %s12043_s18 }
 0x7f4   : > { %s19626_s18 = smov %s12047_s19  ;;  %s19627_s19 = smov %s12166_s26 }
 0x7f5   : > { %s19628_s20 = smov %s12155_s23  ;;  %23 = sbr.rel (!%p21_p2) target bundleno = 5 (0x5), region = 99 }
 0x7fa   :  { %10314 = vsyncpa [#allocation3], 1 }
 0x7fb   :  { %10316 = vsyncpa [#allocation3 + $0x1], 1 }

</bundles_post_ra>
